<compile_context>
chip_gen: v7x
topology: tpu7x:2x2x1
jax: 0.10.0
libtpu: 0.0.40
codegen_flags: <defaults>
</compile_context>

<pallas_src>
import functools
import math

import jax
import jax.numpy as jnp
from jax import lax
from jax.experimental import pallas as pl
from jax.experimental.pallas import tpu as pltpu

# ----------------------------------------------------------------------------
# "Constants" from kanachan (chosen small for the synthetic example).
# ----------------------------------------------------------------------------
NUM_TYPES_OF_SPARSE_FEATURES = 10
NUM_NUMERIC_FEATURES = 4
NUM_TYPES_OF_PROGRESSION_FEATURES = 12
MAX_LENGTH_OF_PROGRESSION_FEATURES = 8
NUM_TYPES_OF_ACTIONS = 16

# Model hyper-parameters (small but consistent with the module).
DIMENSION = 32
NUM_HEADS = 2
DIM_FEEDFORWARD = 64
NUM_LAYERS = 2

# Sequence lengths for the synthetic inputs.
SPARSE_LEN = 8
PROGRESSION_LEN = MAX_LENGTH_OF_PROGRESSION_FEATURES  # 8
CANDIDATES_LEN = 4
TOTAL_LEN = SPARSE_LEN + NUM_NUMERIC_FEATURES + PROGRESSION_LEN + CANDIDATES_LEN  # 24


# ----------------------------------------------------------------------------
# Pallas kernel: the FULL TransformerEncoder (all layers fused), post-norm,
# batch_first, eval mode (dropout = identity), ReLU activation.
# ----------------------------------------------------------------------------
def fused_encoder_kernel(
    x_ref,        # (Bt, S, D)  f32
    wqkv_ref,     # (L, D, 3D)  bf16   fused [q|k|v] projection (q pre-scaled)
    bqkv_ref,     # (L, 1, 3D)  f32    fused [q|k|v] bias (q pre-scaled)
    wo_ref,       # (L, D, D)   bf16   output projection
    w1_ref,       # (L, D, F)   bf16
    b1_ref,       # (L, 1, F)   f32
    w2_ref,       # (L, F, D)   bf16
    smalls_ref,   # (L, 6, D)   f32    rows: bo, ln1_g, ln1_b, b2, ln2_g, ln2_b
    o_ref,        # (Bt, S, D)
    *, num_layers: int, num_heads: int,
):
    Bt, S, D = x_ref.shape
    head_dim = D // num_heads

    x2 = x_ref[...].reshape(Bt * S, D).astype(jnp.float32)   # (Bt*S, D) f32

    for l in range(num_layers):                 # statically unrolled (L=2)
        wqkv = wqkv_ref[l]                      # (D, 3D) bf16
        bqkv = bqkv_ref[l]                      # (1, 3D) f32
        wo = wo_ref[l]                          # (D, D)  bf16
        w1 = w1_ref[l]                          # (D, F)  bf16
        b1 = b1_ref[l]                          # (1, F)  f32
        w2 = w2_ref[l]                          # (F, D)  bf16
        smalls = smalls_ref[l]                  # (6, D)  f32
        bo, g1, be1 = smalls[0:1], smalls[1:2], smalls[2:3]
        b2, g2, be2 = smalls[3:4], smalls[4:5], smalls[5:6]

        # --- Multi-head self-attention: single fused QKV matmul ---------------
        qkv = jnp.dot(x2.astype(jnp.bfloat16), wqkv,
                      preferred_element_type=jnp.float32) + bqkv   # (Bt*S, 3D)
        qkv3 = qkv.reshape(Bt, S, 3 * D)                            # free split

        head_outs = []
        for h in range(num_heads):              # H=2, static lane slices
            q = qkv3[:, :, h * head_dim:(h + 1) * head_dim]              # (Bt,S,Dh)
            k = qkv3[:, :, D + h * head_dim:D + (h + 1) * head_dim]
            v = qkv3[:, :, 2 * D + h * head_dim:2 * D + (h + 1) * head_dim]

            s = lax.dot_general(                                          # (Bt,S,S)
                q.astype(jnp.bfloat16), k.astype(jnp.bfloat16),
                dimension_numbers=(((2,), (2,)), ((0,), (0,))),
                preferred_element_type=jnp.float32)
            s = s - jnp.max(s, axis=-1, keepdims=True)
            p = jnp.exp(s)
            p = p * pl.reciprocal(jnp.sum(p, axis=-1, keepdims=True),
                                  approx=True)

            ah = lax.dot_general(                                         # (Bt,S,Dh)
                p.astype(jnp.bfloat16), v.astype(jnp.bfloat16),
                dimension_numbers=(((2,), (1,)), ((0,), (0,))),
                preferred_element_type=jnp.float32)
            head_outs.append(ah)

        ah_cat = jnp.concatenate(head_outs, axis=-1)            # (Bt, S, D)
        ah2 = ah_cat.reshape(Bt * S, D)                         # free collapse
        attn = jnp.dot(ah2.astype(jnp.bfloat16), wo,
                       preferred_element_type=jnp.float32) + bo  # (Bt*S, D)

        # --- Residual + LayerNorm 1 (one-pass variance) -----------------------
        y = x2 + attn
        mu = jnp.mean(y, axis=-1, keepdims=True)
        var = jnp.mean(y * y, axis=-1, keepdims=True) - mu * mu
        y = (y - mu) * lax.rsqrt(var + 1e-5) * g1 + be1

        # --- Feed-forward (ReLU) ----------------------------------------------
        ff = jnp.dot(y.astype(jnp.bfloat16), w1,
                     preferred_element_type=jnp.float32) + b1
        ff = jnp.maximum(ff, 0.0)
        ff = jnp.dot(ff.astype(jnp.bfloat16), w2,
                     preferred_element_type=jnp.float32) + b2

        # --- Residual + LayerNorm 2 (one-pass variance) -----------------------
        z = y + ff
        mu = jnp.mean(z, axis=-1, keepdims=True)
        var = jnp.mean(z * z, axis=-1, keepdims=True) - mu * mu
        z = (z - mu) * lax.rsqrt(var + 1e-5) * g2 + be2

        x2 = z

    o_ref[...] = x2.reshape(Bt, S, D).astype(o_ref.dtype)


def _choose_block_batch(batch, seq):
    """Rows per block ~256 (MXU), but >=2 grid blocks when batch allows (v7x)."""
    bt = min(batch, max(1, -(-256 // seq)))
    if batch >= 2:
        bt = min(bt, -(-batch // 2))
    return max(bt, 1)


def encoder_transformer(x, enc, *, num_heads, num_layers, block_batch=None):
    """x: (B, S, D) float32; enc: dict of layer-stacked weights."""
    B, S, D = x.shape
    L = enc["wqkv"].shape[0]
    threeD = enc["wqkv"].shape[2]
    F = enc["w1"].shape[2]

    if block_batch is None:
        block_batch = _choose_block_batch(B, S)
    Bp = -(-B // block_batch) * block_batch
    if Bp != B:
        x = jnp.pad(x, ((0, Bp - B), (0, 0), (0, 0)))

    def full(shape):
        return pl.BlockSpec(shape, lambda b, n=len(shape): (0,) * n)

    in_specs = [
        pl.BlockSpec((block_batch, S, D), lambda b: (b, 0, 0)),   # x
        full((L, D, threeD)),                                     # wqkv (bf16)
        full((L, 1, threeD)),                                     # bqkv
        full((L, D, D)),                                          # wo   (bf16)
        full((L, D, F)),                                          # w1   (bf16)
        full((L, 1, F)),                                          # b1
        full((L, F, D)),                                          # w2   (bf16)
        full((L, 6, D)),                                          # packed small params
    ]
    out_spec = pl.BlockSpec((block_batch, S, D), lambda b: (b, 0, 0))

    kernel = functools.partial(
        fused_encoder_kernel, num_layers=num_layers, num_heads=num_heads)

    out = pl.pallas_call(
        kernel,
        out_shape=jax.ShapeDtypeStruct((Bp, S, D), jnp.float32),
        grid=(Bp // block_batch,),
        in_specs=in_specs,
        out_specs=out_spec,
        compiler_params=pltpu.CompilerParams(dimension_semantics=("parallel",)),
    )(x, enc["wqkv"], enc["bqkv"], enc["wo"], enc["w1"], enc["b1"],
      enc["w2"], enc["smalls"])
    return out[:B]


# ----------------------------------------------------------------------------
# Parameter initialization (deterministic, synthetic) and layer packing
# ----------------------------------------------------------------------------
def pack_layer_params(layers, num_heads):
    """Stack per-layer weights: fused bf16 QKV (q pre-scaled), bf16 mats, packed smalls."""
    D = layers[0]["wq"].shape[0]
    Dh = D // num_heads
    scale = 1.0 / math.sqrt(Dh)

    wqkv, bqkv, wo, w1, b1, w2, smalls = [], [], [], [], [], [], []
    for lp in layers:
        wq = lp["wq"] * scale                # fold 1/sqrt(Dh) into q projection
        bq = lp["bq"] * scale
        wqkv.append(jnp.concatenate([wq, lp["wk"], lp["wv"]], axis=-1)
                    .astype(jnp.bfloat16))                       # (D, 3D)
        bqkv.append(jnp.concatenate([bq, lp["bk"], lp["bv"]], axis=-1))  # (1, 3D)

        wo.append(lp["wo"].astype(jnp.bfloat16))                 # (D, D)
        w1.append(lp["w1"].astype(jnp.bfloat16))                 # (D, F)
        b1.append(lp["b1"])                                      # (1, F)
        w2.append(lp["w2"].astype(jnp.bfloat16))                 # (F, D)
        smalls.append(jnp.concatenate(
            [lp["bo"], lp["ln1_g"], lp["ln1_b"],
             lp["b2"], lp["ln2_g"], lp["ln2_b"]], axis=0))       # (6, D)

    return {
        "wqkv": jnp.stack(wqkv), "bqkv": jnp.stack(bqkv), "wo": jnp.stack(wo),
        "w1": jnp.stack(w1), "b1": jnp.stack(b1), "w2": jnp.stack(w2),
        "smalls": jnp.stack(smalls),
    }


def init_params(key):
    ks = iter(jax.random.split(key, 64))
    D, F = DIMENSION, DIM_FEEDFORWARD

    def nrm(k, shape, s=0.02):
        return jax.random.normal(k, shape, jnp.float32) * s

    params = {}
    # Embedding tables (padding rows zeroed, as with nn.Embedding padding_idx).
    sparse_tbl = jax.random.normal(next(ks), (NUM_TYPES_OF_SPARSE_FEATURES + 1, D), jnp.float32)
    sparse_tbl = sparse_tbl.at[NUM_TYPES_OF_SPARSE_FEATURES].set(0.0)
    prog_tbl = jax.random.normal(next(ks), (NUM_TYPES_OF_PROGRESSION_FEATURES + 1, D), jnp.float32)
    prog_tbl = prog_tbl.at[NUM_TYPES_OF_PROGRESSION_FEATURES].set(0.0)
    cand_tbl = jax.random.normal(next(ks), (NUM_TYPES_OF_ACTIONS + 2, D), jnp.float32)
    cand_tbl = cand_tbl.at[NUM_TYPES_OF_ACTIONS + 1].set(0.0)
    params["sparse_tbl"] = sparse_tbl
    params["prog_tbl"] = prog_tbl
    params["cand_tbl"] = cand_tbl
    # numeric_embedding ~ N(0, 1), shape (NUM_NUMERIC_FEATURES, D - 1)
    params["numeric_emb"] = jax.random.normal(next(ks), (NUM_NUMERIC_FEATURES, D - 1), jnp.float32)

    layers = []
    for _ in range(NUM_LAYERS):
        lp = {
            "wq": nrm(next(ks), (D, D)), "wk": nrm(next(ks), (D, D)), "wv": nrm(next(ks), (D, D)),
            "bq": jnp.zeros((1, D), jnp.float32),
            "bk": jnp.zeros((1, D), jnp.float32),
            "bv": jnp.zeros((1, D), jnp.float32),
            "wo": nrm(next(ks), (D, D)), "bo": jnp.zeros((1, D), jnp.float32),
            "ln1_g": jnp.ones((1, D), jnp.float32), "ln1_b": jnp.zeros((1, D), jnp.float32),
            "w1": nrm(next(ks), (D, F)), "b1": jnp.zeros((1, F), jnp.float32),
            "w2": nrm(next(ks), (F, D)), "b2": jnp.zeros((1, D), jnp.float32),
            "ln2_g": jnp.ones((1, D), jnp.float32), "ln2_b": jnp.zeros((1, D), jnp.float32),
        }
        layers.append(lp)
    params["enc"] = pack_layer_params(layers, NUM_HEADS)
    return params


def sinusoidal_positional_encoding(length, dim):
    pos = jnp.arange(length, dtype=jnp.float32)[:, None]
    i = jnp.arange(dim, dtype=jnp.float32)[None, :]
    angle = pos / jnp.power(10000.0, (2.0 * jnp.floor(i / 2.0)) / dim)
    pe = jnp.where((jnp.arange(dim) % 2) == 0, jnp.sin(angle), jnp.cos(angle))
    return pe  # (length, dim)


# ----------------------------------------------------------------------------
# Full Encoder forward
# ----------------------------------------------------------------------------
@jax.jit
def encoder_forward(params, sparse, numeric, progression, candidates):
    B = sparse.shape[0]
    D = DIMENSION

    # sparse embedding lookup
    sparse_e = jnp.take(params["sparse_tbl"], sparse, axis=0)          # (B, Ls, D)

    # numeric: unsqueeze(-1) then concat with broadcast numeric_embedding
    numeric_v = numeric[..., None]                                     # (B, Nn, 1)
    numeric_e = jnp.broadcast_to(params["numeric_emb"][None],
                                 (B, NUM_NUMERIC_FEATURES, D - 1))
    numeric_e = jnp.concatenate((numeric_v, numeric_e), axis=-1)       # (B, Nn, D)

    # progression: embedding + sinusoidal positional encoding
    prog_e = jnp.take(params["prog_tbl"], progression, axis=0)         # (B, Lp, D)
    prog_e = prog_e + sinusoidal_positional_encoding(progression.shape[1], D)[None]

    # candidates embedding lookup
    cand_e = jnp.take(params["cand_tbl"], candidates, axis=0)          # (B, Lc, D)

    embedding = jnp.concatenate((sparse_e, numeric_e, prog_e, cand_e), axis=1)

    # TransformerEncoder: all layers fused into one Pallas kernel call.
    # (checkpointing only affects training memory, not forward math)
    return encoder_transformer(embedding, params["enc"],
                               num_heads=NUM_HEADS, num_layers=NUM_LAYERS)


# ----------------------------------------------------------------------------
if __name__ == "__main__":
    key = jax.random.PRNGKey(0)
    k_par, k_sp, k_num, k_pr, k_cd = jax.random.split(key, 5)

    B = 16  # small, but enough to exercise batch-blocking (grid=(2,), Bt=8)
    params = init_params(k_par)

    sparse = jax.random.randint(k_sp, (B, SPARSE_LEN), 0, NUM_TYPES_OF_SPARSE_FEATURES + 1)
    numeric = jax.random.normal(k_num, (B, NUM_NUMERIC_FEATURES), jnp.float32)
    progression = jax.random.randint(k_pr, (B, PROGRESSION_LEN), 0,
                                     NUM_TYPES_OF_PROGRESSION_FEATURES + 1)
    candidates = jax.random.randint(k_cd, (B, CANDIDATES_LEN), 0, NUM_TYPES_OF_ACTIONS + 2)

    out = encoder_forward(params, sparse, numeric, progression, candidates)
    out = jax.block_until_ready(out)

    assert out.shape == (B, TOTAL_LEN, DIMENSION), out.shape
    assert bool(jnp.all(jnp.isfinite(out)))
    print("KERNEL_OK")
</pallas_src>

<mosaic_0001>
module attributes {stable_mosaic.version = 11 : i64} {
  func.func @fused_encoder_kernel(%arg0: i32, %arg1: memref<8x24x32xf32, #tpu.memory_space<vmem>>, %arg2: memref<2x32x96xbf16, #tpu.memory_space<vmem>>, %arg3: memref<2x1x96xf32, #tpu.memory_space<vmem>>, %arg4: memref<2x32x32xbf16, #tpu.memory_space<vmem>>, %arg5: memref<2x32x64xbf16, #tpu.memory_space<vmem>>, %arg6: memref<2x1x64xf32, #tpu.memory_space<vmem>>, %arg7: memref<2x64x32xbf16, #tpu.memory_space<vmem>>, %arg8: memref<2x6x32xf32, #tpu.memory_space<vmem>>, %arg9: memref<8x24x32xf32, #tpu.memory_space<vmem>>) attributes {dimension_semantics = [#tpu.dimension_semantics<parallel>], iteration_bounds = array<i64: 2>, scalar_prefetch = 0 : i64, scratch_operands = 0 : i64, tpu.core_type = #tpu.core_type<tc>, window_params = [{transform_indices = @transform_0, window_bounds = array<i64: 8, 24, 32>}, {pipeline_mode = #tpu.pipeline_mode<synchronous>, transform_indices = @transform_1, window_bounds = array<i64: 2, 32, 96>}, {pipeline_mode = #tpu.pipeline_mode<synchronous>, transform_indices = @transform_2, window_bounds = array<i64: 2, 1, 96>}, {pipeline_mode = #tpu.pipeline_mode<synchronous>, transform_indices = @transform_3, window_bounds = array<i64: 2, 32, 32>}, {pipeline_mode = #tpu.pipeline_mode<synchronous>, transform_indices = @transform_4, window_bounds = array<i64: 2, 32, 64>}, {pipeline_mode = #tpu.pipeline_mode<synchronous>, transform_indices = @transform_5, window_bounds = array<i64: 2, 1, 64>}, {pipeline_mode = #tpu.pipeline_mode<synchronous>, transform_indices = @transform_6, window_bounds = array<i64: 2, 64, 32>}, {pipeline_mode = #tpu.pipeline_mode<synchronous>, transform_indices = @transform_7, window_bounds = array<i64: 2, 6, 32>}, {transform_indices = @transform_8, window_bounds = array<i64: 8, 24, 32>}]} {
    %c0 = arith.constant 0 : index
    %c0_0 = arith.constant 0 : index
    %c0_1 = arith.constant 0 : index
    %0 = vector.load %arg1[%c0, %c0_0, %c0_1] : memref<8x24x32xf32, #tpu.memory_space<vmem>>, vector<8x24x32xf32>
    %1 = vector.shape_cast %0 : vector<8x24x32xf32> to vector<192x32xf32>
    %c0_2 = arith.constant 0 : index
    %c0_3 = arith.constant 0 : index
    %c0_4 = arith.constant 0 : index
    %2 = vector.load %arg2[%c0_2, %c0_3, %c0_4] : memref<2x32x96xbf16, #tpu.memory_space<vmem>>, vector<1x32x96xbf16>
    %3 = vector.shape_cast %2 : vector<1x32x96xbf16> to vector<32x96xbf16>
    %c0_5 = arith.constant 0 : index
    %c0_6 = arith.constant 0 : index
    %c0_7 = arith.constant 0 : index
    %4 = vector.load %arg3[%c0_5, %c0_6, %c0_7] : memref<2x1x96xf32, #tpu.memory_space<vmem>>, vector<1x1x96xf32>
    %5 = vector.shape_cast %4 : vector<1x1x96xf32> to vector<1x96xf32>
    %c0_8 = arith.constant 0 : index
    %c0_9 = arith.constant 0 : index
    %c0_10 = arith.constant 0 : index
    %6 = vector.load %arg4[%c0_8, %c0_9, %c0_10] : memref<2x32x32xbf16, #tpu.memory_space<vmem>>, vector<1x32x32xbf16>
    %7 = vector.shape_cast %6 : vector<1x32x32xbf16> to vector<32x32xbf16>
    %c0_11 = arith.constant 0 : index
    %c0_12 = arith.constant 0 : index
    %c0_13 = arith.constant 0 : index
    %8 = vector.load %arg5[%c0_11, %c0_12, %c0_13] : memref<2x32x64xbf16, #tpu.memory_space<vmem>>, vector<1x32x64xbf16>
    %9 = vector.shape_cast %8 : vector<1x32x64xbf16> to vector<32x64xbf16>
    %c0_14 = arith.constant 0 : index
    %c0_15 = arith.constant 0 : index
    %c0_16 = arith.constant 0 : index
    %10 = vector.load %arg6[%c0_14, %c0_15, %c0_16] : memref<2x1x64xf32, #tpu.memory_space<vmem>>, vector<1x1x64xf32>
    %11 = vector.shape_cast %10 : vector<1x1x64xf32> to vector<1x64xf32>
    %c0_17 = arith.constant 0 : index
    %c0_18 = arith.constant 0 : index
    %c0_19 = arith.constant 0 : index
    %12 = vector.load %arg7[%c0_17, %c0_18, %c0_19] : memref<2x64x32xbf16, #tpu.memory_space<vmem>>, vector<1x64x32xbf16>
    %13 = vector.shape_cast %12 : vector<1x64x32xbf16> to vector<64x32xbf16>
    %c0_20 = arith.constant 0 : index
    %c0_21 = arith.constant 0 : index
    %c0_22 = arith.constant 0 : index
    %14 = vector.load %arg8[%c0_20, %c0_21, %c0_22] : memref<2x6x32xf32, #tpu.memory_space<vmem>>, vector<1x6x32xf32>
    %15 = vector.shape_cast %14 : vector<1x6x32xf32> to vector<6x32xf32>
    %16 = vector.extract_strided_slice %15 {offsets = [0, 0], sizes = [1, 32], strides = [1, 1]} : vector<6x32xf32> to vector<1x32xf32>
    %17 = vector.extract_strided_slice %15 {offsets = [1, 0], sizes = [1, 32], strides = [1, 1]} : vector<6x32xf32> to vector<1x32xf32>
    %18 = vector.extract_strided_slice %15 {offsets = [2, 0], sizes = [1, 32], strides = [1, 1]} : vector<6x32xf32> to vector<1x32xf32>
    %19 = vector.extract_strided_slice %15 {offsets = [3, 0], sizes = [1, 32], strides = [1, 1]} : vector<6x32xf32> to vector<1x32xf32>
    %20 = vector.extract_strided_slice %15 {offsets = [4, 0], sizes = [1, 32], strides = [1, 1]} : vector<6x32xf32> to vector<1x32xf32>
    %21 = vector.extract_strided_slice %15 {offsets = [5, 0], sizes = [1, 32], strides = [1, 1]} : vector<6x32xf32> to vector<1x32xf32>
    %22 = arith.truncf %1 : vector<192x32xf32> to vector<192x32xbf16>
    %cst = arith.constant dense<0.000000e+00> : vector<192x96xf32>
    %23 = tpu.matmul %22, %3, %cst {dimension_numbers = #tpu.dot_dimension_numbers<[1], [0], [0], [1], [0, 0, 1, 1], [], []>} : vector<192x32xbf16>, vector<32x96xbf16>, vector<192x96xf32> -> vector<192x96xf32>
    %24 = vector.broadcast %5 : vector<1x96xf32> to vector<192x96xf32>
    %25 = arith.addf %23, %24 : vector<192x96xf32>
    %26 = vector.shape_cast %25 : vector<192x96xf32> to vector<8x24x96xf32>
    %27 = vector.extract_strided_slice %26 {offsets = [0, 0, 0], sizes = [8, 24, 16], strides = [1, 1, 1]} : vector<8x24x96xf32> to vector<8x24x16xf32>
    %28 = vector.extract_strided_slice %26 {offsets = [0, 0, 32], sizes = [8, 24, 16], strides = [1, 1, 1]} : vector<8x24x96xf32> to vector<8x24x16xf32>
    %29 = vector.extract_strided_slice %26 {offsets = [0, 0, 64], sizes = [8, 24, 16], strides = [1, 1, 1]} : vector<8x24x96xf32> to vector<8x24x16xf32>
    %30 = arith.truncf %27 : vector<8x24x16xf32> to vector<8x24x16xbf16>
    %31 = arith.truncf %28 : vector<8x24x16xf32> to vector<8x24x16xbf16>
    %cst_23 = arith.constant dense<0.000000e+00> : vector<8x24x24xf32>
    %32 = tpu.matmul %30, %31, %cst_23 {dimension_numbers = #tpu.dot_dimension_numbers<[2], [2], [1], [1], [0, 0, 0, 1, 1, 1], [0], [0]>} : vector<8x24x16xbf16>, vector<8x24x16xbf16>, vector<8x24x24xf32> -> vector<8x24x24xf32>
    %cst_24 = arith.constant dense<0xFF800000> : vector<8x24xf32>
    %33 = vector.multi_reduction <maximumf>, %32, %cst_24 [2] : vector<8x24x24xf32> to vector<8x24xf32>
    %34 = vector.shape_cast %33 : vector<8x24xf32> to vector<8x24x1xf32>
    %35 = vector.broadcast %34 : vector<8x24x1xf32> to vector<8x24x24xf32>
    %36 = arith.subf %32, %35 : vector<8x24x24xf32>
    %37 = math.exp %36 : vector<8x24x24xf32>
    %cst_25 = arith.constant dense<0.000000e+00> : vector<8x24xf32>
    %38 = vector.multi_reduction <add>, %37, %cst_25 [2] : vector<8x24x24xf32> to vector<8x24xf32>
    %39 = vector.shape_cast %38 : vector<8x24xf32> to vector<8x24x1xf32>
    %40 = tpu.reciprocal %39 {approx = true} : vector<8x24x1xf32> -> vector<8x24x1xf32>
    %41 = vector.broadcast %40 : vector<8x24x1xf32> to vector<8x24x24xf32>
    %42 = arith.mulf %37, %41 : vector<8x24x24xf32>
    %43 = arith.truncf %42 : vector<8x24x24xf32> to vector<8x24x24xbf16>
    %44 = arith.truncf %29 : vector<8x24x16xf32> to vector<8x24x16xbf16>
    %cst_26 = arith.constant dense<0.000000e+00> : vector<8x24x16xf32>
    %45 = tpu.matmul %43, %44, %cst_26 {dimension_numbers = #tpu.dot_dimension_numbers<[2], [1], [1], [2], [0, 0, 0, 1, 1, 2], [0], [0]>} : vector<8x24x24xbf16>, vector<8x24x16xbf16>, vector<8x24x16xf32> -> vector<8x24x16xf32>
    %46 = vector.extract_strided_slice %26 {offsets = [0, 0, 16], sizes = [8, 24, 16], strides = [1, 1, 1]} : vector<8x24x96xf32> to vector<8x24x16xf32>
    %47 = vector.extract_strided_slice %26 {offsets = [0, 0, 48], sizes = [8, 24, 16], strides = [1, 1, 1]} : vector<8x24x96xf32> to vector<8x24x16xf32>
    %48 = vector.extract_strided_slice %26 {offsets = [0, 0, 80], sizes = [8, 24, 16], strides = [1, 1, 1]} : vector<8x24x96xf32> to vector<8x24x16xf32>
    %49 = arith.truncf %46 : vector<8x24x16xf32> to vector<8x24x16xbf16>
    %50 = arith.truncf %47 : vector<8x24x16xf32> to vector<8x24x16xbf16>
    %cst_27 = arith.constant dense<0.000000e+00> : vector<8x24x24xf32>
    %51 = tpu.matmul %49, %50, %cst_27 {dimension_numbers = #tpu.dot_dimension_numbers<[2], [2], [1], [1], [0, 0, 0, 1, 1, 1], [0], [0]>} : vector<8x24x16xbf16>, vector<8x24x16xbf16>, vector<8x24x24xf32> -> vector<8x24x24xf32>
    %cst_28 = arith.constant dense<0xFF800000> : vector<8x24xf32>
    %52 = vector.multi_reduction <maximumf>, %51, %cst_28 [2] : vector<8x24x24xf32> to vector<8x24xf32>
    %53 = vector.shape_cast %52 : vector<8x24xf32> to vector<8x24x1xf32>
    %54 = vector.broadcast %53 : vector<8x24x1xf32> to vector<8x24x24xf32>
    %55 = arith.subf %51, %54 : vector<8x24x24xf32>
    %56 = math.exp %55 : vector<8x24x24xf32>
    %cst_29 = arith.constant dense<0.000000e+00> : vector<8x24xf32>
    %57 = vector.multi_reduction <add>, %56, %cst_29 [2] : vector<8x24x24xf32> to vector<8x24xf32>
    %58 = vector.shape_cast %57 : vector<8x24xf32> to vector<8x24x1xf32>
    %59 = tpu.reciprocal %58 {approx = true} : vector<8x24x1xf32> -> vector<8x24x1xf32>
    %60 = vector.broadcast %59 : vector<8x24x1xf32> to vector<8x24x24xf32>
    %61 = arith.mulf %56, %60 : vector<8x24x24xf32>
    %62 = arith.truncf %61 : vector<8x24x24xf32> to vector<8x24x24xbf16>
    %63 = arith.truncf %48 : vector<8x24x16xf32> to vector<8x24x16xbf16>
    %cst_30 = arith.constant dense<0.000000e+00> : vector<8x24x16xf32>
    %64 = tpu.matmul %62, %63, %cst_30 {dimension_numbers = #tpu.dot_dimension_numbers<[2], [1], [1], [2], [0, 0, 0, 1, 1, 2], [0], [0]>} : vector<8x24x24xbf16>, vector<8x24x16xbf16>, vector<8x24x16xf32> -> vector<8x24x16xf32>
    %65 = tpu.concatenate %45, %64 in 2 : vector<8x24x16xf32>, vector<8x24x16xf32> -> vector<8x24x32xf32>
    %66 = vector.shape_cast %65 : vector<8x24x32xf32> to vector<192x32xf32>
    %67 = arith.truncf %66 : vector<192x32xf32> to vector<192x32xbf16>
    %cst_31 = arith.constant dense<0.000000e+00> : vector<192x32xf32>
    %68 = tpu.matmul %67, %7, %cst_31 {dimension_numbers = #tpu.dot_dimension_numbers<[1], [0], [0], [1], [0, 0, 1, 1], [], []>} : vector<192x32xbf16>, vector<32x32xbf16>, vector<192x32xf32> -> vector<192x32xf32>
    %69 = vector.broadcast %16 : vector<1x32xf32> to vector<192x32xf32>
    %70 = arith.addf %68, %69 : vector<192x32xf32>
    %71 = arith.addf %1, %70 : vector<192x32xf32>
    %cst_32 = arith.constant dense<0.000000e+00> : vector<192xf32>
    %72 = vector.multi_reduction <add>, %71, %cst_32 [1] : vector<192x32xf32> to vector<192xf32>
    %73 = vector.shape_cast %72 : vector<192xf32> to vector<192x1xf32>
    %cst_33 = arith.constant 3.200000e+01 : f32
    %74 = vector.broadcast %cst_33 : f32 to vector<192x1xf32>
    %75 = arith.divf %73, %74 : vector<192x1xf32>
    %76 = arith.mulf %71, %71 : vector<192x32xf32>
    %cst_34 = arith.constant dense<0.000000e+00> : vector<192xf32>
    %77 = vector.multi_reduction <add>, %76, %cst_34 [1] : vector<192x32xf32> to vector<192xf32>
    %78 = vector.shape_cast %77 : vector<192xf32> to vector<192x1xf32>
    %cst_35 = arith.constant 3.200000e+01 : f32
    %79 = vector.broadcast %cst_35 : f32 to vector<192x1xf32>
    %80 = arith.divf %78, %79 : vector<192x1xf32>
    %81 = arith.mulf %75, %75 : vector<192x1xf32>
    %82 = arith.subf %80, %81 : vector<192x1xf32>
    %83 = vector.broadcast %75 : vector<192x1xf32> to vector<192x32xf32>
    %84 = arith.subf %71, %83 : vector<192x32xf32>
    %cst_36 = arith.constant 9.99999974E-6 : f32
    %85 = vector.broadcast %cst_36 : f32 to vector<192x1xf32>
    %86 = arith.addf %82, %85 : vector<192x1xf32>
    %87 = math.rsqrt %86 : vector<192x1xf32>
    %88 = vector.broadcast %87 : vector<192x1xf32> to vector<192x32xf32>
    %89 = arith.mulf %84, %88 : vector<192x32xf32>
    %90 = vector.broadcast %17 : vector<1x32xf32> to vector<192x32xf32>
    %91 = arith.mulf %89, %90 : vector<192x32xf32>
    %92 = vector.broadcast %18 : vector<1x32xf32> to vector<192x32xf32>
    %93 = arith.addf %91, %92 : vector<192x32xf32>
    %94 = arith.truncf %93 : vector<192x32xf32> to vector<192x32xbf16>
    %cst_37 = arith.constant dense<0.000000e+00> : vector<192x64xf32>
    %95 = tpu.matmul %94, %9, %cst_37 {dimension_numbers = #tpu.dot_dimension_numbers<[1], [0], [0], [1], [0, 0, 1, 1], [], []>} : vector<192x32xbf16>, vector<32x64xbf16>, vector<192x64xf32> -> vector<192x64xf32>
    %96 = vector.broadcast %11 : vector<1x64xf32> to vector<192x64xf32>
    %97 = arith.addf %95, %96 : vector<192x64xf32>
    %cst_38 = arith.constant 0.000000e+00 : f32
    %98 = vector.broadcast %cst_38 : f32 to vector<192x64xf32>
    %99 = arith.maximumf %97, %98 : vector<192x64xf32>
    %100 = arith.truncf %99 : vector<192x64xf32> to vector<192x64xbf16>
    %cst_39 = arith.constant dense<0.000000e+00> : vector<192x32xf32>
    %101 = tpu.matmul %100, %13, %cst_39 {dimension_numbers = #tpu.dot_dimension_numbers<[1], [0], [0], [1], [0, 0, 1, 1], [], []>} : vector<192x64xbf16>, vector<64x32xbf16>, vector<192x32xf32> -> vector<192x32xf32>
    %102 = vector.broadcast %19 : vector<1x32xf32> to vector<192x32xf32>
    %103 = arith.addf %101, %102 : vector<192x32xf32>
    %104 = arith.addf %93, %103 : vector<192x32xf32>
    %cst_40 = arith.constant dense<0.000000e+00> : vector<192xf32>
    %105 = vector.multi_reduction <add>, %104, %cst_40 [1] : vector<192x32xf32> to vector<192xf32>
    %106 = vector.shape_cast %105 : vector<192xf32> to vector<192x1xf32>
    %cst_41 = arith.constant 3.200000e+01 : f32
    %107 = vector.broadcast %cst_41 : f32 to vector<192x1xf32>
    %108 = arith.divf %106, %107 : vector<192x1xf32>
    %109 = arith.mulf %104, %104 : vector<192x32xf32>
    %cst_42 = arith.constant dense<0.000000e+00> : vector<192xf32>
    %110 = vector.multi_reduction <add>, %109, %cst_42 [1] : vector<192x32xf32> to vector<192xf32>
    %111 = vector.shape_cast %110 : vector<192xf32> to vector<192x1xf32>
    %cst_43 = arith.constant 3.200000e+01 : f32
    %112 = vector.broadcast %cst_43 : f32 to vector<192x1xf32>
    %113 = arith.divf %111, %112 : vector<192x1xf32>
    %114 = arith.mulf %108, %108 : vector<192x1xf32>
    %115 = arith.subf %113, %114 : vector<192x1xf32>
    %116 = vector.broadcast %108 : vector<192x1xf32> to vector<192x32xf32>
    %117 = arith.subf %104, %116 : vector<192x32xf32>
    %cst_44 = arith.constant 9.99999974E-6 : f32
    %118 = vector.broadcast %cst_44 : f32 to vector<192x1xf32>
    %119 = arith.addf %115, %118 : vector<192x1xf32>
    %120 = math.rsqrt %119 : vector<192x1xf32>
    %121 = vector.broadcast %120 : vector<192x1xf32> to vector<192x32xf32>
    %122 = arith.mulf %117, %121 : vector<192x32xf32>
    %123 = vector.broadcast %20 : vector<1x32xf32> to vector<192x32xf32>
    %124 = arith.mulf %122, %123 : vector<192x32xf32>
    %125 = vector.broadcast %21 : vector<1x32xf32> to vector<192x32xf32>
    %126 = arith.addf %124, %125 : vector<192x32xf32>
    %c1 = arith.constant 1 : index
    %c0_45 = arith.constant 0 : index
    %c0_46 = arith.constant 0 : index
    %127 = vector.load %arg2[%c1, %c0_45, %c0_46] : memref<2x32x96xbf16, #tpu.memory_space<vmem>>, vector<1x32x96xbf16>
    %128 = vector.shape_cast %127 : vector<1x32x96xbf16> to vector<32x96xbf16>
    %c1_47 = arith.constant 1 : index
    %c0_48 = arith.constant 0 : index
    %c0_49 = arith.constant 0 : index
    %129 = vector.load %arg3[%c1_47, %c0_48, %c0_49] : memref<2x1x96xf32, #tpu.memory_space<vmem>>, vector<1x1x96xf32>
    %130 = vector.shape_cast %129 : vector<1x1x96xf32> to vector<1x96xf32>
    %c1_50 = arith.constant 1 : index
    %c0_51 = arith.constant 0 : index
    %c0_52 = arith.constant 0 : index
    %131 = vector.load %arg4[%c1_50, %c0_51, %c0_52] : memref<2x32x32xbf16, #tpu.memory_space<vmem>>, vector<1x32x32xbf16>
    %132 = vector.shape_cast %131 : vector<1x32x32xbf16> to vector<32x32xbf16>
    %c1_53 = arith.constant 1 : index
    %c0_54 = arith.constant 0 : index
    %c0_55 = arith.constant 0 : index
    %133 = vector.load %arg5[%c1_53, %c0_54, %c0_55] : memref<2x32x64xbf16, #tpu.memory_space<vmem>>, vector<1x32x64xbf16>
    %134 = vector.shape_cast %133 : vector<1x32x64xbf16> to vector<32x64xbf16>
    %c1_56 = arith.constant 1 : index
    %c0_57 = arith.constant 0 : index
    %c0_58 = arith.constant 0 : index
    %135 = vector.load %arg6[%c1_56, %c0_57, %c0_58] : memref<2x1x64xf32, #tpu.memory_space<vmem>>, vector<1x1x64xf32>
    %136 = vector.shape_cast %135 : vector<1x1x64xf32> to vector<1x64xf32>
    %c1_59 = arith.constant 1 : index
    %c0_60 = arith.constant 0 : index
    %c0_61 = arith.constant 0 : index
    %137 = vector.load %arg7[%c1_59, %c0_60, %c0_61] : memref<2x64x32xbf16, #tpu.memory_space<vmem>>, vector<1x64x32xbf16>
    %138 = vector.shape_cast %137 : vector<1x64x32xbf16> to vector<64x32xbf16>
    %c1_62 = arith.constant 1 : index
    %c0_63 = arith.constant 0 : index
    %c0_64 = arith.constant 0 : index
    %139 = vector.load %arg8[%c1_62, %c0_63, %c0_64] : memref<2x6x32xf32, #tpu.memory_space<vmem>>, vector<1x6x32xf32>
    %140 = vector.shape_cast %139 : vector<1x6x32xf32> to vector<6x32xf32>
    %141 = vector.extract_strided_slice %140 {offsets = [0, 0], sizes = [1, 32], strides = [1, 1]} : vector<6x32xf32> to vector<1x32xf32>
    %142 = vector.extract_strided_slice %140 {offsets = [1, 0], sizes = [1, 32], strides = [1, 1]} : vector<6x32xf32> to vector<1x32xf32>
    %143 = vector.extract_strided_slice %140 {offsets = [2, 0], sizes = [1, 32], strides = [1, 1]} : vector<6x32xf32> to vector<1x32xf32>
    %144 = vector.extract_strided_slice %140 {offsets = [3, 0], sizes = [1, 32], strides = [1, 1]} : vector<6x32xf32> to vector<1x32xf32>
    %145 = vector.extract_strided_slice %140 {offsets = [4, 0], sizes = [1, 32], strides = [1, 1]} : vector<6x32xf32> to vector<1x32xf32>
    %146 = vector.extract_strided_slice %140 {offsets = [5, 0], sizes = [1, 32], strides = [1, 1]} : vector<6x32xf32> to vector<1x32xf32>
    %147 = arith.truncf %126 : vector<192x32xf32> to vector<192x32xbf16>
    %cst_65 = arith.constant dense<0.000000e+00> : vector<192x96xf32>
    %148 = tpu.matmul %147, %128, %cst_65 {dimension_numbers = #tpu.dot_dimension_numbers<[1], [0], [0], [1], [0, 0, 1, 1], [], []>} : vector<192x32xbf16>, vector<32x96xbf16>, vector<192x96xf32> -> vector<192x96xf32>
    %149 = vector.broadcast %130 : vector<1x96xf32> to vector<192x96xf32>
    %150 = arith.addf %148, %149 : vector<192x96xf32>
    %151 = vector.shape_cast %150 : vector<192x96xf32> to vector<8x24x96xf32>
    %152 = vector.extract_strided_slice %151 {offsets = [0, 0, 0], sizes = [8, 24, 16], strides = [1, 1, 1]} : vector<8x24x96xf32> to vector<8x24x16xf32>
    %153 = vector.extract_strided_slice %151 {offsets = [0, 0, 32], sizes = [8, 24, 16], strides = [1, 1, 1]} : vector<8x24x96xf32> to vector<8x24x16xf32>
    %154 = vector.extract_strided_slice %151 {offsets = [0, 0, 64], sizes = [8, 24, 16], strides = [1, 1, 1]} : vector<8x24x96xf32> to vector<8x24x16xf32>
    %155 = arith.truncf %152 : vector<8x24x16xf32> to vector<8x24x16xbf16>
    %156 = arith.truncf %153 : vector<8x24x16xf32> to vector<8x24x16xbf16>
    %cst_66 = arith.constant dense<0.000000e+00> : vector<8x24x24xf32>
    %157 = tpu.matmul %155, %156, %cst_66 {dimension_numbers = #tpu.dot_dimension_numbers<[2], [2], [1], [1], [0, 0, 0, 1, 1, 1], [0], [0]>} : vector<8x24x16xbf16>, vector<8x24x16xbf16>, vector<8x24x24xf32> -> vector<8x24x24xf32>
    %cst_67 = arith.constant dense<0xFF800000> : vector<8x24xf32>
    %158 = vector.multi_reduction <maximumf>, %157, %cst_67 [2] : vector<8x24x24xf32> to vector<8x24xf32>
    %159 = vector.shape_cast %158 : vector<8x24xf32> to vector<8x24x1xf32>
    %160 = vector.broadcast %159 : vector<8x24x1xf32> to vector<8x24x24xf32>
    %161 = arith.subf %157, %160 : vector<8x24x24xf32>
    %162 = math.exp %161 : vector<8x24x24xf32>
    %cst_68 = arith.constant dense<0.000000e+00> : vector<8x24xf32>
    %163 = vector.multi_reduction <add>, %162, %cst_68 [2] : vector<8x24x24xf32> to vector<8x24xf32>
    %164 = vector.shape_cast %163 : vector<8x24xf32> to vector<8x24x1xf32>
    %165 = tpu.reciprocal %164 {approx = true} : vector<8x24x1xf32> -> vector<8x24x1xf32>
    %166 = vector.broadcast %165 : vector<8x24x1xf32> to vector<8x24x24xf32>
    %167 = arith.mulf %162, %166 : vector<8x24x24xf32>
    %168 = arith.truncf %167 : vector<8x24x24xf32> to vector<8x24x24xbf16>
    %169 = arith.truncf %154 : vector<8x24x16xf32> to vector<8x24x16xbf16>
    %cst_69 = arith.constant dense<0.000000e+00> : vector<8x24x16xf32>
    %170 = tpu.matmul %168, %169, %cst_69 {dimension_numbers = #tpu.dot_dimension_numbers<[2], [1], [1], [2], [0, 0, 0, 1, 1, 2], [0], [0]>} : vector<8x24x24xbf16>, vector<8x24x16xbf16>, vector<8x24x16xf32> -> vector<8x24x16xf32>
    %171 = vector.extract_strided_slice %151 {offsets = [0, 0, 16], sizes = [8, 24, 16], strides = [1, 1, 1]} : vector<8x24x96xf32> to vector<8x24x16xf32>
    %172 = vector.extract_strided_slice %151 {offsets = [0, 0, 48], sizes = [8, 24, 16], strides = [1, 1, 1]} : vector<8x24x96xf32> to vector<8x24x16xf32>
    %173 = vector.extract_strided_slice %151 {offsets = [0, 0, 80], sizes = [8, 24, 16], strides = [1, 1, 1]} : vector<8x24x96xf32> to vector<8x24x16xf32>
    %174 = arith.truncf %171 : vector<8x24x16xf32> to vector<8x24x16xbf16>
    %175 = arith.truncf %172 : vector<8x24x16xf32> to vector<8x24x16xbf16>
    %cst_70 = arith.constant dense<0.000000e+00> : vector<8x24x24xf32>
    %176 = tpu.matmul %174, %175, %cst_70 {dimension_numbers = #tpu.dot_dimension_numbers<[2], [2], [1], [1], [0, 0, 0, 1, 1, 1], [0], [0]>} : vector<8x24x16xbf16>, vector<8x24x16xbf16>, vector<8x24x24xf32> -> vector<8x24x24xf32>
    %cst_71 = arith.constant dense<0xFF800000> : vector<8x24xf32>
    %177 = vector.multi_reduction <maximumf>, %176, %cst_71 [2] : vector<8x24x24xf32> to vector<8x24xf32>
    %178 = vector.shape_cast %177 : vector<8x24xf32> to vector<8x24x1xf32>
    %179 = vector.broadcast %178 : vector<8x24x1xf32> to vector<8x24x24xf32>
    %180 = arith.subf %176, %179 : vector<8x24x24xf32>
    %181 = math.exp %180 : vector<8x24x24xf32>
    %cst_72 = arith.constant dense<0.000000e+00> : vector<8x24xf32>
    %182 = vector.multi_reduction <add>, %181, %cst_72 [2] : vector<8x24x24xf32> to vector<8x24xf32>
    %183 = vector.shape_cast %182 : vector<8x24xf32> to vector<8x24x1xf32>
    %184 = tpu.reciprocal %183 {approx = true} : vector<8x24x1xf32> -> vector<8x24x1xf32>
    %185 = vector.broadcast %184 : vector<8x24x1xf32> to vector<8x24x24xf32>
    %186 = arith.mulf %181, %185 : vector<8x24x24xf32>
    %187 = arith.truncf %186 : vector<8x24x24xf32> to vector<8x24x24xbf16>
    %188 = arith.truncf %173 : vector<8x24x16xf32> to vector<8x24x16xbf16>
    %cst_73 = arith.constant dense<0.000000e+00> : vector<8x24x16xf32>
    %189 = tpu.matmul %187, %188, %cst_73 {dimension_numbers = #tpu.dot_dimension_numbers<[2], [1], [1], [2], [0, 0, 0, 1, 1, 2], [0], [0]>} : vector<8x24x24xbf16>, vector<8x24x16xbf16>, vector<8x24x16xf32> -> vector<8x24x16xf32>
    %190 = tpu.concatenate %170, %189 in 2 : vector<8x24x16xf32>, vector<8x24x16xf32> -> vector<8x24x32xf32>
    %191 = vector.shape_cast %190 : vector<8x24x32xf32> to vector<192x32xf32>
    %192 = arith.truncf %191 : vector<192x32xf32> to vector<192x32xbf16>
    %cst_74 = arith.constant dense<0.000000e+00> : vector<192x32xf32>
    %193 = tpu.matmul %192, %132, %cst_74 {dimension_numbers = #tpu.dot_dimension_numbers<[1], [0], [0], [1], [0, 0, 1, 1], [], []>} : vector<192x32xbf16>, vector<32x32xbf16>, vector<192x32xf32> -> vector<192x32xf32>
    %194 = vector.broadcast %141 : vector<1x32xf32> to vector<192x32xf32>
    %195 = arith.addf %193, %194 : vector<192x32xf32>
    %196 = arith.addf %126, %195 : vector<192x32xf32>
    %cst_75 = arith.constant dense<0.000000e+00> : vector<192xf32>
    %197 = vector.multi_reduction <add>, %196, %cst_75 [1] : vector<192x32xf32> to vector<192xf32>
    %198 = vector.shape_cast %197 : vector<192xf32> to vector<192x1xf32>
    %cst_76 = arith.constant 3.200000e+01 : f32
    %199 = vector.broadcast %cst_76 : f32 to vector<192x1xf32>
    %200 = arith.divf %198, %199 : vector<192x1xf32>
    %201 = arith.mulf %196, %196 : vector<192x32xf32>
    %cst_77 = arith.constant dense<0.000000e+00> : vector<192xf32>
    %202 = vector.multi_reduction <add>, %201, %cst_77 [1] : vector<192x32xf32> to vector<192xf32>
    %203 = vector.shape_cast %202 : vector<192xf32> to vector<192x1xf32>
    %cst_78 = arith.constant 3.200000e+01 : f32
    %204 = vector.broadcast %cst_78 : f32 to vector<192x1xf32>
    %205 = arith.divf %203, %204 : vector<192x1xf32>
    %206 = arith.mulf %200, %200 : vector<192x1xf32>
    %207 = arith.subf %205, %206 : vector<192x1xf32>
    %208 = vector.broadcast %200 : vector<192x1xf32> to vector<192x32xf32>
    %209 = arith.subf %196, %208 : vector<192x32xf32>
    %cst_79 = arith.constant 9.99999974E-6 : f32
    %210 = vector.broadcast %cst_79 : f32 to vector<192x1xf32>
    %211 = arith.addf %207, %210 : vector<192x1xf32>
    %212 = math.rsqrt %211 : vector<192x1xf32>
    %213 = vector.broadcast %212 : vector<192x1xf32> to vector<192x32xf32>
    %214 = arith.mulf %209, %213 : vector<192x32xf32>
    %215 = vector.broadcast %142 : vector<1x32xf32> to vector<192x32xf32>
    %216 = arith.mulf %214, %215 : vector<192x32xf32>
    %217 = vector.broadcast %143 : vector<1x32xf32> to vector<192x32xf32>
    %218 = arith.addf %216, %217 : vector<192x32xf32>
    %219 = arith.truncf %218 : vector<192x32xf32> to vector<192x32xbf16>
    %cst_80 = arith.constant dense<0.000000e+00> : vector<192x64xf32>
    %220 = tpu.matmul %219, %134, %cst_80 {dimension_numbers = #tpu.dot_dimension_numbers<[1], [0], [0], [1], [0, 0, 1, 1], [], []>} : vector<192x32xbf16>, vector<32x64xbf16>, vector<192x64xf32> -> vector<192x64xf32>
    %221 = vector.broadcast %136 : vector<1x64xf32> to vector<192x64xf32>
    %222 = arith.addf %220, %221 : vector<192x64xf32>
    %cst_81 = arith.constant 0.000000e+00 : f32
    %223 = vector.broadcast %cst_81 : f32 to vector<192x64xf32>
    %224 = arith.maximumf %222, %223 : vector<192x64xf32>
    %225 = arith.truncf %224 : vector<192x64xf32> to vector<192x64xbf16>
    %cst_82 = arith.constant dense<0.000000e+00> : vector<192x32xf32>
    %226 = tpu.matmul %225, %138, %cst_82 {dimension_numbers = #tpu.dot_dimension_numbers<[1], [0], [0], [1], [0, 0, 1, 1], [], []>} : vector<192x64xbf16>, vector<64x32xbf16>, vector<192x32xf32> -> vector<192x32xf32>
    %227 = vector.broadcast %144 : vector<1x32xf32> to vector<192x32xf32>
    %228 = arith.addf %226, %227 : vector<192x32xf32>
    %229 = arith.addf %218, %228 : vector<192x32xf32>
    %cst_83 = arith.constant dense<0.000000e+00> : vector<192xf32>
    %230 = vector.multi_reduction <add>, %229, %cst_83 [1] : vector<192x32xf32> to vector<192xf32>
    %231 = vector.shape_cast %230 : vector<192xf32> to vector<192x1xf32>
    %cst_84 = arith.constant 3.200000e+01 : f32
    %232 = vector.broadcast %cst_84 : f32 to vector<192x1xf32>
    %233 = arith.divf %231, %232 : vector<192x1xf32>
    %234 = arith.mulf %229, %229 : vector<192x32xf32>
    %cst_85 = arith.constant dense<0.000000e+00> : vector<192xf32>
    %235 = vector.multi_reduction <add>, %234, %cst_85 [1] : vector<192x32xf32> to vector<192xf32>
    %236 = vector.shape_cast %235 : vector<192xf32> to vector<192x1xf32>
    %cst_86 = arith.constant 3.200000e+01 : f32
    %237 = vector.broadcast %cst_86 : f32 to vector<192x1xf32>
    %238 = arith.divf %236, %237 : vector<192x1xf32>
    %239 = arith.mulf %233, %233 : vector<192x1xf32>
    %240 = arith.subf %238, %239 : vector<192x1xf32>
    %241 = vector.broadcast %233 : vector<192x1xf32> to vector<192x32xf32>
    %242 = arith.subf %229, %241 : vector<192x32xf32>
    %cst_87 = arith.constant 9.99999974E-6 : f32
    %243 = vector.broadcast %cst_87 : f32 to vector<192x1xf32>
    %244 = arith.addf %240, %243 : vector<192x1xf32>
    %245 = math.rsqrt %244 : vector<192x1xf32>
    %246 = vector.broadcast %245 : vector<192x1xf32> to vector<192x32xf32>
    %247 = arith.mulf %242, %246 : vector<192x32xf32>
    %248 = vector.broadcast %145 : vector<1x32xf32> to vector<192x32xf32>
    %249 = arith.mulf %247, %248 : vector<192x32xf32>
    %250 = vector.broadcast %146 : vector<1x32xf32> to vector<192x32xf32>
    %251 = arith.addf %249, %250 : vector<192x32xf32>
    %252 = vector.shape_cast %251 : vector<192x32xf32> to vector<8x24x32xf32>
    %c0_88 = arith.constant 0 : index
    %c0_89 = arith.constant 0 : index
    %c0_90 = arith.constant 0 : index
    %253 = vector.load %arg9[%c0_88, %c0_89, %c0_90] : memref<8x24x32xf32, #tpu.memory_space<vmem>>, vector<8x24x32xf32>
    tpu.vector_store %arg9[%c0_88, %c0_89, %c0_90], %252 {strides = array<i32>} : memref<8x24x32xf32, #tpu.memory_space<vmem>>, vector<8x24x32xf32>,
    return
  }
  func.func @transform_0(%arg0: i32) -> (i32, i32, i32) {
    %c0_i32 = arith.constant 0 : i32
    %c0_i32_0 = arith.constant 0 : i32
    %c0_i32_1 = arith.constant 0 : i32
    return %arg0, %c0_i32, %c0_i32_0 : i32, i32, i32
  }
  func.func @transform_1(%arg0: i32) -> (i32, i32, i32) {
    %c0_i32 = arith.constant 0 : i32
    %c0_i32_0 = arith.constant 0 : i32
    %c0_i32_1 = arith.constant 0 : i32
    %c0_i32_2 = arith.constant 0 : i32
    return %c0_i32, %c0_i32_0, %c0_i32_1 : i32, i32, i32
  }
  func.func @transform_2(%arg0: i32) -> (i32, i32, i32) {
    %c0_i32 = arith.constant 0 : i32
    %c0_i32_0 = arith.constant 0 : i32
    %c0_i32_1 = arith.constant 0 : i32
    %c0_i32_2 = arith.constant 0 : i32
    return %c0_i32, %c0_i32_0, %c0_i32_1 : i32, i32, i32
  }
  func.func @transform_3(%arg0: i32) -> (i32, i32, i32) {
    %c0_i32 = arith.constant 0 : i32
    %c0_i32_0 = arith.constant 0 : i32
    %c0_i32_1 = arith.constant 0 : i32
    %c0_i32_2 = arith.constant 0 : i32
    return %c0_i32, %c0_i32_0, %c0_i32_1 : i32, i32, i32
  }
  func.func @transform_4(%arg0: i32) -> (i32, i32, i32) {
    %c0_i32 = arith.constant 0 : i32
    %c0_i32_0 = arith.constant 0 : i32
    %c0_i32_1 = arith.constant 0 : i32
    %c0_i32_2 = arith.constant 0 : i32
    return %c0_i32, %c0_i32_0, %c0_i32_1 : i32, i32, i32
  }
  func.func @transform_5(%arg0: i32) -> (i32, i32, i32) {
    %c0_i32 = arith.constant 0 : i32
    %c0_i32_0 = arith.constant 0 : i32
    %c0_i32_1 = arith.constant 0 : i32
    %c0_i32_2 = arith.constant 0 : i32
    return %c0_i32, %c0_i32_0, %c0_i32_1 : i32, i32, i32
  }
  func.func @transform_6(%arg0: i32) -> (i32, i32, i32) {
    %c0_i32 = arith.constant 0 : i32
    %c0_i32_0 = arith.constant 0 : i32
    %c0_i32_1 = arith.constant 0 : i32
    %c0_i32_2 = arith.constant 0 : i32
    return %c0_i32, %c0_i32_0, %c0_i32_1 : i32, i32, i32
  }
  func.func @transform_7(%arg0: i32) -> (i32, i32, i32) {
    %c0_i32 = arith.constant 0 : i32
    %c0_i32_0 = arith.constant 0 : i32
    %c0_i32_1 = arith.constant 0 : i32
    %c0_i32_2 = arith.constant 0 : i32
    return %c0_i32, %c0_i32_0, %c0_i32_1 : i32, i32, i32
  }
  func.func @transform_8(%arg0: i32) -> (i32, i32, i32) {
    %c0_i32 = arith.constant 0 : i32
    %c0_i32_0 = arith.constant 0 : i32
    %c0_i32_1 = arith.constant 0 : i32
    return %arg0, %c0_i32, %c0_i32_0 : i32, i32, i32
  }
}

</mosaic_0001>

<bundles_post_ra>
// kernel: encoder_forward.1
= control target key start
LH: loop header
LB: loop body
LE: loop exit
PB: predicated region body
PF: predicated region fallthrough
CT: control target
= control target key end

     0   :  { %13 = vsyncpa [#allocation3], 0  ;;  %s16082_s0 = inlined_call_operand.vmem [shape: f32[16,24,32], index: 0, kind: input, shape index: {}]   ;;  %s16083_s1 = inlined_call_operand.vmem [shape: bf16[2,32,96], index: 1, kind: input, shape index: {}]   ;;  %s16084_s2 = inlined_call_operand.vmem [shape: f32[2,1,96], index: 2, kind: input, shape index: {}]   ;;  %s16085_s3 = inlined_call_operand.vmem [shape: bf16[2,32,32], index: 3, kind: input, shape index: {}]   ;;  %s16086_s4 = inlined_call_operand.vmem [shape: bf16[2,32,64], index: 4, kind: input, shape index: {}]   ;;  %s16087_s5 = inlined_call_operand.vmem [shape: f32[2,1,64], index: 5, kind: input, shape index: {}]   ;;  %s16088_s6 = inlined_call_operand.vmem [shape: bf16[2,64,32], index: 6, kind: input, shape index: {}]   ;;  %s16089_s7 = inlined_call_operand.vmem [shape: f32[2,6,32], index: 7, kind: input, shape index: {}]   ;;  %s16090_s8 = inlined_call_operand.hbm [shape: f32[16,24,32], index: 8, kind: output, shape index: {}]  }
   0x1   :  { %15 = vsyncpa [#allocation3 + $0x1], 0  ;;  %s11803_s27 = smov 0   ;;  %s11805_s28 = smov 0  }
   0x2   :  { %s11807_s29 = smov 0   ;;  %s11809_s30 = smov 0  }
   0x3 LB: > { %s11824_s9 = sadd.s32 4294967295, %s11747_s30   ;;  %s9399_s10 = sadd.s32 4294967294, %s11747_s30   ;;  %s11747_s30 = sphi %s11809_s30, %s16225_s30   ;;  %s11743_s29 = sphi %s11807_s29, %s16224_s29   ;;  %s11739_s28 = sphi %s11805_s28, %s16223_s28   ;;  %s11735_s27 = sphi %s11803_s27, %s16222_s27  }
   0x4   : > { %s11828_s11 = sadd.s32 1, %s11747_s30   ;;  %s201_s12 = sadd.s32 1, %s11743_s29 }
   0x5   : > { %s198_s13 = ssub.s32 %s11747_s30, %s11828_s11  ;;  %p211_p0 = scmp.ne.s32.totalorder %s11743_s29, %s11739_s28 }
   0x6   : > { %p199_p1 = scmp.eq.s32.totalorder %s198_s13, 0  ;;  %p212_p2 = scmp.eq.s32.totalorder %s11824_s9, 1 }
   0x7   : > { %p217_p3 = scmp.ne.s32.totalorder %s11739_s28, %s11735_s27  ;;  %p218_p4 = scmp.eq.s32.totalorder %s9399_s10, 1 }
   0x8   : > { %s11839_s14 = scalar_select %p199_p1, %s11743_s29, %s201_s12  }
   0x9   : > { %p11841_p5 = por %p212_p2, %p211_p0  ;;  %p11845_p6 = por %p218_p4, %p217_p3 }
   0xa   : > { %p9402_p7 = scmp.ge.s32.totalorder %s11747_s30, 1  ;;  %p267_p8 = scmp.lt.s32.totalorder %s11747_s30, 3 }
   0xc   : > { %p268_p9 = pnand %p9402_p7, %p267_p8 }
   0xe   : > { %271 = sbr.rel (%p268_p9) target bundleno = 5986 (0x1762), region = 52 }
  0x15   : > { %v11063_v0 = vld [vmem:[%s16083_s1] sm:$0xff]   ;;  %s9403_s19 = sshll.u32 %s11824_s9, 3  ;;  %v11064_v1 = vld [vmem:[%s16083_s1 + $0x8] sm:$0xff]   ;;  %vm388_vm0 = vcmask 261120   ;;  %vm576_vm1 = vcmask 130048   ;;  %s11749_s12 = smov 96  }
  0x16   : > { %p303_p10 = scmp.lt.s32.totalorder %s9403_s19, 15  ;;  %10053 = vmatprep.subr.bf16.mxu0 %v11063_v0  ;;  %v11902_v39 = vld [vmem:[%s16084_s2] ss:$0 sm:$0xff]  ;;  %s11750_s13 = smov 64   ;;  %vm1391_vm2 = vcmask 1043456   ;;  %vm1099_vm3 = vcmask 195584  }
  0x17   : > { %10054 = vmatpush3.bf16.msra.mxu0 %v11063_v0  ;;  %s11751_s17 = smov 80   ;;  %s11752_s18 = smov 112   ;;  %vm4210_vm4 = vcmask 523264  }
  0x18   : > { %s16227_s19 = smov (!%p303_p10, %s9403_s19), 15  ;;  %10055 = vmatprep.subr.bf16.mxu0 %v11064_v1  ;;  %s11754_s24 = smov 16  }
  0x19   : > { %s10894_s22 = smul.u32 24, %s16227_s19  ;;  %s11753_s19 = smov 48  }
  0x1a   : > { %s10895_s20 = smul.u32 3072, %s11824_s9 }
  0x1b   : > { %10056 = vmatpush3.bf16.msra.mxu0 %v11064_v1  ;;  %s11861_s25 = scalar_lea.vmem %s16082_s0, %s10894_s22 }
  0x1c   : > { %v311_v2 = vld [vmem:[%s11861_s25] sm:$0xff]  ;;  %v312_v3 = vld [vmem:[%s11861_s25 + $0x8] sm:$0xff]  ;;  %v313_v4 = vld [vmem:[%s11861_s25 + $0x10] sm:$0xff]  ;;  %s16035_s9 = scalar_lea.hbm %s16090_s8, %s10895_s20 }
  0x1d   : > { %v358_v5 = vpack.c.bf16 %v312_v3, %v311_v2  ;;  %v314_v6 = vld [vmem:[%s11861_s25 + $0x18] sm:$0xff]  ;;  %v315_v7 = vld [vmem:[%s11861_s25 + $0x20] sm:$0xff]  ;;  %v316_v8 = vld [vmem:[%s11861_s25 + $0x28] sm:$0xff] }
  0x1e   : > { %v359_v9 = vpack.c.bf16 %v314_v6, %v313_v4  ;;  %v360_v10 = vpack.c.bf16 %v316_v8, %v315_v7  ;;  %v317_v11 = vld [vmem:[%s11861_s25 + $0x30] sm:$0xff]  ;;  %v318_v12 = vld [vmem:[%s11861_s25 + $0x38] sm:$0xff]  ;;  %v319_v13 = vld [vmem:[%s11861_s25 + $0x40] sm:$0xff] }
  0x1f   : > { %10057 = vmatprep.mubr.msk.bf16.mxu0 %vm388_vm0, %v358_v5  ;;  %v320_v14 = vld [vmem:[%s11861_s25 + $0x48] sm:$0xff]  ;;  %v361_v15 = vpack.c.bf16 %v318_v12, %v317_v11  ;;  %v321_v17 = vld [vmem:[%s11861_s25 + $0x50] sm:$0xff]  ;;  %v322_v18 = vld [vmem:[%s11861_s25 + $0x58] sm:$0xff] }
  0x20   : > { %10058 = vmatmul.mubr.msk.bf16.vlgmr.msra.gmra.mrb[0].mxu0 %vm388_vm0, %v359_v9  ;;  %v362_v16 = vpack.c.bf16 %v320_v14, %v319_v13  ;;  %v323_v19 = vld [vmem:[%s11861_s25 + $0x60] sm:$0xff]  ;;  %v324_v20 = vld [vmem:[%s11861_s25 + $0x68] sm:$0xff]  ;;  %v363_v21 = vpack.c.bf16 %v322_v18, %v321_v17  ;;  %v325_v23 = vld [vmem:[%s11861_s25 + $0x70] sm:$0xff] }
  0x21   : > { %10061 = vmatprep.mubr.msk.bf16.mxu0 %vm388_vm0, %v360_v10  ;;  %v364_v22 = vpack.c.bf16 %v324_v20, %v323_v19  ;;  %v326_v24 = vld [vmem:[%s11861_s25 + $0x78] sm:$0xff]  ;;  %v327_v25 = vld [vmem:[%s11861_s25 + $0x80] sm:$0xff]  ;;  %v328_v26 = vld [vmem:[%s11861_s25 + $0x88] sm:$0xff] }
  0x22   : > { %v365_v27 = vpack.c.bf16 %v326_v24, %v325_v23  ;;  %v366_v28 = vpack.c.bf16 %v328_v26, %v327_v25  ;;  %v329_v29 = vld [vmem:[%s11861_s25 + $0x90] sm:$0xff]  ;;  %v330_v30 = vld [vmem:[%s11861_s25 + $0x98] sm:$0xff]  ;;  %v331_v31 = vld [vmem:[%s11861_s25 + $0xa0] sm:$0xff] }
  0x23   : > { %v332_v32 = vld [vmem:[%s11861_s25 + $0xa8] sm:$0xff]  ;;  %v367_v33 = vpack.c.bf16 %v330_v30, %v329_v29  ;;  %v333_v35 = vld [vmem:[%s11861_s25 + $0xb0] sm:$0xff]  ;;  %v334_v36 = vld [vmem:[%s11861_s25 + $0xb8] sm:$0xff] }
  0x24   : > { %v368_v34 = vpack.c.bf16 %v332_v32, %v331_v31  ;;  %v369_v37 = vpack.c.bf16 %v334_v36, %v333_v35 }
  0x28   : > { %10062 = vmatmul.mubr.msk.bf16.gmra.mrb[4].mxu0 %vm388_vm0, %v361_v15 }
  0x29   : > { %10065 = vmatprep.mubr.msk.bf16.mxu0 %vm388_vm0, %v362_v16 }
  0x30   : > { %10066 = vmatmul.mubr.msk.bf16.gmra.mrb[8].mxu0 %vm388_vm0, %v363_v21 }
  0x31   : > { %10069 = vmatprep.mubr.msk.bf16.mxu0 %vm388_vm0, %v364_v22 }
  0x38   : > { %10070 = vmatmul.mubr.msk.bf16.gmra.mrb[12].mxu0 %vm388_vm0, %v365_v27 }
  0x39   : > { %10073 = vmatprep.mubr.msk.bf16.mxu0 %vm388_vm0, %v366_v28 }
  0x40   : > { %10074 = vmatmul.mubr.msk.bf16.gmra.mrb[16].mxu0 %vm388_vm0, %v367_v33 }
  0x41   : > { %10077 = vmatprep.mubr.msk.bf16.mxu0 %vm388_vm0, %v368_v34 }
  0x48   : > { %10078 = vmatmul.mubr.msk.bf16.gmra.mrb[20].mxu0 %vm388_vm0, %v369_v37 }
  0xf3   : > { %v10059_v38 = vpop.f32.mrb[0].mxu0 }
  0xf4   : > { %v459_v40 = vpop.f32.mrb[1].mxu0  ;;  %v468_v57 = vadd.f32 %v10059_v38, %v11902_v39 }
  0xf5   : > { %v10060_v41 = vpop.f32.mrb[2].mxu0  ;;  %v460_v43 = vadd.f32 %v11902_v39, %v459_v40 }
  0xf6   : > { %v462_v42 = vpop.f32.mrb[3].mxu0  ;;  %v471_v48 = vadd.f32 %v10060_v41, %v11902_v39  ;;  %v11928_v61 = vpack.c.bf16 %v468_v57, %v468_v57 }
  0xf7   : > { %v463_v44 = vadd.f32 %v11902_v39, %v462_v42 }
  0xf9   : > { %v11906_v45 = vpack.c.bf16 %v463_v44, %v460_v43 }
  0xfb   : > { %v10063_v46 = vpop.f32.mrb[4].mxu0  ;;  %10085 = vmatprep.mubr.msk.bf16.mxu0 %vm576_vm1, %v11906_v45 }
  0xfc   : > { %v475_v47 = vpop.f32.mrb[5].mxu0  ;;  %v484_v51 = vadd.f32 %v10063_v46, %v11902_v39 }
  0xfd   : > { %v476_v49 = vadd.f32 %v11902_v39, %v475_v47  ;;  %v10064_v50 = vpop.f32.mrb[6].mxu0 }
  0xfe   : > { %v487_v52 = vadd.f32 %v10064_v50, %v11902_v39  ;;  %v478_v53 = vpop.f32.mrb[7].mxu0 }
  0xff   : > { %v11914_v54 = vpack.c.bf16 %v476_v49, %v471_v48  ;;  %v479_v55 = vadd.f32 %v11902_v39, %v478_v53 }
 0x100   : > { %v11917_v56 = vpack.c.bf16 %v487_v52, %v484_v51 }
 0x101   : > { %v11920_v58 = vpack.c.bf16 %v479_v55, %v479_v55  ;;  %639 = vrot.lane.b32.xlu0 %v11914_v54, %s11749_s12  ;;  %10093 = vmatprep.mubr.msk.bf16.mxu1 %vm576_vm1, %v11914_v54 }
 0x103   : > { %641 = vrot.lane.b32.xlu1 %v11920_v58, %s11749_s12  ;;  %v10067_v59 = vpop.f32.mrb[8].mxu0 }
 0x104   : > { %v491_v60 = vpop.f32.mrb[9].mxu0  ;;  %v500_v62 = vadd.f32 %v10067_v59, %v11902_v39 }
 0x105   : > { %572 = vrot.lane.b32.xlu0 %v11906_v45, %s11749_s12  ;;  %v492_v63 = vadd.f32 %v11902_v39, %v491_v60  ;;  %v10068_v0 = vpop.f32.mrb[10].mxu0 }
 0x106   : > { %v494_v1 = vpop.f32.mrb[11].mxu0  ;;  %v503_v3 = vadd.f32 %v10068_v0, %v11902_v39 }
 0x107   : > { %574 = vrot.lane.b32.xlu1 %v11928_v61, %s11749_s12  ;;  %v11936_v2 = vpack.c.bf16 %v492_v63, %v492_v63  ;;  %v495_v4 = vadd.f32 %v11902_v39, %v494_v1 }
 0x108   : > { %v11944_v6 = vpack.c.bf16 %v503_v3, %v503_v3 }
 0x109   : > { %705 = vrot.lane.b32.xlu0 %v11917_v56, %s11749_s12  ;;  %v11942_v5 = vpack.c.bf16 %v500_v62, %v495_v4 }
 0x10b   : > { %v10071_v7 = vpop.f32.mrb[12].mxu0  ;;  %707 = vrot.lane.b32.xlu1 %v11936_v2, %s11749_s12 }
 0x10c   : > { %v516_v8 = vadd.f32 %v10071_v7, %v11902_v39  ;;  %v507_v9 = vpop.f32.mrb[13].mxu0 }
 0x10d   : > { %v508_v10 = vadd.f32 %v11902_v39, %v507_v9  ;;  %v10072_v11 = vpop.f32.mrb[14].mxu0  ;;  %771 = vrot.lane.b32.xlu0 %v11942_v5, %s11749_s12 }
 0x10e   : > { %v510_v12 = vpop.f32.mrb[15].mxu0  ;;  %v11952_v13 = vpack.c.bf16 %v516_v8, %v516_v8  ;;  %v519_v16 = vadd.f32 %v10072_v11, %v11902_v39 }
 0x10f   : > { %v511_v14 = vadd.f32 %v11902_v39, %v510_v12  ;;  %773 = vrot.lane.b32.xlu1 %v11944_v6, %s11749_s12 }
 0x111   : > { %v11957_v15 = vpack.c.bf16 %v511_v14, %v508_v10 }
 0x113   : > { %v10075_v17 = vpop.f32.mrb[16].mxu0  ;;  %837 = vrot.lane.b32.xlu0 %v11957_v15, %s11749_s12  ;;  %839 = vrot.lane.b32.xlu1 %v11952_v13, %s11749_s12 }
 0x114   : > { %v532_v18 = vadd.f32 %v10075_v17, %v11902_v39  ;;  %v523_v19 = vpop.f32.mrb[17].mxu0 }
 0x115   : > { %v524_v20 = vadd.f32 %v11902_v39, %v523_v19  ;;  %v10076_v21 = vpop.f32.mrb[18].mxu0 }
 0x116   : > { %v535_v22 = vadd.f32 %v10076_v21, %v11902_v39  ;;  %v526_v23 = vpop.f32.mrb[19].mxu0 }
 0x117   : > { %v11967_v24 = vpack.c.bf16 %v524_v20, %v519_v16  ;;  %v527_v25 = vadd.f32 %v11902_v39, %v526_v23 }
 0x118   : > { %v11970_v26 = vpack.c.bf16 %v535_v22, %v532_v18 }
 0x119   : > { %v11972_v27 = vpack.c.bf16 %v527_v25, %v527_v25  ;;  %903 = vrot.lane.b32.xlu0 %v11967_v24, %s11749_s12 }
 0x11b   : > { %v10079_v28 = vpop.f32.mrb[20].mxu0  ;;  %905 = vrot.lane.b32.xlu1 %v11972_v27, %s11749_s12 }
 0x11c   : > { %v539_v29 = vpop.f32.mrb[21].mxu0  ;;  %v548_v30 = vadd.f32 %v10079_v28, %v11902_v39 }
 0x11d   : > { %v540_v31 = vadd.f32 %v11902_v39, %v539_v29  ;;  %v10080_v32 = vpop.f32.mrb[22].mxu0  ;;  %969 = vrot.lane.b32.xlu0 %v11970_v26, %s11749_s12 }
 0x11e   : > { %v551_v33 = vadd.f32 %v10080_v32, %v11902_v39  ;;  %v542_v34 = vpop.f32.mrb[23].mxu0 }
 0x11f   : > { %v11983_v35 = vpack.c.bf16 %v540_v31, %v540_v31  ;;  %v543_v36 = vadd.f32 %v11902_v39, %v542_v34 }
 0x120   : > { %v11986_v37 = vpack.c.bf16 %v551_v33, %v551_v33 }
 0x121   : > { %v11988_v38 = vpack.c.bf16 %v548_v30, %v543_v36  ;;  %971 = vrot.lane.b32.xlu1 %v11983_v35, %s11749_s12 }
 0x123   : > { %1035 = vrot.lane.b32.xlu0 %v11988_v38, %s11749_s12 }
 0x125   : > { %1037 = vrot.lane.b32.xlu1 %v11986_v37, %s11749_s12 }
 0x127   : > { %1380 = vrot.lane.b32.xlu0 %v11906_v45, %s11750_s13 }
 0x129   : > { %1382 = vrot.lane.b32.xlu1 %v11928_v61, %s11750_s13 }
 0x12b   : > { %1443 = vrot.lane.b32.xlu0 %v11914_v54, %s11750_s13 }
 0x12d   : > { %1505 = vrot.lane.b32.xlu1 %v11917_v56, %s11750_s13 }
 0x131   : > { %1445 = vrot.lane.b32.xlu1 %v11920_v58, %s11750_s13 }
 0x135   : > { %1507 = vrot.lane.b32.xlu1 %v11936_v2, %s11750_s13 }
 0x173   : > { %v640_v39 = vpop.permute.xlu0 %639 }
 0x174   : > { %10799 = vmatprep.subr.msk.bf16.mxu1 %vm576_vm1, %v640_v39  ;;  %v650_v40 = vsel %vm576_vm1, %v640_v39, 0 }
 0x175   : > { %v642_v41 = vpop.permute.xlu1 %641  ;;  %10090 = vmatpush3.bf16.xpose.msra.mxu1 %v650_v40 }
 0x176   : > { %10800 = vmatprep.subr.msk.bf16.mxu1 %vm576_vm1, %v642_v41  ;;  %v653_v47 = vsel %vm576_vm1, %v642_v41, 0 }
 0x177   : > { %v573_v42 = vpop.permute.xlu0 %572 }
 0x178   : > { %10797 = vmatprep.subr.msk.bf16.mxu0 %vm576_vm1, %v573_v42  ;;  %v584_v43 = vsel %vm576_vm1, %v573_v42, 0 }
 0x179   : > { %v575_v44 = vpop.permute.xlu1 %574  ;;  %10082 = vmatpush3.bf16.xpose.msra.mxu0 %v584_v43 }
 0x17a   : > { %10798 = vmatprep.subr.msk.bf16.mxu0 %vm576_vm1, %v575_v44  ;;  %v587_v49 = vsel %vm576_vm1, %v575_v44, 0 }
 0x17b   : > { %v706_v46 = vpop.permute.xlu0 %705 }
 0x17c   : > { %v716_v51 = vsel %vm576_vm1, %v706_v46, 0 }
 0x17d   : > { %10092 = vmatpush3.bf16.xpose.msra.mxu1 %v653_v47  ;;  %v708_v50 = vpop.permute.xlu1 %707 }
 0x17e   : > { %10801 = vmatprep.subr.msk.bf16.mxu1 %vm576_vm1, %v706_v46  ;;  %v719_v57 = vsel %vm576_vm1, %v708_v50, 0 }
 0x17f   : > { %v772_v48 = vpop.permute.xlu0 %771 }
 0x180   : > { %v782_v52 = vsel %vm576_vm1, %v772_v48, 0 }
 0x181   : > { %10084 = vmatpush3.bf16.xpose.msra.mxu0 %v587_v49  ;;  %v774_v53 = vpop.permute.xlu1 %773 }
 0x182   : > { %10803 = vmatprep.subr.msk.bf16.mxu0 %vm576_vm1, %v772_v48  ;;  %v785_v59 = vsel %vm576_vm1, %v774_v53, 0 }
 0x184   : > { %10094 = vmatmul.mubr.msk.bf16.vlgmr.msra.gmra.mrb[0].mxu1 %vm576_vm1, %v11920_v58 }
 0x185   : > { %10098 = vmatpush3.bf16.xpose.msra.mxu1 %v716_v51  ;;  %10101 = vmatprep.mubr.msk.bf16.mxu1 %vm576_vm1, %v11917_v56  ;;  %v838_v55 = vpop.permute.xlu0 %837  ;;  %v840_v62 = vpop.permute.xlu1 %839 }
 0x186   : > { %10802 = vmatprep.subr.msk.bf16.mxu1 %vm576_vm1, %v708_v50  ;;  %v848_v63 = vsel %vm576_vm1, %v838_v55, 0  ;;  %v851_v4 = vsel %vm576_vm1, %v840_v62, 0 }
 0x188   : > { %10086 = vmatmul.mubr.msk.bf16.vlgmr.msra.gmra.mrb[24].mxu0 %vm576_vm1, %v11928_v61 }
 0x189   : > { %10106 = vmatpush3.bf16.xpose.msra.mxu0 %v782_v52  ;;  %10109 = vmatprep.mubr.msk.bf16.mxu0 %vm576_vm1, %v11942_v5 }
 0x18a   : > { %10804 = vmatprep.subr.msk.bf16.mxu0 %vm576_vm1, %v774_v53 }
 0x18b   : > { %v904_v60 = vpop.permute.xlu0 %903 }
 0x18c   : > { %v914_v0 = vsel %vm576_vm1, %v904_v60, 0 }
 0x18d   : > { %10100 = vmatpush3.bf16.xpose.msra.mxu1 %v719_v57  ;;  %v906_v1 = vpop.permute.xlu1 %905 }
 0x18e   : > { %10805 = vmatprep.subr.msk.bf16.mxu1 %vm576_vm1, %v838_v55  ;;  %v917_v7 = vsel %vm576_vm1, %v906_v1, 0 }
 0x18f   : > { %v970_v3 = vpop.permute.xlu0 %969 }
 0x190   : > { %v980_v10 = vsel %vm576_vm1, %v970_v3, 0 }
 0x191   : > { %10108 = vmatpush3.bf16.xpose.msra.mxu0 %v785_v59 }
 0x192   : > { %10807 = vmatprep.subr.msk.bf16.mxu0 %vm576_vm1, %v904_v60 }
 0x193   : > { %v972_v8 = vpop.permute.xlu1 %971 }
 0x194   : > { %10102 = vmatmul.mubr.msk.bf16.vlgmr.msra.gmra.mrb[4].mxu1 %vm576_vm1, %v11936_v2  ;;  %v983_v16 = vsel %vm576_vm1, %v972_v8, 0 }
 0x195   : > { %10114 = vmatpush3.bf16.xpose.msra.mxu1 %v848_v63  ;;  %10117 = vmatprep.mubr.msk.bf16.mxu1 %vm576_vm1, %v11957_v15  ;;  %v1036_v9 = vpop.permute.xlu0 %1035 }
 0x196   : > { %10806 = vmatprep.subr.msk.bf16.mxu1 %vm576_vm1, %v840_v62  ;;  %v1046_v12 = vsel %vm576_vm1, %v1036_v9, 0 }
 0x197   : > { %v1038_v11 = vpop.permute.xlu1 %1037 }
 0x198   : > { %10110 = vmatmul.mubr.msk.bf16.vlgmr.msra.gmra.mrb[28].mxu0 %vm576_vm1, %v11944_v6  ;;  %v1049_v18 = vsel %vm576_vm1, %v1038_v11, 0 }
 0x199   : > { %10122 = vmatpush3.bf16.xpose.msra.mxu0 %v914_v0  ;;  %10125 = vmatprep.mubr.msk.bf16.mxu0 %vm576_vm1, %v11967_v24  ;;  %v1381_v14 = vpop.permute.xlu0 %1380 }
 0x19a   : > { %10808 = vmatprep.subr.msk.bf16.mxu0 %vm576_vm1, %v906_v1 }
 0x19b   : > { %v1383_v17 = vpop.permute.xlu1 %1382 }
 0x19c   : > { %v1393_v21 = vsel %vm1391_vm2, %v1383_v17, 0 }
 0x19d   : > { %10116 = vmatpush3.bf16.xpose.msra.mxu1 %v851_v4  ;;  %v1444_v19 = vpop.permute.xlu0 %1443 }
 0x19e   : > { %10809 = vmatprep.subr.msk.bf16.mxu1 %vm576_vm1, %v970_v3 }
 0x19f   : > { %v12064_v20 = vpop.permute.xlu1 %1505 }
 0x1a1   : > { %10124 = vmatpush3.bf16.xpose.msra.mxu0 %v917_v7 }
 0x1a2   : > { %10811 = vmatprep.subr.msk.bf16.mxu0 %vm576_vm1, %v1036_v9 }
 0x1a3   : > { %v1446_v22 = vpop.permute.xlu1 %1445 }
 0x1a4   : > { %10118 = vmatmul.mubr.msk.bf16.vlgmr.msra.gmra.mrb[8].mxu1 %vm576_vm1, %v11952_v13  ;;  %v1455_v23 = vsel %vm1391_vm2, %v1446_v22, 0 }
 0x1a5   : > { %10130 = vmatpush3.bf16.xpose.msra.mxu1 %v980_v10  ;;  %10133 = vmatprep.mubr.msk.bf16.mxu1 %vm576_vm1, %v11970_v26 }
 0x1a6   : > { %10810 = vmatprep.subr.msk.bf16.mxu1 %vm576_vm1, %v972_v8 }
 0x1a8   : > { %10126 = vmatmul.mubr.msk.bf16.vlgmr.msra.gmra.mrb[32].mxu0 %vm576_vm1, %v11972_v27 }
 0x1a9   : > { %10138 = vmatpush3.bf16.xpose.msra.mxu0 %v1046_v12  ;;  %10141 = vmatprep.mubr.msk.bf16.mxu0 %vm576_vm1, %v11988_v38 }
 0x1aa   : > { %10812 = vmatprep.subr.msk.bf16.mxu0 %vm576_vm1, %v1038_v11 }
 0x1ad   : > { %10132 = vmatpush3.bf16.xpose.msra.mxu1 %v983_v16 }
 0x1ae   : > { %10145 = vmatprep.subr.bf16.mxu1 %v1381_v14 }
 0x1b1   : > { %10140 = vmatpush3.bf16.xpose.msra.mxu0 %v1049_v18 }
 0x1b2   : > { %10153 = vmatprep.subr.bf16.mxu0 %v1444_v19 }
 0x1b4   : > { %10134 = vmatmul.mubr.msk.bf16.vlgmr.msra.gmra.mrb[12].mxu1 %vm576_vm1, %v11983_v35 }
 0x1b5   : > { %10146 = vmatpush3.bf16.msra.mxu1 %v1381_v14 }
 0x1b6   : > { %10813 = vmatprep.subr.msk.bf16.mxu1 %vm1391_vm2, %v1383_v17 }
 0x1b8   : > { %10142 = vmatmul.mubr.msk.bf16.vlgmr.msra.gmra.mrb[36].mxu0 %vm576_vm1, %v11986_v37 }
 0x1b9   : > { %10148 = vmatpush3.bf16.msra.mxu1 %v1393_v21  ;;  %10154 = vmatpush3.bf16.msra.mxu0 %v1444_v19 }
 0x1ba   : > { %10814 = vmatprep.subr.msk.bf16.mxu0 %vm1391_vm2, %v1446_v22  ;;  %10161 = vmatprep.subr.bf16.mxu1 %v12064_v20 }
 0x1bd   : > { %10156 = vmatpush3.bf16.msra.mxu0 %v1455_v23 }
 0x257   : > { %v12075_v25 = vpop.f32.mrb[0].mxu1 }
 0x258   : > { %v12077_v28 = vpop.f32.mrb[1].mxu1  ;;  %v1115_v42 = vsel %vm1099_vm3, %v12075_v25, -inf }
 0x259   : > { %v10096_v29 = vpop.f32.mrb[2].mxu1  ;;  %v1109_v46 = vsel %vm1099_vm3, %v12077_v28, -inf }
 0x25a   : > { %v12079_v30 = vpop.f32.mrb[3].mxu1 }
 0x25b   : > { %v12081_v31 = vpop.f32.mrb[24].mxu0  ;;  %v1112_v41 = vsel %vm1099_vm3, %v12079_v30, -inf }
 0x25c   : > { %v12083_v32 = vpop.f32.mrb[25].mxu0  ;;  %v1106_v33 = vsel %vm1099_vm3, %v12081_v31, -inf }
 0x25d   : > { %1107 = vmax.xlane.f32.xlu0 %v1106_v33  ;;  %v10088_v34 = vpop.f32.mrb[26].mxu0  ;;  %v1100_v40 = vsel %vm1099_vm3, %v12083_v32, -inf }
 0x25e   : > { %v12087_v36 = vpop.f32.mrb[27].mxu0 }
 0x25f   : > { %v1103_v39 = vsel %vm1099_vm3, %v12087_v36, -inf }
 0x260   : > { %1104 = vmax.xlane.f32.xlu1 %v1103_v39 }
 0x261   : > { %1101 = vmax.xlane.f32.xlu0 %v1100_v40 }
 0x264   : > { %1113 = vmax.xlane.f32.xlu1 %v1112_v41 }
 0x265   : > { %1116 = vmax.xlane.f32.xlu0 %v1115_v42 }
 0x267   : > { %v12097_v43 = vpop.f32.mrb[4].mxu1 }
 0x268   : > { %v12099_v44 = vpop.f32.mrb[5].mxu1  ;;  %v1124_v59 = vsel %vm1099_vm3, %v12097_v43, -inf }
 0x269   : > { %v10104_v47 = vpop.f32.mrb[6].mxu1  ;;  %1110 = vmax.xlane.f32.xlu0 %v1109_v46  ;;  %v1118_v60 = vsel %vm1099_vm3, %v12099_v44, -inf }
 0x26a   : > { %v12103_v48 = vpop.f32.mrb[7].mxu1 }
 0x26b   : > { %v12105_v49 = vpop.f32.mrb[28].mxu0  ;;  %v1121_v63 = vsel %vm1099_vm3, %v12103_v48, -inf }
 0x26c   : > { %v12107_v50 = vpop.f32.mrb[29].mxu0  ;;  %v1133_v51 = vsel %vm1099_vm3, %v12105_v49, -inf }
 0x26d   : > { %1134 = vmax.xlane.f32.xlu0 %v1133_v51  ;;  %v10112_v52 = vpop.f32.mrb[30].mxu0  ;;  %v1127_v57 = vsel %vm1099_vm3, %v12107_v50, -inf  ;;  %v12185_v51 = vpop.permute.xlu1 %1507 }
 0x26e   : > { %v12111_v53 = vpop.f32.mrb[31].mxu0 }
 0x26f   : > { %v1130_v55 = vsel %vm1099_vm3, %v12111_v53, -inf }
 0x270   : > { %1131 = vmax.xlane.f32.xlu1 %v1130_v55 }
 0x271   : > { %1128 = vmax.xlane.f32.xlu0 %v1127_v57 }
 0x274   : > { %1125 = vmax.xlane.f32.xlu1 %v1124_v59 }
 0x275   : > { %1119 = vmax.xlane.f32.xlu0 %v1118_v60 }
 0x277   : > { %v12121_v62 = vpop.f32.mrb[8].mxu1 }
 0x278   : > { %v12125_v0 = vpop.f32.mrb[9].mxu1  ;;  %1122 = vmax.xlane.f32.xlu1 %v1121_v63  ;;  %v1142_v14 = vsel %vm1099_vm3, %v12121_v62, -inf }
 0x279   : > { %v10120_v1 = vpop.f32.mrb[10].mxu1  ;;  %v1136_v16 = vsel %vm1099_vm3, %v12125_v0, -inf }
 0x27a   : > { %v12127_v3 = vpop.f32.mrb[11].mxu1 }
 0x27b   : > { %v12129_v4 = vpop.f32.mrb[32].mxu0  ;;  %v1139_v18 = vsel %vm1099_vm3, %v12127_v3, -inf }
 0x27c   : > { %v12131_v7 = vpop.f32.mrb[33].mxu0  ;;  %v1151_v8 = vsel %vm1099_vm3, %v12129_v4, -inf }
 0x27d   : > { %1152 = vmax.xlane.f32.xlu0 %v1151_v8  ;;  %v10128_v9 = vpop.f32.mrb[34].mxu0  ;;  %v1145_v12 = vsel %vm1099_vm3, %v12131_v7, -inf }
 0x27e   : > { %v12135_v10 = vpop.f32.mrb[35].mxu0 }
 0x27f   : > { %v1148_v11 = vsel %vm1099_vm3, %v12135_v10, -inf }
 0x280   : > { %1149 = vmax.xlane.f32.xlu1 %v1148_v11 }
 0x281   : > { %1146 = vmax.xlane.f32.xlu0 %v1145_v12 }
 0x284   : > { %1143 = vmax.xlane.f32.xlu1 %v1142_v14 }
 0x285   : > { %1137 = vmax.xlane.f32.xlu0 %v1136_v16 }
 0x287   : > { %v12145_v17 = vpop.f32.mrb[12].mxu1 }
 0x288   : > { %v12149_v19 = vpop.f32.mrb[13].mxu1  ;;  %1140 = vmax.xlane.f32.xlu1 %v1139_v18  ;;  %v1160_v42 = vsel %vm1099_vm3, %v12145_v17, -inf }
 0x289   : > { %v10136_v21 = vpop.f32.mrb[14].mxu1  ;;  %v1154_v47 = vsel %vm1099_vm3, %v12149_v19, -inf }
 0x28a   : > { %v12151_v22 = vpop.f32.mrb[15].mxu1 }
 0x28b   : > { %v12153_v23 = vpop.f32.mrb[36].mxu0  ;;  %v1157_v46 = vsel %vm1099_vm3, %v12151_v22, -inf }
 0x28c   : > { %v12155_v29 = vpop.f32.mrb[37].mxu0  ;;  %v1169_v33 = vsel %vm1099_vm3, %v12153_v23, -inf }
 0x28d   : > { %1170 = vmax.xlane.f32.xlu0 %v1169_v33  ;;  %v10144_v34 = vpop.f32.mrb[38].mxu0  ;;  %v1163_v41 = vsel %vm1099_vm3, %v12155_v29, -inf }
 0x28e   : > { %v12159_v39 = vpop.f32.mrb[39].mxu0 }
 0x28f   : > { %v1166_v40 = vsel %vm1099_vm3, %v12159_v39, -inf }
 0x290   : > { %1167 = vmax.xlane.f32.xlu1 %v1166_v40 }
 0x291   : > { %1164 = vmax.xlane.f32.xlu0 %v1163_v41 }
 0x294   : > { %1161 = vmax.xlane.f32.xlu1 %v1160_v42 }
 0x295   : > { %1158 = vmax.xlane.f32.xlu0 %v1157_v46 }
 0x298   : > { %1155 = vmax.xlane.f32.xlu1 %v1154_v47 }
 0x2a9   : > { %1629 = vrot.lane.b32.xlu1 %v11957_v15, %s11750_s13 }
 0x2ab   : > { %1567 = vrot.lane.b32.xlu0 %v11942_v5, %s11750_s13 }
 0x2ad   : > { %1569 = vrot.lane.b32.xlu1 %v11944_v6, %s11750_s13 }
 0x2b1   : > { %1631 = vrot.lane.b32.xlu1 %v11952_v13, %s11750_s13 }
 0x2b5   : > { %1691 = vrot.lane.b32.xlu1 %v11967_v24, %s11750_s13 }
 0x2b9   : > { %1753 = vrot.lane.b32.xlu1 %v11970_v26, %s11750_s13 }
 0x2bd   : > { %1693 = vrot.lane.b32.xlu1 %v11972_v27, %s11750_s13 }
 0x2ea   : > { %v1108_v52 = vpop.xlane.xlu0 %1107 }
 0x2eb   : > { %v1174_v55 = vsub.f32 %v12081_v31, %v1108_v52 }
 0x2ed   : > { %v1200_v57 = vmul.f32 1.442695, %v1174_v55  ;;  %v1105_v59 = vpop.xlane.xlu1 %1104 }
 0x2ee   : > { %v1173_v60 = vsub.f32 %v12087_v36, %v1105_v59  ;;  %v1102_v63 = vpop.xlane.xlu0 %1101 }
 0x2ef   : > { %11083 = vpow2.f32 %v1200_v57  ;;  %v1172_v1 = vsub.f32 %v12083_v32, %v1102_v63 }
 0x2f0   : > { %v1198_v8 = vmul.f32 1.442695, %v1173_v60 }
 0x2f1   : > { %v1196_v9 = vmul.f32 1.442695, %v1172_v1  ;;  %v1114_v11 = vpop.xlane.xlu1 %1113 }
 0x2f2   : > { %11085 = vpow2.f32 %v1198_v8  ;;  %v1176_v12 = vsub.f32 %v12079_v30, %v1114_v11  ;;  %v1117_v14 = vpop.xlane.xlu0 %1116 }
 0x2f3   : > { %11087 = vpow2.f32 %v1196_v9  ;;  %v1177_v16 = vsub.f32 %v12075_v25, %v1117_v14 }
 0x2f4   : > { %v1204_v18 = vmul.f32 1.442695, %v1176_v12 }
 0x2f5   : > { %v1206_v31 = vmul.f32 1.442695, %v1177_v16 }
 0x2f6   : > { %11089 = vpow2.f32 %v1204_v18  ;;  %v1111_v21 = vpop.xlane.xlu0 %1110 }
 0x2f7   : > { %11091 = vpow2.f32 %v1206_v31  ;;  %v1175_v36 = vsub.f32 %v12077_v28, %v1111_v21 }
 0x2f9   : > { %v12193_v33 = vpop.eup %11083  ;;  %v1202_v32 = vmul.f32 1.442695, %v1175_v36 }
 0x2fa   : > { %v1135_v34 = vpop.xlane.xlu0 %1134  ;;  %v1250_v40 = vsel %vm1099_vm3, %v12193_v33, 0.0 }
 0x2fb   : > { %11093 = vpow2.f32 %v1202_v32  ;;  %v1183_v30 = vsub.f32 %v12105_v49, %v1135_v34  ;;  %1251 = vadd.xlane.f32.xlu1 %v1250_v40 }
 0x2fc   : > { %v12198_v41 = vpop.eup %11085 }
 0x2fd   : > { %v12200_v25 = vpop.eup %11087  ;;  %v1218_v42 = vmul.f32 1.442695, %v1183_v30  ;;  %v1132_v46 = vpop.xlane.xlu1 %1131  ;;  %v1247_v28 = vsel %vm1099_vm3, %v12198_v41, 0.0 }
 0x2fe   : > { %v1182_v47 = vsub.f32 %v12111_v53, %v1132_v46  ;;  %v1129_v52 = vpop.xlane.xlu0 %1128  ;;  %1248 = vadd.xlane.f32.xlu0 %v1247_v28  ;;  %v1244_v55 = vsel %vm1099_vm3, %v12200_v25, 0.0 }
 0x2ff   : > { %11095 = vpow2.f32 %v1218_v42  ;;  %v1181_v49 = vsub.f32 %v12107_v50, %v1129_v52  ;;  %1245 = vadd.xlane.f32.xlu1 %v1244_v55 }
 0x300   : > { %v12208_v57 = vpop.eup %11089  ;;  %v1216_v59 = vmul.f32 1.442695, %v1182_v47 }
 0x301   : > { %v12210_v60 = vpop.eup %11091  ;;  %v1214_v63 = vmul.f32 1.442695, %v1181_v49  ;;  %v1126_v1 = vpop.xlane.xlu1 %1125  ;;  %v1256_v8 = vsel %vm1099_vm3, %v12208_v57, 0.0 }
 0x302   : > { %11097 = vpow2.f32 %v1216_v59  ;;  %v1180_v53 = vsub.f32 %v12097_v43, %v1126_v1  ;;  %v1120_v9 = vpop.xlane.xlu0 %1119  ;;  %v1259_v11 = vsel %vm1099_vm3, %v12210_v60, 0.0 }
 0x303   : > { %11099 = vpow2.f32 %v1214_v63  ;;  %v1178_v50 = vsub.f32 %v12099_v44, %v1120_v9  ;;  %1260 = vadd.xlane.f32.xlu0 %v1259_v11  ;;  %1257 = vadd.xlane.f32.xlu1 %v1256_v8 }
 0x304   : > { %v1212_v12 = vmul.f32 1.442695, %v1180_v53 }
 0x305   : > { %v12218_v14 = vpop.eup %11093  ;;  %v1208_v16 = vmul.f32 1.442695, %v1178_v50  ;;  %v1123_v18 = vpop.xlane.xlu1 %1122 }
 0x306   : > { %11101 = vpow2.f32 %v1212_v12  ;;  %v1179_v31 = vsub.f32 %v12103_v48, %v1123_v18  ;;  %v1253_v43 = vsel %vm1099_vm3, %v12218_v14, 0.0 }
 0x307   : > { %11103 = vpow2.f32 %v1208_v16  ;;  %1254 = vadd.xlane.f32.xlu0 %v1253_v43 }
 0x308   : > { %v1210_v21 = vmul.f32 1.442695, %v1179_v31 }
 0x309   : > { %v12223_v36 = vpop.eup %11095 }
 0x30a   : > { %11105 = vpow2.f32 %v1210_v21  ;;  %v1153_v44 = vpop.xlane.xlu0 %1152  ;;  %v1277_v32 = vsel %vm1099_vm3, %v12223_v36, 0.0 }
 0x30b   : > { %v1189_v34 = vsub.f32 %v12129_v4, %v1153_v44  ;;  %1278 = vadd.xlane.f32.xlu0 %v1277_v32 }
 0x30c   : > { %v12228_v40 = vpop.eup %11097 }
 0x30d   : > { %v12230_v30 = vpop.eup %11099  ;;  %v1230_v48 = vmul.f32 1.442695, %v1189_v34  ;;  %v1150_v42 = vpop.xlane.xlu1 %1149  ;;  %v1274_v46 = vsel %vm1099_vm3, %v12228_v40, 0.0 }
 0x30e   : > { %v1188_v28 = vsub.f32 %v12135_v10, %v1150_v42  ;;  %v1147_v47 = vpop.xlane.xlu0 %1146  ;;  %1275 = vadd.xlane.f32.xlu1 %v1274_v46  ;;  %v1271_v52 = vsel %vm1099_vm3, %v12230_v30, 0.0 }
 0x30f   : > { %11107 = vpow2.f32 %v1230_v48  ;;  %v1187_v4 = vsub.f32 %v12131_v7, %v1147_v47  ;;  %1272 = vadd.xlane.f32.xlu0 %v1271_v52 }
 0x310   : > { %v12238_v55 = vpop.eup %11101  ;;  %v1228_v59 = vmul.f32 1.442695, %v1188_v28 }
 0x311   : > { %v12240_v49 = vpop.eup %11103  ;;  %v1226_v63 = vmul.f32 1.442695, %v1187_v4  ;;  %v1144_v1 = vpop.xlane.xlu1 %1143  ;;  %v1268_v8 = vsel %vm1099_vm3, %v12238_v55, 0.0 }
 0x312   : > { %v1186_v10 = vsub.f32 %v12121_v62, %v1144_v1  ;;  %v1138_v53 = vpop.xlane.xlu0 %1137  ;;  %1269 = vadd.xlane.f32.xlu1 %v1268_v8  ;;  %v1262_v9 = vsel %vm1099_vm3, %v12240_v49, 0.0 }
 0x313   : > { %11109 = vpow2.f32 %v1226_v63  ;;  %v1184_v7 = vsub.f32 %v12125_v0, %v1138_v53  ;;  %1263 = vadd.xlane.f32.xlu0 %v1262_v9 }
 0x314   : > { %v12248_v11 = vpop.eup %11105  ;;  %11111 = vpow2.f32 %v1228_v59  ;;  %v1224_v50 = vmul.f32 1.442695, %v1186_v10 }
 0x315   : > { %v1220_v12 = vmul.f32 1.442695, %v1184_v7  ;;  %v1141_v16 = vpop.xlane.xlu1 %1140  ;;  %v1265_v18 = vsel %vm1099_vm3, %v12248_v11, 0.0 }
 0x316   : > { %v1185_v62 = vsub.f32 %v12127_v3, %v1141_v16  ;;  %1266 = vadd.xlane.f32.xlu1 %v1265_v18 }
 0x317   : > { %11113 = vpow2.f32 %v1220_v12 }
 0x318   : > { %11115 = vpow2.f32 %v1224_v50  ;;  %v1222_v43 = vmul.f32 1.442695, %v1185_v62 }
 0x319   : > { %v12253_v31 = vpop.eup %11107 }
 0x31a   : > { %v1171_v21 = vpop.xlane.xlu0 %1170  ;;  %v1295_v0 = vsel %vm1099_vm3, %v12253_v31, 0.0  ;;  %11117 = vpow2.f32 %v1222_v43 }
 0x31b   : > { %v1195_v44 = vsub.f32 %v12153_v23, %v1171_v21  ;;  %1296 = vadd.xlane.f32.xlu1 %v1295_v0 }
 0x31d   : > { %v12258_v32 = vpop.eup %11109  ;;  %v1242_v34 = vmul.f32 1.442695, %v1195_v44  ;;  %v1168_v48 = vpop.xlane.xlu1 %1167 }
 0x31e   : > { %v1194_v3 = vsub.f32 %v12159_v39, %v1168_v48  ;;  %v1165_v42 = vpop.xlane.xlu0 %1164  ;;  %v1289_v46 = vsel %vm1099_vm3, %v12258_v32, 0.0  ;;  %v12263_v28 = vpop.eup %11111 }
 0x31f   : > { %11119 = vpow2.f32 %v1242_v34  ;;  %v1193_v47 = vsub.f32 %v12155_v29, %v1165_v42  ;;  %1290 = vadd.xlane.f32.xlu1 %v1289_v46  ;;  %v1292_v8 = vsel %vm1099_vm3, %v12263_v28, 0.0 }
 0x320   : > { %v1240_v52 = vmul.f32 1.442695, %v1194_v3 }
 0x321   : > { %v12266_v23 = vpop.eup %11113  ;;  %v1238_v4 = vmul.f32 1.442695, %v1193_v47  ;;  %v1162_v59 = vpop.xlane.xlu1 %1161 }
 0x322   : > { %11121 = vpow2.f32 %v1240_v52  ;;  %v1192_v63 = vsub.f32 %v12145_v17, %v1162_v59  ;;  %v1159_v1 = vpop.xlane.xlu0 %1158  ;;  %v1280_v39 = vsel %vm1099_vm3, %v12266_v23, 0.0  ;;  %v12273_v10 = vpop.eup %11115 }
 0x323   : > { %11123 = vpow2.f32 %v1238_v4  ;;  %1281 = vadd.xlane.f32.xlu0 %v1280_v39  ;;  %1293 = vadd.xlane.f32.xlu1 %v1292_v8  ;;  %v1286_v17 = vsel %vm1099_vm3, %v12273_v10, 0.0  ;;  %v1191_v42 = vsub.f32 %v12151_v22, %v1159_v1 }
 0x324   : > { %v1236_v29 = vmul.f32 1.442695, %v1192_v63  ;;  %v12280_v50 = vpop.eup %11117 }
 0x325   : > { %v1156_v53 = vpop.xlane.xlu1 %1155  ;;  %v1234_v46 = vmul.f32 1.442695, %v1191_v42 }
 0x326   : > { %11125 = vpow2.f32 %v1236_v29  ;;  %v1190_v9 = vsub.f32 %v12149_v19, %v1156_v53  ;;  %v12276_v7 = vpop.permute.xlu0 %1567  ;;  %v1283_v19 = vsel %vm1099_vm3, %v12280_v50, 0.0 }
 0x327   : > { %10169 = vmatprep.subr.bf16.mxu0 %v12276_v7  ;;  %1287 = vadd.xlane.f32.xlu1 %v1286_v17 }
 0x328   : > { %v1232_v12 = vmul.f32 1.442695, %v1190_v9 }
 0x329   : > { %v12283_v16 = vpop.eup %11119  ;;  %v12326_v47 = vpop.permute.xlu1 %1629 }
 0x32a   : > { %11127 = vpow2.f32 %v1232_v12  ;;  %v1313_v18 = vsel %vm1099_vm3, %v12283_v16, 0.0 }
 0x32b   : > { %1314 = vadd.xlane.f32.xlu0 %v1313_v18  ;;  %1284 = vadd.xlane.f32.xlu1 %v1283_v19  ;;  %11129 = vpow2.f32 %v1234_v46 }
 0x32c   : > { %v12289_v62 = vpop.eup %11121 }
 0x32d   : > { %v12291_v43 = vpop.eup %11123  ;;  %v1310_v21 = vsel %vm1099_vm3, %v12289_v62, 0.0  ;;  %v12334_v4 = vpop.permute.xlu1 %1569 }
 0x32e   : > { %v1307_v0 = vsel %vm1099_vm3, %v12291_v43, 0.0 }
 0x32f   : > { %1308 = vadd.xlane.f32.xlu1 %v1307_v0  ;;  %1311 = vadd.xlane.f32.xlu0 %v1310_v21 }
 0x330   : > { %v12297_v44 = vpop.eup %11125 }
 0x331   : > { %v1304_v34 = vsel %vm1099_vm3, %v12297_v44, 0.0  ;;  %v12340_v59 = vpop.permute.xlu1 %1631 }
 0x333   : > { %1305 = vadd.xlane.f32.xlu0 %v1304_v34 }
 0x334   : > { %v12301_v48 = vpop.eup %11127 }
 0x335   : > { %v1298_v3 = vsel %vm1099_vm3, %v12301_v48, 0.0  ;;  %v12328_v52 = vpop.eup %11129  ;;  %v12344_v63 = vpop.permute.xlu1 %1691 }
 0x336   : > { %v1301_v22 = vsel %vm1099_vm3, %v12328_v52, 0.0 }
 0x337   : > { %1299 = vadd.xlane.f32.xlu0 %v1298_v3 }
 0x339   : > { %v12352_v1 = vpop.permute.xlu1 %1753 }
 0x33d   : > { %v12358_v39 = vpop.permute.xlu1 %1693 }
 0x340   : > { %1815 = vrot.lane.b32.xlu1 %v11988_v38, %s11750_s13 }
 0x344   : > { %1817 = vrot.lane.b32.xlu1 %v11986_v37, %s11750_s13 }
 0x348   : > { %1881 = vrot.lane.b32.xlu1 %v11906_v45, %s11751_s17 }
 0x34d   : > { %1755 = vrot.lane.b32.xlu0 %v11983_v35, %s11750_s13 }
 0x351   : > { %1951 = vrot.lane.b32.xlu0 %v11920_v58, %s11751_s17 }
 0x355   : > { %1879 = vrot.lane.b32.xlu0 %v11928_v61, %s11752_s18 }
 0x359   : > { %1947 = vrot.lane.b32.xlu0 %v11920_v58, %s11752_s18 }
 0x35d   : > { %2085 = vrot.lane.b32.xlu0 %v11942_v5, %s11751_s17 }
 0x361   : > { %2015 = vrot.lane.b32.xlu0 %v11936_v2, %s11752_s18 }
 0x365   : > { %2153 = vrot.lane.b32.xlu0 %v11957_v15, %s11751_s17 }
 0x369   : > { %2155 = vrot.lane.b32.xlu0 %v11952_v13, %s11751_s17 }
 0x36c   : > { %1302 = vadd.xlane.f32.xlu1 %v1301_v22 }
 0x36d   : > { %2083 = vrot.lane.b32.xlu0 %v11944_v6, %s11752_s18 }
 0x371   : > { %2223 = vrot.lane.b32.xlu0 %v11972_v27, %s11751_s17 }
 0x375   : > { %2151 = vrot.lane.b32.xlu0 %v11952_v13, %s11752_s18 }
 0x379   : > { %2219 = vrot.lane.b32.xlu0 %v11972_v27, %s11752_s18 }
 0x37d   : > { %1883 = vrot.lane.b32.xlu1 %v11928_v61, %s11751_s17  ;;  %2357 = vrot.lane.b32.xlu0 %v11988_v38, %s11751_s17 }
 0x381   : > { %1949 = vrot.lane.b32.xlu1 %v11914_v54, %s11751_s17  ;;  %2287 = vrot.lane.b32.xlu0 %v11983_v35, %s11752_s18 }
 0x385   : > { %1877 = vrot.lane.b32.xlu1 %v11906_v45, %s11752_s18  ;;  %2353 = vrot.lane.b32.xlu0 %v11988_v38, %s11752_s18 }
 0x388   : > { %v1252_v8 = vpop.xlane.xlu1 %1251 }
 0x389   : > { %2017 = vrot.lane.b32.xlu1 %v11917_v56, %s11751_s17  ;;  %2763 = vrot.lane.b32.xlu0 %v11914_v54, %s11753_s19  ;;  %11131 = vrcp.f32 %v1252_v8 }
 0x38b   : > { %v1249_v29 = vpop.xlane.xlu0 %1248 }
 0x38c   : > { %11133 = vrcp.f32 %v1249_v29  ;;  %v1246_v53 = vpop.xlane.xlu1 %1245 }
 0x38d   : > { %11135 = vrcp.f32 %v1246_v53  ;;  %1945 = vrot.lane.b32.xlu1 %v11914_v54, %s11752_s18  ;;  %2703 = vrot.lane.b32.xlu0 %v11928_v61, %s11753_s19 }
 0x390   : > { %v1261_v9 = vpop.xlane.xlu0 %1260  ;;  %v1258_v17 = vpop.xlane.xlu1 %1257 }
 0x391   : > { %2019 = vrot.lane.b32.xlu1 %v11936_v2, %s11751_s17  ;;  %2765 = vrot.lane.b32.xlu0 %v11920_v58, %s11753_s19  ;;  %11137 = vrcp.f32 %v1261_v9  ;;  %v1517_v9 = vsel %vm1391_vm2, %v12185_v51, 0 }
 0x392   : > { %11139 = vrcp.f32 %v1258_v17 }
 0x393   : > { %v11132_v12 = vpop.eup %11131 }
 0x394   : > { %v1255_v18 = vpop.xlane.xlu0 %1254  ;;  %v1342_v21 = vmul.f32 %v11132_v12, %v12193_v33 }
 0x395   : > { %11141 = vrcp.f32 %v1255_v18  ;;  %2013 = vrot.lane.b32.xlu1 %v11917_v56, %s11752_s18  ;;  %2827 = vrot.lane.b32.xlu0 %v11936_v2, %s11753_s19 }
 0x396   : > { %v11134_v54 = vpop.eup %11133  ;;  %v1365_v42 = vpack.c.bf16 %v1342_v21, %v1342_v21 }
 0x397   : > { %v11136_v61 = vpop.eup %11135  ;;  %v1341_v19 = vmul.f32 %v11134_v54, %v12198_v41 }
 0x398   : > { %v1279_v0 = vpop.xlane.xlu0 %1278  ;;  %v1340_v58 = vmul.f32 %v11136_v61, %v12200_v25 }
 0x399   : > { %2087 = vrot.lane.b32.xlu1 %v11944_v6, %s11751_s17  ;;  %11143 = vrcp.f32 %v1279_v0 }
 0x39a   : > { %v1364_v34 = vpack.c.bf16 %v1341_v19, %v1340_v58  ;;  %v1579_v19 = vsel %vm1391_vm2, %v12334_v4, 0 }
 0x39b   : > { %v1276_v3 = vpop.xlane.xlu1 %1275  ;;  %v11138_v46 = vpop.eup %11137 }
 0x39c   : > { %11145 = vrcp.f32 %v1276_v3  ;;  %v1273_v22 = vpop.xlane.xlu0 %1272  ;;  %10149 = vmatprep.mubr.msk.bf16.mxu1 %vm1099_vm3, %v1364_v34  ;;  %v11140_v2 = vpop.eup %11139  ;;  %v1345_v25 = vmul.f32 %v11138_v46, %v12210_v60 }
 0x39d   : > { %11147 = vrcp.f32 %v1273_v22  ;;  %2081 = vrot.lane.b32.xlu1 %v11942_v5, %s11752_s18  ;;  %10150 = vmatmul.mubr.msk.bf16.vlgmr.msra.gmra.mrb[16].mxu1 %vm1099_vm3, %v1365_v42  ;;  %v1344_v53 = vmul.f32 %v11140_v2, %v12208_v57  ;;  %v1703_v42 = vsel %vm1391_vm2, %v12358_v39, 0 }
 0x39e   : > { %10162 = vmatpush3.bf16.msra.mxu1 %v12064_v20  ;;  %v1367_v12 = vpack.c.bf16 %v1345_v25, %v1345_v25 }
 0x39f   : > { %v11142_v33 = vpop.eup %11141  ;;  %10815 = vmatprep.subr.msk.bf16.mxu1 %vm1391_vm2, %v12185_v51  ;;  %v1270_v41 = vpop.xlane.xlu1 %1269 }
 0x3a0   : > { %v1264_v8 = vpop.xlane.xlu0 %1263  ;;  %v1343_v29 = vmul.f32 %v11142_v33, %v12218_v14  ;;  %11149 = vrcp.f32 %v1270_v41 }
 0x3a1   : > { %2221 = vrot.lane.b32.xlu1 %v11967_v24, %s11751_s17  ;;  %11151 = vrcp.f32 %v1264_v8 }
 0x3a2   : > { %10164 = vmatpush3.bf16.msra.mxu1 %v1517_v9  ;;  %v1366_v20 = vpack.c.bf16 %v1344_v53, %v1343_v29 }
 0x3a3   : > { %10177 = vmatprep.subr.bf16.mxu1 %v12326_v47  ;;  %v1267_v17 = vpop.xlane.xlu1 %1266  ;;  %v11144_v60 = vpop.eup %11143 }
 0x3a4   : > { %11153 = vrcp.f32 %v1267_v17  ;;  %10157 = vmatprep.mubr.msk.bf16.mxu0 %vm1099_vm3, %v1366_v20  ;;  %v1351_v18 = vmul.f32 %v11144_v60, %v12223_v36 }
 0x3a5   : > { %2149 = vrot.lane.b32.xlu1 %v11957_v15, %s11752_s18  ;;  %10158 = vmatmul.mubr.msk.bf16.vlgmr.msra.gmra.mrb[40].mxu0 %vm1099_vm3, %v1367_v12 }
 0x3a6   : > { %v11146_v57 = vpop.eup %11145  ;;  %10170 = vmatpush3.bf16.msra.mxu0 %v12276_v7  ;;  %v1371_v0 = vpack.c.bf16 %v1351_v18, %v1351_v18 }
 0x3a7   : > { %v11148_v51 = vpop.eup %11147  ;;  %10816 = vmatprep.subr.msk.bf16.mxu0 %vm1391_vm2, %v12334_v4  ;;  %v1350_v14 = vmul.f32 %v11146_v57, %v12228_v40 }
 0x3a8   : > { %v1297_v54 = vpop.xlane.xlu1 %1296  ;;  %v1349_v61 = vmul.f32 %v11148_v51, %v12230_v30 }
 0x3a9   : > { %2289 = vrot.lane.b32.xlu1 %v11970_v26, %s11751_s17  ;;  %11155 = vrcp.f32 %v1297_v54 }
 0x3aa   : > { %10172 = vmatpush3.bf16.msra.mxu0 %v1579_v19  ;;  %v1370_v21 = vpack.c.bf16 %v1350_v14, %v1349_v61  ;;  %v11150_v7 = vpop.eup %11149 }
 0x3ab   : > { %10185 = vmatprep.subr.bf16.mxu0 %v12344_v63  ;;  %v11152_v58 = vpop.eup %11151  ;;  %v1348_v30 = vmul.f32 %v11150_v7, %v12238_v55 }
 0x3ac   : > { %10173 = vmatprep.mubr.msk.bf16.mxu0 %vm1099_vm3, %v1370_v21  ;;  %v1291_v40 = vpop.xlane.xlu1 %1290  ;;  %v1346_v4 = vmul.f32 %v11152_v58, %v12240_v49 }
 0x3ad   : > { %2217 = vrot.lane.b32.xlu1 %v11967_v24, %s11752_s18  ;;  %10174 = vmatmul.mubr.msk.bf16.vlgmr.msra.gmra.mrb[44].mxu0 %vm1099_vm3, %v1371_v0  ;;  %11157 = vrcp.f32 %v1291_v40  ;;  %v1369_v55 = vpack.c.bf16 %v1348_v30, %v1348_v30 }
 0x3ae   : > { %v11154_v36 = vpop.eup %11153  ;;  %10186 = vmatpush3.bf16.msra.mxu0 %v12344_v63 }
 0x3af   : > { %10818 = vmatprep.subr.msk.bf16.mxu0 %vm1391_vm2, %v12358_v39  ;;  %v1347_v34 = vmul.f32 %v11154_v36, %v12248_v11  ;;  %v1641_v39 = vsel %vm1391_vm2, %v12340_v59, 0 }
 0x3b0   : > { %v1294_v3 = vpop.xlane.xlu1 %1293  ;;  %v1282_v63 = vpop.xlane.xlu0 %1281 }
 0x3b1   : > { %2291 = vrot.lane.b32.xlu1 %v11983_v35, %s11751_s17  ;;  %v1368_v46 = vpack.c.bf16 %v1347_v34, %v1346_v4  ;;  %11159 = vrcp.f32 %v1294_v3 }
 0x3b2   : > { %10188 = vmatpush3.bf16.msra.mxu0 %v1703_v42 }
 0x3b3   : > { %10165 = vmatprep.mubr.msk.bf16.mxu1 %vm1099_vm3, %v1368_v46  ;;  %v11156_v2 = vpop.eup %11155 }
 0x3b4   : > { %10166 = vmatmul.mubr.msk.bf16.vlgmr.msra.gmra.mrb[20].mxu1 %vm1099_vm3, %v1369_v55  ;;  %v1288_v49 = vpop.xlane.xlu1 %1287  ;;  %v1357_v8 = vmul.f32 %v11156_v2, %v12253_v31 }
 0x3b5   : > { %10178 = vmatpush3.bf16.msra.mxu1 %v12326_v47  ;;  %2285 = vrot.lane.b32.xlu1 %v11970_v26, %s11752_s18  ;;  %11161 = vrcp.f32 %v1288_v49 }
 0x3b6   : > { %10817 = vmatprep.subr.msk.bf16.mxu1 %vm1391_vm2, %v12340_v59  ;;  %11163 = vrcp.f32 %v1282_v63  ;;  %v1375_v17 = vpack.c.bf16 %v1357_v8, %v1357_v8 }
 0x3b7   : > { %v11158_v33 = vpop.eup %11157 }
 0x3b8   : > { %v1315_v11 = vpop.xlane.xlu0 %1314  ;;  %v1285_v22 = vpop.xlane.xlu1 %1284  ;;  %v1355_v59 = vmul.f32 %v11158_v33, %v12258_v32 }
 0x3b9   : > { %10180 = vmatpush3.bf16.msra.mxu1 %v1641_v39  ;;  %2359 = vrot.lane.b32.xlu1 %v11986_v37, %s11751_s17  ;;  %11165 = vrcp.f32 %v1285_v22 }
 0x3ba   : > { %10193 = vmatprep.subr.bf16.mxu1 %v12352_v1  ;;  %11167 = vrcp.f32 %v1315_v11 }
 0x3bb   : > { %v11160_v47 = vpop.eup %11159 }
 0x3bc   : > { %v1312_v41 = vpop.xlane.xlu0 %1311  ;;  %v1309_v25 = vpop.xlane.xlu1 %1308  ;;  %v1356_v29 = vmul.f32 %v11160_v47, %v12263_v28 }
 0x3bd   : > { %11169 = vrcp.f32 %v1312_v41  ;;  %2355 = vrot.lane.b32.xlu1 %v11986_v37, %s11752_s18 }
 0x3be   : > { %11171 = vrcp.f32 %v1309_v25  ;;  %v1374_v53 = vpack.c.bf16 %v1356_v29, %v1355_v59 }
 0x3bf   : > { %v11162_v12 = vpop.eup %11161 }
 0x3c0   : > { %v1306_v9 = vpop.xlane.xlu0 %1305  ;;  %v1816_v20 = vpop.permute.xlu1 %1815  ;;  %10189 = vmatprep.mubr.msk.bf16.mxu0 %vm1099_vm3, %v1374_v53  ;;  %v1354_v28 = vmul.f32 %v11162_v12, %v12273_v10 }
 0x3c1   : > { %2701 = vrot.lane.b32.xlu1 %v11906_v45, %s11753_s19  ;;  %v11164_v31 = vpop.eup %11163  ;;  %10190 = vmatmul.mubr.msk.bf16.vlgmr.msra.gmra.mrb[48].mxu0 %vm1099_vm3, %v1375_v17  ;;  %11173 = vrcp.f32 %v1306_v9 }
 0x3c2   : > { %10201 = vmatprep.subr.bf16.mxu0 %v1816_v20  ;;  %v1352_v45 = vmul.f32 %v11164_v31, %v12266_v23  ;;  %v1373_v21 = vpack.c.bf16 %v1354_v28, %v1354_v28 }
 0x3c3   : > { %10202 = vmatpush3.bf16.msra.mxu0 %v1816_v20  ;;  %v11166_v60 = vpop.eup %11165 }
 0x3c4   : > { %v1300_v32 = vpop.xlane.xlu0 %1299  ;;  %v1818_v57 = vpop.permute.xlu1 %1817  ;;  %v1353_v18 = vmul.f32 %v11166_v60, %v12280_v50 }
 0x3c5   : > { %v11168_v51 = vpop.eup %11167  ;;  %2825 = vrot.lane.b32.xlu1 %v11917_v56, %s11753_s19  ;;  %10820 = vmatprep.subr.msk.bf16.mxu0 %vm1391_vm2, %v1818_v57  ;;  %v1827_v14 = vsel %vm1391_vm2, %v1818_v57, 0  ;;  %11175 = vrcp.f32 %v1300_v32 }
 0x3c6   : > { %v1372_v61 = vpack.c.bf16 %v1353_v18, %v1352_v45  ;;  %v1363_v10 = vmul.f32 %v11168_v51, %v12283_v16 }
 0x3c7   : > { %v11170_v54 = vpop.eup %11169  ;;  %10204 = vmatpush3.bf16.msra.mxu0 %v1827_v14 }
 0x3c8   : > { %v11172_v19 = vpop.eup %11171  ;;  %v1362_v7 = vmul.f32 %v11170_v54, %v12289_v62  ;;  %v1756_v0 = vpop.permute.xlu0 %1755  ;;  %10181 = vmatprep.mubr.msk.bf16.mxu1 %vm1099_vm3, %v1372_v61  ;;  %v1379_v50 = vpack.c.bf16 %v1363_v10, %v1363_v10 }
 0x3c9   : > { %2887 = vrot.lane.b32.xlu1 %v11942_v5, %s11753_s19  ;;  %v1361_v56 = vmul.f32 %v11172_v19, %v12291_v43  ;;  %10182 = vmatmul.mubr.msk.bf16.vlgmr.msra.gmra.mrb[24].mxu1 %vm1099_vm3, %v1373_v21  ;;  %v1765_v16 = vsel %vm1391_vm2, %v1756_v0, 0  ;;  %v1882_v62 = vpop.permute.xlu1 %1881 }
 0x3ca   : > { %10194 = vmatpush3.bf16.msra.mxu1 %v12352_v1  ;;  %v1892_v41 = vsel %vm576_vm1, %v1882_v62, 0 }
 0x3cb   : > { %v1378_v23 = vpack.c.bf16 %v1362_v7, %v1361_v56  ;;  %10819 = vmatprep.subr.msk.bf16.mxu1 %vm1391_vm2, %v1756_v0  ;;  %v11174_v4 = vpop.eup %11173 }
 0x3cc   : > { %v1952_v5 = vpop.permute.xlu0 %1951  ;;  %v1360_v63 = vmul.f32 %v11174_v4, %v12297_v44 }
 0x3cd   : > { %10205 = vmatprep.mubr.msk.bf16.mxu0 %vm1099_vm3, %v1378_v23  ;;  %v1963_v44 = vsel %vm576_vm1, %v1952_v5, 0 }
 0x3ce   : > { %10206 = vmatmul.mubr.msk.bf16.vlgmr.msra.gmra.mrb[52].mxu0 %vm1099_vm3, %v1379_v50  ;;  %10196 = vmatpush3.bf16.msra.mxu1 %v1765_v16  ;;  %v1377_v33 = vpack.c.bf16 %v1360_v63, %v1360_v63 }
 0x3cf   : > { %10821 = vmatprep.subr.msk.bf16.mxu1 %vm576_vm1, %v1882_v62  ;;  %v11176_v3 = vpop.eup %11175 }
 0x3d0   : > { %v1880_v43 = vpop.permute.xlu0 %1879  ;;  %v1358_v11 = vmul.f32 %v11176_v3, %v12301_v48 }
 0x3d4   : > { %v1948_v58 = vpop.permute.xlu0 %1947 }
 0x3d8   : > { %v2086_v40 = vpop.permute.xlu0 %2085 }
 0x3d9   : > { %v2096_v59 = vsel %vm576_vm1, %v2086_v40, 0 }
 0x3dc   : > { %v12470_v36 = vpop.permute.xlu0 %2015 }
 0x3e0   : > { %v2154_v42 = vpop.permute.xlu0 %2153 }
 0x3e1   : > { %v2164_v18 = vsel %vm576_vm1, %v2154_v42, 0 }
 0x3e4   : > { %v2156_v2 = vpop.permute.xlu0 %2155 }
 0x3e5   : > { %v2167_v10 = vsel %vm576_vm1, %v2156_v2, 0 }
 0x3f9   : > { %v1303_v1 = vpop.xlane.xlu1 %1302 }
 0x3fa   : > { %11177 = vrcp.f32 %v1303_v1 }
 0x3fd   : > { %v1884_v30 = vpop.permute.xlu1 %1883 }
 0x3fe   : > { %v1895_v8 = vsel %vm576_vm1, %v1884_v30, 0 }
 0x401   : > { %v1950_v34 = vpop.permute.xlu1 %1949 }
 0x402   : > { %10823 = vmatprep.subr.msk.bf16.mxu0 %vm576_vm1, %v1950_v34  ;;  %v1960_v46 = vsel %vm576_vm1, %v1950_v34, 0 }
 0x403   : > { %10218 = vmatpush3.bf16.xpose.msra.mxu0 %v1960_v46 }
 0x404   : > { %v11178_v55 = vpop.eup %11177  ;;  %10824 = vmatprep.subr.msk.bf16.mxu0 %vm576_vm1, %v1952_v5 }
 0x405   : > { %v1878_v49 = vpop.permute.xlu1 %1877  ;;  %v1359_v39 = vmul.f32 %v11178_v55, %v12328_v52  ;;  %v2084_v52 = vpop.permute.xlu0 %2083 }
 0x407   : > { %v1376_v22 = vpack.c.bf16 %v1359_v39, %v1358_v11 }
 0x409   : > { %10197 = vmatprep.mubr.msk.bf16.mxu1 %vm1099_vm3, %v1376_v22  ;;  %v2018_v47 = vpop.permute.xlu1 %2017  ;;  %v2224_v29 = vpop.permute.xlu0 %2223 }
 0x40a   : > { %10198 = vmatmul.mubr.msk.bf16.vlgmr.msra.gmra.mrb[28].mxu1 %vm1099_vm3, %v1377_v33  ;;  %v2028_v17 = vsel %vm576_vm1, %v2018_v47, 0  ;;  %v2235_v54 = vsel %vm576_vm1, %v2224_v29, 0 }
 0x40b   : > { %10210 = vmatpush3.bf16.xpose.msra.mxu1 %v1892_v41  ;;  %10213 = vmatprep.mubr.msk.bf16.mxu1 %vm576_vm1, %v1878_v49 }
 0x40c   : > { %10822 = vmatprep.subr.msk.bf16.mxu1 %vm576_vm1, %v1884_v30  ;;  %10220 = vmatpush3.bf16.xpose.msra.mxu0 %v1963_v44 }
 0x40d   : > { %10827 = vmatprep.subr.msk.bf16.mxu0 %vm576_vm1, %v2086_v40  ;;  %v1946_v48 = vpop.permute.xlu1 %1945  ;;  %v2152_v20 = vpop.permute.xlu0 %2151 }
 0x40e   : > { %10221 = vmatprep.mubr.msk.bf16.mxu0 %vm576_vm1, %v1946_v48 }
 0x411   : > { %v2020_v25 = vpop.permute.xlu1 %2019  ;;  %v2220_v60 = vpop.permute.xlu0 %2219 }
 0x412   : > { %v2031_v57 = vsel %vm576_vm1, %v2020_v25, 0 }
 0x413   : > { %10212 = vmatpush3.bf16.xpose.msra.mxu1 %v1895_v8  ;;  %10222 = vmatmul.mubr.msk.bf16.vlgmr.msra.gmra.mrb[56].mxu0 %vm576_vm1, %v1948_v58 }
 0x414   : > { %10825 = vmatprep.subr.msk.bf16.mxu1 %vm576_vm1, %v2018_v47  ;;  %10234 = vmatpush3.bf16.xpose.msra.mxu0 %v2096_v59 }
 0x415   : > { %v2014_v53 = vpop.permute.xlu1 %2013  ;;  %v2358_v14 = vpop.permute.xlu0 %2357 }
 0x416   : > { %v2368_v0 = vsel %vm576_vm1, %v2358_v14, 0 }
 0x419   : > { %v2088_v9 = vpop.permute.xlu1 %2087  ;;  %v2288_v61 = vpop.permute.xlu0 %2287 }
 0x41a   : > { %10214 = vmatmul.mubr.msk.bf16.vlgmr.msra.gmra.mrb[32].mxu1 %vm576_vm1, %v1880_v43  ;;  %10828 = vmatprep.subr.msk.bf16.mxu0 %vm576_vm1, %v2088_v9  ;;  %v2099_v12 = vsel %vm576_vm1, %v2088_v9, 0 }
 0x41b   : > { %10226 = vmatpush3.bf16.xpose.msra.mxu1 %v2028_v17  ;;  %10229 = vmatprep.mubr.msk.bf16.mxu1 %vm576_vm1, %v2014_v53 }
 0x41c   : > { %10826 = vmatprep.subr.msk.bf16.mxu1 %vm576_vm1, %v2020_v25  ;;  %10236 = vmatpush3.bf16.xpose.msra.mxu0 %v2099_v12 }
 0x41d   : > { %v2082_v31 = vpop.permute.xlu1 %2081  ;;  %v2354_v7 = vpop.permute.xlu0 %2353 }
 0x41e   : > { %10237 = vmatprep.mubr.msk.bf16.mxu0 %vm576_vm1, %v2082_v31 }
 0x421   : > { %v2222_v32 = vpop.permute.xlu1 %2221  ;;  %v2764_v23 = vpop.permute.xlu0 %2763 }
 0x422   : > { %10831 = vmatprep.subr.msk.bf16.mxu0 %vm576_vm1, %v2222_v32  ;;  %v2232_v28 = vsel %vm576_vm1, %v2222_v32, 0 }
 0x423   : > { %10228 = vmatpush3.bf16.xpose.msra.mxu1 %v2031_v57  ;;  %10238 = vmatmul.mubr.msk.bf16.vlgmr.msra.gmra.mrb[60].mxu0 %vm576_vm1, %v2084_v52 }
 0x424   : > { %10829 = vmatprep.subr.msk.bf16.mxu1 %vm576_vm1, %v2154_v42  ;;  %10250 = vmatpush3.bf16.xpose.msra.mxu0 %v2232_v28 }
 0x425   : > { %10832 = vmatprep.subr.msk.bf16.mxu0 %vm576_vm1, %v2224_v29  ;;  %v2150_v51 = vpop.permute.xlu1 %2149  ;;  %v2704_v43 = vpop.permute.xlu0 %2703 }
 0x426   : > { %v2713_v34 = vsel %vm1391_vm2, %v2704_v43, 0 }
 0x429   : > { %v2290_v45 = vpop.permute.xlu1 %2289  ;;  %v2766_v1 = vpop.permute.xlu0 %2765 }
 0x42a   : > { %10230 = vmatmul.mubr.msk.bf16.vlgmr.msra.gmra.mrb[36].mxu1 %vm576_vm1, %v12470_v36  ;;  %v2300_v16 = vsel %vm576_vm1, %v2290_v45, 0  ;;  %v2775_v30 = vsel %vm1391_vm2, %v2766_v1, 0 }
 0x42b   : > { %10242 = vmatpush3.bf16.xpose.msra.mxu1 %v2164_v18  ;;  %10245 = vmatprep.mubr.msk.bf16.mxu1 %vm576_vm1, %v2150_v51 }
 0x42c   : > { %10830 = vmatprep.subr.msk.bf16.mxu1 %vm576_vm1, %v2156_v2  ;;  %10252 = vmatpush3.bf16.xpose.msra.mxu0 %v2235_v54 }
 0x42d   : > { %10835 = vmatprep.subr.msk.bf16.mxu0 %vm576_vm1, %v2358_v14  ;;  %v2218_v19 = vpop.permute.xlu1 %2217 }
 0x42e   : > { %10253 = vmatprep.mubr.msk.bf16.mxu0 %vm576_vm1, %v2218_v19 }
 0x431   : > { %v2292_v21 = vpop.permute.xlu1 %2291 }
 0x432   : > { %v2303_v40 = vsel %vm576_vm1, %v2292_v21, 0 }
 0x433   : > { %10244 = vmatpush3.bf16.xpose.msra.mxu1 %v2167_v10  ;;  %10254 = vmatmul.mubr.msk.bf16.vlgmr.msra.gmra.mrb[64].mxu0 %vm576_vm1, %v2220_v60 }
 0x434   : > { %10833 = vmatprep.subr.msk.bf16.mxu1 %vm576_vm1, %v2290_v45  ;;  %10266 = vmatpush3.bf16.xpose.msra.mxu0 %v2368_v0 }
 0x435   : > { %10269 = vmatprep.mubr.msk.bf16.mxu0 %vm576_vm1, %v2354_v7  ;;  %v2286_v56 = vpop.permute.xlu1 %2285 }
 0x439   : > { %v2360_v50 = vpop.permute.xlu1 %2359 }
 0x43a   : > { %10246 = vmatmul.mubr.msk.bf16.vlgmr.msra.gmra.mrb[40].mxu1 %vm576_vm1, %v2152_v20  ;;  %10836 = vmatprep.subr.msk.bf16.mxu0 %vm576_vm1, %v2360_v50  ;;  %v2371_v62 = vsel %vm576_vm1, %v2360_v50, 0 }
 0x43b   : > { %10258 = vmatpush3.bf16.xpose.msra.mxu1 %v2300_v16  ;;  %10261 = vmatprep.mubr.msk.bf16.mxu1 %vm576_vm1, %v2286_v56 }
 0x43c   : > { %10834 = vmatprep.subr.msk.bf16.mxu1 %vm576_vm1, %v2292_v21  ;;  %10268 = vmatpush3.bf16.xpose.msra.mxu0 %v2371_v62 }
 0x43d   : > { %10281 = vmatprep.subr.bf16.mxu0 %v2764_v23  ;;  %v2356_v5 = vpop.permute.xlu1 %2355 }
 0x441   : > { %v2702_v58 = vpop.permute.xlu1 %2701 }
 0x443   : > { %10260 = vmatpush3.bf16.xpose.msra.mxu1 %v2303_v40  ;;  %10270 = vmatmul.mubr.msk.bf16.vlgmr.msra.gmra.mrb[68].mxu0 %vm576_vm1, %v2356_v5 }
 0x444   : > { %10273 = vmatprep.subr.bf16.mxu1 %v2702_v58  ;;  %10282 = vmatpush3.bf16.msra.mxu0 %v2764_v23 }
 0x445   : > { %10838 = vmatprep.subr.msk.bf16.mxu0 %vm1391_vm2, %v2766_v1  ;;  %v12525_v36 = vpop.permute.xlu1 %2825 }
 0x448   : > { %10284 = vmatpush3.bf16.msra.mxu0 %v2775_v30 }
 0x449   : > { %v12528_v4 = vpop.permute.xlu1 %2887 }
 0x44a   : > { %10262 = vmatmul.mubr.msk.bf16.vlgmr.msra.gmra.mrb[44].mxu1 %vm576_vm1, %v2288_v61  ;;  %10297 = vmatprep.subr.bf16.mxu0 %v12528_v4 }
 0x44b   : > { %10274 = vmatpush3.bf16.msra.mxu1 %v2702_v58 }
 0x44c   : > { %10837 = vmatprep.subr.msk.bf16.mxu1 %vm1391_vm2, %v2704_v43 }
 0x44f   : > { %10276 = vmatpush3.bf16.msra.mxu1 %v2713_v34 }
 0x450   : > { %10289 = vmatprep.subr.bf16.mxu1 %v12525_v36 }
 0x470   : > { %v12535_v3 = vpop.f32.mrb[16].mxu1 }
 0x471   : > { %v12537_v42 = vpop.f32.mrb[17].mxu1 }
 0x472   : > { %v10152_v46 = vpop.f32.mrb[18].mxu1 }
 0x473   : > { %v12539_v55 = vpop.f32.mrb[19].mxu1 }
 0x478   : > { %v12541_v63 = vpop.f32.mrb[40].mxu0 }
 0x479   : > { %v12543_v49 = vpop.f32.mrb[41].mxu0 }
 0x47a   : > { %v10160_v11 = vpop.f32.mrb[42].mxu0 }
 0x47b   : > { %v12545_v39 = vpop.f32.mrb[43].mxu0 }
 0x480   : > { %v12547_v22 = vpop.f32.mrb[44].mxu0 }
 0x481   : > { %v12549_v2 = vpop.f32.mrb[45].mxu0 }
 0x482   : > { %v10176_v33 = vpop.f32.mrb[46].mxu0 }
 0x483   : > { %v12551_v47 = vpop.f32.mrb[47].mxu0 }
 0x487   : > { %v12553_v41 = vpop.f32.mrb[20].mxu1 }
 0x488   : > { %v12555_v44 = vpop.f32.mrb[21].mxu1 }
 0x489   : > { %v10168_v48 = vpop.f32.mrb[22].mxu1 }
 0x48a   : > { %v12557_v52 = vpop.f32.mrb[23].mxu1 }
 0x494   : > { %v12559_v25 = vpop.f32.mrb[48].mxu0 }
 0x495   : > { %v12561_v8 = vpop.f32.mrb[49].mxu0 }
 0x496   : > { %v10192_v59 = vpop.f32.mrb[50].mxu0 }
 0x497   : > { %v12563_v29 = vpop.f32.mrb[51].mxu0 }
 0x498   : > { %16130 = vst [vmem:[#allocation5_spill] sm:$0xff] %v12563_v29 }
 0x49c   : > { %v12565_v53 = vpop.f32.mrb[24].mxu1 }
 0x49d   : > { %v12567_v9 = vpop.f32.mrb[25].mxu1 }
 0x49e   : > { %v10184_v20 = vpop.f32.mrb[26].mxu1 }
 0x49f   : > { %v12569_v17 = vpop.f32.mrb[27].mxu1 }
 0x4a1   : > { %v12571_v12 = vpop.f32.mrb[52].mxu0 }
 0x4a2   : > { %16131 = vst [vmem:[#allocation6_spill] sm:$0xff] %v12571_v12  ;;  %v12573_v31 = vpop.f32.mrb[53].mxu0 }
 0x4a3   : > { %16132 = vst [vmem:[#allocation7_spill] sm:$0xff] %v12573_v31  ;;  %v10208_v60 = vpop.f32.mrb[54].mxu0 }
 0x4a4   : > { %v12575_v32 = vpop.f32.mrb[55].mxu0 }
 0x4a5   : > { %16133 = vst [vmem:[#allocation8_spill] sm:$0xff] %v12575_v32 }
 0x4dd   : > { %v12577_v57 = vpop.f32.mrb[28].mxu1 }
 0x4de   : > { %16134 = vst [vmem:[#allocation9_spill] sm:$0xff] %v12577_v57  ;;  %v12579_v28 = vpop.f32.mrb[29].mxu1 }
 0x4df   : > { %16135 = vst [vmem:[#allocation10_spill] sm:$0xff] %v12579_v28  ;;  %v10200_v51 = vpop.f32.mrb[30].mxu1 }
 0x4e0   : > { %v12581_v14 = vpop.f32.mrb[31].mxu1 }
 0x4e1   : > { %16136 = vst [vmem:[#allocation11_spill] sm:$0xff] %v12581_v14 }
 0x4e6   : > { %v12583_v45 = vpop.f32.mrb[56].mxu0 }
 0x4e7   : > { %v12585_v18 = vpop.f32.mrb[57].mxu0  ;;  %v2436_v54 = vsel %vm1099_vm3, %v12583_v45, -inf }
 0x4e8   : > { %2437 = vmax.xlane.f32.xlu1 %v2436_v54  ;;  %v10224_v61 = vpop.f32.mrb[58].mxu0  ;;  %v2430_v19 = vsel %vm1099_vm3, %v12585_v18, -inf }
 0x4e9   : > { %2431 = vmax.xlane.f32.xlu0 %v2430_v19  ;;  %v12591_v21 = vpop.f32.mrb[59].mxu0 }
 0x4ea   : > { %v2433_v7 = vsel %vm1099_vm3, %v12591_v21, -inf }
 0x4ed   : > { %v12595_v10 = vpop.f32.mrb[32].mxu1  ;;  %2434 = vmax.xlane.f32.xlu0 %v2433_v7 }
 0x4ee   : > { %v12597_v0 = vpop.f32.mrb[33].mxu1  ;;  %v2427_v50 = vsel %vm1099_vm3, %v12595_v10, -inf }
 0x4ef   : > { %v10216_v56 = vpop.f32.mrb[34].mxu1  ;;  %v2421_v62 = vsel %vm1099_vm3, %v12597_v0, -inf }
 0x4f0   : > { %v12599_v23 = vpop.f32.mrb[35].mxu1 }
 0x4f1   : > { %2428 = vmax.xlane.f32.xlu0 %v2427_v50  ;;  %v2424_v16 = vsel %vm1099_vm3, %v12599_v23, -inf }
 0x4f2   : > { %2425 = vmax.xlane.f32.xlu1 %v2424_v16 }
 0x4f5   : > { %2422 = vmax.xlane.f32.xlu0 %v2421_v62 }
 0x4f6   : > { %v12607_v5 = vpop.f32.mrb[60].mxu0 }
 0x4f7   : > { %v12609_v43 = vpop.f32.mrb[61].mxu0  ;;  %v2454_v58 = vsel %vm1099_vm3, %v12607_v5, -inf }
 0x4f8   : > { %2455 = vmax.xlane.f32.xlu1 %v2454_v58  ;;  %v10240_v40 = vpop.f32.mrb[62].mxu0  ;;  %v2448_v34 = vsel %vm1099_vm3, %v12609_v43, -inf }
 0x4f9   : > { %v12613_v1 = vpop.f32.mrb[63].mxu0 }
 0x4fa   : > { %v2451_v30 = vsel %vm1099_vm3, %v12613_v1, -inf }
 0x4fb   : > { %2452 = vmax.xlane.f32.xlu0 %v2451_v30 }
 0x4fc   : > { %2449 = vmax.xlane.f32.xlu1 %v2448_v34 }
 0x4fd   : > { %v12619_v46 = vpop.f32.mrb[36].mxu1 }
 0x4fe   : > { %v12621_v11 = vpop.f32.mrb[37].mxu1  ;;  %v2445_v33 = vsel %vm1099_vm3, %v12619_v46, -inf }
 0x4ff   : > { %v10232_v48 = vpop.f32.mrb[38].mxu1  ;;  %2446 = vmax.xlane.f32.xlu0 %v2445_v33  ;;  %v2439_v60 = vsel %vm1099_vm3, %v12621_v11, -inf }
 0x500   : > { %v12625_v59 = vpop.f32.mrb[39].mxu1 }
 0x501   : > { %v2442_v20 = vsel %vm1099_vm3, %v12625_v59, -inf }
 0x502   : > { %2443 = vmax.xlane.f32.xlu1 %v2442_v20 }
 0x503   : > { %2440 = vmax.xlane.f32.xlu0 %v2439_v60 }
 0x506   : > { %v12631_v51 = vpop.f32.mrb[64].mxu0 }
 0x507   : > { %v12633_v54 = vpop.f32.mrb[65].mxu0  ;;  %v2472_v61 = vsel %vm1099_vm3, %v12631_v51, -inf }
 0x508   : > { %2473 = vmax.xlane.f32.xlu1 %v2472_v61  ;;  %v10256_v19 = vpop.f32.mrb[66].mxu0  ;;  %v2466_v50 = vsel %vm1099_vm3, %v12633_v54, -inf }
 0x509   : > { %v12637_v7 = vpop.f32.mrb[67].mxu0 }
 0x50a   : > { %v2469_v56 = vsel %vm1099_vm3, %v12637_v7, -inf }
 0x50b   : > { %2470 = vmax.xlane.f32.xlu0 %v2469_v56 }
 0x50c   : > { %2467 = vmax.xlane.f32.xlu1 %v2466_v50 }
 0x50d   : > { %v12643_v16 = vpop.f32.mrb[40].mxu1 }
 0x50e   : > { %v12645_v62 = vpop.f32.mrb[41].mxu1  ;;  %v2463_v58 = vsel %vm1099_vm3, %v12643_v16, -inf }
 0x50f   : > { %v10248_v40 = vpop.f32.mrb[42].mxu1  ;;  %2464 = vmax.xlane.f32.xlu0 %v2463_v58  ;;  %v2457_v33 = vsel %vm1099_vm3, %v12645_v62, -inf }
 0x510   : > { %v12649_v30 = vpop.f32.mrb[43].mxu1 }
 0x511   : > { %v2460_v34 = vsel %vm1099_vm3, %v12649_v30, -inf }
 0x512   : > { %2461 = vmax.xlane.f32.xlu1 %v2460_v34 }
 0x513   : > { %2458 = vmax.xlane.f32.xlu0 %v2457_v33 }
 0x516   : > { %v12655_v48 = vpop.f32.mrb[68].mxu0 }
 0x517   : > { %v12657_v20 = vpop.f32.mrb[69].mxu0  ;;  %v2490_v60 = vsel %vm1099_vm3, %v12655_v48, -inf }
 0x518   : > { %2491 = vmax.xlane.f32.xlu1 %v2490_v60  ;;  %v10272_v61 = vpop.f32.mrb[70].mxu0  ;;  %v2484_v50 = vsel %vm1099_vm3, %v12657_v20, -inf }
 0x519   : > { %v12661_v19 = vpop.f32.mrb[71].mxu0 }
 0x51a   : > { %v2487_v56 = vsel %vm1099_vm3, %v12661_v19, -inf }
 0x51b   : > { %2488 = vmax.xlane.f32.xlu0 %v2487_v56 }
 0x51c   : > { %2485 = vmax.xlane.f32.xlu1 %v2484_v50  ;;  %v12685_v50 = vpop.permute.xlu0 %2827 }
 0x51d   : > { %v12667_v58 = vpop.f32.mrb[44].mxu1 }
 0x51e   : > { %v12669_v40 = vpop.f32.mrb[45].mxu1  ;;  %v2481_v34 = vsel %vm1099_vm3, %v12667_v58, -inf }
 0x51f   : > { %v10264_v33 = vpop.f32.mrb[46].mxu1  ;;  %2482 = vmax.xlane.f32.xlu0 %v2481_v34  ;;  %v2475_v61 = vsel %vm1099_vm3, %v12669_v40, -inf }
 0x520   : > { %v12673_v60 = vpop.f32.mrb[47].mxu1 }
 0x521   : > { %v2478_v56 = vsel %vm1099_vm3, %v12673_v60, -inf }
 0x523   : > { %2476 = vmax.xlane.f32.xlu0 %v2475_v61 }
 0x52d   : > { %2949 = vrot.lane.b32.xlu1 %v11957_v15, %s11753_s19 }
 0x531   : > { %3011 = vrot.lane.b32.xlu1 %v11967_v24, %s11753_s19 }
 0x539   : > { %2889 = vrot.lane.b32.xlu0 %v11944_v6, %s11753_s19 }
 0x555   : > { %2479 = vmax.xlane.f32.xlu1 %v2478_v56 }
 0x575   : > { %v2438_v34 = vpop.xlane.xlu1 %2437 }
 0x576   : > { %v2498_v33 = vsub.f32 %v12583_v45, %v2438_v34  ;;  %v2432_v32 = vpop.xlane.xlu0 %2431 }
 0x577   : > { %v2496_v61 = vsub.f32 %v12585_v18, %v2432_v32 }
 0x578   : > { %v2527_v12 = vmul.f32 1.442695, %v2498_v33 }
 0x579   : > { %v2523_v15 = vmul.f32 1.442695, %v2496_v61 }
 0x57a   : > { %11179 = vpow2.f32 %v2527_v12  ;;  %v2435_v28 = vpop.xlane.xlu0 %2434 }
 0x57b   : > { %v2497_v24 = vsub.f32 %v12591_v21, %v2435_v28  ;;  %11181 = vpow2.f32 %v2523_v15 }
 0x57d   : > { %v2525_v6 = vmul.f32 1.442695, %v2497_v24 }
 0x57e   : > { %v2429_v14 = vpop.xlane.xlu0 %2428 }
 0x57f   : > { %11183 = vpow2.f32 %v2525_v6  ;;  %v2495_v56 = vsub.f32 %v12595_v10, %v2429_v14  ;;  %v2426_v57 = vpop.xlane.xlu1 %2425 }
 0x580   : > { %v2494_v31 = vsub.f32 %v12599_v23, %v2426_v57 }
 0x581   : > { %v2521_v29 = vmul.f32 1.442695, %v2495_v56 }
 0x582   : > { %v2519_v45 = vmul.f32 1.442695, %v2494_v31  ;;  %v2423_v34 = vpop.xlane.xlu0 %2422 }
 0x583   : > { %11185 = vpow2.f32 %v2521_v29  ;;  %v2493_v32 = vsub.f32 %v12597_v0, %v2423_v34 }
 0x584   : > { %v12693_v18 = vpop.eup %11179  ;;  %11187 = vpow2.f32 %v2519_v45 }
 0x585   : > { %v2517_v12 = vmul.f32 1.442695, %v2493_v32  ;;  %v2456_v28 = vpop.xlane.xlu1 %2455  ;;  %v2580_v21 = vsel %vm1099_vm3, %v12693_v18, 0.0  ;;  %v12697_v33 = vpop.eup %11181 }
 0x586   : > { %v2504_v14 = vsub.f32 %v12607_v5, %v2456_v28  ;;  %2581 = vadd.xlane.f32.xlu1 %v2580_v21  ;;  %v2574_v23 = vsel %vm1099_vm3, %v12697_v33, 0.0 }
 0x587   : > { %11189 = vpow2.f32 %v2517_v12 }
 0x588   : > { %v2539_v57 = vmul.f32 1.442695, %v2504_v14  ;;  %v2453_v31 = vpop.xlane.xlu0 %2452 }
 0x589   : > { %v12700_v10 = vpop.eup %11183  ;;  %v2503_v29 = vsub.f32 %v12613_v1, %v2453_v31  ;;  %v2450_v0 = vpop.xlane.xlu1 %2449 }
 0x58a   : > { %11191 = vpow2.f32 %v2539_v57  ;;  %v2502_v61 = vsub.f32 %v12609_v43, %v2450_v0  ;;  %2575 = vadd.xlane.f32.xlu1 %v2574_v23  ;;  %v2577_v15 = vsel %vm1099_vm3, %v12700_v10, 0.0 }
 0x58b   : > { %2578 = vadd.xlane.f32.xlu0 %v2577_v15  ;;  %v2537_v5 = vmul.f32 1.442695, %v2503_v29 }
 0x58c   : > { %v2535_v24 = vmul.f32 1.442695, %v2502_v61  ;;  %v2447_v6 = vpop.xlane.xlu0 %2446 }
 0x58d   : > { %v12708_v56 = vpop.eup %11185  ;;  %v2501_v45 = vsub.f32 %v12619_v46, %v2447_v6 }
 0x58e   : > { %v12711_v1 = vpop.eup %11187  ;;  %11193 = vpow2.f32 %v2535_v24  ;;  %v2571_v34 = vsel %vm1099_vm3, %v12708_v56, 0.0 }
 0x58f   : > { %v2533_v32 = vmul.f32 1.442695, %v2501_v45  ;;  %2572 = vadd.xlane.f32.xlu0 %v2571_v34  ;;  %v2444_v43 = vpop.xlane.xlu1 %2443  ;;  %v2568_v12 = vsel %vm1099_vm3, %v12711_v1, 0.0  ;;  %11195 = vpow2.f32 %v2537_v5 }
 0x590   : > { %v2500_v28 = vsub.f32 %v12625_v59, %v2444_v43  ;;  %v2441_v21 = vpop.xlane.xlu0 %2440  ;;  %2569 = vadd.xlane.f32.xlu1 %v2568_v12 }
 0x591   : > { %v12718_v14 = vpop.eup %11189  ;;  %v2499_v46 = vsub.f32 %v12621_v11, %v2441_v21  ;;  %11197 = vpow2.f32 %v2533_v32 }
 0x592   : > { %v2531_v57 = vmul.f32 1.442695, %v2500_v28  ;;  %v2565_v31 = vsel %vm1099_vm3, %v12718_v14, 0.0 }
 0x593   : > { %2566 = vadd.xlane.f32.xlu0 %v2565_v31  ;;  %v2529_v0 = vmul.f32 1.442695, %v2499_v46 }
 0x594   : > { %v12723_v29 = vpop.eup %11191  ;;  %11199 = vpow2.f32 %v2531_v57 }
 0x595   : > { %v2474_v23 = vpop.xlane.xlu1 %2473  ;;  %v2598_v59 = vsel %vm1099_vm3, %v12723_v29, 0.0  ;;  %11201 = vpow2.f32 %v2529_v0 }
 0x596   : > { %v2510_v61 = vsub.f32 %v12631_v51, %v2474_v23  ;;  %2599 = vadd.xlane.f32.xlu1 %v2598_v59 }
 0x598   : > { %v12728_v15 = vpop.eup %11193  ;;  %v2551_v11 = vmul.f32 1.442695, %v2510_v61  ;;  %v2471_v5 = vpop.xlane.xlu0 %2470 }
 0x599   : > { %v2509_v24 = vsub.f32 %v12637_v7, %v2471_v5  ;;  %v2468_v6 = vpop.xlane.xlu1 %2467  ;;  %v2592_v45 = vsel %vm1099_vm3, %v12728_v15, 0.0  ;;  %v12733_v34 = vpop.eup %11195 }
 0x59a   : > { %11203 = vpow2.f32 %v2551_v11  ;;  %v2508_v32 = vsub.f32 %v12633_v54, %v2468_v6  ;;  %2593 = vadd.xlane.f32.xlu0 %v2592_v45  ;;  %v2595_v7 = vsel %vm1099_vm3, %v12733_v34, 0.0 }
 0x59b   : > { %v2549_v43 = vmul.f32 1.442695, %v2509_v24  ;;  %v12736_v28 = vpop.eup %11197 }
 0x59c   : > { %v2547_v51 = vmul.f32 1.442695, %v2508_v32  ;;  %v2465_v12 = vpop.xlane.xlu0 %2464  ;;  %v2589_v59 = vsel %vm1099_vm3, %v12736_v28, 0.0 }
 0x59d   : > { %v2507_v21 = vsub.f32 %v12643_v16, %v2465_v12 }
 0x59e   : > { %v12741_v46 = vpop.eup %11199  ;;  %11205 = vpow2.f32 %v2547_v51  ;;  %2596 = vadd.xlane.f32.xlu0 %v2595_v7 }
 0x59f   : > { %v2545_v57 = vmul.f32 1.442695, %v2507_v21  ;;  %v2462_v31 = vpop.xlane.xlu1 %2461  ;;  %v2586_v54 = vsel %vm1099_vm3, %v12741_v46, 0.0  ;;  %11207 = vpow2.f32 %v2549_v43  ;;  %v12749_v61 = vpop.eup %11201 }
 0x5a0   : > { %v2506_v0 = vsub.f32 %v12649_v30, %v2462_v31  ;;  %v2459_v23 = vpop.xlane.xlu0 %2458  ;;  %2587 = vadd.xlane.f32.xlu1 %v2586_v54  ;;  %v2583_v30 = vsel %vm1099_vm3, %v12749_v61, 0.0 }
 0x5a1   : > { %11209 = vpow2.f32 %v2545_v57  ;;  %v2505_v16 = vsub.f32 %v12645_v62, %v2459_v23 }
 0x5a2   : > { %v2543_v11 = vmul.f32 1.442695, %v2506_v0  ;;  %2590 = vadd.xlane.f32.xlu0 %v2589_v59 }
 0x5a3   : > { %v2541_v5 = vmul.f32 1.442695, %v2505_v16 }
 0x5a4   : > { %v12751_v24 = vpop.eup %11203  ;;  %11211 = vpow2.f32 %v2543_v11 }
 0x5a5   : > { %11213 = vpow2.f32 %v2541_v5  ;;  %v2492_v6 = vpop.xlane.xlu1 %2491  ;;  %v2616_v45 = vsel %vm1099_vm3, %v12751_v24, 0.0 }
 0x5a6   : > { %v2516_v62 = vsub.f32 %v12655_v48, %v2492_v6  ;;  %2584 = vadd.xlane.f32.xlu0 %v2583_v30  ;;  %2617 = vadd.xlane.f32.xlu1 %v2616_v45 }
 0x5a8   : > { %v12758_v32 = vpop.eup %11205  ;;  %v2563_v43 = vmul.f32 1.442695, %v2516_v62  ;;  %v2489_v51 = vpop.xlane.xlu0 %2488 }
 0x5a9   : > { %v2515_v12 = vsub.f32 %v12661_v19, %v2489_v51  ;;  %v2486_v21 = vpop.xlane.xlu1 %2485  ;;  %v2610_v7 = vsel %vm1099_vm3, %v12758_v32, 0.0  ;;  %v12763_v57 = vpop.eup %11207 }
 0x5aa   : > { %11215 = vpow2.f32 %v2563_v43  ;;  %v2514_v31 = vsub.f32 %v12657_v20, %v2486_v21  ;;  %2611 = vadd.xlane.f32.xlu0 %v2610_v7  ;;  %v2613_v59 = vsel %vm1099_vm3, %v12763_v57, 0.0 }
 0x5ab   : > { %v12766_v54 = vpop.eup %11209  ;;  %v2561_v48 = vmul.f32 1.442695, %v2515_v12 }
 0x5ac   : > { %v2559_v0 = vmul.f32 1.442695, %v2514_v31  ;;  %v2483_v23 = vpop.xlane.xlu0 %2482  ;;  %v2607_v16 = vsel %vm1099_vm3, %v12766_v54, 0.0 }
 0x5ad   : > { %11217 = vpow2.f32 %v2561_v48  ;;  %v2513_v19 = vsub.f32 %v12667_v58, %v2483_v23  ;;  %2608 = vadd.xlane.f32.xlu1 %v2607_v16  ;;  %v12810_v16 = vpop.permute.xlu1 %2949 }
 0x5ae   : > { %v12773_v11 = vpop.eup %11211  ;;  %11219 = vpow2.f32 %v2559_v0  ;;  %2614 = vadd.xlane.f32.xlu0 %v2613_v59 }
 0x5af   : > { %v12775_v20 = vpop.eup %11213  ;;  %v2557_v5 = vmul.f32 1.442695, %v2513_v19  ;;  %v2604_v6 = vsel %vm1099_vm3, %v12773_v11, 0.0 }
 0x5b0   : > { %v2477_v30 = vpop.xlane.xlu0 %2476  ;;  %v2601_v45 = vsel %vm1099_vm3, %v12775_v20, 0.0 }
 0x5b1   : > { %11221 = vpow2.f32 %v2557_v5  ;;  %v2511_v58 = vsub.f32 %v12669_v40, %v2477_v30  ;;  %2605 = vadd.xlane.f32.xlu1 %v2604_v6  ;;  %v12812_v19 = vpop.permute.xlu1 %3011 }
 0x5b2   : > { %2602 = vadd.xlane.f32.xlu0 %v2601_v45 }
 0x5b3   : > { %v2553_v62 = vmul.f32 1.442695, %v2511_v58 }
 0x5b4   : > { %v12782_v43 = vpop.eup %11215 }
 0x5b5   : > { %11223 = vpow2.f32 %v2553_v62  ;;  %v2634_v51 = vsel %vm1099_vm3, %v12782_v43, 0.0 }
 0x5b6   : > { %2635 = vadd.xlane.f32.xlu0 %v2634_v51 }
 0x5b7   : > { %v12786_v12 = vpop.eup %11217 }
 0x5b8   : > { %v12788_v21 = vpop.eup %11219  ;;  %v2631_v7 = vsel %vm1099_vm3, %v12786_v12, 0.0 }
 0x5b9   : > { %v2628_v40 = vsel %vm1099_vm3, %v12788_v21, 0.0 }
 0x5ba   : > { %2632 = vadd.xlane.f32.xlu0 %v2631_v7  ;;  %2629 = vadd.xlane.f32.xlu1 %v2628_v40 }
 0x5bb   : > { %v12794_v31 = vpop.eup %11221 }
 0x5bc   : > { %v2625_v48 = vsel %vm1099_vm3, %v12794_v31, 0.0 }
 0x5be   : > { %2626 = vadd.xlane.f32.xlu1 %v2625_v48 }
 0x5bf   : > { %v12798_v0 = vpop.eup %11223 }
 0x5c0   : > { %v2619_v23 = vsel %vm1099_vm3, %v12798_v0, 0.0 }
 0x5c1   : > { %2620 = vadd.xlane.f32.xlu0 %v2619_v23 }
 0x5cf   : > { %3013 = vrot.lane.b32.xlu1 %v11972_v27, %s11753_s19  ;;  %v2890_v27 = vpop.permute.xlu0 %2889 }
 0x5d3   : > { %3073 = vrot.lane.b32.xlu1 %v11970_v26, %s11753_s19 }
 0x5d7   : > { %2951 = vrot.lane.b32.xlu0 %v11952_v13, %s11753_s19  ;;  %3075 = vrot.lane.b32.xlu1 %v11983_v35, %s11753_s19 }
 0x5e2   : > { %v2480_v59 = vpop.xlane.xlu1 %2479 }
 0x5e3   : > { %v2512_v5 = vsub.f32 %v12673_v60, %v2480_v59 }
 0x5e5   : > { %v2555_v6 = vmul.f32 1.442695, %v2512_v5 }
 0x5e7   : > { %11225 = vpow2.f32 %v2555_v6 }
 0x5f1   : > { %v12815_v30 = vpop.eup %11225 }
 0x5f2   : > { %v2622_v26 = vsel %vm1099_vm3, %v12815_v30, 0.0 }
 0x5fb   : > { %2623 = vadd.xlane.f32.xlu1 %v2622_v26 }
 0x60c   : > { %3135 = vrot.lane.b32.xlu1 %v11988_v38, %s11753_s19 }
 0x610   : > { %3137 = vrot.lane.b32.xlu1 %v11986_v37, %s11753_s19 }
 0x613   : > { %v2582_v13 = vpop.xlane.xlu1 %2581 }
 0x614   : > { %11227 = vrcp.f32 %v2582_v13 }
 0x617   : > { %v2576_v35 = vpop.xlane.xlu1 %2575 }
 0x618   : > { %11229 = vrcp.f32 %v2576_v35  ;;  %v2579_v60 = vpop.xlane.xlu0 %2578 }
 0x619   : > { %11231 = vrcp.f32 %v2579_v60 }
 0x61c   : > { %v2573_v45 = vpop.xlane.xlu0 %2572 }
 0x61d   : > { %v2570_v58 = vpop.xlane.xlu1 %2569  ;;  %11233 = vrcp.f32 %v2573_v45  ;;  %v2899_v45 = vsel %vm1391_vm2, %v2890_v27, 0 }
 0x61e   : > { %11235 = vrcp.f32 %v2570_v58  ;;  %v11228_v62 = vpop.eup %11227 }
 0x61f   : > { %v2666_v37 = vmul.f32 %v11228_v62, %v12693_v18 }
 0x620   : > { %v2567_v51 = vpop.xlane.xlu0 %2566 }
 0x621   : > { %11237 = vrcp.f32 %v2567_v51  ;;  %v2688_v6 = vpack.c.bf16 %v2666_v37, %v2666_v37 }
 0x622   : > { %v11230_v7 = vpop.eup %11229 }
 0x623   : > { %v11232_v40 = vpop.eup %11231  ;;  %v2664_v38 = vmul.f32 %v11230_v7, %v12697_v33  ;;  %v2600_v23 = vpop.xlane.xlu1 %2599 }
 0x624   : > { %v2665_v48 = vmul.f32 %v11232_v40, %v12700_v10  ;;  %11239 = vrcp.f32 %v2600_v23 }
 0x626   : > { %v2687_v59 = vpack.c.bf16 %v2665_v48, %v2664_v38 }
 0x627   : > { %v2594_v5 = vpop.xlane.xlu0 %2593  ;;  %v11234_v26 = vpop.eup %11233 }
 0x628   : > { %10285 = vmatprep.mubr.msk.bf16.mxu0 %vm1099_vm3, %v2687_v59  ;;  %v11236_v13 = vpop.eup %11235  ;;  %11241 = vrcp.f32 %v2594_v5  ;;  %v2663_v33 = vmul.f32 %v11234_v26, %v12708_v56 }
 0x629   : > { %10286 = vmatmul.mubr.msk.bf16.vlgmr.msra.gmra.mrb[72].mxu0 %vm1099_vm3, %v2688_v6  ;;  %v2662_v60 = vmul.f32 %v11236_v13, %v12711_v1 }
 0x62a   : > { %10298 = vmatpush3.bf16.msra.mxu0 %v12528_v4  ;;  %v2686_v4 = vpack.c.bf16 %v2663_v33, %v2663_v33 }
 0x62b   : > { %v11238_v35 = vpop.eup %11237  ;;  %10840 = vmatprep.subr.msk.bf16.mxu0 %vm1391_vm2, %v2890_v27  ;;  %v2597_v18 = vpop.xlane.xlu0 %2596  ;;  %v2837_v27 = vsel %vm1391_vm2, %v12685_v50, 0 }
 0x62c   : > { %11243 = vrcp.f32 %v2597_v18  ;;  %v2661_v10 = vmul.f32 %v11238_v35, %v12718_v14 }
 0x62d   : > { %v2588_v62 = vpop.xlane.xlu1 %2587 }
 0x62e   : > { %10300 = vmatpush3.bf16.msra.mxu0 %v2899_v45  ;;  %v2685_v58 = vpack.c.bf16 %v2662_v60, %v2661_v10  ;;  %v11240_v56 = vpop.eup %11239 }
 0x62f   : > { %10313 = vmatprep.subr.bf16.mxu0 %v12812_v19  ;;  %v2591_v51 = vpop.xlane.xlu0 %2590  ;;  %v2672_v38 = vmul.f32 %v11240_v56, %v12723_v29 }
 0x630   : > { %10277 = vmatprep.mubr.msk.bf16.mxu1 %vm1099_vm3, %v2685_v58  ;;  %11245 = vrcp.f32 %v2591_v51 }
 0x631   : > { %10278 = vmatmul.mubr.msk.bf16.vlgmr.msra.gmra.mrb[48].mxu1 %vm1099_vm3, %v2686_v4  ;;  %11247 = vrcp.f32 %v2588_v62  ;;  %v2692_v5 = vpack.c.bf16 %v2672_v38, %v2672_v38 }
 0x632   : > { %10290 = vmatpush3.bf16.msra.mxu1 %v12525_v36  ;;  %v11242_v14 = vpop.eup %11241 }
 0x633   : > { %10839 = vmatprep.subr.msk.bf16.mxu1 %vm1391_vm2, %v12685_v50  ;;  %v2585_v1 = vpop.xlane.xlu0 %2584  ;;  %v2618_v40 = vpop.xlane.xlu1 %2617  ;;  %v2670_v36 = vmul.f32 %v11242_v14, %v12728_v15 }
 0x634   : > { %11249 = vrcp.f32 %v2585_v1 }
 0x636   : > { %v11244_v7 = vpop.eup %11243  ;;  %10292 = vmatpush3.bf16.msra.mxu1 %v2837_v27 }
 0x637   : > { %10305 = vmatprep.subr.bf16.mxu1 %v12810_v16  ;;  %v2612_v37 = vpop.xlane.xlu0 %2611  ;;  %v2671_v48 = vmul.f32 %v11244_v7, %v12733_v34 }
 0x638   : > { %11251 = vrcp.f32 %v2612_v37 }
 0x639   : > { %v2691_v23 = vpack.c.bf16 %v2671_v48, %v2670_v36 }
 0x63a   : > { %v2609_v59 = vpop.xlane.xlu1 %2608  ;;  %v11246_v6 = vpop.eup %11245 }
 0x63b   : > { %v2615_v26 = vpop.xlane.xlu0 %2614  ;;  %10301 = vmatprep.mubr.msk.bf16.mxu0 %vm1099_vm3, %v2691_v23  ;;  %v11248_v50 = vpop.eup %11247  ;;  %v2669_v15 = vmul.f32 %v11246_v6, %v12736_v28 }
 0x63c   : > { %11253 = vrcp.f32 %v2615_v26  ;;  %10302 = vmatmul.mubr.msk.bf16.vlgmr.msra.gmra.mrb[76].mxu0 %vm1099_vm3, %v2692_v5  ;;  %v2668_v18 = vmul.f32 %v11248_v50, %v12741_v46 }
 0x63d   : > { %10314 = vmatpush3.bf16.msra.mxu0 %v12812_v19  ;;  %v2690_v10 = vpack.c.bf16 %v2669_v15, %v2669_v15 }
 0x63e   : > { %v11250_v29 = vpop.eup %11249  ;;  %v2606_v13 = vpop.xlane.xlu1 %2605 }
 0x63f   : > { %11255 = vrcp.f32 %v2606_v13  ;;  %v2603_v34 = vpop.xlane.xlu0 %2602  ;;  %v2667_v35 = vmul.f32 %v11250_v29, %v12749_v61 }
 0x640   : > { %11257 = vrcp.f32 %v2603_v34 }
 0x641   : > { %11259 = vrcp.f32 %v2618_v40  ;;  %v2689_v33 = vpack.c.bf16 %v2668_v18, %v2667_v35 }
 0x642   : > { %v11252_v45 = vpop.eup %11251  ;;  %11261 = vrcp.f32 %v2609_v59 }
 0x643   : > { %v2636_v60 = vpop.xlane.xlu0 %2635  ;;  %10293 = vmatprep.mubr.msk.bf16.mxu1 %vm1099_vm3, %v2689_v33  ;;  %v2676_v61 = vmul.f32 %v11252_v45, %v12758_v32 }
 0x644   : > { %10294 = vmatmul.mubr.msk.bf16.vlgmr.msra.gmra.mrb[52].mxu1 %vm1099_vm3, %v2690_v10 }
 0x645   : > { %10306 = vmatpush3.bf16.msra.mxu1 %v12810_v16 }
 0x646   : > { %v11254_v28 = vpop.eup %11253 }
 0x647   : > { %v2633_v19 = vpop.xlane.xlu0 %2632  ;;  %v2630_v58 = vpop.xlane.xlu1 %2629  ;;  %v2677_v46 = vmul.f32 %v11254_v28, %v12763_v57 }
 0x648   : > { %11263 = vrcp.f32 %v2633_v19 }
 0x649   : > { %v11256_v62 = vpop.eup %11255  ;;  %11265 = vrcp.f32 %v2630_v58  ;;  %v2695_v51 = vpack.c.bf16 %v2677_v46, %v2676_v61  ;;  %v11065_v58 = vld [vmem:[%s16085_s3] sm:$0xff]  }
 0x64a   : > { %v11258_v4 = vpop.eup %11257  ;;  %v2674_v56 = vmul.f32 %v11256_v62, %v12773_v11  ;;  %11267 = vrcp.f32 %v2636_v60 }
 0x64b   : > { %v11260_v1 = vpop.eup %11259  ;;  %10317 = vmatprep.mubr.msk.bf16.mxu0 %vm1099_vm3, %v2695_v51  ;;  %v2627_v14 = vpop.xlane.xlu1 %2626  ;;  %v2673_v16 = vmul.f32 %v11258_v4, %v12775_v20 }
 0x64c   : > { %v11262_v7 = vpop.eup %11261  ;;  %v2678_v32 = vmul.f32 %v11260_v1, %v12751_v24  ;;  %11269 = vrcp.f32 %v2627_v14 }
 0x64d   : > { %v2693_v27 = vpack.c.bf16 %v2674_v56, %v2673_v16  ;;  %v2675_v11 = vmul.f32 %v11262_v7, %v12766_v54 }
 0x64e   : > { %v2621_v40 = vpop.xlane.xlu0 %2620  ;;  %v2696_v48 = vpack.c.bf16 %v2678_v32, %v2678_v32 }
 0x64f   : > { %10309 = vmatprep.mubr.msk.bf16.mxu1 %vm1099_vm3, %v2693_v27  ;;  %v3014_v57 = vpop.permute.xlu1 %3013  ;;  %v2694_v6 = vpack.c.bf16 %v2675_v11, %v2675_v11  ;;  %11271 = vrcp.f32 %v2621_v40 }
 0x650   : > { %10842 = vmatprep.subr.msk.bf16.mxu0 %vm1391_vm2, %v3014_v57  ;;  %v3023_v38 = vsel %vm1391_vm2, %v3014_v57, 0 }
 0x651   : > { %10316 = vmatpush3.bf16.msra.mxu0 %v3023_v38 }
 0x652   : > { %v11264_v37 = vpop.eup %11263  ;;  %v2952_v36 = vpop.permute.xlu0 %2951 }
 0x653   : > { %v11266_v23 = vpop.eup %11265  ;;  %10841 = vmatprep.subr.msk.bf16.mxu1 %vm1391_vm2, %v2952_v36  ;;  %v3074_v20 = vpop.permute.xlu1 %3073  ;;  %v2961_v59 = vsel %vm1391_vm2, %v2952_v36, 0  ;;  %v2683_v24 = vmul.f32 %v11264_v37, %v12786_v12 }
 0x654   : > { %10308 = vmatpush3.bf16.msra.mxu1 %v2961_v59  ;;  %10318 = vmatmul.mubr.msk.bf16.vlgmr.msra.gmra.mrb[80].mxu0 %vm1099_vm3, %v2696_v48  ;;  %v2682_v5 = vmul.f32 %v11266_v23, %v12788_v21  ;;  %v11268_v21 = vpop.eup %11267 }
 0x655   : > { %10321 = vmatprep.subr.bf16.mxu1 %v3074_v20  ;;  %v2684_v13 = vmul.f32 %v11268_v21, %v12782_v43 }
 0x656   : > { %v2699_v26 = vpack.c.bf16 %v2683_v24, %v2682_v5  ;;  %v11270_v15 = vpop.eup %11269 }
 0x657   : > { %10310 = vmatmul.mubr.msk.bf16.vlgmr.msra.gmra.mrb[56].mxu1 %vm1099_vm3, %v2694_v6  ;;  %v3076_v54 = vpop.permute.xlu1 %3075  ;;  %v2700_v10 = vpack.c.bf16 %v2684_v13, %v2684_v13  ;;  %v2681_v60 = vmul.f32 %v11270_v15, %v12794_v31 }
 0x658   : > { %10333 = vmatprep.mubr.msk.bf16.mxu0 %vm1099_vm3, %v2699_v26  ;;  %10322 = vmatpush3.bf16.msra.mxu1 %v3074_v20  ;;  %v3085_v50 = vsel %vm1391_vm2, %v3076_v54, 0 }
 0x659   : > { %10843 = vmatprep.subr.msk.bf16.mxu1 %vm1391_vm2, %v3076_v54  ;;  %v11272_v35 = vpop.eup %11271  ;;  %v2698_v43 = vpack.c.bf16 %v2681_v60, %v2681_v60 }
 0x65a   : > { %v2679_v45 = vmul.f32 %v11272_v35, %v12798_v0  ;;  %v11066_v0 = vld [vmem:[%s16085_s3 + $0x8] sm:$0xff]  }
 0x65c   : > { %10324 = vmatpush3.bf16.msra.mxu1 %v3085_v50 }
 0x65d   : > { %10337 = vmatprep.subr.bf16.mxu1 %v11065_v58 }
 0x688   : > { %v2624_v12 = vpop.xlane.xlu1 %2623 }
 0x689   : > { %11273 = vrcp.f32 %v2624_v12 }
 0x68c   : > { %v3136_v29 = vpop.permute.xlu1 %3135 }
 0x68d   : > { %10329 = vmatprep.subr.bf16.mxu0 %v3136_v29 }
 0x68e   : > { %10330 = vmatpush3.bf16.msra.mxu0 %v3136_v29 }
 0x690   : > { %v3138_v34 = vpop.permute.xlu1 %3137 }
 0x691   : > { %10844 = vmatprep.subr.msk.bf16.mxu0 %vm1391_vm2, %v3138_v34  ;;  %v3147_v18 = vsel %vm1391_vm2, %v3138_v34, 0 }
 0x692   : > { %10332 = vmatpush3.bf16.msra.mxu0 %v3147_v18 }
 0x693   : > { %v11274_v33 = vpop.eup %11273 }
 0x694   : > { %v2680_v28 = vmul.f32 %v11274_v33, %v12815_v30 }
 0x695   : > { %10334 = vmatmul.mubr.msk.bf16.vlgmr.msra.gmra.mrb[84].mxu0 %vm1099_vm3, %v2700_v10 }
 0x696   : > { %v2697_v19 = vpack.c.bf16 %v2680_v28, %v2679_v45 }
 0x698   : > { %10325 = vmatprep.mubr.msk.bf16.mxu1 %vm1099_vm3, %v2697_v19 }
 0x699   : > { %10326 = vmatmul.mubr.msk.bf16.vlgmr.msra.gmra.mrb[60].mxu1 %vm1099_vm3, %v2698_v43 }
 0x69a   : > { %10338 = vmatpush3.bf16.msra.mxu1 %v11065_v58 }
 0x69b   : > { %10339 = vmatprep.subr.bf16.mxu1 %v11066_v0 }
 0x69e   : > { %10340 = vmatpush3.bf16.msra.mxu1 %v11066_v0 }
 0x6fc   : > { %v10287_v61 = vpop.f32.mrb[72].mxu0 }
 0x6fd   : > { %v2811_v46 = vpop.f32.mrb[73].mxu0 }
 0x6fe   : > { %v10288_v31 = vpop.f32.mrb[74].mxu0 }
 0x6ff   : > { %v2814_v30 = vpop.f32.mrb[75].mxu0 }
 0x700   : > { %v10953_v62 = vpack.i.bf16 %v10287_v61, %v2814_v30 }
 0x704   : > { %v10279_v51 = vpop.f32.mrb[48].mxu1 }
 0x705   : > { %v10948_v4 = vpack.i.bf16 %v2811_v46, %v10279_v51  ;;  %v2749_v56 = vpop.f32.mrb[49].mxu1 }
 0x706   : > { %v10280_v1 = vpop.f32.mrb[50].mxu1 }
 0x707   : > { %10949 = vrot.lane.b32.xlu1 %v10948_v4, %s11754_s24  ;;  %v2752_v14 = vpop.f32.mrb[51].mxu1 }
 0x708   : > { %v10943_v16 = vpack.i.bf16 %v2752_v14, %v2749_v56 }
 0x70a   : > { %10944 = vrot.lane.b32.xlu0 %v10943_v16, %s11754_s24 }
 0x70e   : > { %10954 = vrot.lane.b32.xlu0 %v10953_v62, %s11754_s24 }
 0x70f   : > { %v10303_v27 = vpop.f32.mrb[76].mxu0 }
 0x710   : > { %v2935_v7 = vpop.f32.mrb[77].mxu0 }
 0x711   : > { %v10304_v40 = vpop.f32.mrb[78].mxu0 }
 0x712   : > { %v2938_v32 = vpop.f32.mrb[79].mxu0 }
 0x713   : > { %v10968_v57 = vpack.i.bf16 %v10303_v27, %v2938_v32 }
 0x717   : > { %v10295_v38 = vpop.f32.mrb[52].mxu1 }
 0x718   : > { %v10963_v11 = vpack.i.bf16 %v2935_v7, %v10295_v38  ;;  %v2873_v37 = vpop.f32.mrb[53].mxu1 }
 0x719   : > { %v10296_v36 = vpop.f32.mrb[54].mxu1 }
 0x71a   : > { %10964 = vrot.lane.b32.xlu0 %v10963_v11, %s11754_s24  ;;  %v2876_v48 = vpop.f32.mrb[55].mxu1 }
 0x71b   : > { %v10958_v23 = vpack.i.bf16 %v2876_v48, %v2873_v37 }
 0x71d   : > { %10959 = vrot.lane.b32.xlu1 %v10958_v23, %s11754_s24 }
 0x721   : > { %10969 = vrot.lane.b32.xlu1 %v10968_v57, %s11754_s24 }
 0x727   : > { %v10319_v20 = vpop.f32.mrb[80].mxu0 }
 0x728   : > { %v3059_v59 = vpop.f32.mrb[81].mxu0 }
 0x729   : > { %v10320_v24 = vpop.f32.mrb[82].mxu0 }
 0x72a   : > { %v10311_v5 = vpop.f32.mrb[56].mxu1  ;;  %v3062_v6 = vpop.f32.mrb[83].mxu0 }
 0x72b   : > { %v10978_v26 = vpack.i.bf16 %v3059_v59, %v10311_v5  ;;  %v10983_v54 = vpack.i.bf16 %v10319_v20, %v3062_v6  ;;  %v2997_v50 = vpop.f32.mrb[57].mxu1 }
 0x72c   : > { %v10312_v12 = vpop.f32.mrb[58].mxu1 }
 0x72d   : > { %v3000_v21 = vpop.f32.mrb[59].mxu1  ;;  %10979 = vrot.lane.b32.xlu1 %v10978_v26, %s11754_s24 }
 0x72e   : > { %v10973_v29 = vpack.i.bf16 %v3000_v21, %v2997_v50 }
 0x730   : > { %10974 = vrot.lane.b32.xlu0 %v10973_v29, %s11754_s24 }
 0x734   : > { %10984 = vrot.lane.b32.xlu0 %v10983_v54, %s11754_s24 }
 0x768   : > { %v10335_v13 = vpop.f32.mrb[84].mxu0 }
 0x769   : > { %v3183_v15 = vpop.f32.mrb[85].mxu0 }
 0x76a   : > { %v10336_v34 = vpop.f32.mrb[86].mxu0 }
 0x76b   : > { %v3186_v35 = vpop.f32.mrb[87].mxu0 }
 0x76c   : > { %v10998_v18 = vpack.i.bf16 %v10335_v13, %v3186_v35  ;;  %v10327_v33 = vpop.f32.mrb[60].mxu1 }
 0x76d   : > { %v10993_v10 = vpack.i.bf16 %v3183_v15, %v10327_v33  ;;  %v3121_v60 = vpop.f32.mrb[61].mxu1 }
 0x76e   : > { %v10328_v45 = vpop.f32.mrb[62].mxu1 }
 0x76f   : > { %v3124_v28 = vpop.f32.mrb[63].mxu1  ;;  %10994 = vrot.lane.b32.xlu0 %v10993_v10, %s11754_s24  ;;  %v16138_v10 = vld [vmem:[#allocation7_spill] sm:$0xff]  ;;  %v16139_v45 = vld [vmem:[#allocation9_spill] sm:$0xff] }
 0x770   : > { %v10988_v19 = vpack.i.bf16 %v3124_v28, %v3121_v60 }
 0x772   : > { %10989 = vrot.lane.b32.xlu1 %v10988_v19, %s11754_s24 }
 0x776   : > { %10999 = vrot.lane.b32.xlu1 %v10998_v18, %s11754_s24 }
 0x779   : > { %v10950_v43 = vpop.permute.xlu1 %10949 }
 0x77a   : > { %v10952_v58 = vunpack.i.h.bf16 %v10950_v43  ;;  %v10951_v61 = vunpack.i.l.bf16 %v10950_v43 }
 0x77c   : > { %v3296_v46 = vsel %vm576_vm1, %v12543_v49, %v10952_v58  ;;  %v3295_v31 = vsel %vm576_vm1, %v12535_v3, %v10951_v61  ;;  %v10945_v0 = vpop.permute.xlu0 %10944  ;;  %v16140_v61 = vld [vmem:[#allocation11_spill] sm:$0xff] }
 0x77d   : > { %v3318_v30 = vpack.c.bf16 %v3296_v46, %v3295_v31  ;;  %v10947_v62 = vunpack.i.h.bf16 %v10945_v0  ;;  %v10946_v51 = vunpack.i.l.bf16 %v10945_v0  ;;  %v16141_v31 = vld [vmem:[#allocation10_spill] sm:$0xff] }
 0x77f   : > { %v3294_v4 = vsel %vm576_vm1, %v12539_v55, %v10947_v62  ;;  %v3293_v56 = vsel %vm576_vm1, %v12537_v42, %v10946_v51 }
 0x780   : > { %v10955_v1 = vpop.permute.xlu0 %10954  ;;  %v3317_v14 = vpack.c.bf16 %v3294_v4, %v3293_v56  ;;  %v16142_v56 = vld [vmem:[#allocation6_spill] sm:$0xff] }
 0x781   : > { %v10957_v16 = vunpack.i.h.bf16 %v10955_v1  ;;  %v10956_v27 = vunpack.i.l.bf16 %v10955_v1 }
 0x782   : > { %10341 = vmatprep.mubr.msk.bf16.mxu1 %vm388_vm0, %v3317_v14  ;;  %v16143_v14 = vld [vmem:[#allocation8_spill] sm:$0xff] }
 0x783   : > { %v3298_v49 = vsel %vm576_vm1, %v12541_v63, %v10957_v16  ;;  %v3297_v3 = vsel %vm576_vm1, %v12545_v39, %v10956_v27  ;;  %10342 = vmatmul.mubr.msk.bf16.vlgmr.msra.gmra.mrb[64].mxu1 %vm388_vm0, %v3318_v30 }
 0x784   : > { %v3319_v7 = vpack.c.bf16 %v3298_v49, %v3297_v3  ;;  %v3329_v49 = vlaneseq }
 0x786   : > { %10345 = vmatprep.mubr.msk.bf16.mxu1 %vm388_vm0, %v3319_v7  ;;  %v12961_v3 = vshrl.u32 %v3329_v49, 7 }
 0x788   : > { %v16096_v7 = vsub.s32 0, %v12961_v3 }
 0x78c   : > { %v10965_v55 = vpop.permute.xlu0 %10964 }
 0x78d   : > { %v10967_v40 = vunpack.i.h.bf16 %v10965_v55  ;;  %v10966_v42 = vunpack.i.l.bf16 %v10965_v55  ;;  %v12967_v55 = vld [vmem:[%s16089_s7] sm:$0x3f] }
 0x78f   : > { %v3302_v32 = vsel %vm576_vm1, %v12549_v2, %v10967_v40  ;;  %v3301_v57 = vsel %vm576_vm1, %v12553_v41, %v10966_v42  ;;  %v10960_v38 = vpop.permute.xlu1 %10959  ;;  %v12972_v40 = vrot.slane %v12967_v55, %v16096_v7 }
 0x790   : > { %v10962_v11 = vunpack.i.h.bf16 %v10960_v38  ;;  %v10961_v63 = vunpack.i.l.bf16 %v10960_v38  ;;  %v3321_v37 = vpack.c.bf16 %v3302_v32, %v3301_v57 }
 0x792   : > { %v3300_v39 = vsel %vm576_vm1, %v12557_v52, %v10962_v11  ;;  %v3299_v36 = vsel %vm576_vm1, %v12555_v44, %v10961_v63  ;;  %v11659_v63 = vld [vmem:[%s11861_s25 + $0x10] sm:$0xff] }
 0x793   : > { %v10970_v48 = vpop.permute.xlu1 %10969  ;;  %v3320_v23 = vpack.c.bf16 %v3300_v39, %v3299_v36 }
 0x794   : > { %v10972_v20 = vunpack.i.h.bf16 %v10970_v48  ;;  %v10971_v59 = vunpack.i.l.bf16 %v10970_v48 }
 0x795   : > { %10346 = vmatmul.mubr.msk.bf16.gmra.mrb[68].mxu1 %vm388_vm0, %v3320_v23  ;;  %v11660_v23 = vld [vmem:[%s11861_s25] sm:$0xff] }
 0x796   : > { %v3304_v2 = vsel %vm576_vm1, %v12547_v22, %v10972_v20  ;;  %v3303_v41 = vsel %vm576_vm1, %v12551_v47, %v10971_v59  ;;  %10349 = vmatprep.mubr.msk.bf16.mxu1 %vm388_vm0, %v3321_v37  ;;  %v11661_v59 = vld [vmem:[%s11861_s25 + $0x18] sm:$0xff] }
 0x797   : > { %v3322_v24 = vpack.c.bf16 %v3304_v2, %v3303_v41 }
 0x79d   : > { %10350 = vmatmul.mubr.msk.bf16.gmra.mrb[72].mxu1 %vm388_vm0, %v3322_v24  ;;  %v11662_v24 = vld [vmem:[%s11861_s25 + $0x8] sm:$0xff] }
 0x79f   : > { %v10980_v52 = vpop.permute.xlu1 %10979 }
 0x7a0   : > { %v10982_v5 = vunpack.i.h.bf16 %v10980_v52  ;;  %v10981_v44 = vunpack.i.l.bf16 %v10980_v52 }
 0x7a2   : > { %v3308_v6 = vsel %vm576_vm1, %v12561_v8, %v10982_v5  ;;  %v3307_v26 = vsel %vm576_vm1, %v12565_v53, %v10981_v44  ;;  %v10975_v54 = vpop.permute.xlu0 %10974  ;;  %v16137_v53 = vld [vmem:[#allocation5_spill] sm:$0xff] }
 0x7a3   : > { %v10977_v50 = vunpack.i.h.bf16 %v10975_v54  ;;  %v10976_v22 = vunpack.i.l.bf16 %v10975_v54  ;;  %v3324_v12 = vpack.c.bf16 %v3308_v6, %v3307_v26  ;;  %16144 = vst [vmem:[#allocation5_spill] sm:$0xff] %v12961_v3 }
 0x7a5   : > { %v3306_v47 = vsel %vm576_vm1, %v12569_v17, %v10977_v50  ;;  %v3305_v21 = vsel %vm576_vm1, %v12567_v9, %v10976_v22 }
 0x7a6   : > { %v10985_v29 = vpop.permute.xlu0 %10984  ;;  %v3323_v13 = vpack.c.bf16 %v3306_v47, %v3305_v21 }
 0x7a7   : > { %v10987_v15 = vunpack.i.h.bf16 %v10985_v29  ;;  %v10986_v34 = vunpack.i.l.bf16 %v10985_v29 }
 0x7a8   : > { %10353 = vmatprep.mubr.msk.bf16.mxu1 %vm388_vm0, %v3323_v13 }
 0x7a9   : > { %v3310_v8 = vsel %vm576_vm1, %v12559_v25, %v10987_v15  ;;  %v3309_v35 = vsel %vm576_vm1, %v16137_v53, %v10986_v34  ;;  %10354 = vmatmul.mubr.msk.bf16.gmra.mrb[76].mxu1 %vm388_vm0, %v3324_v12 }
 0x7aa   : > { %v3325_v18 = vpack.c.bf16 %v3310_v8, %v3309_v35  ;;  %v11663_v8 = vld [vmem:[%s11861_s25 + $0x30] sm:$0xff] }
 0x7ac   : > { %10357 = vmatprep.mubr.msk.bf16.mxu1 %vm388_vm0, %v3325_v18 }
 0x7e1   : > { %v10995_v17 = vpop.permute.xlu0 %10994 }
 0x7e2   : > { %v10997_v33 = vunpack.i.h.bf16 %v10995_v17  ;;  %v10996_v9 = vunpack.i.l.bf16 %v10995_v17 }
 0x7e4   : > { %v3314_v60 = vsel %vm576_vm1, %v16138_v10, %v10997_v33  ;;  %v3313_v28 = vsel %vm576_vm1, %v16139_v45, %v10996_v9  ;;  %v10990_v19 = vpop.permute.xlu1 %10989  ;;  %v11664_v10 = vld [vmem:[%s11861_s25 + $0x38] sm:$0xff]  ;;  %v11665_v45 = vld [vmem:[%s11861_s25 + $0x20] sm:$0xff] }
 0x7e5   : > { %v10992_v43 = vunpack.i.h.bf16 %v10990_v19  ;;  %v10991_v25 = vunpack.i.l.bf16 %v10990_v19  ;;  %v3327_v58 = vpack.c.bf16 %v3314_v60, %v3313_v28  ;;  %v11666_v19 = vld [vmem:[%s11861_s25 + $0x28] sm:$0xff] }
 0x7e7   : > { %v3312_v46 = vsel %vm576_vm1, %v16140_v61, %v10992_v43  ;;  %v3311_v0 = vsel %vm576_vm1, %v16141_v31, %v10991_v25 }
 0x7e8   : > { %v11000_v30 = vpop.permute.xlu1 %10999  ;;  %v3326_v62 = vpack.c.bf16 %v3312_v46, %v3311_v0 }
 0x7e9   : > { %v11002_v51 = vunpack.i.h.bf16 %v11000_v30  ;;  %v11001_v4 = vunpack.i.l.bf16 %v11000_v30 }
 0x7ea   : > { %10358 = vmatmul.mubr.msk.bf16.gmra.mrb[80].mxu1 %vm388_vm0, %v3326_v62 }
 0x7eb   : > { %v3316_v1 = vsel %vm576_vm1, %v16142_v56, %v11002_v51  ;;  %v3315_v16 = vsel %vm576_vm1, %v16143_v14, %v11001_v4  ;;  %10361 = vmatprep.mubr.msk.bf16.mxu1 %vm388_vm0, %v3327_v58 }
 0x7ec   : > { %v3328_v27 = vpack.c.bf16 %v3316_v1, %v3315_v16 }
 0x7f2   : > { %10362 = vmatmul.mubr.msk.bf16.gmra.mrb[84].mxu1 %vm388_vm0, %v3328_v27 }
 0x856   : > { %v10343_v42 = vpop.f32.mrb[64].mxu1 }
 0x857   : > { %v3424_v32 = vadd.f32 %v10343_v42, %v12972_v40  ;;  %v3415_v57 = vpop.f32.mrb[65].mxu1 }
 0x858   : > { %v3416_v38 = vadd.f32 %v3415_v57, %v12972_v40  ;;  %v10344_v11 = vpop.f32.mrb[66].mxu1  ;;  %v11667_v57 = vld [vmem:[%s11861_s25 + $0x50] sm:$0xff] }
 0x859   : > { %v12977_v37 = vadd.f32 %v11659_v63, %v3424_v32  ;;  %v3427_v39 = vadd.f32 %v10344_v11, %v12972_v40  ;;  %v3418_v36 = vpop.f32.mrb[67].mxu1  ;;  %v11668_v11 = vld [vmem:[%s11861_s25 + $0x58] sm:$0xff] }
 0x85a   : > { %v3419_v48 = vadd.f32 %v3418_v36, %v12972_v40  ;;  %v12982_v20 = vadd.f32 %v11660_v23, %v3416_v38 }
 0x85b   : > { %v12985_v2 = vadd.f32 %v11661_v59, %v3427_v39  ;;  %v3540_v41 = vsel %vm388_vm0, %v12977_v37, 0.0  ;;  %v3633_v22 = vmul.f32 %v12977_v37, %v12977_v37 }
 0x85c   : > { %v12990_v52 = vadd.f32 %v11662_v24, %v3419_v48  ;;  %3541 = vadd.xlane.f32.xlu0 %v3540_v41  ;;  %v3534_v6 = vsel %vm388_vm0, %v12982_v20, 0.0  ;;  %v3631_v21 = vmul.f32 %v12982_v20, %v12982_v20  ;;  %v11669_v41 = vld [vmem:[%s11861_s25 + $0x40] sm:$0xff] }
 0x85d   : > { %v3634_v44 = vmul.f32 %v12985_v2, %v12985_v2  ;;  %v3543_v50 = vsel %vm388_vm0, %v12985_v2, 0.0  ;;  %v3661_v47 = vsel %vm388_vm0, %v3633_v22, 0.0 }
 0x85e   : > { %v3537_v5 = vsel %vm388_vm0, %v12990_v52, 0.0  ;;  %v3632_v54 = vmul.f32 %v12990_v52, %v12990_v52  ;;  %v3655_v33 = vsel %vm388_vm0, %v3631_v21, 0.0 }
 0x85f   : > { %3538 = vadd.xlane.f32.xlu1 %v3537_v5  ;;  %v3664_v26 = vsel %vm388_vm0, %v3634_v44, 0.0  ;;  %v11670_v5 = vld [vmem:[%s11861_s25 + $0x48] sm:$0xff] }
 0x860   : > { %3535 = vadd.xlane.f32.xlu0 %v3534_v6  ;;  %v3658_v12 = vsel %vm388_vm0, %v3632_v54, 0.0 }
 0x863   : > { %3665 = vadd.xlane.f32.xlu1 %v3664_v26 }
 0x864   : > { %3544 = vadd.xlane.f32.xlu0 %v3543_v50 }
 0x867   : > { %3659 = vadd.xlane.f32.xlu1 %v3658_v12 }
 0x868   : > { %v10347_v29 = vpop.f32.mrb[68].mxu1  ;;  %3662 = vadd.xlane.f32.xlu0 %v3661_v47 }
 0x869   : > { %v3440_v13 = vadd.f32 %v10347_v29, %v12972_v40  ;;  %v3431_v15 = vpop.f32.mrb[69].mxu1 }
 0x86a   : > { %v10348_v34 = vpop.f32.mrb[70].mxu1  ;;  %v3432_v35 = vadd.f32 %v3431_v15, %v12972_v40 }
 0x86b   : > { %v13011_v53 = vadd.f32 %v11663_v8, %v3440_v13  ;;  %v3443_v18 = vadd.f32 %v10348_v34, %v12972_v40  ;;  %v3434_v17 = vpop.f32.mrb[71].mxu1 }
 0x86c   : > { %v3435_v9 = vadd.f32 %v3434_v17, %v12972_v40  ;;  %3656 = vadd.xlane.f32.xlu0 %v3655_v33  ;;  %v13021_v28 = vadd.f32 %v11665_v45, %v3432_v35  ;;  %v11671_v17 = vld [vmem:[%s11861_s25 + $0x70] sm:$0xff] }
 0x86d   : > { %v13018_v60 = vadd.f32 %v11664_v10, %v3443_v18  ;;  %v3552_v58 = vsel %vm388_vm0, %v13011_v53, 0.0  ;;  %v3637_v0 = vmul.f32 %v13011_v53, %v13011_v53  ;;  %v11672_v10 = vld [vmem:[%s11861_s25 + $0x78] sm:$0xff] }
 0x86e   : > { %v13024_v43 = vadd.f32 %v11666_v19, %v3435_v9  ;;  %v3546_v51 = vsel %vm388_vm0, %v13021_v28, 0.0  ;;  %v3635_v1 = vmul.f32 %v13021_v28, %v13021_v28 }
 0x86f   : > { %v3555_v25 = vsel %vm388_vm0, %v13018_v60, 0.0  ;;  %v3638_v4 = vmul.f32 %v13018_v60, %v13018_v60  ;;  %v3673_v56 = vsel %vm388_vm0, %v3637_v0, 0.0 }
 0x870   : > { %v10351_v61 = vpop.f32.mrb[72].mxu1  ;;  %3556 = vadd.xlane.f32.xlu1 %v3555_v25  ;;  %3553 = vadd.xlane.f32.xlu0 %v3552_v58  ;;  %v3549_v62 = vsel %vm388_vm0, %v13024_v43, 0.0  ;;  %v3636_v49 = vmul.f32 %v13024_v43, %v13024_v43  ;;  %v3667_v32 = vsel %vm388_vm0, %v3635_v1, 0.0  ;;  %v11067_v25 = vld [vmem:[%s16086_s4] sm:$0xff]  }
 0x871   : > { %v3447_v46 = vpop.f32.mrb[73].mxu1  ;;  %v3456_v14 = vadd.f32 %v10351_v61, %v12972_v40  ;;  %v3676_v27 = vsel %vm388_vm0, %v3638_v4, 0.0  ;;  %10365 = vmatprep.subr.bf16.mxu0 %v11067_v25  ;;  %v11673_v58 = vld [vmem:[%s11861_s25 + $0x60] sm:$0xff] }
 0x872   : > { %v10352_v31 = vpop.f32.mrb[74].mxu1  ;;  %v3448_v42 = vadd.f32 %v3447_v46, %v12972_v40  ;;  %v3670_v36 = vsel %vm388_vm0, %v3636_v49, 0.0  ;;  %10366 = vmatpush3.bf16.msra.mxu0 %v11067_v25  ;;  %v11674_v46 = vld [vmem:[%s11861_s25 + $0x68] sm:$0xff] }
 0x873   : > { %v3450_v30 = vpop.f32.mrb[75].mxu1  ;;  %v3459_v16 = vadd.f32 %v10352_v31, %v12972_v40  ;;  %v13049_v38 = vadd.f32 %v11667_v57, %v3456_v14 }
 0x874   : > { %3550 = vadd.xlane.f32.xlu1 %v3549_v62  ;;  %3547 = vadd.xlane.f32.xlu0 %v3546_v51  ;;  %v3451_v39 = vadd.f32 %v3450_v30, %v12972_v40  ;;  %v13057_v24 = vadd.f32 %v11669_v41, %v3448_v42  ;;  %v11068_v62 = vld [vmem:[%s16086_s4 + $0x8] sm:$0xff]  }
 0x875   : > { %v13052_v63 = vadd.f32 %v11668_v11, %v3459_v16  ;;  %v3564_v54 = vsel %vm388_vm0, %v13049_v38, 0.0  ;;  %v3641_v47 = vmul.f32 %v13049_v38, %v13049_v38  ;;  %10367 = vmatprep.subr.bf16.mxu0 %v11068_v62 }
 0x876   : > { %v13060_v44 = vadd.f32 %v11670_v5, %v3451_v39  ;;  %v3558_v22 = vsel %vm388_vm0, %v13057_v24, 0.0  ;;  %v3639_v29 = vmul.f32 %v13057_v24, %v13057_v24  ;;  %10368 = vmatpush3.bf16.msra.mxu0 %v11068_v62 }
 0x877   : > { %v3567_v26 = vsel %vm388_vm0, %v13052_v63, 0.0  ;;  %v3642_v12 = vmul.f32 %v13052_v63, %v13052_v63  ;;  %v3685_v8 = vsel %vm388_vm0, %v3641_v47, 0.0  ;;  %v11678_v47 = vld [vmem:[%s11861_s25 + $0x88] sm:$0xff] }
 0x878   : > { %3677 = vadd.xlane.f32.xlu1 %v3676_v27  ;;  %3674 = vadd.xlane.f32.xlu0 %v3673_v56  ;;  %v3561_v50 = vsel %vm388_vm0, %v13060_v44, 0.0  ;;  %v3640_v21 = vmul.f32 %v13060_v44, %v13060_v44  ;;  %v3679_v18 = vsel %vm388_vm0, %v3639_v29, 0.0 }
 0x879   : > { %v3688_v34 = vsel %vm388_vm0, %v3642_v12, 0.0 }
 0x87a   : > { %v3682_v35 = vsel %vm388_vm0, %v3640_v21, 0.0 }
 0x87c   : > { %v10355_v48 = vpop.f32.mrb[76].mxu1  ;;  %3671 = vadd.xlane.f32.xlu1 %v3670_v36  ;;  %3668 = vadd.xlane.f32.xlu0 %v3667_v32 }
 0x87d   : > { %v3463_v23 = vpop.f32.mrb[77].mxu1  ;;  %v3472_v13 = vadd.f32 %v10355_v48, %v12972_v40 }
 0x87e   : > { %v10356_v59 = vpop.f32.mrb[78].mxu1  ;;  %v3464_v9 = vadd.f32 %v3463_v23, %v12972_v40  ;;  %v11675_v23 = vld [vmem:[%s11861_s25 + $0x90] sm:$0xff] }
 0x87f   : > { %v3466_v6 = vpop.f32.mrb[79].mxu1  ;;  %v3475_v15 = vadd.f32 %v10356_v59, %v12972_v40  ;;  %v13085_v33 = vadd.f32 %v11671_v17, %v3472_v13 }
 0x880   : > { %3568 = vadd.xlane.f32.xlu1 %v3567_v26  ;;  %3565 = vadd.xlane.f32.xlu0 %v3564_v54  ;;  %v3467_v19 = vadd.f32 %v3466_v6, %v12972_v40  ;;  %v13096_v61 = vadd.f32 %v11673_v58, %v3464_v9  ;;  %v11676_v26 = vld [vmem:[%s11861_s25 + $0x80] sm:$0xff] }
 0x881   : > { %v13089_v45 = vadd.f32 %v11672_v10, %v3475_v15  ;;  %v3576_v30 = vsel %vm388_vm0, %v13085_v33, 0.0  ;;  %v3645_v1 = vmul.f32 %v13085_v33, %v13085_v33 }
 0x882   : > { %v13099_v31 = vadd.f32 %v11674_v46, %v3467_v19  ;;  %v3570_v4 = vsel %vm388_vm0, %v13096_v61, 0.0  ;;  %v3643_v49 = vmul.f32 %v13096_v61, %v13096_v61 }
 0x883   : > { %v3579_v0 = vsel %vm388_vm0, %v13089_v45, 0.0  ;;  %v3646_v56 = vmul.f32 %v13089_v45, %v13089_v45  ;;  %v3697_v16 = vsel %vm388_vm0, %v3645_v1, 0.0 }
 0x884   : > { %3562 = vadd.xlane.f32.xlu1 %v3561_v50  ;;  %3559 = vadd.xlane.f32.xlu0 %v3558_v22  ;;  %v3573_v51 = vsel %vm388_vm0, %v13099_v31, 0.0  ;;  %v3644_v27 = vmul.f32 %v13099_v31, %v13099_v31  ;;  %v3691_v32 = vsel %vm388_vm0, %v3643_v49, 0.0  ;;  %v11677_v50 = vld [vmem:[%s11861_s25 + $0x98] sm:$0xff] }
 0x885   : > { %v3700_v14 = vsel %vm388_vm0, %v3646_v56, 0.0  ;;  %v11680_v56 = vld [vmem:[%s11861_s25 + $0xb8] sm:$0xff] }
 0x886   : > { %v3694_v42 = vsel %vm388_vm0, %v3644_v27, 0.0  ;;  %v11681_v27 = vld [vmem:[%s11861_s25 + $0xa0] sm:$0xff] }
 0x888   : > { %3689 = vadd.xlane.f32.xlu1 %v3688_v34  ;;  %3686 = vadd.xlane.f32.xlu0 %v3685_v8 }
 0x88c   : > { %3683 = vadd.xlane.f32.xlu1 %v3682_v35  ;;  %3680 = vadd.xlane.f32.xlu0 %v3679_v18 }
 0x890   : > { %3580 = vadd.xlane.f32.xlu1 %v3579_v0  ;;  %3577 = vadd.xlane.f32.xlu0 %v3576_v30  ;;  %v11679_v30 = vld [vmem:[%s11861_s25 + $0xb0] sm:$0xff] }
 0x894   : > { %3574 = vadd.xlane.f32.xlu1 %v3573_v51  ;;  %3571 = vadd.xlane.f32.xlu0 %v3570_v4 }
 0x898   : > { %3701 = vadd.xlane.f32.xlu1 %v3700_v14  ;;  %3698 = vadd.xlane.f32.xlu0 %v3697_v16 }
 0x89c   : > { %3695 = vadd.xlane.f32.xlu1 %v3694_v42  ;;  %3692 = vadd.xlane.f32.xlu0 %v3691_v32  ;;  %v11682_v32 = vld [vmem:[%s11861_s25 + $0xa8] sm:$0xff]  ;;  %s299_s25 = sand.u32 1, %s11739_s28  }
 0x89d   : > { %s15824_s26 = smul.u32 192, %s299_s25 }
 0x89f   : > { %s15851_s10 = scalar_lea.vmem [#allocation2], %s15824_s26 }
 0x8bd   : > { %v10359_v57 = vpop.f32.mrb[80].mxu1 }
 0x8be   : > { %v3488_v11 = vadd.f32 %v10359_v57, %v12972_v40  ;;  %v3479_v39 = vpop.f32.mrb[81].mxu1 }
 0x8bf   : > { %v3480_v36 = vadd.f32 %v3479_v39, %v12972_v40  ;;  %v10360_v48 = vpop.f32.mrb[82].mxu1 }
 0x8c0   : > { %v13127_v59 = vadd.f32 %v11675_v23, %v3488_v11  ;;  %v3491_v41 = vadd.f32 %v10360_v48, %v12972_v40  ;;  %v3482_v5 = vpop.f32.mrb[83].mxu1 }
 0x8c1   : > { %v3483_v6 = vadd.f32 %v3482_v5, %v12972_v40  ;;  %v13132_v54 = vadd.f32 %v11676_v26, %v3480_v36 }
 0x8c2   : > { %v13135_v22 = vadd.f32 %v11677_v50, %v3491_v41  ;;  %v3588_v12 = vsel %vm388_vm0, %v13127_v59, 0.0  ;;  %v3649_v8 = vmul.f32 %v13127_v59, %v13127_v59 }
 0x8c3   : > { %3589 = vadd.xlane.f32.xlu0 %v3588_v12  ;;  %v13140_v21 = vadd.f32 %v11678_v47, %v3483_v6  ;;  %v3582_v34 = vsel %vm388_vm0, %v13132_v54, 0.0  ;;  %v3647_v25 = vmul.f32 %v13132_v54, %v13132_v54 }
 0x8c4   : > { %v3591_v29 = vsel %vm388_vm0, %v13135_v22, 0.0  ;;  %v3650_v9 = vmul.f32 %v13135_v22, %v13135_v22  ;;  %v3709_v19 = vsel %vm388_vm0, %v3649_v8, 0.0 }
 0x8c5   : > { %v10363_v13 = vpop.f32.mrb[84].mxu1  ;;  %3592 = vadd.xlane.f32.xlu1 %v3591_v29  ;;  %v3585_v17 = vsel %vm388_vm0, %v13140_v21, 0.0  ;;  %v3648_v0 = vmul.f32 %v13140_v21, %v13140_v21  ;;  %v3703_v4 = vsel %vm388_vm0, %v3647_v25, 0.0 }
 0x8c6   : > { %v3495_v15 = vpop.f32.mrb[85].mxu1  ;;  %v3504_v10 = vadd.f32 %v10363_v13, %v12972_v40  ;;  %v3712_v46 = vsel %vm388_vm0, %v3650_v9, 0.0 }
 0x8c7   : > { %v10364_v35 = vpop.f32.mrb[86].mxu1  ;;  %3583 = vadd.xlane.f32.xlu0 %v3582_v34  ;;  %v3496_v51 = vadd.f32 %v3495_v15, %v12972_v40  ;;  %v3706_v16 = vsel %vm388_vm0, %v3648_v0, 0.0 }
 0x8c8   : > { %v3498_v18 = vpop.f32.mrb[87].mxu1  ;;  %v3507_v58 = vadd.f32 %v10364_v35, %v12972_v40  ;;  %v13161_v62 = vadd.f32 %v11679_v30, %v3504_v10 }
 0x8c9   : > { %3586 = vadd.xlane.f32.xlu1 %v3585_v17  ;;  %v3499_v14 = vadd.f32 %v3498_v18, %v12972_v40  ;;  %v13171_v49 = vadd.f32 %v11681_v27, %v3496_v51 }
 0x8ca   : > { %v13166_v1 = vadd.f32 %v11680_v56, %v3507_v58  ;;  %v3600_v42 = vsel %vm388_vm0, %v13161_v62, 0.0  ;;  %v3653_v41 = vmul.f32 %v13161_v62, %v13161_v62 }
 0x8cb   : > { %3710 = vadd.xlane.f32.xlu0 %v3709_v19  ;;  %v13176_v57 = vadd.f32 %v11682_v32, %v3499_v14  ;;  %v3594_v40 = vsel %vm388_vm0, %v13171_v49, 0.0  ;;  %v3651_v39 = vmul.f32 %v13171_v49, %v13171_v49 }
 0x8cc   : > { %v3603_v11 = vsel %vm388_vm0, %v13166_v1, 0.0  ;;  %v3654_v6 = vmul.f32 %v13166_v1, %v13166_v1  ;;  %v3721_v26 = vsel %vm388_vm0, %v3653_v41, 0.0 }
 0x8cd   : > { %3713 = vadd.xlane.f32.xlu1 %v3712_v46  ;;  %v3597_v36 = vsel %vm388_vm0, %v13176_v57, 0.0  ;;  %v3652_v48 = vmul.f32 %v13176_v57, %v13176_v57  ;;  %v3715_v23 = vsel %vm388_vm0, %v3651_v39, 0.0 }
 0x8ce   : > { %v3724_v50 = vsel %vm388_vm0, %v3654_v6, 0.0  ;;  %v16095_v6 = vsub.s32 1, %v12961_v3 }
 0x8cf   : > { %3704 = vadd.xlane.f32.xlu0 %v3703_v4  ;;  %v3718_v5 = vsel %vm388_vm0, %v3652_v48, 0.0 }
 0x8d1   : > { %3707 = vadd.xlane.f32.xlu1 %v3706_v16 }
 0x8d3   : > { %3601 = vadd.xlane.f32.xlu0 %v3600_v42 }
 0x8d5   : > { %3604 = vadd.xlane.f32.xlu1 %v3603_v11 }
 0x8d7   : > { %3595 = vadd.xlane.f32.xlu0 %v3594_v40 }
 0x8d9   : > { %3598 = vadd.xlane.f32.xlu1 %v3597_v36 }
 0x8db   : > { %3716 = vadd.xlane.f32.xlu0 %v3715_v23 }
 0x8dd   : > { %3719 = vadd.xlane.f32.xlu1 %v3718_v5 }
 0x8df   : > { %3722 = vadd.xlane.f32.xlu0 %v3721_v26 }
 0x8e1   : > { %3725 = vadd.xlane.f32.xlu1 %v3724_v50 }
 0x8e9   : > { %v3542_v12 = vpop.xlane.xlu0 %3541 }
 0x8ea   : > { %v3609_v8 = vmul.f32 0.03125, %v3542_v12 }
 0x8ec   : > { %v3539_v47 = vpop.xlane.xlu1 %3538  ;;  %v3753_v58 = vmul.f32 %v3609_v8, %v3609_v8  ;;  %v3801_v50 = vsub.f32 %v12977_v37, %v3609_v8 }
 0x8ed   : > { %v3536_v29 = vpop.xlane.xlu0 %3535  ;;  %v3608_v15 = vmul.f32 0.03125, %v3539_v47 }
 0x8ee   : > { %v3607_v46 = vmul.f32 0.03125, %v3536_v29 }
 0x8ef   : > { %v3752_v10 = vmul.f32 %v3608_v15, %v3608_v15  ;;  %v3800_v47 = vsub.f32 %v12990_v52, %v3608_v15  ;;  %v13215_v52 = vrot.slane %v12967_v55, %v16095_v6 }
 0x8f0   : > { %v3666_v13 = vpop.xlane.xlu1 %3665  ;;  %v3751_v27 = vmul.f32 %v3607_v46, %v3607_v46 }
 0x8f1   : > { %v3545_v34 = vpop.xlane.xlu0 %3544  ;;  %v3730_v18 = vmul.f32 0.03125, %v3666_v13 }
 0x8f2   : > { %v3610_v35 = vmul.f32 0.03125, %v3545_v34 }
 0x8f4   : > { %v3754_v17 = vmul.f32 %v3610_v35, %v3610_v35  ;;  %v3660_v9 = vpop.xlane.xlu1 %3659  ;;  %v3802_v29 = vsub.f32 %v12985_v2, %v3610_v35  ;;  %v16094_v2 = vsub.s32 2, %v12961_v3 }
 0x8f5   : > { %v3728_v19 = vmul.f32 0.03125, %v3660_v9  ;;  %v3663_v25 = vpop.xlane.xlu0 %3662 }
 0x8f6   : > { %v3778_v0 = vsub.f32 %v3730_v18, %v3754_v17  ;;  %v3729_v30 = vmul.f32 0.03125, %v3663_v25 }
 0x8f7   : > { %v3776_v51 = vsub.f32 %v3728_v19, %v3752_v10 }
 0x8f8   : > { %v3826_v4 = vadd.f32 1e-05, %v3778_v0  ;;  %v3777_v56 = vsub.f32 %v3729_v30, %v3753_v58  ;;  %v11069_v30 = vld [vmem:[%s16088_s6] sm:$0xff]  }
 0x8f9   : > { %v3824_v14 = vadd.f32 1e-05, %v3776_v51  ;;  %v3657_v16 = vpop.xlane.xlu0 %3656  ;;  %v11070_v51 = vld [vmem:[%s16088_s6 + $0x8] sm:$0xff]   ;;  %10393 = vmatprep.subr.bf16.mxu1 %v11069_v30 }
 0x8fa   : > { %11275 = vrsqrt.f32 %v3826_v4  ;;  %v3825_v42 = vadd.f32 1e-05, %v3777_v56  ;;  %v3727_v32 = vmul.f32 0.03125, %v3657_v16  ;;  %v3799_v4 = vsub.f32 %v12982_v20, %v3607_v46  ;;  %10394 = vmatpush3.bf16.msra.mxu1 %v11069_v30 }
 0x8fb   : > { %11277 = vrsqrt.f32 %v3824_v14  ;;  %v13233_v20 = vrot.slane %v12967_v55, %v16094_v2  ;;  %10395 = vmatprep.subr.bf16.mxu1 %v11070_v51 }
 0x8fc   : > { %11279 = vrsqrt.f32 %v3825_v42  ;;  %v3775_v11 = vsub.f32 %v3727_v32, %v3751_v27 }
 0x8fd   : > { %v3557_v40 = vpop.xlane.xlu1 %3556  ;;  %v3554_v39 = vpop.xlane.xlu0 %3553 }
 0x8fe   : > { %v3823_v36 = vadd.f32 1e-05, %v3775_v11  ;;  %v13196_v41 = vmul.f32 0.03125, %v3557_v40  ;;  %v13198_v5 = vmul.f32 0.03125, %v3554_v39  ;;  %10396 = vmatpush3.bf16.msra.mxu1 %v11070_v51 }
 0x900   : > { %11281 = vrsqrt.f32 %v3823_v36  ;;  %v3758_v10 = vmul.f32 %v13196_v41, %v13196_v41  ;;  %v3757_v19 = vmul.f32 %v13198_v5, %v13198_v5  ;;  %v3805_v30 = vsub.f32 %v13011_v53, %v13198_v5 }
 0x901   : > { %v3551_v48 = vpop.xlane.xlu1 %3550  ;;  %v3548_v23 = vpop.xlane.xlu0 %3547 }
 0x902   : > { %v13204_v13 = vmul.f32 0.03125, %v3551_v48  ;;  %v13206_v34 = vmul.f32 0.03125, %v3548_v23 }
 0x904   : > { %v11276_v26 = vpop.eup %11275  ;;  %v3756_v56 = vmul.f32 %v13204_v13, %v13204_v13  ;;  %v3755_v14 = vmul.f32 %v13206_v34, %v13206_v34  ;;  %v3804_v5 = vsub.f32 %v13024_v43, %v13204_v13 }
 0x905   : > { %v11278_v12 = vpop.eup %11277  ;;  %v3678_v18 = vpop.xlane.xlu1 %3677  ;;  %v3874_v35 = vmul.f32 %v11276_v26, %v3802_v29 }
 0x906   : > { %v3675_v17 = vpop.xlane.xlu0 %3674  ;;  %v11280_v9 = vpop.eup %11279  ;;  %v3734_v25 = vmul.f32 0.03125, %v3678_v18  ;;  %v3872_v8 = vmul.f32 %v11278_v12, %v3800_v47 }
 0x907   : > { %v3733_v37 = vmul.f32 0.03125, %v3675_v17  ;;  %v3873_v15 = vmul.f32 %v11280_v9, %v3801_v50  ;;  %v3902_v23 = vmul.f32 %v13215_v52, %v3874_v35 }
 0x908   : > { %v3782_v58 = vsub.f32 %v3734_v25, %v3758_v10  ;;  %v3900_v48 = vmul.f32 %v13215_v52, %v3872_v8 }
 0x909   : > { %v3781_v0 = vsub.f32 %v3733_v37, %v3757_v19  ;;  %v3672_v16 = vpop.xlane.xlu1 %3671  ;;  %v3901_v42 = vmul.f32 %v13215_v52, %v3873_v15  ;;  %v13248_v19 = vadd.f32 %v13233_v20, %v3902_v23 }
 0x90a   : > { %v3669_v27 = vpop.xlane.xlu0 %3668  ;;  %v11282_v32 = vpop.eup %11281  ;;  %v3830_v11 = vadd.f32 1e-05, %v3782_v58  ;;  %v3732_v39 = vmul.f32 0.03125, %v3672_v16  ;;  %v13245_v10 = vadd.f32 %v13233_v20, %v3900_v48 }
 0x90b   : > { %v3829_v40 = vadd.f32 1e-05, %v3781_v0  ;;  %v3731_v36 = vmul.f32 0.03125, %v3669_v27  ;;  %v3871_v46 = vmul.f32 %v11282_v32, %v3799_v4  ;;  %v13239_v55 = vadd.f32 %v13233_v20, %v3901_v42 }
 0x90c   : > { %11283 = vrsqrt.f32 %v3830_v11  ;;  %v3780_v26 = vsub.f32 %v3732_v39, %v3756_v56  ;;  %v3806_v0 = vsub.f32 %v13018_v60, %v13196_v41 }
 0x90d   : > { %v3779_v50 = vsub.f32 %v3731_v36, %v3755_v14  ;;  %11285 = vrsqrt.f32 %v3829_v40  ;;  %v3569_v12 = vpop.xlane.xlu1 %3568  ;;  %v3899_v29 = vmul.f32 %v13215_v52, %v3871_v46  ;;  %v3952_v58 = vpack.c.bf16 %v13248_v19, %v13239_v55 }
 0x90e   : > { %v3566_v47 = vpop.xlane.xlu0 %3565  ;;  %v3828_v18 = vadd.f32 1e-05, %v3780_v26  ;;  %v13252_v8 = vmul.f32 0.03125, %v3569_v12  ;;  %v3803_v36 = vsub.f32 %v13021_v28, %v13206_v34 }
 0x90f   : > { %v3827_v17 = vadd.f32 1e-05, %v3779_v50  ;;  %v13242_v9 = vadd.f32 %v13233_v20, %v3899_v29  ;;  %v13254_v35 = vmul.f32 0.03125, %v3566_v47 }
 0x910   : > { %11287 = vrsqrt.f32 %v3828_v18  ;;  %v3762_v27 = vmul.f32 %v13252_v8, %v13252_v8 }
 0x911   : > { %11289 = vrsqrt.f32 %v3827_v17  ;;  %v3563_v25 = vpop.xlane.xlu1 %3562  ;;  %v3951_v15 = vpack.c.bf16 %v13245_v10, %v13242_v9  ;;  %v3761_v42 = vmul.f32 %v13254_v35, %v13254_v35 }
 0x912   : > { %v3560_v37 = vpop.xlane.xlu0 %3559  ;;  %v13264_v51 = vmul.f32 0.03125, %v3563_v25 }
 0x913   : > { %10369 = vmatprep.mubr.msk.bf16.mxu0 %vm388_vm0, %v3951_v15  ;;  %v13266_v4 = vmul.f32 0.03125, %v3560_v37 }
 0x914   : > { %10370 = vmatmul.mubr.msk.bf16.vlgmr.msra.gmra.mrb[88].mxu0 %vm388_vm0, %v3952_v58  ;;  %v3760_v46 = vmul.f32 %v13264_v51, %v13264_v51 }
 0x915   : > { %v3690_v56 = vpop.xlane.xlu1 %3689  ;;  %v3759_v48 = vmul.f32 %v13266_v4, %v13266_v4 }
 0x916   : > { %v3687_v14 = vpop.xlane.xlu0 %3686  ;;  %v11284_v16 = vpop.eup %11283  ;;  %v3738_v32 = vmul.f32 0.03125, %v3690_v56 }
 0x917   : > { %v3737_v11 = vmul.f32 0.03125, %v3687_v14  ;;  %v11286_v40 = vpop.eup %11285  ;;  %v3878_v60 = vmul.f32 %v11284_v16, %v3806_v0 }
 0x918   : > { %v3786_v41 = vsub.f32 %v3738_v32, %v3762_v27  ;;  %v3877_v53 = vmul.f32 %v11286_v40, %v3805_v30 }
 0x919   : > { %v3785_v39 = vsub.f32 %v3737_v11, %v3761_v42  ;;  %v3684_v23 = vpop.xlane.xlu1 %3683  ;;  %v3906_v13 = vmul.f32 %v13215_v52, %v3878_v60 }
 0x91a   : > { %v3681_v26 = vpop.xlane.xlu0 %3680  ;;  %v11288_v50 = vpop.eup %11287  ;;  %v3834_v12 = vadd.f32 1e-05, %v3786_v41  ;;  %v3736_v29 = vmul.f32 0.03125, %v3684_v23  ;;  %v3905_v43 = vmul.f32 %v13215_v52, %v3877_v53 }
 0x91b   : > { %v3833_v47 = vadd.f32 1e-05, %v3785_v39  ;;  %v3735_v18 = vmul.f32 0.03125, %v3681_v26  ;;  %v11290_v17 = vpop.eup %11289  ;;  %v3876_v25 = vmul.f32 %v11288_v50, %v3804_v5  ;;  %v13291_v42 = vadd.f32 %v13233_v20, %v3906_v13 }
 0x91c   : > { %11291 = vrsqrt.f32 %v3834_v12  ;;  %v3784_v28 = vsub.f32 %v3736_v29, %v3760_v46  ;;  %v3875_v37 = vmul.f32 %v11290_v17, %v3803_v36  ;;  %v13288_v27 = vadd.f32 %v13233_v20, %v3905_v43 }
 0x91d   : > { %v3783_v34 = vsub.f32 %v3735_v18, %v3759_v48  ;;  %11293 = vrsqrt.f32 %v3833_v47  ;;  %v3581_v15 = vpop.xlane.xlu1 %3580  ;;  %v3904_v0 = vmul.f32 %v13215_v52, %v3876_v25  ;;  %v3810_v5 = vsub.f32 %v13052_v63, %v13252_v8 }
 0x91e   : > { %v3578_v58 = vpop.xlane.xlu0 %3577  ;;  %v3832_v30 = vadd.f32 1e-05, %v3784_v28  ;;  %v3903_v14 = vmul.f32 %v13215_v52, %v3875_v37  ;;  %v3622_v60 = vmul.f32 0.03125, %v3581_v15  ;;  %v3954_v53 = vpack.c.bf16 %v13291_v42, %v13288_v27 }
 0x91f   : > { %v3831_v56 = vadd.f32 1e-05, %v3783_v34  ;;  %v13285_v16 = vadd.f32 %v13233_v20, %v3904_v0  ;;  %v3621_v41 = vmul.f32 0.03125, %v3578_v58  ;;  %v3809_v36 = vsub.f32 %v13049_v38, %v13254_v35 }
 0x920   : > { %11295 = vrsqrt.f32 %v3832_v30  ;;  %v13294_v40 = vadd.f32 %v13233_v20, %v3903_v14  ;;  %v3766_v12 = vmul.f32 %v3622_v60, %v3622_v60  ;;  %v3808_v38 = vsub.f32 %v13060_v44, %v13264_v51 }
 0x921   : > { %11297 = vrsqrt.f32 %v3831_v56  ;;  %v3575_v32 = vpop.xlane.xlu1 %3574  ;;  %v3765_v47 = vmul.f32 %v3621_v41, %v3621_v41  ;;  %v3807_v35 = vsub.f32 %v13057_v24, %v13266_v4 }
 0x922   : > { %v3572_v11 = vpop.xlane.xlu0 %3571  ;;  %v3953_v39 = vpack.c.bf16 %v13285_v16, %v13294_v40  ;;  %v3620_v46 = vmul.f32 0.03125, %v3575_v32 }
 0x923   : > { %v13304_v48 = vmul.f32 0.03125, %v3572_v11 }
 0x924   : > { %10373 = vmatprep.mubr.msk.bf16.mxu0 %vm388_vm0, %v3953_v39  ;;  %v3764_v13 = vmul.f32 %v3620_v46, %v3620_v46 }
 0x925   : > { %v3702_v23 = vpop.xlane.xlu1 %3701  ;;  %10374 = vmatmul.mubr.msk.bf16.gmra.mrb[92].mxu0 %vm388_vm0, %v3954_v53  ;;  %v3763_v28 = vmul.f32 %v13304_v48, %v13304_v48 }
 0x926   : > { %v3699_v26 = vpop.xlane.xlu0 %3698  ;;  %v11292_v50 = vpop.eup %11291  ;;  %v3742_v29 = vmul.f32 0.03125, %v3702_v23 }
 0x927   : > { %v3741_v18 = vmul.f32 0.03125, %v3699_v26  ;;  %v11294_v17 = vpop.eup %11293  ;;  %v3882_v25 = vmul.f32 %v11292_v50, %v3810_v5 }
 0x928   : > { %v3790_v63 = vsub.f32 %v3742_v29, %v3766_v12  ;;  %v3881_v43 = vmul.f32 %v11294_v17, %v3809_v36 }
 0x929   : > { %v3789_v8 = vsub.f32 %v3741_v18, %v3765_v47  ;;  %v3696_v34 = vpop.xlane.xlu1 %3695  ;;  %v3910_v44 = vmul.f32 %v13215_v52, %v3882_v25  ;;  %v3814_v18 = vsub.f32 %v13089_v45, %v3622_v60  ;;  %v3813_v25 = vsub.f32 %v13085_v33, %v3621_v41 }
 0x92a   : > { %v3693_v37 = vpop.xlane.xlu0 %3692  ;;  %v11296_v15 = vpop.eup %11295  ;;  %v3838_v58 = vadd.f32 1e-05, %v3790_v63  ;;  %v3740_v30 = vmul.f32 0.03125, %v3696_v34  ;;  %v3909_v11 = vmul.f32 %v13215_v52, %v3881_v43 }
 0x92b   : > { %v3837_v0 = vadd.f32 1e-05, %v3789_v8  ;;  %v3739_v56 = vmul.f32 0.03125, %v3693_v37  ;;  %v11298_v14 = vpop.eup %11297  ;;  %v3880_v32 = vmul.f32 %v11296_v15, %v3808_v38  ;;  %v13325_v50 = vadd.f32 %v13233_v20, %v3910_v44 }
 0x92c   : > { %11299 = vrsqrt.f32 %v3838_v58  ;;  %v3788_v51 = vsub.f32 %v3740_v30, %v3764_v13  ;;  %v3879_v4 = vmul.f32 %v11298_v14, %v3807_v35  ;;  %v13322_v26 = vadd.f32 %v13233_v20, %v3909_v11 }
 0x92d   : > { %v3787_v24 = vsub.f32 %v3739_v56, %v3763_v28  ;;  %11301 = vrsqrt.f32 %v3837_v0  ;;  %v3908_v39 = vmul.f32 %v13215_v52, %v3880_v32  ;;  %v3812_v38 = vsub.f32 %v13099_v31, %v3620_v46 }
 0x92e   : > { %v3836_v53 = vadd.f32 1e-05, %v3788_v51  ;;  %v3907_v36 = vmul.f32 %v13215_v52, %v3879_v4  ;;  %v3956_v29 = vpack.c.bf16 %v13325_v50, %v13322_v26  ;;  %v3811_v13 = vsub.f32 %v13096_v61, %v13304_v48 }
 0x92f   : > { %v3835_v5 = vadd.f32 1e-05, %v3787_v24  ;;  %v13319_v23 = vadd.f32 %v13233_v20, %v3908_v39 }
 0x930   : > { %11303 = vrsqrt.f32 %v3836_v53  ;;  %v13328_v12 = vadd.f32 %v13233_v20, %v3907_v36 }
 0x931   : > { %11305 = vrsqrt.f32 %v3835_v5 }
 0x932   : > { %v3955_v47 = vpack.c.bf16 %v13319_v23, %v13328_v12 }
 0x934   : > { %10377 = vmatprep.mubr.msk.bf16.mxu0 %vm388_vm0, %v3955_v47 }
 0x935   : > { %10378 = vmatmul.mubr.msk.bf16.gmra.mrb[96].mxu0 %vm388_vm0, %v3956_v29 }
 0x936   : > { %v11300_v17 = vpop.eup %11299 }
 0x937   : > { %v11302_v63 = vpop.eup %11301  ;;  %v3886_v8 = vmul.f32 %v11300_v17, %v3814_v18 }
 0x938   : > { %v3885_v43 = vmul.f32 %v11302_v63, %v3813_v25 }
 0x939   : > { %v3914_v45 = vmul.f32 %v13215_v52, %v3886_v8 }
 0x93a   : > { %v11304_v35 = vpop.eup %11303  ;;  %v3913_v37 = vmul.f32 %v13215_v52, %v3885_v43 }
 0x93b   : > { %v11306_v28 = vpop.eup %11305  ;;  %v3884_v34 = vmul.f32 %v11304_v35, %v3812_v38  ;;  %v13352_v46 = vadd.f32 %v13233_v20, %v3914_v45 }
 0x93c   : > { %v3883_v60 = vmul.f32 %v11306_v28, %v3811_v13  ;;  %v13349_v31 = vadd.f32 %v13233_v20, %v3913_v37 }
 0x93d   : > { %v3912_v15 = vmul.f32 %v13215_v52, %v3884_v34 }
 0x93e   : > { %v3911_v33 = vmul.f32 %v13215_v52, %v3883_v60  ;;  %v3958_v58 = vpack.c.bf16 %v13352_v46, %v13349_v31 }
 0x93f   : > { %v13346_v41 = vadd.f32 %v13233_v20, %v3912_v15 }
 0x940   : > { %v13355_v61 = vadd.f32 %v13233_v20, %v3911_v33 }
 0x942   : > { %v3957_v48 = vpack.c.bf16 %v13346_v41, %v13355_v61 }
 0x944   : > { %10381 = vmatprep.mubr.msk.bf16.mxu0 %vm388_vm0, %v3957_v48 }
 0x945   : > { %10382 = vmatmul.mubr.msk.bf16.gmra.mrb[100].mxu0 %vm388_vm0, %v3958_v58 }
 0x950   : > { %v3590_v0 = vpop.xlane.xlu0 %3589 }
 0x951   : > { %v3625_v14 = vmul.f32 0.03125, %v3590_v0 }
 0x952   : > { %v3593_v30 = vpop.xlane.xlu1 %3592 }
 0x953   : > { %v3626_v11 = vmul.f32 0.03125, %v3593_v30  ;;  %v3769_v51 = vmul.f32 %v3625_v14, %v3625_v14 }
 0x954   : > { %v3584_v56 = vpop.xlane.xlu0 %3583 }
 0x955   : > { %v3623_v24 = vmul.f32 0.03125, %v3584_v56  ;;  %v3770_v53 = vmul.f32 %v3626_v11, %v3626_v11 }
 0x956   : > { %v3587_v32 = vpop.xlane.xlu1 %3586 }
 0x957   : > { %v13363_v5 = vmul.f32 0.03125, %v3587_v32  ;;  %v3767_v18 = vmul.f32 %v3623_v24, %v3623_v24 }
 0x958   : > { %v3711_v44 = vpop.xlane.xlu0 %3710 }
 0x959   : > { %v3745_v4 = vmul.f32 0.03125, %v3711_v44  ;;  %v3768_v43 = vmul.f32 %v13363_v5, %v13363_v5 }
 0x95a   : > { %v3714_v39 = vpop.xlane.xlu1 %3713 }
 0x95b   : > { %v3793_v36 = vsub.f32 %v3745_v4, %v3769_v51  ;;  %v3746_v47 = vmul.f32 0.03125, %v3714_v39  ;;  %v3818_v51 = vsub.f32 %v13135_v22, %v3626_v11 }
 0x95c   : > { %v3705_v29 = vpop.xlane.xlu0 %3704 }
 0x95d   : > { %v3841_v17 = vadd.f32 1e-05, %v3793_v36  ;;  %v3794_v25 = vsub.f32 %v3746_v47, %v3770_v53  ;;  %v3743_v63 = vmul.f32 0.03125, %v3705_v29  ;;  %v11071_v53 = vld [vmem:[%s16088_s6 + $0x10] sm:$0xff]   ;;  %v3817_v47 = vsub.f32 %v13127_v59, %v3625_v14 }
 0x95e   : > { %v3708_v8 = vpop.xlane.xlu1 %3707  ;;  %10397 = vmatprep.subr.bf16.mxu1 %v11071_v53  ;;  %v3816_v59 = vsub.f32 %v13140_v21, %v13363_v5 }
 0x95f   : > { %v3842_v38 = vadd.f32 1e-05, %v3794_v25  ;;  %v3791_v35 = vsub.f32 %v3743_v63, %v3767_v18  ;;  %v3744_v13 = vmul.f32 0.03125, %v3708_v8  ;;  %11307 = vrsqrt.f32 %v3841_v17  ;;  %10398 = vmatpush3.bf16.msra.mxu1 %v11071_v53 }
 0x960   : > { %v3602_v28 = vpop.xlane.xlu0 %3601  ;;  %v3815_v25 = vsub.f32 %v13132_v54, %v3623_v24 }
 0x961   : > { %11309 = vrsqrt.f32 %v3842_v38  ;;  %v3839_v34 = vadd.f32 1e-05, %v3791_v35  ;;  %v3792_v37 = vsub.f32 %v3744_v13, %v3768_v43  ;;  %v13371_v0 = vmul.f32 0.03125, %v3602_v28 }
 0x962   : > { %v3605_v45 = vpop.xlane.xlu1 %3604 }
 0x963   : > { %11311 = vrsqrt.f32 %v3839_v34  ;;  %v3840_v60 = vadd.f32 1e-05, %v3792_v37  ;;  %v13376_v4 = vmul.f32 0.03125, %v3605_v45  ;;  %v3773_v22 = vmul.f32 %v13371_v0, %v13371_v0  ;;  %v11072_v34 = vld [vmem:[%s16088_s6 + $0x18] sm:$0xff]  }
 0x964   : > { %v3596_v15 = vpop.xlane.xlu0 %3595  ;;  %10399 = vmatprep.subr.bf16.mxu1 %v11072_v34 }
 0x965   : > { %11313 = vrsqrt.f32 %v3840_v60  ;;  %v13367_v33 = vmul.f32 0.03125, %v3596_v15  ;;  %v3774_v14 = vmul.f32 %v13376_v4, %v13376_v4  ;;  %10400 = vmatpush3.bf16.msra.mxu1 %v11072_v34 }
 0x966   : > { %v3599_v48 = vpop.xlane.xlu1 %3598 }
 0x967   : > { %v13369_v58 = vmul.f32 0.03125, %v3599_v48  ;;  %v3771_v56 = vmul.f32 %v13367_v33, %v13367_v33 }
 0x968   : > { %v3717_v30 = vpop.xlane.xlu0 %3716 }
 0x969   : > { %v3747_v32 = vmul.f32 0.03125, %v3717_v30  ;;  %v11308_v44 = vpop.eup %11307  ;;  %v3772_v29 = vmul.f32 %v13369_v58, %v13369_v58 }
 0x96a   : > { %v3720_v39 = vpop.xlane.xlu1 %3719  ;;  %v3889_v13 = vmul.f32 %v11308_v44, %v3817_v47 }
 0x96b   : > { %v11310_v36 = vpop.eup %11309  ;;  %v3795_v18 = vsub.f32 %v3747_v32, %v3771_v56  ;;  %v3748_v17 = vmul.f32 0.03125, %v3720_v39 }
 0x96c   : > { %v3723_v11 = vpop.xlane.xlu0 %3722  ;;  %v3890_v63 = vmul.f32 %v11310_v36, %v3818_v51  ;;  %v3917_v56 = vmul.f32 %v13215_v52, %v3889_v13 }
 0x96d   : > { %v11312_v8 = vpop.eup %11311  ;;  %v3843_v43 = vadd.f32 1e-05, %v3795_v18  ;;  %v3796_v38 = vsub.f32 %v3748_v17, %v3772_v29  ;;  %v3749_v35 = vmul.f32 0.03125, %v3723_v11  ;;  %v3819_v18 = vsub.f32 %v13171_v49, %v13367_v33 }
 0x96e   : > { %v3726_v28 = vpop.xlane.xlu1 %3725  ;;  %v3887_v54 = vmul.f32 %v11312_v8, %v3815_v25  ;;  %v3918_v24 = vmul.f32 %v13215_v52, %v3890_v63  ;;  %v13408_v36 = vadd.f32 %v13233_v20, %v3917_v56  ;;  %v3820_v25 = vsub.f32 %v13176_v57, %v13369_v58 }
 0x96f   : > { %v11314_v37 = vpop.eup %11313  ;;  %11315 = vrsqrt.f32 %v3843_v43  ;;  %v3844_v45 = vadd.f32 1e-05, %v3796_v38  ;;  %v3797_v60 = vsub.f32 %v3749_v35, %v3773_v22  ;;  %v3750_v15 = vmul.f32 0.03125, %v3726_v28 }
 0x970   : > { %v3888_v48 = vmul.f32 %v11314_v37, %v3816_v59  ;;  %v3915_v30 = vmul.f32 %v13215_v52, %v3887_v54  ;;  %v13399_v51 = vadd.f32 %v13233_v20, %v3918_v24  ;;  %v3821_v63 = vsub.f32 %v13161_v62, %v13371_v0  ;;  %v13449_v54 = vld [vmem:[%s16087_s5] ss:$0 sm:$0xff] }
 0x971   : > { %11317 = vrsqrt.f32 %v3844_v45  ;;  %v3845_v21 = vadd.f32 1e-05, %v3797_v60  ;;  %v3798_v5 = vsub.f32 %v3750_v15, %v3774_v14  ;;  %v3822_v49 = vsub.f32 %v13166_v1, %v13376_v4 }
 0x972   : > { %v3916_v32 = vmul.f32 %v13215_v52, %v3888_v48  ;;  %v13402_v39 = vadd.f32 %v13233_v20, %v3915_v30  ;;  %v3960_v29 = vpack.c.bf16 %v13399_v51, %v13408_v36 }
 0x973   : > { %11319 = vrsqrt.f32 %v3845_v21  ;;  %v3846_v44 = vadd.f32 1e-05, %v3798_v5 }
 0x974   : > { %v13405_v53 = vadd.f32 %v13233_v20, %v3916_v32 }
 0x975   : > { %11321 = vrsqrt.f32 %v3846_v44 }
 0x976   : > { %v3959_v47 = vpack.c.bf16 %v13405_v53, %v13402_v39 }
 0x978   : > { %10385 = vmatprep.mubr.msk.bf16.mxu0 %vm388_vm0, %v3959_v47 }
 0x979   : > { %v11316_v17 = vpop.eup %11315  ;;  %10386 = vmatmul.mubr.msk.bf16.gmra.mrb[104].mxu0 %vm388_vm0, %v3960_v29 }
 0x97a   : > { %v3891_v22 = vmul.f32 %v11316_v17, %v3819_v18 }
 0x97b   : > { %v11318_v11 = vpop.eup %11317 }
 0x97c   : > { %v3892_v8 = vmul.f32 %v11318_v11, %v3820_v25  ;;  %v3919_v43 = vmul.f32 %v13215_v52, %v3891_v22 }
 0x97d   : > { %v11320_v38 = vpop.eup %11319 }
 0x97e   : > { %v3920_v33 = vmul.f32 %v13215_v52, %v3892_v8  ;;  %v3893_v35 = vmul.f32 %v11320_v38, %v3821_v63  ;;  %v13427_v59 = vadd.f32 %v13233_v20, %v3919_v43 }
 0x97f   : > { %v11322_v13 = vpop.eup %11321 }
 0x980   : > { %v13430_v57 = vadd.f32 %v13233_v20, %v3920_v33  ;;  %v3894_v58 = vmul.f32 %v11322_v13, %v3822_v49  ;;  %v3921_v62 = vmul.f32 %v13215_v52, %v3893_v35 }
 0x982   : > { %v3961_v0 = vpack.c.bf16 %v13430_v57, %v13427_v59  ;;  %v3922_v14 = vmul.f32 %v13215_v52, %v3894_v58  ;;  %v13438_v1 = vadd.f32 %v13233_v20, %v3921_v62 }
 0x984   : > { %10389 = vmatprep.mubr.msk.bf16.mxu0 %vm388_vm0, %v3961_v0  ;;  %v13441_v4 = vadd.f32 %v13233_v20, %v3922_v14 }
 0x986   : > { %v3962_v28 = vpack.c.bf16 %v13441_v4, %v13438_v1 }
 0x988   : > { %10390 = vmatmul.mubr.msk.bf16.gmra.mrb[108].mxu0 %vm388_vm0, %v3962_v28 }
 0x9e7   : > { %v10371_v24 = vpop.f32.mrb[88].mxu0 }
 0x9e8   : > { %v4060_v52 = vadd.f32 %v10371_v24, %v13449_v54  ;;  %v4051_v34 = vpop.f32.mrb[89].mxu0 }
 0x9e9   : > { %v4052_v37 = vadd.f32 %v13449_v54, %v4051_v34  ;;  %v10372_v45 = vpop.f32.mrb[90].mxu0 }
 0x9ea   : > { %v4063_v20 = vadd.f32 %v10372_v45, %v13449_v54  ;;  %v4054_v60 = vpop.f32.mrb[91].mxu0  ;;  %v4148_v48 = vmax.f32 %v4060_v52, 0.0 }
 0x9eb   : > { %v4055_v15 = vadd.f32 %v13449_v54, %v4054_v60  ;;  %v4146_v21 = vmax.f32 %v4052_v37, 0.0 }
 0x9ec   : > { %v4149_v30 = vmax.f32 %v4063_v20, 0.0 }
 0x9ed   : > { %v4147_v5 = vmax.f32 %v4055_v15, 0.0 }
 0x9ee   : > { %v4171_v56 = vpack.c.bf16 %v4149_v30, %v4148_v48 }
 0x9ef   : > { %v4170_v32 = vpack.c.bf16 %v4147_v5, %v4146_v21 }
 0x9f1   : > { %10401 = vmatprep.mubr.msk.bf16.mxu1 %vm4210_vm4, %v4170_v32 }
 0x9f2   : > { %10402 = vmatmul.mubr.msk.bf16.vlgmr.msra.gmra.mrb[88].mxu1 %vm4210_vm4, %v4171_v56 }
 0x9f8   : > { %v10375_v44 = vpop.f32.mrb[92].mxu0 }
 0x9f9   : > { %v4076_v47 = vadd.f32 %v10375_v44, %v13449_v54  ;;  %v4067_v29 = vpop.f32.mrb[93].mxu0 }
 0x9fa   : > { %v4068_v18 = vadd.f32 %v13449_v54, %v4067_v29  ;;  %v10376_v17 = vpop.f32.mrb[94].mxu0 }
 0x9fb   : > { %v4079_v25 = vadd.f32 %v10376_v17, %v13449_v54  ;;  %v4070_v22 = vpop.f32.mrb[95].mxu0  ;;  %v4152_v63 = vmax.f32 %v4076_v47, 0.0 }
 0x9fc   : > { %v4071_v11 = vadd.f32 %v13449_v54, %v4070_v22  ;;  %v4150_v43 = vmax.f32 %v4068_v18, 0.0 }
 0x9fd   : > { %v4153_v8 = vmax.f32 %v4079_v25, 0.0 }
 0x9fe   : > { %v4151_v38 = vmax.f32 %v4071_v11, 0.0 }
 0x9ff   : > { %v4173_v49 = vpack.c.bf16 %v4153_v8, %v4152_v63 }
 0xa00   : > { %v4172_v33 = vpack.c.bf16 %v4151_v38, %v4150_v43 }
 0xa02   : > { %10405 = vmatprep.mubr.msk.bf16.mxu1 %vm4210_vm4, %v4172_v33 }
 0xa03   : > { %10406 = vmatmul.mubr.msk.bf16.gmra.mrb[92].mxu1 %vm4210_vm4, %v4173_v49 }
 0xa08   : > { %v10379_v35 = vpop.f32.mrb[96].mxu0 }
 0xa09   : > { %v4092_v13 = vadd.f32 %v10379_v35, %v13449_v54  ;;  %v4083_v58 = vpop.f32.mrb[97].mxu0 }
 0xa0a   : > { %v4084_v62 = vadd.f32 %v13449_v54, %v4083_v58  ;;  %v10380_v0 = vpop.f32.mrb[98].mxu0 }
 0xa0b   : > { %v4095_v14 = vadd.f32 %v10380_v0, %v13449_v54  ;;  %v4086_v28 = vpop.f32.mrb[99].mxu0  ;;  %v4156_v52 = vmax.f32 %v4092_v13, 0.0 }
 0xa0c   : > { %v4087_v24 = vadd.f32 %v13449_v54, %v4086_v28  ;;  %v4154_v37 = vmax.f32 %v4084_v62, 0.0 }
 0xa0d   : > { %v4157_v34 = vmax.f32 %v4095_v14, 0.0 }
 0xa0e   : > { %v4155_v45 = vmax.f32 %v4087_v24, 0.0 }
 0xa0f   : > { %v4175_v20 = vpack.c.bf16 %v4157_v34, %v4156_v52 }
 0xa10   : > { %v4174_v60 = vpack.c.bf16 %v4155_v45, %v4154_v37 }
 0xa12   : > { %10409 = vmatprep.mubr.msk.bf16.mxu1 %vm4210_vm4, %v4174_v60 }
 0xa13   : > { %10410 = vmatmul.mubr.msk.bf16.gmra.mrb[96].mxu1 %vm4210_vm4, %v4175_v20 }
 0xa18   : > { %v10383_v15 = vpop.f32.mrb[100].mxu0 }
 0xa19   : > { %v4108_v48 = vadd.f32 %v10383_v15, %v13449_v54  ;;  %v4099_v30 = vpop.f32.mrb[101].mxu0 }
 0xa1a   : > { %v4100_v21 = vadd.f32 %v13449_v54, %v4099_v30  ;;  %v10384_v5 = vpop.f32.mrb[102].mxu0 }
 0xa1b   : > { %v4111_v56 = vadd.f32 %v10384_v5, %v13449_v54  ;;  %v4102_v32 = vpop.f32.mrb[103].mxu0  ;;  %v4160_v47 = vmax.f32 %v4108_v48, 0.0 }
 0xa1c   : > { %v4103_v44 = vadd.f32 %v13449_v54, %v4102_v32  ;;  %v4158_v18 = vmax.f32 %v4100_v21, 0.0 }
 0xa1d   : > { %v4161_v29 = vmax.f32 %v4111_v56, 0.0 }
 0xa1e   : > { %v4159_v17 = vmax.f32 %v4103_v44, 0.0  ;;  %v16093_v44 = vsub.s32 3, %v12961_v3 }
 0xa1f   : > { %v4177_v25 = vpack.c.bf16 %v4161_v29, %v4160_v47  ;;  %v13491_v47 = vld [vmem:[%s16089_s7] sm:$0x3f] }
 0xa20   : > { %v4176_v22 = vpack.c.bf16 %v4159_v17, %v4158_v18 }
 0xa22   : > { %10413 = vmatprep.mubr.msk.bf16.mxu1 %vm4210_vm4, %v4176_v22 }
 0xa23   : > { %10414 = vmatmul.mubr.msk.bf16.gmra.mrb[100].mxu1 %vm4210_vm4, %v4177_v25 }
 0xa4c   : > { %v10387_v11 = vpop.f32.mrb[104].mxu0 }
 0xa4d   : > { %v4124_v63 = vadd.f32 %v10387_v11, %v13449_v54  ;;  %v4115_v8 = vpop.f32.mrb[105].mxu0 }
 0xa4e   : > { %v4116_v43 = vadd.f32 %v13449_v54, %v4115_v8  ;;  %v10388_v38 = vpop.f32.mrb[106].mxu0 }
 0xa4f   : > { %v4127_v49 = vadd.f32 %v10388_v38, %v13449_v54  ;;  %v4118_v33 = vpop.f32.mrb[107].mxu0  ;;  %v4164_v13 = vmax.f32 %v4124_v63, 0.0 }
 0xa50   : > { %v4119_v35 = vadd.f32 %v13449_v54, %v4118_v33  ;;  %v4162_v62 = vmax.f32 %v4116_v43, 0.0 }
 0xa51   : > { %v4165_v58 = vmax.f32 %v4127_v49, 0.0 }
 0xa52   : > { %v4163_v0 = vmax.f32 %v4119_v35, 0.0 }
 0xa53   : > { %v4179_v14 = vpack.c.bf16 %v4165_v58, %v4164_v13 }
 0xa54   : > { %v4178_v28 = vpack.c.bf16 %v4163_v0, %v4162_v62 }
 0xa56   : > { %10417 = vmatprep.mubr.msk.bf16.mxu1 %vm4210_vm4, %v4178_v28 }
 0xa57   : > { %10418 = vmatmul.mubr.msk.bf16.gmra.mrb[104].mxu1 %vm4210_vm4, %v4179_v14 }
 0xa5b   : > { %v10391_v24 = vpop.f32.mrb[108].mxu0 }
 0xa5c   : > { %v4140_v52 = vadd.f32 %v10391_v24, %v13449_v54  ;;  %v4131_v34 = vpop.f32.mrb[109].mxu0 }
 0xa5d   : > { %v4132_v37 = vadd.f32 %v13449_v54, %v4131_v34  ;;  %v10392_v45 = vpop.f32.mrb[110].mxu0 }
 0xa5e   : > { %v4143_v20 = vadd.f32 %v10392_v45, %v13449_v54  ;;  %v4134_v60 = vpop.f32.mrb[111].mxu0  ;;  %v4168_v48 = vmax.f32 %v4140_v52, 0.0 }
 0xa5f   : > { %v4135_v15 = vadd.f32 %v13449_v54, %v4134_v60  ;;  %v4166_v21 = vmax.f32 %v4132_v37, 0.0  ;;  %v13496_v54 = vrot.slane %v13491_v47, %v16093_v44 }
 0xa60   : > { %v4169_v30 = vmax.f32 %v4143_v20, 0.0 }
 0xa61   : > { %v4167_v5 = vmax.f32 %v4135_v15, 0.0 }
 0xa62   : > { %v4181_v56 = vpack.c.bf16 %v4169_v30, %v4168_v48 }
 0xa63   : > { %v4180_v32 = vpack.c.bf16 %v4167_v5, %v4166_v21 }
 0xa65   : > { %10421 = vmatprep.mubr.msk.bf16.mxu1 %vm4210_vm4, %v4180_v32 }
 0xa66   : > { %10422 = vmatmul.mubr.msk.bf16.gmra.mrb[108].mxu1 %vm4210_vm4, %v4181_v56 }
 0xac5   : > { %v10403_v29 = vpop.f32.mrb[88].mxu1 }
 0xac6   : > { %v4290_v18 = vadd.f32 %v10403_v29, %v13496_v54  ;;  %v4281_v17 = vpop.f32.mrb[89].mxu1 }
 0xac7   : > { %v4282_v25 = vadd.f32 %v4281_v17, %v13496_v54  ;;  %v10404_v22 = vpop.f32.mrb[90].mxu1 }
 0xac8   : > { %v13501_v11 = vadd.f32 %v4290_v18, %v13239_v55  ;;  %v4293_v63 = vadd.f32 %v10404_v22, %v13496_v54  ;;  %v4284_v8 = vpop.f32.mrb[91].mxu1 }
 0xac9   : > { %v4285_v43 = vadd.f32 %v4284_v8, %v13496_v54  ;;  %v13506_v38 = vadd.f32 %v4282_v25, %v13242_v9 }
 0xaca   : > { %v13509_v49 = vadd.f32 %v4293_v63, %v13248_v19  ;;  %v4406_v33 = vsel %vm388_vm0, %v13501_v11, 0.0  ;;  %v4498_v9 = vmul.f32 %v13501_v11, %v13501_v11 }
 0xacb   : > { %4407 = vadd.xlane.f32.xlu0 %v4406_v33  ;;  %v13514_v35 = vadd.f32 %v4285_v43, %v13245_v10  ;;  %v4400_v13 = vsel %vm388_vm0, %v13506_v38, 0.0  ;;  %v4496_v62 = vmul.f32 %v13506_v38, %v13506_v38 }
 0xacc   : > { %v4409_v55 = vsel %vm388_vm0, %v13509_v49, 0.0  ;;  %v4499_v58 = vmul.f32 %v13509_v49, %v13509_v49  ;;  %v4526_v10 = vsel %vm388_vm0, %v4498_v9, 0.0 }
 0xacd   : > { %4410 = vadd.xlane.f32.xlu1 %v4409_v55  ;;  %v4403_v19 = vsel %vm388_vm0, %v13514_v35, 0.0  ;;  %v4497_v14 = vmul.f32 %v13514_v35, %v13514_v35  ;;  %v4520_v28 = vsel %vm388_vm0, %v4496_v62, 0.0 }
 0xace   : > { %v4529_v0 = vsel %vm388_vm0, %v4499_v58, 0.0 }
 0xacf   : > { %4401 = vadd.xlane.f32.xlu0 %v4400_v13  ;;  %v4523_v37 = vsel %vm388_vm0, %v4497_v14, 0.0 }
 0xad1   : > { %4404 = vadd.xlane.f32.xlu1 %v4403_v19 }
 0xad3   : > { %4527 = vadd.xlane.f32.xlu0 %v4526_v10 }
 0xad5   : > { %4530 = vadd.xlane.f32.xlu1 %v4529_v0 }
 0xad6   : > { %v10407_v24 = vpop.f32.mrb[92].mxu1 }
 0xad7   : > { %4521 = vadd.xlane.f32.xlu0 %v4520_v28  ;;  %v4306_v52 = vadd.f32 %v10407_v24, %v13496_v54  ;;  %v4297_v34 = vpop.f32.mrb[93].mxu1 }
 0xad8   : > { %v4298_v45 = vadd.f32 %v4297_v34, %v13496_v54  ;;  %v10408_v20 = vpop.f32.mrb[94].mxu1 }
 0xad9   : > { %4524 = vadd.xlane.f32.xlu1 %v4523_v37  ;;  %v13537_v60 = vadd.f32 %v4306_v52, %v13288_v27  ;;  %v4309_v15 = vadd.f32 %v10408_v20, %v13496_v54  ;;  %v4300_v48 = vpop.f32.mrb[95].mxu1 }
 0xada   : > { %v4301_v30 = vadd.f32 %v4300_v48, %v13496_v54  ;;  %v13542_v21 = vadd.f32 %v4298_v45, %v13294_v40 }
 0xadb   : > { %v13545_v5 = vadd.f32 %v4309_v15, %v13291_v42  ;;  %v4418_v56 = vsel %vm388_vm0, %v13537_v60, 0.0  ;;  %v4502_v40 = vmul.f32 %v13537_v60, %v13537_v60 }
 0xadc   : > { %4419 = vadd.xlane.f32.xlu0 %v4418_v56  ;;  %v13550_v32 = vadd.f32 %v4301_v30, %v13285_v16  ;;  %v4412_v29 = vsel %vm388_vm0, %v13542_v21, 0.0  ;;  %v4500_v17 = vmul.f32 %v13542_v21, %v13542_v21 }
 0xadd   : > { %v4421_v27 = vsel %vm388_vm0, %v13545_v5, 0.0  ;;  %v4503_v18 = vmul.f32 %v13545_v5, %v13545_v5  ;;  %v4538_v16 = vsel %vm388_vm0, %v4502_v40, 0.0 }
 0xade   : > { %4422 = vadd.xlane.f32.xlu1 %v4421_v27  ;;  %v4415_v42 = vsel %vm388_vm0, %v13550_v32, 0.0  ;;  %v4501_v63 = vmul.f32 %v13550_v32, %v13550_v32  ;;  %v4532_v55 = vsel %vm388_vm0, %v4500_v17, 0.0 }
 0xadf   : > { %v4541_v25 = vsel %vm388_vm0, %v4503_v18, 0.0 }
 0xae0   : > { %4413 = vadd.xlane.f32.xlu0 %v4412_v29  ;;  %v4535_v62 = vsel %vm388_vm0, %v4501_v63, 0.0 }
 0xae2   : > { %4416 = vadd.xlane.f32.xlu1 %v4415_v42 }
 0xae4   : > { %4539 = vadd.xlane.f32.xlu0 %v4538_v16  ;;  %v11073_v16 = vld [vmem:[%s16083_s1 + $0x10] sm:$0xff]  }
 0xae5   : > { %10425 = vmatprep.subr.bf16.mxu0 %v11073_v16 }
 0xae6   : > { %v10411_v22 = vpop.f32.mrb[96].mxu1  ;;  %4542 = vadd.xlane.f32.xlu1 %v4541_v25  ;;  %10426 = vmatpush3.bf16.msra.mxu0 %v11073_v16 }
 0xae7   : > { %v4322_v8 = vadd.f32 %v10411_v22, %v13496_v54  ;;  %v4313_v43 = vpop.f32.mrb[97].mxu1 }
 0xae8   : > { %v4314_v33 = vadd.f32 %v4313_v43, %v13496_v54  ;;  %v10412_v13 = vpop.f32.mrb[98].mxu1  ;;  %4533 = vadd.xlane.f32.xlu0 %v4532_v55 }
 0xae9   : > { %v13572_v9 = vadd.f32 %v4322_v8, %v13322_v26  ;;  %v4325_v19 = vadd.f32 %v10412_v13, %v13496_v54  ;;  %v4316_v58 = vpop.f32.mrb[99].mxu1 }
 0xaea   : > { %v4317_v10 = vadd.f32 %v4316_v58, %v13496_v54  ;;  %4536 = vadd.xlane.f32.xlu1 %v4535_v62  ;;  %v13583_v28 = vadd.f32 %v4314_v33, %v13328_v12 }
 0xaeb   : > { %v13578_v0 = vadd.f32 %v4325_v19, %v13325_v50  ;;  %v4430_v14 = vsel %vm388_vm0, %v13572_v9, 0.0  ;;  %v4506_v50 = vmul.f32 %v13572_v9, %v13572_v9 }
 0xaec   : > { %4431 = vadd.xlane.f32.xlu0 %v4430_v14  ;;  %v13588_v24 = vadd.f32 %v4317_v10, %v13319_v23  ;;  %v4424_v52 = vsel %vm388_vm0, %v13583_v28, 0.0  ;;  %v4504_v23 = vmul.f32 %v13583_v28, %v13583_v28 }
 0xaed   : > { %v4433_v26 = vsel %vm388_vm0, %v13578_v0, 0.0  ;;  %v4507_v12 = vmul.f32 %v13578_v0, %v13578_v0  ;;  %v4550_v37 = vsel %vm388_vm0, %v4506_v50, 0.0 }
 0xaee   : > { %4434 = vadd.xlane.f32.xlu1 %v4433_v26  ;;  %v4427_v34 = vsel %vm388_vm0, %v13588_v24, 0.0  ;;  %v4505_v15 = vmul.f32 %v13588_v24, %v13588_v24  ;;  %v4544_v27 = vsel %vm388_vm0, %v4504_v23, 0.0 }
 0xaef   : > { %v4553_v45 = vsel %vm388_vm0, %v4507_v12, 0.0 }
 0xaf0   : > { %4425 = vadd.xlane.f32.xlu0 %v4424_v52  ;;  %v4547_v25 = vsel %vm388_vm0, %v4505_v15, 0.0 }
 0xaf2   : > { %4428 = vadd.xlane.f32.xlu1 %v4427_v34 }
 0xaf4   : > { %4551 = vadd.xlane.f32.xlu0 %v4550_v37 }
 0xaf6   : > { %v10415_v20 = vpop.f32.mrb[100].mxu1  ;;  %4554 = vadd.xlane.f32.xlu1 %v4553_v45 }
 0xaf7   : > { %v4338_v48 = vadd.f32 %v10415_v20, %v13496_v54  ;;  %v4329_v30 = vpop.f32.mrb[101].mxu1 }
 0xaf8   : > { %v4330_v56 = vadd.f32 %v4329_v30, %v13496_v54  ;;  %v10416_v29 = vpop.f32.mrb[102].mxu1  ;;  %4545 = vadd.xlane.f32.xlu0 %v4544_v27 }
 0xaf9   : > { %v13608_v40 = vadd.f32 %v4338_v48, %v13349_v31  ;;  %v4341_v42 = vadd.f32 %v10416_v29, %v13496_v54  ;;  %v4332_v18 = vpop.f32.mrb[103].mxu1 }
 0xafa   : > { %v4333_v17 = vadd.f32 %v4332_v18, %v13496_v54  ;;  %4548 = vadd.xlane.f32.xlu1 %v4547_v25  ;;  %v13622_v63 = vadd.f32 %v4330_v56, %v13355_v61 }
 0xafb   : > { %v13617_v22 = vadd.f32 %v4341_v42, %v13352_v46  ;;  %v4442_v31 = vsel %vm388_vm0, %v13608_v40, 0.0  ;;  %v11074_v46 = vld [vmem:[%s16083_s1 + $0x18] sm:$0xff]   ;;  %v4510_v61 = vmul.f32 %v13608_v40, %v13608_v40 }
 0xafc   : > { %4443 = vadd.xlane.f32.xlu0 %v4442_v31  ;;  %v13627_v43 = vadd.f32 %v4333_v17, %v13346_v41  ;;  %v4436_v33 = vsel %vm388_vm0, %v13622_v63, 0.0  ;;  %10427 = vmatprep.subr.bf16.mxu0 %v11074_v46  ;;  %v4508_v19 = vmul.f32 %v13622_v63, %v13622_v63 }
 0xafd   : > { %v4445_v8 = vsel %vm388_vm0, %v13617_v22, 0.0  ;;  %10428 = vmatpush3.bf16.msra.mxu0 %v11074_v46  ;;  %v4511_v41 = vmul.f32 %v13617_v22, %v13617_v22  ;;  %v4562_v13 = vsel %vm388_vm0, %v4510_v61, 0.0 }
 0xafe   : > { %4446 = vadd.xlane.f32.xlu1 %v4445_v8  ;;  %v4439_v55 = vsel %vm388_vm0, %v13627_v43, 0.0  ;;  %v4509_v10 = vmul.f32 %v13627_v43, %v13627_v43  ;;  %v4556_v62 = vsel %vm388_vm0, %v4508_v19, 0.0 }
 0xaff   : > { %v4565_v58 = vsel %vm388_vm0, %v4511_v41, 0.0 }
 0xb00   : > { %4437 = vadd.xlane.f32.xlu0 %v4436_v33  ;;  %v4559_v14 = vsel %vm388_vm0, %v4509_v10, 0.0 }
 0xb02   : > { %4440 = vadd.xlane.f32.xlu1 %v4439_v55 }
 0xb04   : > { %4563 = vadd.xlane.f32.xlu0 %v4562_v13 }
 0xb06   : > { %4566 = vadd.xlane.f32.xlu1 %v4565_v58 }
 0xb08   : > { %4557 = vadd.xlane.f32.xlu0 %v4556_v62 }
 0xb0a   : > { %4560 = vadd.xlane.f32.xlu1 %v4559_v14 }
 0xb2a   : > { %v10419_v26 = vpop.f32.mrb[104].mxu1 }
 0xb2b   : > { %v4354_v52 = vadd.f32 %v10419_v26, %v13496_v54  ;;  %v4345_v50 = vpop.f32.mrb[105].mxu1 }
 0xb2c   : > { %v4346_v34 = vadd.f32 %v4345_v50, %v13496_v54  ;;  %v10420_v12 = vpop.f32.mrb[106].mxu1 }
 0xb2d   : > { %v13651_v37 = vadd.f32 %v4354_v52, %v13408_v36  ;;  %v4357_v23 = vadd.f32 %v10420_v12, %v13496_v54  ;;  %v4348_v45 = vpop.f32.mrb[107].mxu1 }
 0xb2e   : > { %v4349_v20 = vadd.f32 %v4348_v45, %v13496_v54  ;;  %v13656_v15 = vadd.f32 %v4346_v34, %v13402_v39 }
 0xb2f   : > { %v13659_v48 = vadd.f32 %v4357_v23, %v13399_v51  ;;  %v4454_v30 = vsel %vm388_vm0, %v13651_v37, 0.0  ;;  %v4514_v39 = vmul.f32 %v13651_v37, %v13651_v37 }
 0xb30   : > { %4455 = vadd.xlane.f32.xlu0 %v4454_v30  ;;  %v13664_v56 = vadd.f32 %v4349_v20, %v13405_v53  ;;  %v4448_v27 = vsel %vm388_vm0, %v13656_v15, 0.0  ;;  %v4512_v42 = vmul.f32 %v13656_v15, %v13656_v15 }
 0xb31   : > { %v4457_v36 = vsel %vm388_vm0, %v13659_v48, 0.0  ;;  %v4515_v29 = vmul.f32 %v13659_v48, %v13659_v48  ;;  %v4574_v53 = vsel %vm388_vm0, %v4514_v39, 0.0 }
 0xb32   : > { %4458 = vadd.xlane.f32.xlu1 %v4457_v36  ;;  %v4451_v51 = vsel %vm388_vm0, %v13664_v56, 0.0  ;;  %v4513_v17 = vmul.f32 %v13664_v56, %v13664_v56  ;;  %v4568_v33 = vsel %vm388_vm0, %v4512_v42, 0.0 }
 0xb33   : > { %v4577_v16 = vsel %vm388_vm0, %v4515_v29, 0.0 }
 0xb34   : > { %4449 = vadd.xlane.f32.xlu0 %v4448_v27  ;;  %v4571_v19 = vsel %vm388_vm0, %v4513_v17, 0.0 }
 0xb36   : > { %4452 = vadd.xlane.f32.xlu1 %v4451_v51 }
 0xb38   : > { %4575 = vadd.xlane.f32.xlu0 %v4574_v53 }
 0xb39   : > { %v10423_v18 = vpop.f32.mrb[108].mxu1 }
 0xb3a   : > { %v4370_v25 = vadd.f32 %v10423_v18, %v13496_v54  ;;  %4578 = vadd.xlane.f32.xlu1 %v4577_v16  ;;  %v4361_v31 = vpop.f32.mrb[109].mxu1 }
 0xb3b   : > { %v4362_v8 = vadd.f32 %v4361_v31, %v13496_v54  ;;  %v10424_v46 = vpop.f32.mrb[110].mxu1 }
 0xb3c   : > { %v13686_v61 = vadd.f32 %v4370_v25, %v13438_v1  ;;  %v4373_v55 = vadd.f32 %v10424_v46, %v13496_v54  ;;  %4569 = vadd.xlane.f32.xlu0 %v4568_v33  ;;  %v4364_v41 = vpop.f32.mrb[111].mxu1 }
 0xb3d   : > { %v4365_v13 = vadd.f32 %v4364_v41, %v13496_v54  ;;  %v13697_v62 = vadd.f32 %v4362_v8, %v13427_v59 }
 0xb3e   : > { %v13692_v58 = vadd.f32 %v4373_v55, %v13441_v4  ;;  %4572 = vadd.xlane.f32.xlu1 %v4571_v19  ;;  %v4466_v10 = vsel %vm388_vm0, %v13686_v61, 0.0 }
 0xb3f   : > { %v13702_v14 = vadd.f32 %v4365_v13, %v13430_v57  ;;  %v4460_v54 = vsel %vm388_vm0, %v13697_v62, 0.0  ;;  %v4516_v4 = vmul.f32 %v13697_v62, %v13697_v62  ;;  %v4518_v57 = vmul.f32 %v13686_v61, %v13686_v61 }
 0xb40   : > { %4467 = vadd.xlane.f32.xlu0 %v4466_v10  ;;  %v4469_v1 = vsel %vm388_vm0, %v13692_v58, 0.0  ;;  %v4519_v34 = vmul.f32 %v13692_v58, %v13692_v58 }
 0xb41   : > { %v4463_v26 = vsel %vm388_vm0, %v13702_v14, 0.0  ;;  %v4517_v59 = vmul.f32 %v13702_v14, %v13702_v14  ;;  %v4580_v52 = vsel %vm388_vm0, %v4516_v4, 0.0  ;;  %v4586_v12 = vsel %vm388_vm0, %v4518_v57, 0.0 }
 0xb42   : > { %4470 = vadd.xlane.f32.xlu1 %v4469_v1  ;;  %v4589_v23 = vsel %vm388_vm0, %v4519_v34, 0.0  ;;  %v16092_v34 = vsub.s32 4, %v12961_v3 }
 0xb43   : > { %v4583_v50 = vsel %vm388_vm0, %v4517_v59, 0.0 }
 0xb44   : > { %4461 = vadd.xlane.f32.xlu0 %v4460_v54 }
 0xb46   : > { %4464 = vadd.xlane.f32.xlu1 %v4463_v26 }
 0xb48   : > { %4581 = vadd.xlane.f32.xlu0 %v4580_v52 }
 0xb4a   : > { %4584 = vadd.xlane.f32.xlu1 %v4583_v50 }
 0xb4c   : > { %4587 = vadd.xlane.f32.xlu0 %v4586_v12 }
 0xb4e   : > { %4590 = vadd.xlane.f32.xlu1 %v4589_v23 }
 0xb58   : > { %v4408_v45 = vpop.xlane.xlu0 %4407 }
 0xb59   : > { %v4474_v36 = vmul.f32 0.03125, %v4408_v45 }
 0xb5a   : > { %v4411_v20 = vpop.xlane.xlu1 %4410 }
 0xb5b   : > { %v4475_v39 = vmul.f32 0.03125, %v4411_v20  ;;  %v4618_v29 = vmul.f32 %v4474_v36, %v4474_v36 }
 0xb5c   : > { %v4402_v30 = vpop.xlane.xlu0 %4401 }
 0xb5d   : > { %v4472_v53 = vmul.f32 0.03125, %v4402_v30  ;;  %v4619_v16 = vmul.f32 %v4475_v39, %v4475_v39  ;;  %v4667_v30 = vsub.f32 %v13509_v49, %v4475_v39  ;;  %v16091_v39 = vsub.s32 5, %v12961_v3 }
 0xb5e   : > { %v4405_v27 = vpop.xlane.xlu1 %4404 }
 0xb5f   : > { %v4473_v17 = vmul.f32 0.03125, %v4405_v27  ;;  %v4616_v46 = vmul.f32 %v4472_v53, %v4472_v53 }
 0xb60   : > { %v4528_v51 = vpop.xlane.xlu0 %4527 }
 0xb61   : > { %v4594_v42 = vmul.f32 0.03125, %v4528_v51  ;;  %v4617_v19 = vmul.f32 %v4473_v17, %v4473_v17 }
 0xb62   : > { %v4531_v18 = vpop.xlane.xlu1 %4530 }
 0xb63   : > { %v4642_v25 = vsub.f32 %v4594_v42, %v4618_v29  ;;  %v4595_v31 = vmul.f32 0.03125, %v4531_v18  ;;  %v4666_v42 = vsub.f32 %v13501_v11, %v4474_v36  ;;  %v13732_v18 = vrot.slane %v13491_v47, %v16092_v34 }
 0xb64   : > { %v4522_v8 = vpop.xlane.xlu0 %4521 }
 0xb65   : > { %v4690_v33 = vadd.f32 1e-05, %v4642_v25  ;;  %v4643_v55 = vsub.f32 %v4595_v31, %v4619_v16  ;;  %v4592_v41 = vmul.f32 0.03125, %v4522_v8  ;;  %v4664_v31 = vsub.f32 %v13506_v38, %v4472_v53 }
 0xb66   : > { %v4525_v13 = vpop.xlane.xlu1 %4524 }
 0xb67   : > { %v4691_v10 = vadd.f32 1e-05, %v4643_v55  ;;  %v4640_v1 = vsub.f32 %v4592_v41, %v4616_v46  ;;  %v4593_v54 = vmul.f32 0.03125, %v4525_v13  ;;  %11323 = vrsqrt.f32 %v4690_v33 }
 0xb68   : > { %v4665_v13 = vsub.f32 %v13514_v35, %v4473_v17  ;;  %v13752_v35 = vrot.slane %v13491_v47, %v16091_v39 }
 0xb69   : > { %11325 = vrsqrt.f32 %v4691_v10  ;;  %v4688_v4 = vadd.f32 1e-05, %v4640_v1  ;;  %v4641_v26 = vsub.f32 %v4593_v54, %v4617_v19  ;;  %v4420_v59 = vpop.xlane.xlu0 %4419 }
 0xb6a   : > { %v13721_v12 = vmul.f32 0.03125, %v4420_v59 }
 0xb6b   : > { %11327 = vrsqrt.f32 %v4688_v4  ;;  %v4689_v52 = vadd.f32 1e-05, %v4641_v26  ;;  %v4423_v57 = vpop.xlane.xlu1 %4422 }
 0xb6c   : > { %v13723_v45 = vmul.f32 0.03125, %v4423_v57  ;;  %v4622_v16 = vmul.f32 %v13721_v12, %v13721_v12 }
 0xb6d   : > { %11329 = vrsqrt.f32 %v4689_v52  ;;  %v4414_v50 = vpop.xlane.xlu0 %4413 }
 0xb6e   : > { %v13726_v27 = vmul.f32 0.03125, %v4414_v50  ;;  %v4623_v11 = vmul.f32 %v13723_v45, %v13723_v45 }
 0xb6f   : > { %v4417_v23 = vpop.xlane.xlu1 %4416 }
 0xb70   : > { %v13737_v46 = vmul.f32 0.03125, %v4417_v23  ;;  %v4620_v19 = vmul.f32 %v13726_v27, %v13726_v27 }
 0xb71   : > { %v11324_v20 = vpop.eup %11323  ;;  %v4540_v51 = vpop.xlane.xlu0 %4539 }
 0xb72   : > { %v4598_v25 = vmul.f32 0.03125, %v4540_v51  ;;  %v4738_v55 = vmul.f32 %v11324_v20, %v4666_v42  ;;  %v4621_v59 = vmul.f32 %v13737_v46, %v13737_v46 }
 0xb73   : > { %v11326_v29 = vpop.eup %11325  ;;  %v4543_v49 = vpop.xlane.xlu1 %4542 }
 0xb74   : > { %v4739_v8 = vmul.f32 %v11326_v29, %v4667_v30  ;;  %v4646_v36 = vsub.f32 %v4598_v25, %v4622_v16  ;;  %v4599_v41 = vmul.f32 0.03125, %v4543_v49  ;;  %v4766_v17 = vmul.f32 %v13732_v18, %v4738_v55 }
 0xb75   : > { %v11328_v33 = vpop.eup %11327  ;;  %v4534_v10 = vpop.xlane.xlu0 %4533 }
 0xb76   : > { %v4736_v38 = vmul.f32 %v11328_v33, %v4664_v31  ;;  %v4767_v1 = vmul.f32 %v13732_v18, %v4739_v8  ;;  %v4694_v54 = vadd.f32 1e-05, %v4646_v36  ;;  %v4647_v4 = vsub.f32 %v4599_v41, %v4623_v11 }
 0xb77   : > { %v11330_v53 = vpop.eup %11329  ;;  %v4596_v26 = vmul.f32 0.03125, %v4534_v10  ;;  %v4537_v52 = vpop.xlane.xlu1 %4536  ;;  %v13766_v33 = vadd.f32 %v13752_v35, %v4766_v17 }
 0xb78   : > { %v4737_v57 = vmul.f32 %v11330_v53, %v4665_v13  ;;  %v4764_v50 = vmul.f32 %v13732_v18, %v4736_v38  ;;  %v4695_v23 = vadd.f32 1e-05, %v4647_v4  ;;  %v4597_v30 = vmul.f32 0.03125, %v4537_v52 }
 0xb79   : > { %v4644_v20 = vsub.f32 %v4596_v26, %v4620_v19  ;;  %11331 = vrsqrt.f32 %v4694_v54  ;;  %v4432_v51 = vpop.xlane.xlu0 %4431  ;;  %v13757_v25 = vadd.f32 %v13752_v35, %v4767_v1  ;;  %16148 = vst [vmem:[#allocation10_spill] sm:$0xff] %v13766_v33  ;;  %v4671_v4 = vsub.f32 %v13545_v5, %v13723_v45 }
 0xb7a   : > { %v4765_v29 = vmul.f32 %v13732_v18, %v4737_v57  ;;  %11333 = vrsqrt.f32 %v4695_v23  ;;  %v4645_v16 = vsub.f32 %v4597_v30, %v4621_v59  ;;  %v13760_v8 = vadd.f32 %v13752_v35, %v4764_v50 }
 0xb7b   : > { %v4692_v42 = vadd.f32 1e-05, %v4644_v20  ;;  %16145 = vst [vmem:[#allocation7_spill] sm:$0xff] %v13757_v25  ;;  %v4435_v31 = vpop.xlane.xlu1 %4434  ;;  %v13770_v36 = vmul.f32 0.03125, %v4432_v51  ;;  %v4847_v41 = vpack.c.bf16 %v13757_v25, %v13766_v33  ;;  %v4670_v57 = vsub.f32 %v13537_v60, %v13721_v12 }
 0xb7c   : > { %16146 = vst [vmem:[#allocation9_spill] sm:$0xff] %v13760_v8  ;;  %v13763_v47 = vadd.f32 %v13752_v35, %v4765_v29  ;;  %v4693_v49 = vadd.f32 1e-05, %v4645_v16  ;;  %v13775_v19 = vmul.f32 0.03125, %v4435_v31  ;;  %v4668_v20 = vsub.f32 %v13542_v21, %v13726_v27 }
 0xb7d   : > { %11335 = vrsqrt.f32 %v4692_v42  ;;  %v4426_v55 = vpop.xlane.xlu0 %4425  ;;  %v4626_v53 = vmul.f32 %v13770_v36, %v13770_v36  ;;  %v4669_v60 = vsub.f32 %v13550_v32, %v13737_v46 }
 0xb7e   : > { %16147 = vst [vmem:[#allocation11_spill] sm:$0xff] %v13763_v47  ;;  %v4846_v11 = vpack.c.bf16 %v13763_v47, %v13760_v8  ;;  %11337 = vrsqrt.f32 %v4693_v49  ;;  %v13778_v10 = vmul.f32 0.03125, %v4426_v55  ;;  %v4627_v50 = vmul.f32 %v13775_v19, %v13775_v19 }
 0xb7f   : > { %v4429_v13 = vpop.xlane.xlu1 %4428 }
 0xb80   : > { %10429 = vmatprep.mubr.msk.bf16.mxu0 %vm388_vm0, %v4846_v11  ;;  %v13784_v26 = vmul.f32 0.03125, %v4429_v13  ;;  %v4624_v30 = vmul.f32 %v13778_v10, %v13778_v10 }
 0xb81   : > { %10430 = vmatmul.mubr.msk.bf16.vlgmr.msra.gmra.mrb[112].mxu0 %vm388_vm0, %v4847_v41  ;;  %v4552_v38 = vpop.xlane.xlu0 %4551 }
 0xb82   : > { %v4602_v1 = vmul.f32 0.03125, %v4552_v38  ;;  %v4625_v12 = vmul.f32 %v13784_v26, %v13784_v26 }
 0xb83   : > { %v11332_v54 = vpop.eup %11331  ;;  %v4555_v59 = vpop.xlane.xlu1 %4554 }
 0xb84   : > { %v11334_v52 = vpop.eup %11333  ;;  %v4650_v17 = vsub.f32 %v4602_v1, %v4626_v53  ;;  %v4603_v23 = vmul.f32 0.03125, %v4555_v59  ;;  %v4742_v31 = vmul.f32 %v11332_v54, %v4670_v57 }
 0xb85   : > { %v4546_v51 = vpop.xlane.xlu0 %4545  ;;  %v4743_v5 = vmul.f32 %v11334_v52, %v4671_v4 }
 0xb86   : > { %v4698_v29 = vadd.f32 1e-05, %v4650_v17  ;;  %v4651_v42 = vsub.f32 %v4603_v23, %v4627_v50  ;;  %v4600_v16 = vmul.f32 0.03125, %v4546_v51  ;;  %v4770_v32 = vmul.f32 %v13732_v18, %v4742_v31 }
 0xb87   : > { %v11336_v45 = vpop.eup %11335  ;;  %v4549_v49 = vpop.xlane.xlu1 %4548  ;;  %v4771_v13 = vmul.f32 %v13732_v18, %v4743_v5 }
 0xb88   : > { %v4740_v55 = vmul.f32 %v11336_v45, %v4668_v20  ;;  %v11338_v11 = vpop.eup %11337  ;;  %v4699_v21 = vadd.f32 1e-05, %v4651_v42  ;;  %v4648_v27 = vsub.f32 %v4600_v16, %v4624_v30  ;;  %v4601_v41 = vmul.f32 0.03125, %v4549_v49 }
 0xb89   : > { %11339 = vrsqrt.f32 %v4698_v29  ;;  %v4444_v38 = vpop.xlane.xlu0 %4443  ;;  %v4741_v53 = vmul.f32 %v11338_v11, %v4669_v60  ;;  %v13803_v57 = vadd.f32 %v13752_v35, %v4771_v13  ;;  %v13814_v30 = vadd.f32 %v13752_v35, %v4770_v32 }
 0xb8a   : > { %v4768_v1 = vmul.f32 %v13732_v18, %v4740_v55  ;;  %11341 = vrsqrt.f32 %v4699_v21  ;;  %v4696_v54 = vadd.f32 1e-05, %v4648_v27  ;;  %v4649_v4 = vsub.f32 %v4601_v41, %v4625_v12 }
 0xb8b   : > { %v4447_v46 = vpop.xlane.xlu1 %4446  ;;  %v4769_v59 = vmul.f32 %v13732_v18, %v4741_v53  ;;  %16149 = vst [vmem:[#allocation6_spill] sm:$0xff] %v13803_v57  ;;  %v13811_v20 = vmul.f32 0.03125, %v4444_v38  ;;  %16152 = vst [vmem:[#allocation13_spill] sm:$0xff] %v13814_v30  ;;  %v4849_v29 = vpack.c.bf16 %v13803_v57, %v13814_v30  ;;  %v4675_v49 = vsub.f32 %v13578_v0, %v13775_v19 }
 0xb8c   : > { %11343 = vrsqrt.f32 %v4696_v54  ;;  %v4697_v52 = vadd.f32 1e-05, %v4649_v4  ;;  %v13806_v17 = vadd.f32 %v13752_v35, %v4768_v1  ;;  %v4487_v45 = vmul.f32 0.03125, %v4447_v46 }
 0xb8d   : > { %v4438_v50 = vpop.xlane.xlu0 %4437  ;;  %v13809_v23 = vadd.f32 %v13752_v35, %v4769_v59  ;;  %v4630_v31 = vmul.f32 %v13811_v20, %v13811_v20  ;;  %v4674_v27 = vsub.f32 %v13572_v9, %v13770_v36  ;;  %v4672_v53 = vsub.f32 %v13583_v28, %v13778_v10 }
 0xb8e   : > { %16150 = vst [vmem:[#allocation8_spill] sm:$0xff] %v13806_v17  ;;  %11345 = vrsqrt.f32 %v4697_v52  ;;  %v4484_v42 = vmul.f32 0.03125, %v4438_v50  ;;  %v4631_v41 = vmul.f32 %v4487_v45, %v4487_v45  ;;  %v4673_v19 = vsub.f32 %v13588_v24, %v13784_v26 }
 0xb8f   : > { %16151 = vst [vmem:[#allocation12_spill] sm:$0xff] %v13809_v23  ;;  %v4441_v51 = vpop.xlane.xlu1 %4440  ;;  %v4848_v5 = vpack.c.bf16 %v13809_v23, %v13806_v17 }
 0xb90   : > { %v4485_v55 = vmul.f32 0.03125, %v4441_v51  ;;  %v4628_v1 = vmul.f32 %v4484_v42, %v4484_v42 }
 0xb91   : > { %10433 = vmatprep.mubr.msk.bf16.mxu0 %vm388_vm0, %v4848_v5  ;;  %v4564_v16 = vpop.xlane.xlu0 %4563 }
 0xb92   : > { %v4606_v60 = vmul.f32 0.03125, %v4564_v16  ;;  %10434 = vmatmul.mubr.msk.bf16.gmra.mrb[116].mxu0 %vm388_vm0, %v4849_v29  ;;  %v4629_v50 = vmul.f32 %v4485_v55, %v4485_v55 }
 0xb93   : > { %v11340_v12 = vpop.eup %11339  ;;  %v4567_v11 = vpop.xlane.xlu1 %4566 }
 0xb94   : > { %v11342_v21 = vpop.eup %11341  ;;  %v4654_v13 = vsub.f32 %v4606_v60, %v4630_v31  ;;  %v4607_v38 = vmul.f32 0.03125, %v4567_v11  ;;  %v4746_v0 = vmul.f32 %v11340_v12, %v4674_v27 }
 0xb95   : > { %v4558_v54 = vpop.xlane.xlu0 %4557  ;;  %v4747_v4 = vmul.f32 %v11342_v21, %v4675_v49 }
 0xb96   : > { %v11344_v32 = vpop.eup %11343  ;;  %v4702_v46 = vadd.f32 1e-05, %v4654_v13  ;;  %v4655_v59 = vsub.f32 %v4607_v38, %v4631_v41  ;;  %v4604_v52 = vmul.f32 0.03125, %v4558_v54  ;;  %v4774_v12 = vmul.f32 %v13732_v18, %v4746_v0 }
 0xb97   : > { %v4561_v51 = vpop.xlane.xlu1 %4560  ;;  %v4744_v9 = vmul.f32 %v11344_v32, %v4672_v53  ;;  %v4775_v28 = vmul.f32 %v13732_v18, %v4747_v4  ;;  %v4678_v4 = vsub.f32 %v13608_v40, %v13811_v20  ;;  %v4676_v32 = vsub.f32 %v13622_v63, %v4484_v42 }
 0xb98   : > { %v11346_v36 = vpop.eup %11345  ;;  %v4703_v5 = vadd.f32 1e-05, %v4655_v59  ;;  %v4652_v29 = vsub.f32 %v4604_v52, %v4628_v1  ;;  %v4605_v16 = vmul.f32 0.03125, %v4561_v51  ;;  %11347 = vrsqrt.f32 %v4702_v46 }
 0xb99   : > { %v4745_v10 = vmul.f32 %v11346_v36, %v4673_v19  ;;  %v4772_v31 = vmul.f32 %v13732_v18, %v4744_v9  ;;  %v13837_v11 = vadd.f32 %v13752_v35, %v4775_v28  ;;  %v13846_v41 = vadd.f32 %v13752_v35, %v4774_v12 }
 0xb9a   : > { %11349 = vrsqrt.f32 %v4703_v5  ;;  %v4700_v60 = vadd.f32 1e-05, %v4652_v29  ;;  %v4653_v49 = vsub.f32 %v4605_v16, %v4629_v50  ;;  %v4679_v1 = vsub.f32 %v13617_v22, %v4487_v45 }
 0xb9b   : > { %v4773_v24 = vmul.f32 %v13732_v18, %v4745_v10  ;;  %16153 = vst [vmem:[#allocation14_spill] sm:$0xff] %v13837_v11  ;;  %v13840_v21 = vadd.f32 %v13752_v35, %v4772_v31  ;;  %16156 = vst [vmem:[#allocation17_spill] sm:$0xff] %v13846_v41  ;;  %v4851_v38 = vpack.c.bf16 %v13837_v11, %v13846_v41 }
 0xb9c   : > { %11351 = vrsqrt.f32 %v4700_v60  ;;  %v4701_v26 = vadd.f32 1e-05, %v4653_v49  ;;  %v4677_v0 = vsub.f32 %v13627_v43, %v4485_v55 }
 0xb9d   : > { %16154 = vst [vmem:[#allocation15_spill] sm:$0xff] %v13840_v21  ;;  %v13843_v27 = vadd.f32 %v13752_v35, %v4773_v24 }
 0xb9e   : > { %11353 = vrsqrt.f32 %v4701_v26 }
 0xb9f   : > { %16155 = vst [vmem:[#allocation16_spill] sm:$0xff] %v13843_v27  ;;  %v4850_v13 = vpack.c.bf16 %v13843_v27, %v13840_v21 }
 0xba1   : > { %10437 = vmatprep.mubr.msk.bf16.mxu0 %vm388_vm0, %v4850_v13 }
 0xba2   : > { %10438 = vmatmul.mubr.msk.bf16.gmra.mrb[120].mxu0 %vm388_vm0, %v4851_v38  ;;  %v11348_v53 = vpop.eup %11347 }
 0xba3   : > { %v4750_v52 = vmul.f32 %v11348_v53, %v4678_v4 }
 0xba4   : > { %v11350_v54 = vpop.eup %11349 }
 0xba5   : > { %v4751_v46 = vmul.f32 %v11350_v54, %v4679_v1  ;;  %v4778_v22 = vmul.f32 %v13732_v18, %v4750_v52 }
 0xba6   : > { %v11352_v59 = vpop.eup %11351 }
 0xba7   : > { %v4748_v19 = vmul.f32 %v11352_v59, %v4676_v32  ;;  %v4779_v51 = vmul.f32 %v13732_v18, %v4751_v46  ;;  %v13873_v43 = vadd.f32 %v13752_v35, %v4778_v22 }
 0xba8   : > { %v11354_v50 = vpop.eup %11353 }
 0xba9   : > { %v4749_v9 = vmul.f32 %v11354_v50, %v4677_v0  ;;  %v4776_v36 = vmul.f32 %v13732_v18, %v4748_v19  ;;  %v13864_v40 = vadd.f32 %v13752_v35, %v4779_v51  ;;  %16160 = vst [vmem:[#allocation21_spill] sm:$0xff] %v13873_v43 }
 0xbab   : > { %v4777_v45 = vmul.f32 %v13732_v18, %v4749_v9  ;;  %16157 = vst [vmem:[#allocation18_spill] sm:$0xff] %v13864_v40  ;;  %v13867_v63 = vadd.f32 %v13752_v35, %v4776_v36  ;;  %v4853_v55 = vpack.c.bf16 %v13864_v40, %v13873_v43 }
 0xbad   : > { %16158 = vst [vmem:[#allocation19_spill] sm:$0xff] %v13867_v63  ;;  %v13870_v20 = vadd.f32 %v13752_v35, %v4777_v45 }
 0xbaf   : > { %16159 = vst [vmem:[#allocation20_spill] sm:$0xff] %v13870_v20  ;;  %v4852_v42 = vpack.c.bf16 %v13870_v20, %v13867_v63 }
 0xbb1   : > { %10441 = vmatprep.mubr.msk.bf16.mxu0 %vm388_vm0, %v4852_v42 }
 0xbb2   : > { %10442 = vmatmul.mubr.msk.bf16.gmra.mrb[124].mxu0 %vm388_vm0, %v4853_v55 }
 0xbbd   : > { %v4456_v5 = vpop.xlane.xlu0 %4455 }
 0xbbe   : > { %v4490_v28 = vmul.f32 0.03125, %v4456_v5 }
 0xbbf   : > { %v4459_v29 = vpop.xlane.xlu1 %4458 }
 0xbc0   : > { %v4491_v31 = vmul.f32 0.03125, %v4459_v29  ;;  %v4634_v49 = vmul.f32 %v4490_v28, %v4490_v28 }
 0xbc1   : > { %v4450_v16 = vpop.xlane.xlu0 %4449 }
 0xbc2   : > { %v4488_v12 = vmul.f32 0.03125, %v4450_v16  ;;  %v4635_v13 = vmul.f32 %v4491_v31, %v4491_v31 }
 0xbc3   : > { %v4453_v10 = vpop.xlane.xlu1 %4452 }
 0xbc4   : > { %v4489_v38 = vmul.f32 0.03125, %v4453_v10  ;;  %v4632_v4 = vmul.f32 %v4488_v12, %v4488_v12 }
 0xbc5   : > { %v4576_v60 = vpop.xlane.xlu0 %4575 }
 0xbc6   : > { %v4610_v24 = vmul.f32 0.03125, %v4576_v60  ;;  %v4633_v0 = vmul.f32 %v4489_v38, %v4489_v38 }
 0xbc7   : > { %v4579_v26 = vpop.xlane.xlu1 %4578 }
 0xbc8   : > { %v4658_v53 = vsub.f32 %v4610_v24, %v4634_v49  ;;  %v4611_v1 = vmul.f32 0.03125, %v4579_v26 }
 0xbc9   : > { %v4570_v54 = vpop.xlane.xlu0 %4569 }
 0xbca   : > { %v4706_v32 = vadd.f32 1e-05, %v4658_v53  ;;  %v4659_v46 = vsub.f32 %v4611_v1, %v4635_v13  ;;  %v4608_v59 = vmul.f32 0.03125, %v4570_v54  ;;  %v4683_v13 = vsub.f32 %v13659_v48, %v4491_v31 }
 0xbcb   : > { %v4573_v52 = vpop.xlane.xlu1 %4572  ;;  %v4681_v48 = vsub.f32 %v13664_v56, %v4489_v38 }
 0xbcc   : > { %v4707_v19 = vadd.f32 1e-05, %v4659_v46  ;;  %v4656_v50 = vsub.f32 %v4608_v59, %v4632_v4  ;;  %v4609_v51 = vmul.f32 0.03125, %v4573_v52  ;;  %11355 = vrsqrt.f32 %v4706_v32 }
 0xbcd   : > { %v4468_v9 = vpop.xlane.xlu0 %4467  ;;  %v4682_v4 = vsub.f32 %v13651_v37, %v4490_v28  ;;  %v4680_v52 = vsub.f32 %v13656_v15, %v4488_v12 }
 0xbce   : > { %11357 = vrsqrt.f32 %v4707_v19  ;;  %v4704_v36 = vadd.f32 1e-05, %v4656_v50  ;;  %v4657_v22 = vsub.f32 %v4609_v51, %v4633_v0  ;;  %v4494_v10 = vmul.f32 0.03125, %v4468_v9 }
 0xbcf   : > { %v4471_v45 = vpop.xlane.xlu1 %4470 }
 0xbd0   : > { %11359 = vrsqrt.f32 %v4704_v36  ;;  %v4705_v42 = vadd.f32 1e-05, %v4657_v22  ;;  %v4495_v53 = vmul.f32 0.03125, %v4471_v45  ;;  %v4638_v0 = vmul.f32 %v4494_v10, %v4494_v10 }
 0xbd1   : > { %v4462_v55 = vpop.xlane.xlu0 %4461 }
 0xbd2   : > { %11361 = vrsqrt.f32 %v4705_v42  ;;  %v4492_v5 = vmul.f32 0.03125, %v4462_v55  ;;  %v4639_v31 = vmul.f32 %v4495_v53, %v4495_v53 }
 0xbd3   : > { %v4465_v29 = vpop.xlane.xlu1 %4464 }
 0xbd4   : > { %v4493_v16 = vmul.f32 0.03125, %v4465_v29  ;;  %v4636_v49 = vmul.f32 %v4492_v5, %v4492_v5 }
 0xbd5   : > { %v4582_v60 = vpop.xlane.xlu0 %4581 }
 0xbd6   : > { %v4612_v24 = vmul.f32 0.03125, %v4582_v60  ;;  %v11356_v26 = vpop.eup %11355  ;;  %v4637_v32 = vmul.f32 %v4493_v16, %v4493_v16 }
 0xbd7   : > { %v4585_v1 = vpop.xlane.xlu1 %4584  ;;  %v4754_v42 = vmul.f32 %v11356_v26, %v4682_v4 }
 0xbd8   : > { %v11358_v54 = vpop.eup %11357  ;;  %v4660_v46 = vsub.f32 %v4612_v24, %v4636_v49  ;;  %v4613_v59 = vmul.f32 0.03125, %v4585_v1 }
 0xbd9   : > { %v4588_v19 = vpop.xlane.xlu0 %4587  ;;  %v4755_v50 = vmul.f32 %v11358_v54, %v4683_v13  ;;  %v4782_v26 = vmul.f32 %v13732_v18, %v4754_v42 }
 0xbda   : > { %v11360_v51 = vpop.eup %11359  ;;  %v4708_v9 = vadd.f32 1e-05, %v4660_v46  ;;  %v4661_v36 = vsub.f32 %v4613_v59, %v4637_v32  ;;  %v4614_v22 = vmul.f32 0.03125, %v4588_v19  ;;  %v4685_v19 = vsub.f32 %v13702_v14, %v4493_v16 }
 0xbdb   : > { %v4591_v45 = vpop.xlane.xlu1 %4590  ;;  %v4752_v55 = vmul.f32 %v11360_v51, %v4680_v52  ;;  %v4783_v37 = vmul.f32 %v13732_v18, %v4755_v50  ;;  %v13899_v32 = vadd.f32 %v13752_v35, %v4782_v26  ;;  %v4684_v52 = vsub.f32 %v13697_v62, %v4492_v5 }
 0xbdc   : > { %v11362_v28 = vpop.eup %11361  ;;  %11363 = vrsqrt.f32 %v4708_v9  ;;  %v4709_v29 = vadd.f32 1e-05, %v4661_v36  ;;  %v4662_v60 = vsub.f32 %v4614_v22, %v4638_v0  ;;  %v4615_v15 = vmul.f32 0.03125, %v4591_v45 }
 0xbdd   : > { %v4753_v12 = vmul.f32 %v11362_v28, %v4681_v48  ;;  %v4780_v49 = vmul.f32 %v13732_v18, %v4752_v55  ;;  %v13890_v1 = vadd.f32 %v13752_v35, %v4783_v37  ;;  %16164 = vst [vmem:[#allocation25_spill] sm:$0xff] %v13899_v32  ;;  %v4686_v9 = vsub.f32 %v13686_v61, %v4494_v10  ;;  %v13936_v28 = vld [vmem:[%s16084_s2 + $0x1] ss:$0 sm:$0xff] }
 0xbde   : > { %11365 = vrsqrt.f32 %v4709_v29  ;;  %v4710_v24 = vadd.f32 1e-05, %v4662_v60  ;;  %v4663_v13 = vsub.f32 %v4615_v15, %v4639_v31  ;;  %v4687_v48 = vsub.f32 %v13692_v58, %v4495_v53 }
 0xbdf   : > { %v4781_v56 = vmul.f32 %v13732_v18, %v4753_v12  ;;  %16161 = vst [vmem:[#allocation22_spill] sm:$0xff] %v13890_v1  ;;  %v13893_v54 = vadd.f32 %v13752_v35, %v4780_v49  ;;  %v4855_v59 = vpack.c.bf16 %v13890_v1, %v13899_v32 }
 0xbe0   : > { %11367 = vrsqrt.f32 %v4710_v24  ;;  %v4711_v38 = vadd.f32 1e-05, %v4663_v13 }
 0xbe1   : > { %16162 = vst [vmem:[#allocation23_spill] sm:$0xff] %v13893_v54  ;;  %v13896_v4 = vadd.f32 %v13752_v35, %v4781_v56 }
 0xbe2   : > { %11369 = vrsqrt.f32 %v4711_v38 }
 0xbe3   : > { %16163 = vst [vmem:[#allocation24_spill] sm:$0xff] %v13896_v4  ;;  %v4854_v46 = vpack.c.bf16 %v13896_v4, %v13893_v54 }
 0xbe5   : > { %10445 = vmatprep.mubr.msk.bf16.mxu0 %vm388_vm0, %v4854_v46 }
 0xbe6   : > { %v11364_v0 = vpop.eup %11363  ;;  %10446 = vmatmul.mubr.msk.bf16.gmra.mrb[128].mxu0 %vm388_vm0, %v4855_v59 }
 0xbe7   : > { %v4756_v50 = vmul.f32 %v11364_v0, %v4684_v52 }
 0xbe8   : > { %v11366_v51 = vpop.eup %11365 }
 0xbe9   : > { %v4757_v36 = vmul.f32 %v11366_v51, %v4685_v19  ;;  %v4784_v22 = vmul.f32 %v13732_v18, %v4756_v50 }
 0xbea   : > { %v11368_v42 = vpop.eup %11367 }
 0xbeb   : > { %v4785_v31 = vmul.f32 %v13732_v18, %v4757_v36  ;;  %v4758_v62 = vmul.f32 %v11368_v42, %v4686_v9  ;;  %v13914_v45 = vadd.f32 %v13752_v35, %v4784_v22 }
 0xbec   : > { %v11370_v5 = vpop.eup %11369 }
 0xbed   : > { %16165 = vst [vmem:[#allocation26_spill] sm:$0xff] %v13914_v45  ;;  %v13917_v55 = vadd.f32 %v13752_v35, %v4785_v31  ;;  %v4759_v14 = vmul.f32 %v11370_v5, %v4687_v48  ;;  %v4786_v16 = vmul.f32 %v13732_v18, %v4758_v62 }
 0xbef   : > { %16166 = vst [vmem:[#allocation27_spill] sm:$0xff] %v13917_v55  ;;  %v4856_v61 = vpack.c.bf16 %v13917_v55, %v13914_v45  ;;  %v4787_v10 = vmul.f32 %v13732_v18, %v4759_v14  ;;  %v13925_v58 = vadd.f32 %v13752_v35, %v4786_v16 }
 0xbf1   : > { %10449 = vmatprep.mubr.msk.bf16.mxu0 %vm388_vm0, %v4856_v61  ;;  %16167 = vst [vmem:[#allocation28_spill] sm:$0xff] %v13925_v58  ;;  %v13928_v53 = vadd.f32 %v13752_v35, %v4787_v10 }
 0xbf3   : > { %16168 = vst [vmem:[#allocation29_spill] sm:$0xff] %v13928_v53  ;;  %v4857_v37 = vpack.c.bf16 %v13928_v53, %v13925_v58 }
 0xbf5   : > { %10450 = vmatmul.mubr.msk.bf16.gmra.mrb[132].mxu0 %vm388_vm0, %v4857_v37 }
 0xc54   : > { %v10431_v29 = vpop.f32.mrb[112].mxu0 }
 0xc55   : > { %v4955_v18 = vadd.f32 %v10431_v29, %v13936_v28  ;;  %v4946_v60 = vpop.f32.mrb[113].mxu0 }
 0xc56   : > { %v10432_v15 = vpop.f32.mrb[114].mxu0  ;;  %v4947_v35 = vadd.f32 %v13936_v28, %v4946_v60 }
 0xc57   : > { %v13939_v12 = vpack.c.bf16 %v4955_v18, %v4955_v18  ;;  %v4949_v49 = vpop.f32.mrb[115].mxu0  ;;  %v4958_v38 = vadd.f32 %v10432_v15, %v13936_v28 }
 0xc58   : > { %v4950_v24 = vadd.f32 %v13936_v28, %v4949_v49 }
 0xc59   : > { %5061 = vrot.lane.b32.xlu1 %v13939_v12, %s11749_s12 }
 0xc5a   : > { %v13945_v13 = vpack.c.bf16 %v4950_v24, %v4947_v35 }
 0xc5c   : > { %5059 = vrot.lane.b32.xlu0 %v13945_v13, %s11749_s12  ;;  %10457 = vmatprep.mubr.msk.bf16.mxu1 %vm576_vm1, %v13945_v13 }
 0xc65   : > { %v10435_v26 = vpop.f32.mrb[116].mxu0 }
 0xc66   : > { %v4962_v56 = vpop.f32.mrb[117].mxu0  ;;  %v4971_v52 = vadd.f32 %v10435_v26, %v13936_v28 }
 0xc67   : > { %v4963_v46 = vadd.f32 %v13936_v28, %v4962_v56  ;;  %v10436_v59 = vpop.f32.mrb[118].mxu0 }
 0xc68   : > { %v4974_v0 = vadd.f32 %v10436_v59, %v13936_v28  ;;  %v4965_v19 = vpop.f32.mrb[119].mxu0 }
 0xc69   : > { %v13955_v50 = vpack.c.bf16 %v4963_v46, %v4958_v38  ;;  %v4966_v51 = vadd.f32 %v13936_v28, %v4965_v19 }
 0xc6a   : > { %v13958_v9 = vpack.c.bf16 %v4974_v0, %v4971_v52 }
 0xc6b   : > { %5125 = vrot.lane.b32.xlu1 %v13955_v50, %s11749_s12  ;;  %10465 = vmatprep.mubr.msk.bf16.mxu0 %vm576_vm1, %v13955_v50  ;;  %v13966_v36 = vpack.c.bf16 %v4966_v51, %v4966_v51 }
 0xc6c   : > { %5191 = vrot.lane.b32.xlu0 %v13958_v9, %s11749_s12 }
 0xc6f   : > { %5127 = vrot.lane.b32.xlu1 %v13966_v36, %s11749_s12 }
 0xc75   : > { %v10439_v22 = vpop.f32.mrb[120].mxu0 }
 0xc76   : > { %v4978_v42 = vpop.f32.mrb[121].mxu0  ;;  %v4987_v5 = vadd.f32 %v10439_v22, %v13936_v28 }
 0xc77   : > { %v4979_v48 = vadd.f32 %v13936_v28, %v4978_v42  ;;  %v10440_v31 = vpop.f32.mrb[122].mxu0 }
 0xc78   : > { %v4981_v62 = vpop.f32.mrb[123].mxu0  ;;  %v4990_v16 = vadd.f32 %v10440_v31, %v13936_v28 }
 0xc79   : > { %v13972_v14 = vpack.c.bf16 %v4979_v48, %v4979_v48  ;;  %v4982_v61 = vadd.f32 %v13936_v28, %v4981_v62 }
 0xc7a   : > { %v13980_v37 = vpack.c.bf16 %v4990_v16, %v4990_v16 }
 0xc7b   : > { %v13976_v10 = vpack.c.bf16 %v4987_v5, %v4982_v61  ;;  %5193 = vrot.lane.b32.xlu1 %v13972_v14, %s11749_s12 }
 0xc7d   : > { %5257 = vrot.lane.b32.xlu0 %v13976_v10, %s11749_s12 }
 0xc7f   : > { %5259 = vrot.lane.b32.xlu1 %v13980_v37, %s11749_s12 }
 0xc85   : > { %v10443_v29 = vpop.f32.mrb[124].mxu0 }
 0xc86   : > { %v5003_v18 = vadd.f32 %v10443_v29, %v13936_v28  ;;  %v4994_v60 = vpop.f32.mrb[125].mxu0 }
 0xc87   : > { %v10444_v15 = vpop.f32.mrb[126].mxu0  ;;  %v4995_v24 = vadd.f32 %v13936_v28, %v4994_v60 }
 0xc88   : > { %v13987_v49 = vpack.c.bf16 %v5003_v18, %v5003_v18  ;;  %v4997_v35 = vpop.f32.mrb[127].mxu0  ;;  %v5006_v59 = vadd.f32 %v10444_v15, %v13936_v28 }
 0xc89   : > { %v4998_v26 = vadd.f32 %v13936_v28, %v4997_v35 }
 0xc8a   : > { %5325 = vrot.lane.b32.xlu1 %v13987_v49, %s11749_s12 }
 0xc8b   : > { %v13993_v56 = vpack.c.bf16 %v4998_v26, %v4995_v24 }
 0xc8d   : > { %5323 = vrot.lane.b32.xlu0 %v13993_v56, %s11749_s12 }
 0xcb9   : > { %v10447_v38 = vpop.f32.mrb[128].mxu0 }
 0xcba   : > { %v5010_v46 = vpop.f32.mrb[129].mxu0  ;;  %v5019_v19 = vadd.f32 %v10447_v38, %v13936_v28 }
 0xcbb   : > { %v5011_v52 = vadd.f32 %v13936_v28, %v5010_v46  ;;  %v10448_v0 = vpop.f32.mrb[130].mxu0 }
 0xcbc   : > { %v5022_v51 = vadd.f32 %v10448_v0, %v13936_v28  ;;  %v5013_v22 = vpop.f32.mrb[131].mxu0 }
 0xcbd   : > { %v14001_v42 = vpack.c.bf16 %v5011_v52, %v5006_v59  ;;  %v5014_v48 = vadd.f32 %v13936_v28, %v5013_v22 }
 0xcbe   : > { %v14004_v31 = vpack.c.bf16 %v5022_v51, %v5019_v19 }
 0xcbf   : > { %v14006_v62 = vpack.c.bf16 %v5014_v48, %v5014_v48  ;;  %5389 = vrot.lane.b32.xlu0 %v14001_v42, %s11749_s12 }
 0xcc0   : > { %16169 = vst [vmem:[#allocation30_spill] sm:$0xff] %v14004_v31 }
 0xcc1   : > { %5391 = vrot.lane.b32.xlu1 %v14006_v62, %s11749_s12 }
 0xcc3   : > { %5455 = vrot.lane.b32.xlu0 %v14004_v31, %s11749_s12 }
 0xcc8   : > { %v10451_v5 = vpop.f32.mrb[132].mxu0 }
 0xcc9   : > { %v5026_v16 = vpop.f32.mrb[133].mxu0  ;;  %v5035_v60 = vadd.f32 %v10451_v5, %v13936_v28 }
 0xcca   : > { %v5027_v61 = vadd.f32 %v13936_v28, %v5026_v16  ;;  %v10452_v29 = vpop.f32.mrb[134].mxu0 }
 0xccb   : > { %v5029_v18 = vpop.f32.mrb[135].mxu0  ;;  %v5038_v35 = vadd.f32 %v10452_v29, %v13936_v28  ;;  %v5062_v52 = vpop.permute.xlu1 %5061 }
 0xccc   : > { %v14016_v15 = vpack.c.bf16 %v5027_v61, %v5027_v61  ;;  %v5030_v24 = vadd.f32 %v13936_v28, %v5029_v18  ;;  %v5073_v28 = vsel %vm576_vm1, %v5062_v52, 0 }
 0xccd   : > { %v14026_v59 = vpack.c.bf16 %v5038_v35, %v5038_v35 }
 0xcce   : > { %v14020_v26 = vpack.c.bf16 %v5035_v60, %v5030_v24  ;;  %5457 = vrot.lane.b32.xlu1 %v14016_v15, %s11749_s12  ;;  %v5060_v38 = vpop.permute.xlu0 %5059 }
 0xccf   : > { %10845 = vmatprep.subr.msk.bf16.mxu1 %vm576_vm1, %v5060_v38  ;;  %v5070_v46 = vsel %vm576_vm1, %v5060_v38, 0  ;;  %16170 = vst [vmem:[#allocation31_spill] sm:$0xff] %v14026_v59 }
 0xcd0   : > { %5521 = vrot.lane.b32.xlu0 %v14020_v26, %s11749_s12  ;;  %10454 = vmatpush3.bf16.xpose.msra.mxu1 %v5070_v46 }
 0xcd1   : > { %10846 = vmatprep.subr.msk.bf16.mxu1 %vm576_vm1, %v5062_v52 }
 0xcd2   : > { %5523 = vrot.lane.b32.xlu1 %v14026_v59, %s11749_s12  ;;  %s9337_s12 = sshll.u32 %s15851_s10, 4  ;;  %s16027_s12 = int_to_ptr.vmem [resolvable:$true] %s9337_s12 }
 0xcd4   : > { %5867 = vrot.lane.b32.xlu0 %v13939_v12, %s11750_s13 }
 0xcd6   : > { %5865 = vrot.lane.b32.xlu1 %v13945_v13, %s11750_s13 }
 0xcd8   : > { %5989 = vrot.lane.b32.xlu0 %v13958_v9, %s11750_s13  ;;  %10456 = vmatpush3.bf16.xpose.msra.mxu1 %v5073_v28 }
 0xcda   : > { %5927 = vrot.lane.b32.xlu1 %v13955_v50, %s11750_s13 }
 0xcdc   : > { %5929 = vrot.lane.b32.xlu0 %v13966_v36, %s11750_s13 }
 0xcdd   : > { %v5126_v0 = vpop.permute.xlu1 %5125 }
 0xcde   : > { %6051 = vrot.lane.b32.xlu1 %v13976_v10, %s11750_s13  ;;  %10847 = vmatprep.subr.msk.bf16.mxu0 %vm576_vm1, %v5126_v0  ;;  %v5192_v19 = vpop.permute.xlu0 %5191  ;;  %v5136_v51 = vsel %vm576_vm1, %v5126_v0, 0 }
 0xcdf   : > { %10458 = vmatmul.mubr.msk.bf16.vlgmr.msra.gmra.mrb[112].mxu1 %vm576_vm1, %v13939_v12  ;;  %10462 = vmatpush3.bf16.xpose.msra.mxu0 %v5136_v51  ;;  %v5202_v22 = vsel %vm576_vm1, %v5192_v19, 0 }
 0xce0   : > { %10849 = vmatprep.subr.msk.bf16.mxu1 %vm576_vm1, %v5192_v19  ;;  %5991 = vrot.lane.b32.xlu0 %v13972_v14, %s11750_s13 }
 0xce1   : > { %10470 = vmatpush3.bf16.xpose.msra.mxu1 %v5202_v22  ;;  %v5128_v48 = vpop.permute.xlu1 %5127  ;;  %10473 = vmatprep.mubr.msk.bf16.mxu1 %vm576_vm1, %v13958_v9 }
 0xce2   : > { %6113 = vrot.lane.b32.xlu1 %v13993_v56, %s11750_s13  ;;  %10848 = vmatprep.subr.msk.bf16.mxu0 %vm576_vm1, %v5128_v48  ;;  %v5139_v5 = vsel %vm576_vm1, %v5128_v48, 0 }
 0xce4   : > { %6115 = vrot.lane.b32.xlu0 %v13987_v49, %s11750_s13 }
 0xce6   : > { %6053 = vrot.lane.b32.xlu1 %v13980_v37, %s11750_s13 }
 0xce7   : > { %10464 = vmatpush3.bf16.xpose.msra.mxu0 %v5139_v5 }
 0xcea   : > { %6175 = vrot.lane.b32.xlu1 %v14001_v42, %s11750_s13 }
 0xced   : > { %v5194_v16 = vpop.permute.xlu1 %5193 }
 0xcee   : > { %6237 = vrot.lane.b32.xlu1 %v14004_v31, %s11750_s13  ;;  %10466 = vmatmul.mubr.msk.bf16.vlgmr.msra.gmra.mrb[136].mxu0 %vm576_vm1, %v13966_v36  ;;  %v5205_v61 = vsel %vm576_vm1, %v5194_v16, 0 }
 0xcef   : > { %10850 = vmatprep.subr.msk.bf16.mxu1 %vm576_vm1, %v5194_v16  ;;  %10481 = vmatprep.mubr.msk.bf16.mxu0 %vm576_vm1, %v13976_v10  ;;  %v5258_v29 = vpop.permute.xlu0 %5257 }
 0xcf0   : > { %10472 = vmatpush3.bf16.xpose.msra.mxu1 %v5205_v61  ;;  %10851 = vmatprep.subr.msk.bf16.mxu0 %vm576_vm1, %v5258_v29  ;;  %v5268_v18 = vsel %vm576_vm1, %v5258_v29, 0 }
 0xcf1   : > { %v5260_v60 = vpop.permute.xlu1 %5259  ;;  %10478 = vmatpush3.bf16.xpose.msra.mxu0 %v5268_v18 }
 0xcf2   : > { %6177 = vrot.lane.b32.xlu1 %v14006_v62, %s11750_s13  ;;  %10852 = vmatprep.subr.msk.bf16.mxu0 %vm576_vm1, %v5260_v60  ;;  %v5271_v35 = vsel %vm576_vm1, %v5260_v60, 0 }
 0xcf6   : > { %6239 = vrot.lane.b32.xlu1 %v14016_v15, %s11750_s13 }
 0xcf7   : > { %10474 = vmatmul.mubr.msk.bf16.vlgmr.msra.gmra.mrb[116].mxu1 %vm576_vm1, %v13972_v14 }
 0xcf8   : > { %10489 = vmatprep.mubr.msk.bf16.mxu1 %vm576_vm1, %v13993_v56 }
 0xcf9   : > { %10480 = vmatpush3.bf16.xpose.msra.mxu0 %v5271_v35 }
 0xcfa   : > { %6301 = vrot.lane.b32.xlu1 %v14026_v59, %s11750_s13 }
 0xcfc   : > { %v5326_v46 = vpop.permute.xlu1 %5325 }
 0xcfd   : > { %v5337_v52 = vsel %vm576_vm1, %v5326_v46, 0 }
 0xcfe   : > { %6299 = vrot.lane.b32.xlu1 %v14020_v26, %s11750_s13 }
 0xcff   : > { %v5324_v24 = vpop.permute.xlu0 %5323 }
 0xd00   : > { %10482 = vmatmul.mubr.msk.bf16.vlgmr.msra.gmra.mrb[140].mxu0 %vm576_vm1, %v13980_v37  ;;  %10853 = vmatprep.subr.msk.bf16.mxu1 %vm576_vm1, %v5324_v24  ;;  %v5334_v38 = vsel %vm576_vm1, %v5324_v24, 0 }
 0xd01   : > { %10486 = vmatpush3.bf16.xpose.msra.mxu1 %v5334_v38  ;;  %10497 = vmatprep.mubr.msk.bf16.mxu0 %vm576_vm1, %v14001_v42 }
 0xd02   : > { %10854 = vmatprep.subr.msk.bf16.mxu1 %vm576_vm1, %v5326_v46 }
 0xd09   : > { %10488 = vmatpush3.bf16.xpose.msra.mxu1 %v5337_v52 }
 0xd10   : > { %10490 = vmatmul.mubr.msk.bf16.vlgmr.msra.gmra.mrb[120].mxu1 %vm576_vm1, %v13987_v49 }
 0xd11   : > { %10505 = vmatprep.mubr.msk.bf16.mxu1 %vm576_vm1, %v14004_v31 }
 0xd31   : > { %v5390_v28 = vpop.permute.xlu0 %5389 }
 0xd32   : > { %10855 = vmatprep.subr.msk.bf16.mxu0 %vm576_vm1, %v5390_v28  ;;  %v5400_v0 = vsel %vm576_vm1, %v5390_v28, 0 }
 0xd33   : > { %v5392_v19 = vpop.permute.xlu1 %5391  ;;  %10494 = vmatpush3.bf16.xpose.msra.mxu0 %v5400_v0 }
 0xd34   : > { %10856 = vmatprep.subr.msk.bf16.mxu0 %vm576_vm1, %v5392_v19  ;;  %v5403_v48 = vsel %vm576_vm1, %v5392_v19, 0 }
 0xd35   : > { %v5456_v51 = vpop.permute.xlu0 %5455 }
 0xd36   : > { %10857 = vmatprep.subr.msk.bf16.mxu1 %vm576_vm1, %v5456_v51  ;;  %v5466_v22 = vsel %vm576_vm1, %v5456_v51, 0 }
 0xd37   : > { %10502 = vmatpush3.bf16.xpose.msra.mxu1 %v5466_v22 }
 0xd3b   : > { %10496 = vmatpush3.bf16.xpose.msra.mxu0 %v5403_v48 }
 0xd40   : > { %v5458_v5 = vpop.permute.xlu1 %5457 }
 0xd41   : > { %10858 = vmatprep.subr.msk.bf16.mxu1 %vm576_vm1, %v5458_v5  ;;  %v5469_v16 = vsel %vm576_vm1, %v5458_v5, 0 }
 0xd42   : > { %10498 = vmatmul.mubr.msk.bf16.vlgmr.msra.gmra.mrb[144].mxu0 %vm576_vm1, %v14006_v62  ;;  %10504 = vmatpush3.bf16.xpose.msra.mxu1 %v5469_v16  ;;  %v5522_v61 = vpop.permute.xlu0 %5521 }
 0xd43   : > { %10859 = vmatprep.subr.msk.bf16.mxu0 %vm576_vm1, %v5522_v61  ;;  %10513 = vmatprep.mubr.msk.bf16.mxu0 %vm576_vm1, %v14020_v26  ;;  %v5532_v29 = vsel %vm576_vm1, %v5522_v61, 0 }
 0xd44   : > { %v5524_v18 = vpop.permute.xlu1 %5523  ;;  %10510 = vmatpush3.bf16.xpose.msra.mxu0 %v5532_v29 }
 0xd45   : > { %10860 = vmatprep.subr.msk.bf16.mxu0 %vm576_vm1, %v5524_v18  ;;  %v5535_v24 = vsel %vm576_vm1, %v5524_v18, 0 }
 0xd46   : > { %v5868_v60 = vpop.permute.xlu0 %5867 }
 0xd47   : > { %v5877_v46 = vsel %vm1391_vm2, %v5868_v60, 0 }
 0xd48   : > { %v5866_v35 = vpop.permute.xlu1 %5865 }
 0xd49   : > { %10506 = vmatmul.mubr.msk.bf16.vlgmr.msra.gmra.mrb[124].mxu1 %vm576_vm1, %v14016_v15  ;;  %10517 = vmatprep.subr.bf16.mxu1 %v5866_v35 }
 0xd4a   : > { %10518 = vmatpush3.bf16.msra.mxu1 %v5866_v35  ;;  %v14122_v52 = vpop.permute.xlu0 %5989 }
 0xd4b   : > { %10861 = vmatprep.subr.msk.bf16.mxu1 %vm1391_vm2, %v5868_v60 }
 0xd4c   : > { %v5928_v38 = vpop.permute.xlu1 %5927  ;;  %10512 = vmatpush3.bf16.xpose.msra.mxu0 %v5535_v24 }
 0xd4d   : > { %10525 = vmatprep.subr.bf16.mxu0 %v5928_v38 }
 0xd4e   : > { %10520 = vmatpush3.bf16.msra.mxu1 %v5877_v46  ;;  %v5930_v28 = vpop.permute.xlu0 %5929 }
 0xd4f   : > { %10533 = vmatprep.subr.bf16.mxu1 %v14122_v52  ;;  %v5939_v0 = vsel %vm1391_vm2, %v5930_v28, 0 }
 0xd50   : > { %v14129_v19 = vpop.permute.xlu1 %6051 }
 0xd52   : > { %v14240_v41 = vpop.permute.xlu0 %5991 }
 0xd53   : > { %10514 = vmatmul.mubr.msk.bf16.vlgmr.msra.gmra.mrb[148].mxu0 %vm576_vm1, %v14026_v59 }
 0xd54   : > { %10526 = vmatpush3.bf16.msra.mxu0 %v5928_v38  ;;  %v14194_v7 = vpop.permute.xlu1 %6113 }
 0xd55   : > { %10862 = vmatprep.subr.msk.bf16.mxu0 %vm1391_vm2, %v5930_v28 }
 0xd58   : > { %10528 = vmatpush3.bf16.msra.mxu0 %v5939_v0  ;;  %v14206_v55 = vpop.permute.xlu1 %6053 }
 0xd59   : > { %10541 = vmatprep.subr.bf16.mxu0 %v14129_v19 }
 0xd5c   : > { %v14220_v4 = vpop.permute.xlu1 %6175 }
 0xdb2   : > { %v14132_v51 = vpop.f32.mrb[112].mxu1 }
 0xdb3   : > { %v14134_v22 = vpop.f32.mrb[113].mxu1  ;;  %v5591_v48 = vsel %vm1099_vm3, %v14132_v51, -inf }
 0xdb4   : > { %5592 = vmax.xlane.f32.xlu0 %v5591_v48  ;;  %v10460_v5 = vpop.f32.mrb[114].mxu1  ;;  %v5585_v29 = vsel %vm1099_vm3, %v14134_v22, -inf }
 0xdb5   : > { %v14138_v16 = vpop.f32.mrb[115].mxu1 }
 0xdb6   : > { %v5588_v61 = vsel %vm1099_vm3, %v14138_v16, -inf }
 0xdb7   : > { %5589 = vmax.xlane.f32.xlu1 %v5588_v61 }
 0xdb8   : > { %5586 = vmax.xlane.f32.xlu0 %v5585_v29 }
 0xdc1   : > { %v14144_v18 = vpop.f32.mrb[136].mxu0 }
 0xdc2   : > { %v14146_v60 = vpop.f32.mrb[137].mxu0  ;;  %v5600_v35 = vsel %vm1099_vm3, %v14144_v18, -inf }
 0xdc3   : > { %v10468_v24 = vpop.f32.mrb[138].mxu0  ;;  %5601 = vmax.xlane.f32.xlu1 %v5600_v35  ;;  %v5594_v38 = vsel %vm1099_vm3, %v14146_v60, -inf }
 0xdc4   : > { %v14152_v46 = vpop.f32.mrb[139].mxu0  ;;  %5595 = vmax.xlane.f32.xlu0 %v5594_v38 }
 0xdc5   : > { %v5597_v28 = vsel %vm1099_vm3, %v14152_v46, -inf }
 0xdc8   : > { %5598 = vmax.xlane.f32.xlu0 %v5597_v28 }
 0xdca   : > { %v14156_v0 = vpop.f32.mrb[116].mxu1 }
 0xdcb   : > { %v14158_v48 = vpop.f32.mrb[117].mxu1  ;;  %v5609_v5 = vsel %vm1099_vm3, %v14156_v0, -inf }
 0xdcc   : > { %v10476_v61 = vpop.f32.mrb[118].mxu1  ;;  %v5603_v29 = vsel %vm1099_vm3, %v14158_v48, -inf  ;;  %5610 = vmax.xlane.f32.xlu0 %v5609_v5 }
 0xdcd   : > { %5604 = vmax.xlane.f32.xlu1 %v5603_v29  ;;  %v14164_v35 = vpop.f32.mrb[119].mxu1 }
 0xdce   : > { %v5606_v24 = vsel %vm1099_vm3, %v14164_v35, -inf }
 0xdd0   : > { %5607 = vmax.xlane.f32.xlu0 %v5606_v24 }
 0xdd3   : > { %v14168_v38 = vpop.f32.mrb[140].mxu0 }
 0xdd4   : > { %v14170_v28 = vpop.f32.mrb[141].mxu0  ;;  %v5618_v39 = vsel %vm1099_vm3, %v14168_v38, -inf }
 0xdd5   : > { %5619 = vmax.xlane.f32.xlu1 %v5618_v39  ;;  %v10484_v61 = vpop.f32.mrb[142].mxu0  ;;  %v5612_v29 = vsel %vm1099_vm3, %v14170_v28, -inf }
 0xdd6   : > { %v14174_v34 = vpop.f32.mrb[143].mxu0 }
 0xdd7   : > { %v5615_v5 = vsel %vm1099_vm3, %v14174_v34, -inf }
 0xdd8   : > { %5616 = vmax.xlane.f32.xlu0 %v5615_v5 }
 0xdd9   : > { %5613 = vmax.xlane.f32.xlu1 %v5612_v29 }
 0xde3   : > { %v14180_v24 = vpop.f32.mrb[120].mxu1 }
 0xde4   : > { %v14182_v44 = vpop.f32.mrb[121].mxu1  ;;  %v5627_v2 = vsel %vm1099_vm3, %v14180_v24, -inf }
 0xde5   : > { %5628 = vmax.xlane.f32.xlu0 %v5627_v2  ;;  %v10492_v39 = vpop.f32.mrb[122].mxu1  ;;  %v5621_v61 = vsel %vm1099_vm3, %v14182_v44, -inf }
 0xde6   : > { %5622 = vmax.xlane.f32.xlu1 %v5621_v61  ;;  %v14188_v6 = vpop.f32.mrb[123].mxu1 }
 0xde7   : > { %v5624_v5 = vsel %vm1099_vm3, %v14188_v6, -inf }
 0xde9   : > { %5625 = vmax.xlane.f32.xlu0 %v5624_v5 }
 0xe15   : > { %v14192_v29 = vpop.f32.mrb[144].mxu0 }
 0xe16   : > { %v14196_v45 = vpop.f32.mrb[145].mxu0  ;;  %v5636_v2 = vsel %vm1099_vm3, %v14192_v29, -inf }
 0xe17   : > { %5637 = vmax.xlane.f32.xlu1 %v5636_v2  ;;  %v10500_v39 = vpop.f32.mrb[146].mxu0  ;;  %v5630_v5 = vsel %vm1099_vm3, %v14196_v45, -inf }
 0xe18   : > { %v14200_v58 = vpop.f32.mrb[147].mxu0 }
 0xe19   : > { %v5633_v61 = vsel %vm1099_vm3, %v14200_v58, -inf }
 0xe1a   : > { %5634 = vmax.xlane.f32.xlu0 %v5633_v61 }
 0xe1b   : > { %5631 = vmax.xlane.f32.xlu1 %v5630_v5 }
 0xe1c   : > { %v14208_v53 = vpop.f32.mrb[124].mxu1 }
 0xe1d   : > { %v14210_v54 = vpop.f32.mrb[125].mxu1  ;;  %v5645_v2 = vsel %vm1099_vm3, %v14208_v53, -inf }
 0xe1e   : > { %5646 = vmax.xlane.f32.xlu0 %v5645_v2  ;;  %v10508_v39 = vpop.f32.mrb[126].mxu1  ;;  %v5639_v5 = vsel %vm1099_vm3, %v14210_v54, -inf }
 0xe1f   : > { %v14214_v32 = vpop.f32.mrb[127].mxu1  ;;  %v14228_v39 = vpop.permute.xlu1 %6237 }
 0xe20   : > { %v5642_v61 = vsel %vm1099_vm3, %v14214_v32, -inf }
 0xe21   : > { %5643 = vmax.xlane.f32.xlu1 %v5642_v61 }
 0xe22   : > { %5640 = vmax.xlane.f32.xlu0 %v5639_v5 }
 0xe23   : > { %v14236_v40 = vpop.permute.xlu1 %6177 }
 0xe26   : > { %v14222_v1 = vpop.f32.mrb[148].mxu0 }
 0xe27   : > { %v14224_v63 = vpop.f32.mrb[149].mxu0  ;;  %v5654_v2 = vsel %vm1099_vm3, %v14222_v1, -inf  ;;  %v14238_v21 = vpop.permute.xlu1 %6239 }
 0xe28   : > { %5655 = vmax.xlane.f32.xlu1 %v5654_v2  ;;  %v10516_v43 = vpop.f32.mrb[150].mxu0  ;;  %v5648_v5 = vsel %vm1099_vm3, %v14224_v63, -inf  ;;  %v14244_v2 = vpop.permute.xlu0 %6115 }
 0xe29   : > { %v14230_v20 = vpop.f32.mrb[151].mxu0 }
 0xe2a   : > { %v5651_v61 = vsel %vm1099_vm3, %v14230_v20, -inf }
 0xe2b   : > { %5652 = vmax.xlane.f32.xlu0 %v5651_v61  ;;  %v14242_v27 = vpop.permute.xlu1 %6301 }
 0xe2c   : > { %5649 = vmax.xlane.f32.xlu1 %v5648_v5  ;;  %16171 = vst [vmem:[#allocation32_spill] sm:$0xff] %v14242_v27 }
 0xe2f   : > { %v14246_v43 = vpop.permute.xlu1 %6299 }
 0xe41   : > { %6365 = vrot.lane.b32.xlu0 %v13945_v13, %s11751_s17  ;;  %v5593_v61 = vpop.xlane.xlu0 %5592 }
 0xe42   : > { %v5659_v30 = vsub.f32 %v14132_v51, %v5593_v61 }
 0xe44   : > { %v5590_v11 = vpop.xlane.xlu1 %5589  ;;  %v5685_v47 = vmul.f32 1.442695, %v5659_v30 }
 0xe45   : > { %v5658_v17 = vsub.f32 %v14138_v16, %v5590_v11  ;;  %v5587_v23 = vpop.xlane.xlu0 %5586 }
 0xe46   : > { %v5657_v57 = vsub.f32 %v14134_v22, %v5587_v23 }
 0xe47   : > { %v5683_v5 = vmul.f32 1.442695, %v5658_v17 }
 0xe48   : > { %v5681_v25 = vmul.f32 1.442695, %v5657_v57 }
 0xe49   : > { %11371 = vpow2.f32 %v5683_v5 }
 0xe4a   : > { %11373 = vpow2.f32 %v5685_v47 }
 0xe4b   : > { %11375 = vpow2.f32 %v5681_v25 }
 0xe50   : > { %v5602_v8 = vpop.xlane.xlu1 %5601 }
 0xe51   : > { %v5662_v33 = vsub.f32 %v14144_v18, %v5602_v8  ;;  %v5596_v3 = vpop.xlane.xlu0 %5595 }
 0xe52   : > { %v5660_v59 = vsub.f32 %v14146_v60, %v5596_v3 }
 0xe53   : > { %v14254_v27 = vpop.eup %11371  ;;  %v5691_v31 = vmul.f32 1.442695, %v5662_v33 }
 0xe54   : > { %v5732_v17 = vsel %vm1099_vm3, %v14254_v27, 0.0  ;;  %v5687_v11 = vmul.f32 1.442695, %v5660_v59  ;;  %v14262_v33 = vpop.eup %11373 }
 0xe55   : > { %5733 = vadd.xlane.f32.xlu1 %v5732_v17  ;;  %11377 = vpow2.f32 %v5691_v31  ;;  %v5599_v23 = vpop.xlane.xlu0 %5598  ;;  %v14264_v59 = vpop.eup %11375  ;;  %v5735_v18 = vsel %vm1099_vm3, %v14262_v33, 0.0 }
 0xe56   : > { %v5661_v57 = vsub.f32 %v14152_v46, %v5599_v23  ;;  %11379 = vpow2.f32 %v5687_v11  ;;  %v5729_v5 = vsel %vm1099_vm3, %v14264_v59, 0.0 }
 0xe58   : > { %v5689_v47 = vmul.f32 1.442695, %v5661_v57 }
 0xe59   : > { %v5611_v8 = vpop.xlane.xlu0 %5610 }
 0xe5a   : > { %v5605_v30 = vpop.xlane.xlu1 %5604  ;;  %11381 = vpow2.f32 %v5689_v47  ;;  %v5665_v3 = vsub.f32 %v14156_v0, %v5611_v8 }
 0xe5b   : > { %v5663_v51 = vsub.f32 %v14158_v48, %v5605_v30 }
 0xe5c   : > { %v5697_v16 = vmul.f32 1.442695, %v5665_v3 }
 0xe5d   : > { %v5693_v22 = vmul.f32 1.442695, %v5663_v51  ;;  %v5608_v25 = vpop.xlane.xlu0 %5607 }
 0xe5e   : > { %v5664_v31 = vsub.f32 %v14164_v35, %v5608_v25 }
 0xe5f   : > { %11383 = vpow2.f32 %v5693_v22  ;;  %v14269_v60 = vpop.eup %11377 }
 0xe60   : > { %11385 = vpow2.f32 %v5697_v16  ;;  %5736 = vadd.xlane.f32.xlu0 %v5735_v18  ;;  %v5695_v46 = vmul.f32 1.442695, %v5664_v31  ;;  %v5744_v0 = vsel %vm1099_vm3, %v14269_v60, 0.0  ;;  %v14273_v48 = vpop.eup %11379 }
 0xe61   : > { %5745 = vadd.xlane.f32.xlu1 %v5744_v0  ;;  %v5738_v11 = vsel %vm1099_vm3, %v14273_v48, 0.0 }
 0xe62   : > { %11387 = vpow2.f32 %v5695_v46  ;;  %v5620_v61 = vpop.xlane.xlu1 %5619 }
 0xe63   : > { %v5668_v35 = vsub.f32 %v14168_v38, %v5620_v61 }
 0xe64   : > { %5730 = vadd.xlane.f32.xlu0 %v5729_v5  ;;  %v14278_v17 = vpop.eup %11381 }
 0xe65   : > { %v5703_v23 = vmul.f32 1.442695, %v5668_v35  ;;  %5739 = vadd.xlane.f32.xlu1 %v5738_v11  ;;  %v5617_v57 = vpop.xlane.xlu0 %5616  ;;  %v5741_v8 = vsel %vm1099_vm3, %v14278_v17, 0.0 }
 0xe66   : > { %v5667_v47 = vsub.f32 %v14174_v34, %v5617_v57  ;;  %v5614_v30 = vpop.xlane.xlu1 %5613 }
 0xe67   : > { %11389 = vpow2.f32 %v5703_v23  ;;  %v5666_v51 = vsub.f32 %v14170_v28, %v5614_v30 }
 0xe68   : > { %5742 = vadd.xlane.f32.xlu0 %v5741_v8  ;;  %v5701_v3 = vmul.f32 1.442695, %v5667_v47 }
 0xe69   : > { %v14286_v38 = vpop.eup %11383  ;;  %v5699_v16 = vmul.f32 1.442695, %v5666_v51 }
 0xe6a   : > { %v14288_v22 = vpop.eup %11385  ;;  %v5747_v25 = vsel %vm1099_vm3, %v14286_v38, 0.0  ;;  %11391 = vpow2.f32 %v5701_v3 }
 0xe6b   : > { %5748 = vadd.xlane.f32.xlu1 %v5747_v25  ;;  %v5753_v34 = vsel %vm1099_vm3, %v14288_v22, 0.0  ;;  %11393 = vpow2.f32 %v5699_v16 }
 0xe6c   : > { %5754 = vadd.xlane.f32.xlu0 %v5753_v34  ;;  %v14294_v31 = vpop.eup %11387 }
 0xe6d   : > { %v5750_v28 = vsel %vm1099_vm3, %v14294_v31, 0.0 }
 0xe70   : > { %5751 = vadd.xlane.f32.xlu0 %v5750_v28 }
 0xe71   : > { %v14298_v18 = vpop.eup %11389 }
 0xe72   : > { %v5629_v46 = vpop.xlane.xlu0 %5628  ;;  %v5762_v0 = vsel %vm1099_vm3, %v14298_v18, 0.0 }
 0xe73   : > { %v5671_v61 = vsub.f32 %v14180_v24, %v5629_v46  ;;  %v5623_v5 = vpop.xlane.xlu1 %5622  ;;  %5763 = vadd.xlane.f32.xlu1 %v5762_v0 }
 0xe74   : > { %v14303_v35 = vpop.eup %11391  ;;  %v5669_v11 = vsub.f32 %v14182_v44, %v5623_v5 }
 0xe75   : > { %v14306_v23 = vpop.eup %11393  ;;  %v5709_v57 = vmul.f32 1.442695, %v5671_v61  ;;  %v5759_v47 = vsel %vm1099_vm3, %v14303_v35, 0.0 }
 0xe76   : > { %v5705_v30 = vmul.f32 1.442695, %v5669_v11  ;;  %5760 = vadd.xlane.f32.xlu0 %v5759_v47  ;;  %v5626_v8 = vpop.xlane.xlu0 %5625  ;;  %v5756_v51 = vsel %vm1099_vm3, %v14306_v23, 0.0 }
 0xe77   : > { %11395 = vpow2.f32 %v5709_v57  ;;  %v5670_v24 = vsub.f32 %v14188_v6, %v5626_v8  ;;  %5757 = vadd.xlane.f32.xlu1 %v5756_v51 }
 0xe78   : > { %11397 = vpow2.f32 %v5705_v30 }
 0xe79   : > { %v5707_v3 = vmul.f32 1.442695, %v5670_v24 }
 0xe7b   : > { %11399 = vpow2.f32 %v5707_v3 }
 0xe81   : > { %v14313_v44 = vpop.eup %11395 }
 0xe82   : > { %v14315_v16 = vpop.eup %11397  ;;  %v5771_v25 = vsel %vm1099_vm3, %v14313_v44, 0.0 }
 0xe83   : > { %5772 = vadd.xlane.f32.xlu0 %v5771_v25  ;;  %v5765_v34 = vsel %vm1099_vm3, %v14315_v16, 0.0 }
 0xe84   : > { %5766 = vadd.xlane.f32.xlu1 %v5765_v34 }
 0xe85   : > { %v14321_v28 = vpop.eup %11399 }
 0xe86   : > { %v5768_v6 = vsel %vm1099_vm3, %v14321_v28, 0.0 }
 0xe87   : > { %5769 = vadd.xlane.f32.xlu0 %v5768_v6 }
 0xea4   : > { %v5638_v46 = vpop.xlane.xlu1 %5637 }
 0xea5   : > { %v5674_v0 = vsub.f32 %v14192_v29, %v5638_v46 }
 0xea7   : > { %v5715_v61 = vmul.f32 1.442695, %v5674_v0  ;;  %v5635_v5 = vpop.xlane.xlu0 %5634 }
 0xea8   : > { %v5673_v11 = vsub.f32 %v14200_v58, %v5635_v5  ;;  %v5632_v57 = vpop.xlane.xlu1 %5631 }
 0xea9   : > { %11401 = vpow2.f32 %v5715_v61  ;;  %v5672_v47 = vsub.f32 %v14196_v45, %v5632_v57 }
 0xeaa   : > { %v5713_v30 = vmul.f32 1.442695, %v5673_v11 }
 0xeab   : > { %v5711_v8 = vmul.f32 1.442695, %v5672_v47  ;;  %v5647_v51 = vpop.xlane.xlu0 %5646 }
 0xeac   : > { %v5677_v24 = vsub.f32 %v14208_v53, %v5647_v51 }
 0xead   : > { %11403 = vpow2.f32 %v5711_v8 }
 0xeae   : > { %v5721_v3 = vmul.f32 1.442695, %v5677_v24  ;;  %v5644_v25 = vpop.xlane.xlu1 %5643  ;;  %11405 = vpow2.f32 %v5713_v30 }
 0xeaf   : > { %v5676_v34 = vsub.f32 %v14214_v32, %v5644_v25  ;;  %v5641_v29 = vpop.xlane.xlu0 %5640 }
 0xeb0   : > { %11407 = vpow2.f32 %v5721_v3  ;;  %v5675_v6 = vsub.f32 %v14210_v54, %v5641_v29 }
 0xeb1   : > { %v5719_v58 = vmul.f32 1.442695, %v5676_v34 }
 0xeb2   : > { %v5717_v46 = vmul.f32 1.442695, %v5675_v6 }
 0xeb3   : > { %v14331_v0 = vpop.eup %11401  ;;  %11409 = vpow2.f32 %v5719_v58 }
 0xeb4   : > { %11411 = vpow2.f32 %v5717_v46  ;;  %v5780_v45 = vsel %vm1099_vm3, %v14331_v0, 0.0 }
 0xeb5   : > { %v5656_v53 = vpop.xlane.xlu1 %5655  ;;  %5781 = vadd.xlane.f32.xlu0 %v5780_v45 }
 0xeb6   : > { %v5680_v61 = vsub.f32 %v14222_v1, %v5656_v53 }
 0xeb7   : > { %v14336_v5 = vpop.eup %11403 }
 0xeb8   : > { %v5727_v32 = vmul.f32 1.442695, %v5680_v61  ;;  %v5774_v11 = vsel %vm1099_vm3, %v14336_v5, 0.0  ;;  %v14340_v54 = vpop.eup %11405  ;;  %v5653_v46 = vpop.xlane.xlu0 %5652 }
 0xeb9   : > { %v5650_v57 = vpop.xlane.xlu1 %5649  ;;  %5775 = vadd.xlane.f32.xlu0 %v5774_v11  ;;  %v5777_v1 = vsel %vm1099_vm3, %v14340_v54, 0.0  ;;  %v5679_v45 = vsub.f32 %v14230_v20, %v5653_v46 }
 0xeba   : > { %v14342_v47 = vpop.eup %11407  ;;  %11413 = vpow2.f32 %v5727_v32  ;;  %v5678_v30 = vsub.f32 %v14224_v63, %v5650_v57 }
 0xebb   : > { %v5789_v8 = vsel %vm1099_vm3, %v14342_v47, 0.0  ;;  %v5725_v53 = vmul.f32 1.442695, %v5679_v45 }
 0xebc   : > { %v5723_v51 = vmul.f32 1.442695, %v5678_v30  ;;  %5790 = vadd.xlane.f32.xlu1 %v5789_v8  ;;  %v14374_v61 = vpop.permute.xlu0 %6365 }
 0xebd   : > { %v14349_v24 = vpop.eup %11409  ;;  %5778 = vadd.xlane.f32.xlu0 %v5777_v1 }
 0xebe   : > { %v14351_v3 = vpop.eup %11411  ;;  %11415 = vpow2.f32 %v5723_v51  ;;  %v5786_v63 = vsel %vm1099_vm3, %v14349_v24, 0.0 }
 0xebf   : > { %v5783_v25 = vsel %vm1099_vm3, %v14351_v3, 0.0  ;;  %11417 = vpow2.f32 %v5725_v53 }
 0xec0   : > { %5784 = vadd.xlane.f32.xlu1 %v5783_v25 }
 0xec1   : > { %5787 = vadd.xlane.f32.xlu0 %v5786_v63 }
 0xec4   : > { %v14357_v34 = vpop.eup %11413 }
 0xec5   : > { %v5798_v29 = vsel %vm1099_vm3, %v14357_v34, 0.0 }
 0xec6   : > { %5799 = vadd.xlane.f32.xlu0 %v5798_v29 }
 0xec8   : > { %v14361_v6 = vpop.eup %11415 }
 0xec9   : > { %v5792_v58 = vsel %vm1099_vm3, %v14361_v6, 0.0  ;;  %v14380_v20 = vpop.eup %11417 }
 0xeca   : > { %5793 = vadd.xlane.f32.xlu0 %v5792_v58  ;;  %v5795_v51 = vsel %vm1099_vm3, %v14380_v20, 0.0 }
 0xed1   : > { %6367 = vrot.lane.b32.xlu1 %v13939_v12, %s11751_s17 }
 0xee0   : > { %6433 = vrot.lane.b32.xlu0 %v13955_v50, %s11751_s17 }
 0xee2   : > { %v5734_v32 = vpop.xlane.xlu1 %5733 }
 0xee4   : > { %6435 = vrot.lane.b32.xlu0 %v13966_v36, %s11751_s17 }
 0xee8   : > { %6363 = vrot.lane.b32.xlu0 %v13939_v12, %s11752_s18 }
 0xeec   : > { %6503 = vrot.lane.b32.xlu0 %v13972_v14, %s11751_s17 }
 0xeed   : > { %v5737_v11 = vpop.xlane.xlu0 %5736 }
 0xeee   : > { %v5746_v57 = vpop.xlane.xlu1 %5745  ;;  %11419 = vrcp.f32 %v5737_v11 }
 0xeef   : > { %11421 = vrcp.f32 %v5734_v32 }
 0xef0   : > { %6431 = vrot.lane.b32.xlu0 %v13966_v36, %s11752_s18 }
 0xef1   : > { %v5731_v30 = vpop.xlane.xlu0 %5730 }
 0xef2   : > { %11423 = vrcp.f32 %v5731_v30  ;;  %v5740_v8 = vpop.xlane.xlu1 %5739 }
 0xef3   : > { %11425 = vrcp.f32 %v5746_v57 }
 0xef4   : > { %11427 = vrcp.f32 %v5740_v8  ;;  %6571 = vrot.lane.b32.xlu0 %v13980_v37, %s11751_s17 }
 0xef5   : > { %5796 = vadd.xlane.f32.xlu1 %v5795_v51  ;;  %v5743_v1 = vpop.xlane.xlu0 %5742 }
 0xef6   : > { %11429 = vrcp.f32 %v5743_v1 }
 0xef8   : > { %6499 = vrot.lane.b32.xlu0 %v13972_v14, %s11752_s18  ;;  %v11420_v25 = vpop.eup %11419  ;;  %v5749_v63 = vpop.xlane.xlu1 %5748 }
 0xef9   : > { %v5755_v29 = vpop.xlane.xlu0 %5754  ;;  %v11422_v58 = vpop.eup %11421  ;;  %v5827_v45 = vmul.f32 %v11420_v25, %v14262_v33 }
 0xefa   : > { %11431 = vrcp.f32 %v5755_v29  ;;  %v5826_v57 = vmul.f32 %v11422_v58, %v14254_v27 }
 0xefb   : > { %11433 = vrcp.f32 %v5749_v63  ;;  %v5850_v1 = vpack.c.bf16 %v5827_v45, %v5827_v45 }
 0xefc   : > { %v11424_v46 = vpop.eup %11423  ;;  %6639 = vrot.lane.b32.xlu0 %v13987_v49, %s11751_s17 }
 0xefd   : > { %v11426_v53 = vpop.eup %11425  ;;  %v5752_v32 = vpop.xlane.xlu0 %5751  ;;  %v5825_v11 = vmul.f32 %v11424_v46, %v14264_v59 }
 0xefe   : > { %v11428_v30 = vpop.eup %11427  ;;  %11435 = vrcp.f32 %v5752_v32  ;;  %v5830_v63 = vmul.f32 %v11426_v53, %v14269_v60 }
 0xeff   : > { %v5849_v8 = vpack.c.bf16 %v5826_v57, %v5825_v11  ;;  %v5828_v33 = vmul.f32 %v11428_v30, %v14273_v48 }
 0xf00   : > { %v11430_v51 = vpop.eup %11429  ;;  %6567 = vrot.lane.b32.xlu0 %v13980_v37, %s11752_s18  ;;  %v5764_v29 = vpop.xlane.xlu1 %5763  ;;  %v5852_v60 = vpack.c.bf16 %v5830_v63, %v5830_v63 }
 0xf01   : > { %10521 = vmatprep.mubr.msk.bf16.mxu1 %vm1099_vm3, %v5849_v8  ;;  %v5829_v25 = vmul.f32 %v11430_v51, %v14278_v17  ;;  %11437 = vrcp.f32 %v5764_v29 }
 0xf02   : > { %10522 = vmatmul.mubr.msk.bf16.vlgmr.msra.gmra.mrb[128].mxu1 %vm1099_vm3, %v5850_v1 }
 0xf03   : > { %10534 = vmatpush3.bf16.msra.mxu1 %v14122_v52  ;;  %v5851_v27 = vpack.c.bf16 %v5829_v25, %v5828_v33  ;;  %v5761_v59 = vpop.xlane.xlu0 %5760  ;;  %v6001_v52 = vsel %vm1391_vm2, %v14240_v41, 0 }
 0xf04   : > { %10863 = vmatprep.subr.msk.bf16.mxu1 %vm1391_vm2, %v14240_v41  ;;  %6707 = vrot.lane.b32.xlu0 %v14006_v62, %s11751_s17  ;;  %v11432_v58 = vpop.eup %11431  ;;  %11439 = vrcp.f32 %v5761_v59  ;;  %v5758_v46 = vpop.xlane.xlu1 %5757  ;;  %v6063_v41 = vsel %vm1391_vm2, %v14206_v55, 0 }
 0xf05   : > { %10529 = vmatprep.mubr.msk.bf16.mxu0 %vm1099_vm3, %v5851_v27  ;;  %v11434_v48 = vpop.eup %11433  ;;  %11441 = vrcp.f32 %v5758_v46  ;;  %v5833_v45 = vmul.f32 %v11432_v58, %v14288_v22 }
 0xf06   : > { %6361 = vrot.lane.b32.xlu1 %v13945_v13, %s11752_s18  ;;  %10530 = vmatmul.mubr.msk.bf16.vlgmr.msra.gmra.mrb[152].mxu0 %vm1099_vm3, %v5852_v60  ;;  %v5831_v53 = vmul.f32 %v11434_v48, %v14286_v38 }
 0xf07   : > { %10536 = vmatpush3.bf16.msra.mxu1 %v6001_v52  ;;  %10542 = vmatpush3.bf16.msra.mxu0 %v14129_v19  ;;  %v5854_v11 = vpack.c.bf16 %v5833_v45, %v5833_v45 }
 0xf08   : > { %v11436_v17 = vpop.eup %11435  ;;  %10864 = vmatprep.subr.msk.bf16.mxu0 %vm1391_vm2, %v14206_v55  ;;  %10549 = vmatprep.subr.bf16.mxu1 %v14194_v7 }
 0xf09   : > { %6635 = vrot.lane.b32.xlu0 %v13987_v49, %s11752_s18  ;;  %v5832_v32 = vmul.f32 %v11436_v17, %v14294_v31 }
 0xf0a   : > { %6501 = vrot.lane.b32.xlu1 %v13958_v9, %s11751_s17 }
 0xf0b   : > { %10544 = vmatpush3.bf16.msra.mxu0 %v6063_v41  ;;  %v5853_v19 = vpack.c.bf16 %v5832_v32, %v5831_v53  ;;  %v11438_v57 = vpop.eup %11437 }
 0xf0c   : > { %10557 = vmatprep.subr.bf16.mxu0 %v14220_v4  ;;  %v5836_v31 = vmul.f32 %v11438_v57, %v14298_v18 }
 0xf0d   : > { %6775 = vrot.lane.b32.xlu0 %v14016_v15, %s11751_s17  ;;  %10537 = vmatprep.mubr.msk.bf16.mxu1 %vm1099_vm3, %v5853_v19 }
 0xf0e   : > { %6429 = vrot.lane.b32.xlu1 %v13955_v50, %s11752_s18  ;;  %10538 = vmatmul.mubr.msk.bf16.vlgmr.msra.gmra.mrb[132].mxu1 %vm1099_vm3, %v5854_v11  ;;  %v11440_v38 = vpop.eup %11439  ;;  %v5856_v18 = vpack.c.bf16 %v5836_v31, %v5836_v31 }
 0xf0f   : > { %10550 = vmatpush3.bf16.msra.mxu1 %v14194_v7  ;;  %v11442_v55 = vpop.eup %11441  ;;  %v5835_v22 = vmul.f32 %v11440_v38, %v14303_v35  ;;  %v6125_v7 = vsel %vm1391_vm2, %v14244_v2, 0 }
 0xf10   : > { %10865 = vmatprep.subr.msk.bf16.mxu1 %vm1391_vm2, %v14244_v2  ;;  %v5773_v30 = vpop.xlane.xlu0 %5772  ;;  %v5834_v8 = vmul.f32 %v11442_v55, %v14306_v23  ;;  %v6187_v2 = vsel %vm1391_vm2, %v14236_v40, 0 }
 0xf11   : > { %6703 = vrot.lane.b32.xlu0 %v14006_v62, %s11752_s18  ;;  %v5767_v51 = vpop.xlane.xlu1 %5766  ;;  %11443 = vrcp.f32 %v5773_v30 }
 0xf12   : > { %6569 = vrot.lane.b32.xlu1 %v13976_v10, %s11751_s17  ;;  %v5855_v1 = vpack.c.bf16 %v5835_v22, %v5834_v8  ;;  %11445 = vrcp.f32 %v5767_v51 }
 0xf13   : > { %10552 = vmatpush3.bf16.msra.mxu1 %v6125_v7 }
 0xf14   : > { %10565 = vmatprep.subr.bf16.mxu1 %v14228_v39  ;;  %10545 = vmatprep.mubr.msk.bf16.mxu0 %vm1099_vm3, %v5855_v1  ;;  %v5770_v35 = vpop.xlane.xlu0 %5769 }
 0xf15   : > { %6771 = vrot.lane.b32.xlu0 %v14016_v15, %s11752_s18  ;;  %11447 = vrcp.f32 %v5770_v35  ;;  %10546 = vmatmul.mubr.msk.bf16.vlgmr.msra.gmra.mrb[156].mxu0 %vm1099_vm3, %v5856_v18 }
 0xf16   : > { %6497 = vrot.lane.b32.xlu1 %v13958_v9, %s11752_s18  ;;  %10558 = vmatpush3.bf16.msra.mxu0 %v14220_v4 }
 0xf17   : > { %10866 = vmatprep.subr.msk.bf16.mxu0 %vm1391_vm2, %v14236_v40 }
 0xf19   : > { %6837 = vrot.lane.b32.xlu0 %v14020_v26, %s11752_s18 }
 0xf1a   : > { %6637 = vrot.lane.b32.xlu1 %v13993_v56, %s11751_s17  ;;  %10560 = vmatpush3.bf16.msra.mxu0 %v6187_v2 }
 0xf1b   : > { %10573 = vmatprep.subr.bf16.mxu0 %v14246_v43  ;;  %v11444_v23 = vpop.eup %11443 }
 0xf1c   : > { %v11446_v4 = vpop.eup %11445  ;;  %v5839_v29 = vmul.f32 %v11444_v23, %v14313_v44 }
 0xf1d   : > { %7185 = vrot.lane.b32.xlu0 %v13945_v13, %s11753_s19  ;;  %v5837_v40 = vmul.f32 %v11446_v4, %v14315_v16  ;;  %v16172_v13 = vld [vmem:[#allocation30_spill] sm:$0xff] }
 0xf1e   : > { %6565 = vrot.lane.b32.xlu1 %v13976_v10, %s11752_s18  ;;  %v5858_v27 = vpack.c.bf16 %v5839_v29, %v5839_v29 }
 0xf1f   : > { %v11448_v63 = vpop.eup %11447 }
 0xf20   : > { %v5838_v33 = vmul.f32 %v11448_v63, %v14321_v28 }
 0xf21   : > { %7187 = vrot.lane.b32.xlu0 %v13939_v12, %s11753_s19  ;;  %v6249_v12 = vsel %vm1391_vm2, %v14238_v21, 0 }
 0xf22   : > { %6705 = vrot.lane.b32.xlu1 %v14001_v42, %s11751_s17  ;;  %v5857_v25 = vpack.c.bf16 %v5838_v33, %v5837_v40 }
 0xf24   : > { %10553 = vmatprep.mubr.msk.bf16.mxu1 %vm1099_vm3, %v5857_v25 }
 0xf25   : > { %7249 = vrot.lane.b32.xlu0 %v13966_v36, %s11753_s19  ;;  %10554 = vmatmul.mubr.msk.bf16.vlgmr.msra.gmra.mrb[136].mxu1 %vm1099_vm3, %v5858_v27 }
 0xf26   : > { %6633 = vrot.lane.b32.xlu1 %v13993_v56, %s11752_s18  ;;  %10566 = vmatpush3.bf16.msra.mxu1 %v14228_v39 }
 0xf27   : > { %10867 = vmatprep.subr.msk.bf16.mxu1 %vm1391_vm2, %v14238_v21  ;;  %v16173_v21 = vld [vmem:[#allocation31_spill] sm:$0xff] }
 0xf29   : > { %7311 = vrot.lane.b32.xlu0 %v13972_v14, %s11753_s19 }
 0xf2a   : > { %6773 = vrot.lane.b32.xlu1 %v16172_v13, %s11751_s17  ;;  %10568 = vmatpush3.bf16.msra.mxu1 %v6249_v12 }
 0xf2b   : > { %10869 = vmatprep.subr.msk.bf16.mxu1 %vm576_vm1, %v14374_v61 }
 0xf2d   : > { %7433 = vrot.lane.b32.xlu0 %v13993_v56, %s11753_s19 }
 0xf2e   : > { %6701 = vrot.lane.b32.xlu1 %v14001_v42, %s11752_s18 }
 0xf32   : > { %6841 = vrot.lane.b32.xlu1 %v14020_v26, %s11751_s17 }
 0xf36   : > { %6769 = vrot.lane.b32.xlu1 %v16172_v13, %s11752_s18 }
 0xf3a   : > { %6843 = vrot.lane.b32.xlu1 %v16173_v21, %s11751_s17 }
 0xf3e   : > { %6839 = vrot.lane.b32.xlu1 %v16173_v21, %s11752_s18  ;;  %s16041_s18 = scalar_lea.sflag [#allocation3], %s299_s25 }
 0xf42   : > { %7247 = vrot.lane.b32.xlu1 %v13955_v50, %s11753_s19  ;;  %v5782_v36 = vpop.xlane.xlu0 %5781 }
 0xf43   : > { %11449 = vrcp.f32 %v5782_v36 }
 0xf46   : > { %7309 = vrot.lane.b32.xlu1 %v13958_v9, %s11753_s19  ;;  %v5776_v14 = vpop.xlane.xlu0 %5775 }
 0xf47   : > { %11451 = vrcp.f32 %v5776_v14 }
 0xf49   : > { %v5791_v56 = vpop.xlane.xlu1 %5790 }
 0xf4a   : > { %7371 = vrot.lane.b32.xlu1 %v13976_v10, %s11753_s19  ;;  %v5779_v39 = vpop.xlane.xlu0 %5778 }
 0xf4b   : > { %11453 = vrcp.f32 %v5779_v39 }
 0xf4c   : > { %11455 = vrcp.f32 %v5791_v56 }
 0xf4d   : > { %v5785_v44 = vpop.xlane.xlu1 %5784  ;;  %v11450_v16 = vpop.eup %11449 }
 0xf4e   : > { %11457 = vrcp.f32 %v5785_v44  ;;  %7373 = vrot.lane.b32.xlu1 %v13980_v37, %s11753_s19  ;;  %v5788_v50 = vpop.xlane.xlu0 %5787  ;;  %v5842_v60 = vmul.f32 %v11450_v16, %v14331_v0 }
 0xf4f   : > { %11459 = vrcp.f32 %v5788_v50 }
 0xf50   : > { %v5860_v45 = vpack.c.bf16 %v5842_v60, %v5842_v60 }
 0xf51   : > { %v11452_v9 = vpop.eup %11451 }
 0xf52   : > { %7495 = vrot.lane.b32.xlu1 %v14001_v42, %s11753_s19  ;;  %v5840_v58 = vmul.f32 %v11452_v9, %v14336_v5 }
 0xf53   : > { %v5800_v28 = vpop.xlane.xlu0 %5799 }
 0xf54   : > { %11461 = vrcp.f32 %v5800_v28 }
 0xf55   : > { %v11454_v59 = vpop.eup %11453 }
 0xf56   : > { %v11456_v10 = vpop.eup %11455  ;;  %7435 = vrot.lane.b32.xlu1 %v13987_v49, %s11753_s19  ;;  %v5841_v46 = vmul.f32 %v11454_v59, %v14340_v54  ;;  %v16174_v54 = vld [vmem:[#allocation32_spill] sm:$0xff] }
 0xf57   : > { %v5794_v37 = vpop.xlane.xlu0 %5793  ;;  %v5845_v53 = vmul.f32 %v11456_v10, %v14342_v47  ;;  %v6376_v47 = vsel %vm576_vm1, %v14374_v61, 0 }
 0xf58   : > { %v11458_v48 = vpop.eup %11457  ;;  %v5859_v52 = vpack.c.bf16 %v5841_v46, %v5840_v58  ;;  %11463 = vrcp.f32 %v5794_v37 }
 0xf59   : > { %v11460_v17 = vpop.eup %11459  ;;  %v5843_v42 = vmul.f32 %v11458_v48, %v14351_v3  ;;  %v5862_v32 = vpack.c.bf16 %v5845_v53, %v5845_v53 }
 0xf5a   : > { %7497 = vrot.lane.b32.xlu1 %v14006_v62, %s11753_s19  ;;  %10561 = vmatprep.mubr.msk.bf16.mxu0 %vm1099_vm3, %v5859_v52  ;;  %v5844_v49 = vmul.f32 %v11460_v17, %v14349_v24  ;;  %v6311_v62 = vsel %vm1391_vm2, %v16174_v54, 0  ;;  %v6368_v24 = vpop.permute.xlu1 %6367 }
 0xf5b   : > { %10562 = vmatmul.mubr.msk.bf16.vlgmr.msra.gmra.mrb[160].mxu0 %vm1099_vm3, %v5860_v45  ;;  %v6434_v0 = vpop.permute.xlu0 %6433  ;;  %v6379_v41 = vsel %vm576_vm1, %v6368_v24, 0 }
 0xf5c   : > { %10574 = vmatpush3.bf16.msra.mxu0 %v14246_v43  ;;  %v5861_v5 = vpack.c.bf16 %v5844_v49, %v5843_v42  ;;  %v6444_v33 = vsel %vm576_vm1, %v6434_v0, 0 }
 0xf5d   : > { %10868 = vmatprep.subr.msk.bf16.mxu0 %vm1391_vm2, %v16174_v54 }
 0xf5e   : > { %10569 = vmatprep.mubr.msk.bf16.mxu1 %vm1099_vm3, %v5861_v5  ;;  %v11462_v31 = vpop.eup %11461 }
 0xf5f   : > { %10570 = vmatmul.mubr.msk.bf16.vlgmr.msra.gmra.mrb[140].mxu1 %vm1099_vm3, %v5862_v32  ;;  %v6436_v3 = vpop.permute.xlu0 %6435  ;;  %v5848_v18 = vmul.f32 %v11462_v31, %v14357_v34 }
 0xf60   : > { %10576 = vmatpush3.bf16.msra.mxu0 %v6311_v62  ;;  %10582 = vmatpush3.bf16.xpose.msra.mxu1 %v6376_v47  ;;  %v6447_v27 = vsel %vm576_vm1, %v6436_v3, 0 }
 0xf61   : > { %10870 = vmatprep.subr.msk.bf16.mxu1 %vm576_vm1, %v6368_v24  ;;  %10871 = vmatprep.subr.msk.bf16.mxu0 %vm576_vm1, %v6434_v0  ;;  %v5864_v29 = vpack.c.bf16 %v5848_v18, %v5848_v18 }
 0xf62   : > { %v11464_v8 = vpop.eup %11463 }
 0xf63   : > { %v6364_v43 = vpop.permute.xlu0 %6363  ;;  %v5846_v2 = vmul.f32 %v11464_v8, %v14361_v6 }
 0xf67   : > { %v6504_v19 = vpop.permute.xlu0 %6503 }
 0xf68   : > { %10584 = vmatpush3.bf16.xpose.msra.mxu1 %v6379_v41  ;;  %v6515_v34 = vsel %vm576_vm1, %v6504_v19, 0 }
 0xf6b   : > { %v6432_v11 = vpop.permute.xlu0 %6431 }
 0xf6f   : > { %v6572_v57 = vpop.permute.xlu0 %6571 }
 0xf70   : > { %v6583_v59 = vsel %vm576_vm1, %v6572_v57, 0 }
 0xf73   : > { %v6500_v38 = vpop.permute.xlu0 %6499 }
 0xf77   : > { %v6640_v61 = vpop.permute.xlu0 %6639 }
 0xf78   : > { %v6651_v50 = vsel %vm576_vm1, %v6640_v61, 0 }
 0xf7b   : > { %v6568_v51 = vpop.permute.xlu0 %6567 }
 0xf7f   : > { %v6708_v63 = vpop.permute.xlu0 %6707 }
 0xf80   : > { %v6719_v42 = vsel %vm576_vm1, %v6708_v63, 0 }
 0xf82   : > { %v5797_v55 = vpop.xlane.xlu1 %5796 }
 0xf83   : > { %11465 = vrcp.f32 %v5797_v55 }
 0xf86   : > { %v6362_v22 = vpop.permute.xlu1 %6361 }
 0xf87   : > { %10585 = vmatprep.mubr.msk.bf16.mxu1 %vm576_vm1, %v6362_v22 }
 0xf88   : > { %10586 = vmatmul.mubr.msk.bf16.vlgmr.msra.gmra.mrb[144].mxu1 %vm576_vm1, %v6364_v43 }
 0xf8a   : > { %v6502_v30 = vpop.permute.xlu1 %6501 }
 0xf8b   : > { %10873 = vmatprep.subr.msk.bf16.mxu1 %vm576_vm1, %v6502_v30  ;;  %v6512_v7 = vsel %vm576_vm1, %v6502_v30, 0 }
 0xf8c   : > { %10598 = vmatpush3.bf16.xpose.msra.mxu1 %v6512_v7 }
 0xf8d   : > { %v11466_v1 = vpop.eup %11465  ;;  %10874 = vmatprep.subr.msk.bf16.mxu1 %vm576_vm1, %v6504_v19 }
 0xf8e   : > { %v6430_v35 = vpop.permute.xlu1 %6429  ;;  %v5847_v23 = vmul.f32 %v11466_v1, %v14380_v20  ;;  %v6636_v20 = vpop.permute.xlu0 %6635 }
 0xf90   : > { %v5863_v4 = vpack.c.bf16 %v5847_v23, %v5846_v2 }
 0xf92   : > { %v6570_v40 = vpop.permute.xlu1 %6569  ;;  %10577 = vmatprep.mubr.msk.bf16.mxu0 %vm1099_vm3, %v5863_v4  ;;  %v6776_v36 = vpop.permute.xlu0 %6775 }
 0xf93   : > { %10578 = vmatmul.mubr.msk.bf16.vlgmr.msra.gmra.mrb[164].mxu0 %vm1099_vm3, %v5864_v29  ;;  %v6580_v44 = vsel %vm576_vm1, %v6570_v40, 0  ;;  %v6787_v48 = vsel %vm576_vm1, %v6776_v36, 0 }
 0xf94   : > { %10590 = vmatpush3.bf16.xpose.msra.mxu0 %v6444_v33  ;;  %10593 = vmatprep.mubr.msk.bf16.mxu0 %vm576_vm1, %v6430_v35 }
 0xf95   : > { %10872 = vmatprep.subr.msk.bf16.mxu0 %vm576_vm1, %v6436_v3  ;;  %10600 = vmatpush3.bf16.xpose.msra.mxu1 %v6515_v34 }
 0xf96   : > { %v6498_v6 = vpop.permute.xlu1 %6497  ;;  %v6704_v39 = vpop.permute.xlu0 %6703 }
 0xf97   : > { %10601 = vmatprep.mubr.msk.bf16.mxu1 %vm576_vm1, %v6498_v6 }
 0xf9a   : > { %v6638_v25 = vpop.permute.xlu1 %6637  ;;  %v6772_v9 = vpop.permute.xlu0 %6771 }
 0xf9b   : > { %10877 = vmatprep.subr.msk.bf16.mxu1 %vm576_vm1, %v6638_v25  ;;  %v6648_v12 = vsel %vm576_vm1, %v6638_v25, 0 }
 0xf9c   : > { %10592 = vmatpush3.bf16.xpose.msra.mxu0 %v6447_v27  ;;  %10602 = vmatmul.mubr.msk.bf16.vlgmr.msra.gmra.mrb[148].mxu1 %vm576_vm1, %v6500_v38 }
 0xf9d   : > { %10875 = vmatprep.subr.msk.bf16.mxu0 %vm576_vm1, %v6570_v40  ;;  %10614 = vmatpush3.bf16.xpose.msra.mxu1 %v6648_v12 }
 0xf9e   : > { %10878 = vmatprep.subr.msk.bf16.mxu1 %vm576_vm1, %v6640_v61  ;;  %v6566_v14 = vpop.permute.xlu1 %6565  ;;  %v6838_v58 = vpop.permute.xlu0 %6837 }
 0xfa2   : > { %v6706_v56 = vpop.permute.xlu1 %6705  ;;  %v7186_v52 = vpop.permute.xlu0 %7185 }
 0xfa3   : > { %10594 = vmatmul.mubr.msk.bf16.vlgmr.msra.gmra.mrb[168].mxu0 %vm576_vm1, %v6432_v11  ;;  %v6716_v37 = vsel %vm576_vm1, %v6706_v56, 0 }
 0xfa4   : > { %10606 = vmatpush3.bf16.xpose.msra.mxu0 %v6580_v44  ;;  %10609 = vmatprep.mubr.msk.bf16.mxu0 %vm576_vm1, %v6566_v14 }
 0xfa5   : > { %10876 = vmatprep.subr.msk.bf16.mxu0 %vm576_vm1, %v6572_v57  ;;  %10616 = vmatpush3.bf16.xpose.msra.mxu1 %v6651_v50 }
 0xfa6   : > { %v6634_v16 = vpop.permute.xlu1 %6633  ;;  %v7188_v53 = vpop.permute.xlu0 %7187 }
 0xfa7   : > { %10617 = vmatprep.mubr.msk.bf16.mxu1 %vm576_vm1, %v6634_v16  ;;  %v7197_v0 = vsel %vm1391_vm2, %v7188_v53, 0 }
 0xfaa   : > { %v6774_v28 = vpop.permute.xlu1 %6773  ;;  %v7250_v47 = vpop.permute.xlu0 %7249 }
 0xfab   : > { %10881 = vmatprep.subr.msk.bf16.mxu1 %vm576_vm1, %v6774_v28  ;;  %v6784_v60 = vsel %vm576_vm1, %v6774_v28, 0  ;;  %v7259_v41 = vsel %vm1391_vm2, %v7250_v47, 0 }
 0xfac   : > { %10608 = vmatpush3.bf16.xpose.msra.mxu0 %v6583_v59  ;;  %10618 = vmatmul.mubr.msk.bf16.vlgmr.msra.gmra.mrb[152].mxu1 %vm576_vm1, %v6636_v20 }
 0xfad   : > { %10879 = vmatprep.subr.msk.bf16.mxu0 %vm576_vm1, %v6706_v56  ;;  %10630 = vmatpush3.bf16.xpose.msra.mxu1 %v6784_v60 }
 0xfae   : > { %10882 = vmatprep.subr.msk.bf16.mxu1 %vm576_vm1, %v6776_v36  ;;  %v6702_v10 = vpop.permute.xlu1 %6701 }
 0xfb2   : > { %v6842_v46 = vpop.permute.xlu1 %6841 }
 0xfb3   : > { %10610 = vmatmul.mubr.msk.bf16.vlgmr.msra.gmra.mrb[172].mxu0 %vm576_vm1, %v6568_v51  ;;  %v6852_v54 = vsel %vm576_vm1, %v6842_v46, 0 }
 0xfb4   : > { %10622 = vmatpush3.bf16.xpose.msra.mxu0 %v6716_v37  ;;  %10625 = vmatprep.mubr.msk.bf16.mxu0 %vm576_vm1, %v6702_v10 }
 0xfb5   : > { %10880 = vmatprep.subr.msk.bf16.mxu0 %vm576_vm1, %v6708_v63  ;;  %10632 = vmatpush3.bf16.xpose.msra.mxu1 %v6787_v48 }
 0xfb6   : > { %10645 = vmatprep.subr.bf16.mxu1 %v7186_v52  ;;  %v6770_v17 = vpop.permute.xlu1 %6769 }
 0xfb7   : > { %10633 = vmatprep.mubr.msk.bf16.mxu1 %vm576_vm1, %v6770_v17 }
 0xfba   : > { %v6844_v45 = vpop.permute.xlu1 %6843 }
 0xfbb   : > { %v6855_v62 = vsel %vm576_vm1, %v6844_v45, 0 }
 0xfbc   : > { %10624 = vmatpush3.bf16.xpose.msra.mxu0 %v6719_v42  ;;  %10634 = vmatmul.mubr.msk.bf16.vlgmr.msra.gmra.mrb[156].mxu1 %vm576_vm1, %v6772_v9 }
 0xfbd   : > { %10883 = vmatprep.subr.msk.bf16.mxu0 %vm576_vm1, %v6842_v46  ;;  %10646 = vmatpush3.bf16.msra.mxu1 %v7186_v52 }
 0xfbe   : > { %10885 = vmatprep.subr.msk.bf16.mxu1 %vm1391_vm2, %v7188_v53  ;;  %v6840_v49 = vpop.permute.xlu1 %6839 }
 0xfc1   : > { %10648 = vmatpush3.bf16.msra.mxu1 %v7197_v0 }
 0xfc2   : > { %v7248_v5 = vpop.permute.xlu1 %7247 }
 0xfc3   : > { %10626 = vmatmul.mubr.msk.bf16.vlgmr.msra.gmra.mrb[176].mxu0 %vm576_vm1, %v6704_v39 }
 0xfc4   : > { %10638 = vmatpush3.bf16.xpose.msra.mxu0 %v6852_v54  ;;  %10641 = vmatprep.mubr.msk.bf16.mxu0 %vm576_vm1, %v6838_v58 }
 0xfc5   : > { %10884 = vmatprep.subr.msk.bf16.mxu0 %vm576_vm1, %v6844_v45 }
 0xfc6   : > { %v14582_v32 = vpop.permute.xlu1 %7309 }
 0xfc7   : > { %10661 = vmatprep.subr.bf16.mxu1 %v14582_v32 }
 0xfca   : > { %v14593_v19 = vpop.permute.xlu1 %7371 }
 0xfcc   : > { %10640 = vmatpush3.bf16.xpose.msra.mxu0 %v6855_v62 }
 0xfcd   : > { %10653 = vmatprep.subr.bf16.mxu0 %v7248_v5 }
 0xfd3   : > { %10642 = vmatmul.mubr.msk.bf16.vlgmr.msra.gmra.mrb[180].mxu0 %vm576_vm1, %v6840_v49 }
 0xfd4   : > { %10654 = vmatpush3.bf16.msra.mxu0 %v7248_v5 }
 0xfd5   : > { %10886 = vmatprep.subr.msk.bf16.mxu0 %vm1391_vm2, %v7250_v47  ;;  %v14588_v24 = vpop.f32.mrb[128].mxu1 }
 0xfd6   : > { %v14590_v3 = vpop.f32.mrb[129].mxu1 }
 0xfd7   : > { %v10524_v43 = vpop.f32.mrb[130].mxu1 }
 0xfd8   : > { %10656 = vmatpush3.bf16.msra.mxu0 %v7259_v41  ;;  %v14595_v11 = vpop.f32.mrb[131].mxu1 }
 0xfd9   : > { %10669 = vmatprep.subr.bf16.mxu0 %v14593_v19  ;;  %v14598_v57 = vpop.f32.mrb[152].mxu0 }
 0xfda   : > { %v14600_v38 = vpop.f32.mrb[153].mxu0 }
 0xfdb   : > { %v10532_v55 = vpop.f32.mrb[154].mxu0 }
 0xfdc   : > { %v14602_v61 = vpop.f32.mrb[155].mxu0 }
 0xfe1   : > { %v14604_v22 = vpop.f32.mrb[132].mxu1 }
 0xfe2   : > { %v14606_v31 = vpop.f32.mrb[133].mxu1 }
 0xfe3   : > { %v10540_v30 = vpop.f32.mrb[134].mxu1 }
 0xfe4   : > { %v14608_v8 = vpop.f32.mrb[135].mxu1 }
 0xfe8   : > { %v14610_v51 = vpop.f32.mrb[156].mxu0 }
 0xfe9   : > { %v14612_v7 = vpop.f32.mrb[157].mxu0 }
 0xfea   : > { %v10548_v1 = vpop.f32.mrb[158].mxu0 }
 0xfeb   : > { %v14614_v18 = vpop.f32.mrb[159].mxu0 }
 0xff8   : > { %v14616_v35 = vpop.f32.mrb[136].mxu1 }
 0xff9   : > { %v14618_v2 = vpop.f32.mrb[137].mxu1 }
 0xffa   : > { %v10556_v23 = vpop.f32.mrb[138].mxu1 }
 0xffb   : > { %v14620_v4 = vpop.f32.mrb[139].mxu1 }
0x102e   : > { %v14622_v63 = vpop.f32.mrb[160].mxu0 }
0x102f   : > { %16175 = vst [vmem:[#allocation30_spill] sm:$0xff] %v14622_v63  ;;  %v14624_v29 = vpop.f32.mrb[161].mxu0 }
0x1030   : > { %v10564_v40 = vpop.f32.mrb[162].mxu0 }
0x1031   : > { %v14626_v33 = vpop.f32.mrb[163].mxu0 }
0x1032   : > { %16176 = vst [vmem:[#allocation31_spill] sm:$0xff] %v14626_v33  ;;  %v14628_v34 = vpop.f32.mrb[140].mxu1 }
0x1033   : > { %16177 = vst [vmem:[#allocation32_spill] sm:$0xff] %v14628_v34  ;;  %v14630_v6 = vpop.f32.mrb[141].mxu1 }
0x1034   : > { %16178 = vst [vmem:[#allocation33_spill] sm:$0xff] %v14630_v6  ;;  %v10572_v20 = vpop.f32.mrb[142].mxu1 }
0x1035   : > { %v14632_v25 = vpop.f32.mrb[143].mxu1 }
0x1036   : > { %16179 = vst [vmem:[#allocation34_spill] sm:$0xff] %v14632_v25 }
0x105b   : > { %v14634_v27 = vpop.f32.mrb[144].mxu1 }
0x105c   : > { %v14636_v12 = vpop.f32.mrb[145].mxu1  ;;  %v6911_v36 = vsel %vm1099_vm3, %v14634_v27, -inf }
0x105d   : > { %6912 = vmax.xlane.f32.xlu0 %v6911_v36  ;;  %v10588_v14 = vpop.f32.mrb[146].mxu1  ;;  %v6905_v44 = vsel %vm1099_vm3, %v14636_v12, -inf }
0x105e   : > { %v14640_v56 = vpop.f32.mrb[147].mxu1 }
0x105f   : > { %v6908_v39 = vsel %vm1099_vm3, %v14640_v56, -inf }
0x1060   : > { %6909 = vmax.xlane.f32.xlu1 %v6908_v39 }
0x1061   : > { %6906 = vmax.xlane.f32.xlu0 %v6905_v44 }
0x1066   : > { %v14646_v50 = vpop.f32.mrb[164].mxu0 }
0x1067   : > { %16180 = vst [vmem:[#allocation35_spill] sm:$0xff] %v14646_v50  ;;  %v14648_v16 = vpop.f32.mrb[165].mxu0 }
0x1068   : > { %16181 = vst [vmem:[#allocation36_spill] sm:$0xff] %v14648_v16  ;;  %v10580_v9 = vpop.f32.mrb[166].mxu0 }
0x1069   : > { %v14650_v28 = vpop.f32.mrb[167].mxu0 }
0x106a   : > { %16182 = vst [vmem:[#allocation37_spill] sm:$0xff] %v14650_v28 }
0x106f   : > { %v14652_v59 = vpop.f32.mrb[148].mxu1 }
0x1070   : > { %v14654_v60 = vpop.f32.mrb[149].mxu1  ;;  %v6929_v5 = vsel %vm1099_vm3, %v14652_v59, -inf }
0x1071   : > { %v10604_v10 = vpop.f32.mrb[150].mxu1  ;;  %v6923_v47 = vsel %vm1099_vm3, %v14654_v60, -inf }
0x1072   : > { %v14656_v58 = vpop.f32.mrb[151].mxu1 }
0x1073   : > { %v6926_v42 = vsel %vm1099_vm3, %v14656_v58, -inf }
0x1076   : > { %v14658_v46 = vpop.f32.mrb[168].mxu0 }
0x1077   : > { %v14660_v37 = vpop.f32.mrb[169].mxu0  ;;  %v6920_v48 = vsel %vm1099_vm3, %v14658_v46, -inf }
0x1078   : > { %6921 = vmax.xlane.f32.xlu1 %v6920_v48  ;;  %v10596_v52 = vpop.f32.mrb[170].mxu0  ;;  %v6914_v17 = vsel %vm1099_vm3, %v14660_v37, -inf }
0x1079   : > { %6915 = vmax.xlane.f32.xlu0 %v6914_v17  ;;  %v14666_v45 = vpop.f32.mrb[171].mxu0 }
0x107a   : > { %v6917_v53 = vsel %vm1099_vm3, %v14666_v45, -inf }
0x107c   : > { %6927 = vmax.xlane.f32.xlu1 %v6926_v42 }
0x107d   : > { %6918 = vmax.xlane.f32.xlu0 %v6917_v53 }
0x107f   : > { %v14672_v49 = vpop.f32.mrb[152].mxu1 }
0x1080   : > { %v14674_v0 = vpop.f32.mrb[153].mxu1  ;;  %v6947_v20 = vsel %vm1099_vm3, %v14672_v49, -inf }
0x1081   : > { %6930 = vmax.xlane.f32.xlu0 %v6929_v5  ;;  %v10620_v54 = vpop.f32.mrb[154].mxu1  ;;  %v6941_v10 = vsel %vm1099_vm3, %v14674_v0, -inf }
0x1082   : > { %v14678_v62 = vpop.f32.mrb[155].mxu1 }
0x1083   : > { %v6944_v14 = vsel %vm1099_vm3, %v14678_v62, -inf }
0x1085   : > { %6924 = vmax.xlane.f32.xlu0 %v6923_v47 }
0x1086   : > { %v14682_v43 = vpop.f32.mrb[172].mxu0 }
0x1087   : > { %v14684_v41 = vpop.f32.mrb[173].mxu0  ;;  %v6938_v55 = vsel %vm1099_vm3, %v14682_v43, -inf }
0x1088   : > { %6939 = vmax.xlane.f32.xlu1 %v6938_v55  ;;  %v10612_v30 = vpop.f32.mrb[174].mxu0  ;;  %v6932_v40 = vsel %vm1099_vm3, %v14684_v41, -inf }
0x1089   : > { %v14688_v1 = vpop.f32.mrb[175].mxu0 }
0x108a   : > { %v6935_v23 = vsel %vm1099_vm3, %v14688_v1, -inf }
0x108b   : > { %6936 = vmax.xlane.f32.xlu0 %v6935_v23 }
0x108c   : > { %6933 = vmax.xlane.f32.xlu1 %v6932_v40 }
0x108f   : > { %6948 = vmax.xlane.f32.xlu0 %v6947_v20  ;;  %v14696_v36 = vpop.f32.mrb[156].mxu1 }
0x1090   : > { %6945 = vmax.xlane.f32.xlu1 %v6944_v14  ;;  %v14700_v39 = vpop.f32.mrb[157].mxu1  ;;  %v6965_v47 = vsel %vm1099_vm3, %v14696_v36, -inf }
0x1091   : > { %v10636_v44 = vpop.f32.mrb[158].mxu1  ;;  %v6959_v30 = vsel %vm1099_vm3, %v14700_v39, -inf }
0x1092   : > { %v14702_v9 = vpop.f32.mrb[159].mxu1 }
0x1093   : > { %6942 = vmax.xlane.f32.xlu0 %v6941_v10  ;;  %v6962_v55 = vsel %vm1099_vm3, %v14702_v9, -inf }
0x1096   : > { %v14706_v48 = vpop.f32.mrb[176].mxu0 }
0x1097   : > { %v14708_v52 = vpop.f32.mrb[177].mxu0  ;;  %v6956_v17 = vsel %vm1099_vm3, %v14706_v48, -inf }
0x1098   : > { %6957 = vmax.xlane.f32.xlu1 %v6956_v17  ;;  %v10628_v42 = vpop.f32.mrb[178].mxu0  ;;  %v6950_v54 = vsel %vm1099_vm3, %v14708_v52, -inf }
0x1099   : > { %v14712_v53 = vpop.f32.mrb[179].mxu0  ;;  %v14740_v42 = vpop.permute.xlu1 %7373 }
0x109a   : > { %v6953_v5 = vsel %vm1099_vm3, %v14712_v53, -inf }
0x109b   : > { %6954 = vmax.xlane.f32.xlu0 %v6953_v5 }
0x109c   : > { %6951 = vmax.xlane.f32.xlu1 %v6950_v54  ;;  %v14744_v54 = vpop.permute.xlu0 %7311 }
0x109d   : > { %v14742_v5 = vpop.permute.xlu1 %7495 }
0x109f   : > { %6966 = vmax.xlane.f32.xlu0 %v6965_v47 }
0x10a0   : > { %6963 = vmax.xlane.f32.xlu1 %v6962_v55  ;;  %v14748_v55 = vpop.permute.xlu0 %7433 }
0x10a1   : > { %v14746_v47 = vpop.permute.xlu1 %7435 }
0x10a3   : > { %6960 = vmax.xlane.f32.xlu0 %v6959_v30 }
0x10a5   : > { %v14750_v30 = vpop.permute.xlu1 %7497 }
0x10a6   : > { %v14724_v23 = vpop.f32.mrb[180].mxu0 }
0x10a7   : > { %v14726_v40 = vpop.f32.mrb[181].mxu0  ;;  %v6974_v20 = vsel %vm1099_vm3, %v14724_v23, -inf }
0x10a8   : > { %6975 = vmax.xlane.f32.xlu1 %v6974_v20  ;;  %v10644_v14 = vpop.f32.mrb[182].mxu0  ;;  %v6968_v17 = vsel %vm1099_vm3, %v14726_v40, -inf }
0x10a9   : > { %v14730_v44 = vpop.f32.mrb[183].mxu0 }
0x10aa   : > { %v6971_v10 = vsel %vm1099_vm3, %v14730_v44, -inf }
0x10ab   : > { %6972 = vmax.xlane.f32.xlu0 %v6971_v10 }
0x10ac   : > { %6969 = vmax.xlane.f32.xlu1 %v6968_v17 }
0x10bd   : > { %7559 = vrot.lane.b32.xlu1 %v14016_v15, %s11753_s19 }
0x10c1   : > { %7557 = vrot.lane.b32.xlu0 %v16172_v13, %s11753_s19 }
0x10ea   : > { %v6913_v20 = vpop.xlane.xlu0 %6912 }
0x10eb   : > { %v6979_v14 = vsub.f32 %v14634_v27, %v6913_v20 }
0x10ed   : > { %v7005_v10 = vmul.f32 1.442695, %v6979_v14  ;;  %v6910_v15 = vpop.xlane.xlu1 %6909 }
0x10ee   : > { %v6978_v17 = vsub.f32 %v14640_v56, %v6910_v15  ;;  %v6907_v13 = vpop.xlane.xlu0 %6906 }
0x10ef   : > { %11467 = vpow2.f32 %v7005_v10  ;;  %v6977_v28 = vsub.f32 %v14636_v12, %v6907_v13 }
0x10f0   : > { %v7003_v50 = vmul.f32 1.442695, %v6978_v17 }
0x10f1   : > { %v7001_v34 = vmul.f32 1.442695, %v6977_v28 }
0x10f2   : > { %11469 = vpow2.f32 %v7003_v50 }
0x10f3   : > { %11471 = vpow2.f32 %v7001_v34 }
0x10f9   : > { %v14755_v16 = vpop.eup %11467 }
0x10fa   : > { %v7055_v6 = vsel %vm1099_vm3, %v14755_v16, 0.0 }
0x10fb   : > { %7056 = vadd.xlane.f32.xlu0 %v7055_v6 }
0x10fc   : > { %v14759_v25 = vpop.eup %11469 }
0x10fd   : > { %v14761_v27 = vpop.eup %11471  ;;  %v7052_v56 = vsel %vm1099_vm3, %v14759_v25, 0.0 }
0x10fe   : > { %7053 = vadd.xlane.f32.xlu1 %v7052_v56  ;;  %v7049_v12 = vsel %vm1099_vm3, %v14761_v27, 0.0 }
0x10ff   : > { %7050 = vadd.xlane.f32.xlu0 %v7049_v12 }
0x1105   : > { %v6922_v50 = vpop.xlane.xlu1 %6921 }
0x1106   : > { %v6982_v34 = vsub.f32 %v14658_v46, %v6922_v50  ;;  %v6916_v28 = vpop.xlane.xlu0 %6915 }
0x1107   : > { %v6980_v20 = vsub.f32 %v14660_v37, %v6916_v28 }
0x1108   : > { %v7011_v14 = vmul.f32 1.442695, %v6982_v34 }
0x1109   : > { %v7007_v6 = vmul.f32 1.442695, %v6980_v20  ;;  %v6928_v10 = vpop.xlane.xlu1 %6927 }
0x110a   : > { %11473 = vpow2.f32 %v7011_v14  ;;  %v6984_v15 = vsub.f32 %v14656_v58, %v6928_v10  ;;  %v6919_v17 = vpop.xlane.xlu0 %6918 }
0x110b   : > { %v6981_v13 = vsub.f32 %v14666_v45, %v6919_v17  ;;  %11475 = vpow2.f32 %v7007_v6 }
0x110c   : > { %v7015_v56 = vmul.f32 1.442695, %v6984_v15 }
0x110d   : > { %v7009_v33 = vmul.f32 1.442695, %v6981_v13 }
0x110e   : > { %v6931_v63 = vpop.xlane.xlu0 %6930 }
0x110f   : > { %11477 = vpow2.f32 %v7009_v33  ;;  %v6985_v12 = vsub.f32 %v14652_v59, %v6931_v63 }
0x1110   : > { %11479 = vpow2.f32 %v7015_v56 }
0x1111   : > { %v7017_v46 = vmul.f32 1.442695, %v6985_v12 }
0x1112   : > { %v6925_v50 = vpop.xlane.xlu0 %6924 }
0x1113   : > { %11481 = vpow2.f32 %v7017_v46  ;;  %v6983_v37 = vsub.f32 %v14654_v60, %v6925_v50 }
0x1114   : > { %v14773_v34 = vpop.eup %11473 }
0x1115   : > { %v7013_v28 = vmul.f32 1.442695, %v6983_v37  ;;  %v6940_v58 = vpop.xlane.xlu1 %6939  ;;  %v7064_v45 = vsel %vm1099_vm3, %v14773_v34, 0.0  ;;  %v14777_v20 = vpop.eup %11475 }
0x1116   : > { %v6988_v14 = vsub.f32 %v14682_v43, %v6940_v58  ;;  %7065 = vadd.xlane.f32.xlu1 %v7064_v45  ;;  %v7058_v10 = vsel %vm1099_vm3, %v14777_v20, 0.0 }
0x1117   : > { %11483 = vpow2.f32 %v7013_v28 }
0x1118   : > { %v7023_v63 = vmul.f32 1.442695, %v6988_v14  ;;  %v6937_v33 = vpop.xlane.xlu0 %6936 }
0x1119   : > { %v14780_v59 = vpop.eup %11477  ;;  %v6987_v6 = vsub.f32 %v14688_v1, %v6937_v33  ;;  %v6934_v60 = vpop.xlane.xlu1 %6933 }
0x111a   : > { %v14785_v15 = vpop.eup %11479  ;;  %11485 = vpow2.f32 %v7023_v63  ;;  %v6986_v17 = vsub.f32 %v14684_v41, %v6934_v60  ;;  %7059 = vadd.xlane.f32.xlu1 %v7058_v10  ;;  %v7061_v43 = vsel %vm1099_vm3, %v14780_v59, 0.0 }
0x111b   : > { %v7021_v13 = vmul.f32 1.442695, %v6987_v6  ;;  %7062 = vadd.xlane.f32.xlu0 %v7061_v43  ;;  %v7070_v37 = vsel %vm1099_vm3, %v14785_v15, 0.0 }
0x111c   : > { %v7019_v56 = vmul.f32 1.442695, %v6986_v17  ;;  %v6949_v12 = vpop.xlane.xlu0 %6948 }
0x111d   : > { %v14790_v46 = vpop.eup %11481  ;;  %11487 = vpow2.f32 %v7021_v13  ;;  %v6991_v1 = vsub.f32 %v14672_v49, %v6949_v12  ;;  %v6946_v50 = vpop.xlane.xlu1 %6945 }
0x111e   : > { %11489 = vpow2.f32 %v7019_v56  ;;  %7071 = vadd.xlane.f32.xlu1 %v7070_v37  ;;  %v7073_v41 = vsel %vm1099_vm3, %v14790_v46, 0.0  ;;  %v6990_v58 = vsub.f32 %v14678_v62, %v6946_v50 }
0x111f   : > { %v7029_v28 = vmul.f32 1.442695, %v6991_v1  ;;  %7074 = vadd.xlane.f32.xlu0 %v7073_v41 }
0x1120   : > { %v6943_v45 = vpop.xlane.xlu0 %6942  ;;  %v7027_v60 = vmul.f32 1.442695, %v6990_v58 }
0x1121   : > { %v14798_v14 = vpop.eup %11483  ;;  %11491 = vpow2.f32 %v7029_v28  ;;  %v6989_v63 = vsub.f32 %v14674_v0, %v6943_v45 }
0x1122   : > { %v7067_v49 = vsel %vm1099_vm3, %v14798_v14, 0.0 }
0x1123   : > { %v7025_v33 = vmul.f32 1.442695, %v6989_v63  ;;  %7068 = vadd.xlane.f32.xlu0 %v7067_v49 }
0x1124   : > { %v14803_v6 = vpop.eup %11485 }
0x1125   : > { %11493 = vpow2.f32 %v7025_v33  ;;  %v6958_v10 = vpop.xlane.xlu1 %6957  ;;  %v7082_v17 = vsel %vm1099_vm3, %v14803_v6, 0.0 }
0x1126   : > { %v6994_v62 = vsub.f32 %v14706_v48, %v6958_v10  ;;  %7083 = vadd.xlane.f32.xlu1 %v7082_v17  ;;  %11495 = vpow2.f32 %v7027_v60 }
0x1127   : > { %v14808_v43 = vpop.eup %11487 }
0x1128   : > { %v14810_v13 = vpop.eup %11489  ;;  %v7035_v0 = vmul.f32 1.442695, %v6994_v62  ;;  %v6955_v56 = vpop.xlane.xlu0 %6954  ;;  %v7079_v12 = vsel %vm1099_vm3, %v14808_v43, 0.0 }
0x1129   : > { %v6993_v1 = vsub.f32 %v14712_v53, %v6955_v56  ;;  %v6952_v50 = vpop.xlane.xlu1 %6951  ;;  %7080 = vadd.xlane.f32.xlu0 %v7079_v12  ;;  %v7076_v37 = vsel %vm1099_vm3, %v14810_v13, 0.0 }
0x112a   : > { %11497 = vpow2.f32 %v7035_v0  ;;  %v6992_v48 = vsub.f32 %v14708_v52, %v6952_v50  ;;  %7077 = vadd.xlane.f32.xlu1 %v7076_v37 }
0x112b   : > { %v14818_v41 = vpop.eup %11491  ;;  %v7033_v28 = vmul.f32 1.442695, %v6993_v1 }
0x112c   : > { %v7031_v58 = vmul.f32 1.442695, %v6992_v48  ;;  %v6967_v45 = vpop.xlane.xlu0 %6966  ;;  %v7091_v63 = vsel %vm1099_vm3, %v14818_v41, 0.0 }
0x112d   : > { %11499 = vpow2.f32 %v7033_v28  ;;  %v6997_v53 = vsub.f32 %v14696_v36, %v6967_v45  ;;  %v6964_v49 = vpop.xlane.xlu1 %6963 }
0x112e   : > { %11501 = vpow2.f32 %v7031_v58  ;;  %v6996_v33 = vsub.f32 %v14702_v9, %v6964_v49  ;;  %7092 = vadd.xlane.f32.xlu1 %v7091_v63 }
0x112f   : > { %v14824_v60 = vpop.eup %11493  ;;  %v7041_v52 = vmul.f32 1.442695, %v6997_v53 }
0x1130   : > { %v7039_v10 = vmul.f32 1.442695, %v6996_v33  ;;  %v6961_v17 = vpop.xlane.xlu0 %6960  ;;  %v7085_v62 = vsel %vm1099_vm3, %v14824_v60, 0.0  ;;  %v14829_v56 = vpop.eup %11495 }
0x1131   : > { %11503 = vpow2.f32 %v7041_v52  ;;  %v6995_v0 = vsub.f32 %v14700_v39, %v6961_v17  ;;  %v7088_v50 = vsel %vm1099_vm3, %v14829_v56, 0.0 }
0x1132   : > { %7086 = vadd.xlane.f32.xlu1 %v7085_v62  ;;  %11505 = vpow2.f32 %v7039_v10 }
0x1133   : > { %v7037_v36 = vmul.f32 1.442695, %v6995_v0 }
0x1134   : > { %v14831_v12 = vpop.eup %11497 }
0x1135   : > { %11507 = vpow2.f32 %v7037_v36  ;;  %v6976_v9 = vpop.xlane.xlu1 %6975  ;;  %v7100_v1 = vsel %vm1099_vm3, %v14831_v12, 0.0 }
0x1136   : > { %v7000_v37 = vsub.f32 %v14724_v23, %v6976_v9  ;;  %7101 = vadd.xlane.f32.xlu0 %v7100_v1  ;;  %7089 = vadd.xlane.f32.xlu1 %v7088_v50 }
0x1137   : > { %v14838_v39 = vpop.eup %11499 }
0x1138   : > { %v14840_v48 = vpop.eup %11501  ;;  %v7047_v28 = vmul.f32 1.442695, %v7000_v37  ;;  %v6973_v58 = vpop.xlane.xlu0 %6972  ;;  %v7097_v45 = vsel %vm1099_vm3, %v14838_v39, 0.0 }
0x1139   : > { %v6999_v63 = vsub.f32 %v14730_v44, %v6973_v58  ;;  %v6970_v53 = vpop.xlane.xlu1 %6969  ;;  %v7094_v49 = vsel %vm1099_vm3, %v14840_v48, 0.0 }
0x113a   : > { %11509 = vpow2.f32 %v7047_v28  ;;  %v6998_v23 = vsub.f32 %v14726_v40, %v6970_v53  ;;  %7095 = vadd.xlane.f32.xlu0 %v7094_v49  ;;  %7098 = vadd.xlane.f32.xlu1 %v7097_v45 }
0x113b   : > { %v14848_v33 = vpop.eup %11503  ;;  %v7045_v52 = vmul.f32 1.442695, %v6999_v63 }
0x113c   : > { %v7043_v10 = vmul.f32 1.442695, %v6998_v23  ;;  %v7109_v17 = vsel %vm1099_vm3, %v14848_v33, 0.0  ;;  %v14852_v62 = vpop.eup %11505  ;;  %v14876_v58 = vpop.permute.xlu0 %7557 }
0x113d   : > { %11511 = vpow2.f32 %v7045_v52  ;;  %v7106_v40 = vsel %vm1099_vm3, %v14852_v62, 0.0  ;;  %v14878_v45 = vpop.permute.xlu1 %7559 }
0x113e   : > { %11513 = vpow2.f32 %v7043_v10  ;;  %7110 = vadd.xlane.f32.xlu0 %v7109_v17 }
0x113f   : > { %v14854_v44 = vpop.eup %11507 }
0x1140   : > { %v7103_v0 = vsel %vm1099_vm3, %v14854_v44, 0.0 }
0x1141   : > { %7104 = vadd.xlane.f32.xlu1 %v7103_v0 }
0x1142   : > { %7107 = vadd.xlane.f32.xlu0 %v7106_v40 }
0x1144   : > { %v14860_v36 = vpop.eup %11509 }
0x1145   : > { %v7118_v9 = vsel %vm1099_vm3, %v14860_v36, 0.0 }
0x1146   : > { %7119 = vadd.xlane.f32.xlu0 %v7118_v9  ;;  %v7321_v9 = vsel %vm1391_vm2, %v14744_v54, 0 }
0x1147   : > { %v14864_v1 = vpop.eup %11511 }
0x1148   : > { %v14866_v50 = vpop.eup %11513  ;;  %v7115_v37 = vsel %vm1099_vm3, %v14864_v1, 0.0 }
0x1149   : > { %v7112_v28 = vsel %vm1099_vm3, %v14866_v50, 0.0 }
0x114a   : > { %7113 = vadd.xlane.f32.xlu1 %v7112_v28  ;;  %7116 = vadd.xlane.f32.xlu0 %v7115_v37 }
0x115b   : > { %7621 = vrot.lane.b32.xlu1 %v16173_v21, %s11753_s19 }
0x1160   : > { %7619 = vrot.lane.b32.xlu0 %v14020_v26, %s11753_s19  ;;  %s11685_s19 = scalar_lea.vmem %s16027_s12, 3072 }
0x1161   : > { %p11686_p11 = scmp.ne.s32.totalorder %s16027_s12, %s11685_s19 }
0x1163   : > { %p11687_p12 = pnand %p11686_p11, %p11841_p5 }
0x1165   : > { %p11688_p13 = pneg %p11687_p12 }
0x1188   : > { %v7057_v63 = vpop.xlane.xlu0 %7056 }
0x1189   : > { %11515 = vrcp.f32 %v7057_v63 }
0x118b   : > { %v7054_v53 = vpop.xlane.xlu1 %7053 }
0x118c   : > { %11517 = vrcp.f32 %v7054_v53  ;;  %v7051_v49 = vpop.xlane.xlu0 %7050 }
0x118d   : > { %11519 = vrcp.f32 %v7051_v49 }
0x1193   : > { %v11516_v23 = vpop.eup %11515 }
0x1194   : > { %v7147_v21 = vmul.f32 %v11516_v23, %v14755_v16 }
0x1196   : > { %v11518_v52 = vpop.eup %11517  ;;  %v7170_v40 = vpack.c.bf16 %v7147_v21, %v7147_v21 }
0x1197   : > { %v11520_v10 = vpop.eup %11519  ;;  %v7146_v17 = vmul.f32 %v11518_v52, %v14759_v25 }
0x1198   : > { %v7145_v0 = vmul.f32 %v11520_v10, %v14761_v27 }
0x119a   : > { %v7169_v26 = vpack.c.bf16 %v7146_v17, %v7145_v0 }
0x119c   : > { %10649 = vmatprep.mubr.msk.bf16.mxu1 %vm1099_vm3, %v7169_v26 }
0x119d   : > { %10650 = vmatmul.mubr.msk.bf16.vlgmr.msra.gmra.mrb[160].mxu1 %vm1099_vm3, %v7170_v40 }
0x119e   : > { %10662 = vmatpush3.bf16.msra.mxu1 %v14582_v32 }
0x119f   : > { %10887 = vmatprep.subr.msk.bf16.mxu1 %vm1391_vm2, %v14744_v54 }
0x11a2   : > { %10664 = vmatpush3.bf16.msra.mxu1 %v7321_v9 }
0x11a3   : > { %v7066_v25 = vpop.xlane.xlu1 %7065  ;;  %10677 = vmatprep.subr.bf16.mxu1 %v14748_v55 }
0x11a4   : > { %11521 = vrcp.f32 %v7066_v25 }
0x11a7   : > { %v7060_v16 = vpop.xlane.xlu1 %7059 }
0x11a8   : > { %11523 = vrcp.f32 %v7060_v16  ;;  %v7063_v27 = vpop.xlane.xlu0 %7062 }
0x11a9   : > { %11525 = vrcp.f32 %v7063_v27  ;;  %v7383_v27 = vsel %vm1391_vm2, %v14740_v42, 0 }
0x11ab   : > { %v7072_v37 = vpop.xlane.xlu1 %7071 }
0x11ac   : > { %v7075_v28 = vpop.xlane.xlu0 %7074 }
0x11ad   : > { %11527 = vrcp.f32 %v7075_v28 }
0x11ae   : > { %11529 = vrcp.f32 %v7072_v37  ;;  %v11522_v32 = vpop.eup %11521 }
0x11af   : > { %v7150_v52 = vmul.f32 %v11522_v32, %v14773_v34 }
0x11b0   : > { %v7069_v63 = vpop.xlane.xlu0 %7068 }
0x11b1   : > { %11531 = vrcp.f32 %v7069_v63  ;;  %v7172_v26 = vpack.c.bf16 %v7150_v52, %v7150_v52 }
0x11b2   : > { %v11524_v53 = vpop.eup %11523 }
0x11b3   : > { %v11526_v49 = vpop.eup %11525  ;;  %v7084_v23 = vpop.xlane.xlu1 %7083  ;;  %v7148_v54 = vmul.f32 %v11524_v53, %v14777_v20 }
0x11b4   : > { %v7149_v10 = vmul.f32 %v11526_v49, %v14780_v59  ;;  %11533 = vrcp.f32 %v7084_v23  ;;  %v7445_v23 = vsel %vm1391_vm2, %v14746_v47, 0 }
0x11b6   : > { %v7081_v17 = vpop.xlane.xlu0 %7080  ;;  %v7171_v21 = vpack.c.bf16 %v7149_v10, %v7148_v54  ;;  %v7507_v10 = vsel %vm1391_vm2, %v14750_v30, 0 }
0x11b7   : > { %11535 = vrcp.f32 %v7081_v17  ;;  %v7078_v0 = vpop.xlane.xlu1 %7077  ;;  %v11528_v40 = vpop.eup %11527 }
0x11b8   : > { %11537 = vrcp.f32 %v7078_v0  ;;  %10657 = vmatprep.mubr.msk.bf16.mxu0 %vm1099_vm3, %v7171_v21  ;;  %v11530_v9 = vpop.eup %11529  ;;  %v7153_v59 = vmul.f32 %v11528_v40, %v14790_v46 }
0x11b9   : > { %10658 = vmatmul.mubr.msk.bf16.vlgmr.msra.gmra.mrb[184].mxu0 %vm1099_vm3, %v7172_v26  ;;  %v7152_v16 = vmul.f32 %v11530_v9, %v14785_v15 }
0x11ba   : > { %10670 = vmatpush3.bf16.msra.mxu0 %v14593_v19  ;;  %v7174_v32 = vpack.c.bf16 %v7153_v59, %v7153_v59 }
0x11bb   : > { %v11532_v20 = vpop.eup %11531  ;;  %10888 = vmatprep.subr.msk.bf16.mxu0 %vm1391_vm2, %v14740_v42  ;;  %v7093_v34 = vpop.xlane.xlu1 %7092 }
0x11bc   : > { %v7151_v25 = vmul.f32 %v11532_v20, %v14798_v14  ;;  %11539 = vrcp.f32 %v7093_v34 }
0x11be   : > { %10672 = vmatpush3.bf16.msra.mxu0 %v7383_v27  ;;  %v7173_v37 = vpack.c.bf16 %v7152_v16, %v7151_v25  ;;  %v11534_v28 = vpop.eup %11533 }
0x11bf   : > { %10685 = vmatprep.subr.bf16.mxu0 %v14742_v5  ;;  %v7087_v19 = vpop.xlane.xlu1 %7086  ;;  %v7156_v42 = vmul.f32 %v11534_v28, %v14803_v6 }
0x11c0   : > { %10665 = vmatprep.mubr.msk.bf16.mxu1 %vm1099_vm3, %v7173_v37  ;;  %11541 = vrcp.f32 %v7087_v19 }
0x11c1   : > { %v11536_v63 = vpop.eup %11535  ;;  %10666 = vmatmul.mubr.msk.bf16.vlgmr.msra.gmra.mrb[164].mxu1 %vm1099_vm3, %v7174_v32  ;;  %v7176_v52 = vpack.c.bf16 %v7156_v42, %v7156_v42 }
0x11c2   : > { %v11538_v46 = vpop.eup %11537  ;;  %10678 = vmatpush3.bf16.msra.mxu1 %v14748_v55  ;;  %v7155_v15 = vmul.f32 %v11536_v63, %v14808_v43 }
0x11c3   : > { %10889 = vmatprep.subr.msk.bf16.mxu1 %vm1391_vm2, %v14746_v47  ;;  %v7090_v14 = vpop.xlane.xlu1 %7089  ;;  %v7102_v53 = vpop.xlane.xlu0 %7101  ;;  %v7154_v49 = vmul.f32 %v11538_v46, %v14810_v13 }
0x11c4   : > { %11543 = vrcp.f32 %v7090_v14 }
0x11c5   : > { %v7175_v54 = vpack.c.bf16 %v7155_v15, %v7154_v49  ;;  %11545 = vrcp.f32 %v7102_v53 }
0x11c6   : > { %10680 = vmatpush3.bf16.msra.mxu1 %v7445_v23  ;;  %v11540_v47 = vpop.eup %11539 }
0x11c7   : > { %10693 = vmatprep.subr.bf16.mxu1 %v14876_v58  ;;  %v7099_v55 = vpop.xlane.xlu1 %7098  ;;  %10673 = vmatprep.mubr.msk.bf16.mxu0 %vm1099_vm3, %v7175_v54  ;;  %v7096_v6 = vpop.xlane.xlu0 %7095  ;;  %v7159_v0 = vmul.f32 %v11540_v47, %v14818_v41 }
0x11c8   : > { %11547 = vrcp.f32 %v7099_v55  ;;  %10674 = vmatmul.mubr.msk.bf16.vlgmr.msra.gmra.mrb[188].mxu0 %vm1099_vm3, %v7176_v52  ;;  %v11075_v55 = vld [vmem:[%s16085_s3 + $0x10] sm:$0xff]  }
0x11c9   : > { %11549 = vrcp.f32 %v7096_v6  ;;  %10686 = vmatpush3.bf16.msra.mxu0 %v14742_v5  ;;  %v7178_v59 = vpack.c.bf16 %v7159_v0, %v7159_v0 }
0x11ca   : > { %10890 = vmatprep.subr.msk.bf16.mxu0 %vm1391_vm2, %v14750_v30  ;;  %v11542_v13 = vpop.eup %11541 }
0x11cb   : > { %v7111_v43 = vpop.xlane.xlu0 %7110  ;;  %v7157_v40 = vmul.f32 %v11542_v13, %v14824_v60 }
0x11cc   : > { %11551 = vrcp.f32 %v7111_v43 }
0x11cd   : > { %10688 = vmatpush3.bf16.msra.mxu0 %v7507_v10 }
0x11ce   : > { %v11544_v17 = vpop.eup %11543  ;;  %v7105_v21 = vpop.xlane.xlu1 %7104 }
0x11cf   : > { %11553 = vrcp.f32 %v7105_v21  ;;  %v7108_v26 = vpop.xlane.xlu0 %7107  ;;  %v7158_v5 = vmul.f32 %v11544_v17, %v14829_v56  ;;  %v11546_v9 = vpop.eup %11545 }
0x11d0   : > { %11555 = vrcp.f32 %v7108_v26  ;;  %v7162_v27 = vmul.f32 %v11546_v9, %v14831_v12  ;;  %v7569_v12 = vsel %vm1391_vm2, %v14878_v45, 0 }
0x11d1   : > { %v7177_v20 = vpack.c.bf16 %v7158_v5, %v7157_v40 }
0x11d2   : > { %v11548_v34 = vpop.eup %11547  ;;  %v7180_v19 = vpack.c.bf16 %v7162_v27, %v7162_v27 }
0x11d3   : > { %v11550_v25 = vpop.eup %11549  ;;  %10681 = vmatprep.mubr.msk.bf16.mxu1 %vm1099_vm3, %v7177_v20  ;;  %v7120_v30 = vpop.xlane.xlu0 %7119  ;;  %v7161_v16 = vmul.f32 %v11548_v34, %v14838_v39 }
0x11d4   : > { %10682 = vmatmul.mubr.msk.bf16.vlgmr.msra.gmra.mrb[168].mxu1 %vm1099_vm3, %v7178_v59  ;;  %v7160_v41 = vmul.f32 %v11550_v25, %v14840_v48  ;;  %11557 = vrcp.f32 %v7120_v30 }
0x11d5   : > { %10694 = vmatpush3.bf16.msra.mxu1 %v14876_v58 }
0x11d6   : > { %10891 = vmatprep.subr.msk.bf16.mxu1 %vm1391_vm2, %v14878_v45  ;;  %v7179_v60 = vpack.c.bf16 %v7161_v16, %v7160_v41  ;;  %v11552_v56 = vpop.eup %11551 }
0x11d7   : > { %v7114_v37 = vpop.xlane.xlu1 %7113  ;;  %v7117_v28 = vpop.xlane.xlu0 %7116  ;;  %v7165_v32 = vmul.f32 %v11552_v56, %v14848_v33 }
0x11d8   : > { %11559 = vrcp.f32 %v7114_v37  ;;  %10689 = vmatprep.mubr.msk.bf16.mxu0 %vm1099_vm3, %v7179_v60 }
0x11d9   : > { %v11554_v39 = vpop.eup %11553  ;;  %11561 = vrcp.f32 %v7117_v28  ;;  %10690 = vmatmul.mubr.msk.bf16.vlgmr.msra.gmra.mrb[192].mxu0 %vm1099_vm3, %v7180_v19  ;;  %10696 = vmatpush3.bf16.msra.mxu1 %v7569_v12  ;;  %v7182_v45 = vpack.c.bf16 %v7165_v32, %v7165_v32 }
0x11da   : > { %v11556_v48 = vpop.eup %11555  ;;  %v7163_v58 = vmul.f32 %v11554_v39, %v14854_v44  ;;  %10709 = vmatprep.subr.bf16.mxu1 %v11075_v55 }
0x11db   : > { %v7620_v63 = vpop.permute.xlu0 %7619  ;;  %v7164_v46 = vmul.f32 %v11556_v48, %v14852_v62  ;;  %v7622_v15 = vpop.permute.xlu1 %7621 }
0x11dc   : > { %10701 = vmatprep.subr.bf16.mxu0 %v7620_v63  ;;  %v7631_v53 = vsel %vm1391_vm2, %v7622_v15, 0 }
0x11dd   : > { %10702 = vmatpush3.bf16.msra.mxu0 %v7620_v63  ;;  %v7181_v42 = vpack.c.bf16 %v7164_v46, %v7163_v58 }
0x11de   : > { %10892 = vmatprep.subr.msk.bf16.mxu0 %vm1391_vm2, %v7622_v15  ;;  %v11558_v14 = vpop.eup %11557 }
0x11df   : > { %10697 = vmatprep.mubr.msk.bf16.mxu1 %vm1099_vm3, %v7181_v42  ;;  %v7168_v62 = vmul.f32 %v11558_v14, %v14860_v36  ;;  %v11076_v36 = vld [vmem:[%s16085_s3 + $0x18] sm:$0xff]  }
0x11e0   : > { %10698 = vmatmul.mubr.msk.bf16.vlgmr.msra.gmra.mrb[172].mxu1 %vm1099_vm3, %v7182_v45 }
0x11e1   : > { %10704 = vmatpush3.bf16.msra.mxu0 %v7631_v53  ;;  %v7184_v52 = vpack.c.bf16 %v7168_v62, %v7168_v62  ;;  %10710 = vmatpush3.bf16.msra.mxu1 %v11075_v55 }
0x11e2   : > { %v11560_v44 = vpop.eup %11559  ;;  %10711 = vmatprep.subr.bf16.mxu1 %v11076_v36 }
0x11e3   : > { %v11562_v33 = vpop.eup %11561  ;;  %v7166_v49 = vmul.f32 %v11560_v44, %v14866_v50 }
0x11e4   : > { %v7167_v23 = vmul.f32 %v11562_v33, %v14864_v1 }
0x11e5   : > { %10712 = vmatpush3.bf16.msra.mxu1 %v11076_v36 }
0x11e6   : > { %v7183_v54 = vpack.c.bf16 %v7167_v23, %v7166_v49 }
0x11e8   : > { %10705 = vmatprep.mubr.msk.bf16.mxu0 %vm1099_vm3, %v7183_v54 }
0x11e9   : > { %10706 = vmatmul.mubr.msk.bf16.vlgmr.msra.gmra.mrb[196].mxu0 %vm1099_vm3, %v7184_v52 }
0x1270   : > { %v10651_v6 = vpop.f32.mrb[160].mxu1 }
0x1271   : > { %v7233_v47 = vpop.f32.mrb[161].mxu1 }
0x1272   : > { %v10652_v43 = vpop.f32.mrb[162].mxu1 }
0x1273   : > { %v7236_v50 = vpop.f32.mrb[163].mxu1 }
0x1274   : > { %v11003_v13 = vpack.i.bf16 %v7236_v50, %v7233_v47 }
0x1276   : > { %11004 = vrot.lane.b32.xlu0 %v11003_v13, %s11754_s24 }
0x128c   : > { %v10659_v1 = vpop.f32.mrb[184].mxu0 }
0x128d   : > { %v7295_v10 = vpop.f32.mrb[185].mxu0 }
0x128e   : > { %v11008_v17 = vpack.i.bf16 %v7295_v10, %v10651_v6  ;;  %v10660_v21 = vpop.f32.mrb[186].mxu0 }
0x128f   : > { %v7298_v0 = vpop.f32.mrb[187].mxu0 }
0x1290   : > { %v11013_v26 = vpack.i.bf16 %v10659_v1, %v7298_v0  ;;  %11009 = vrot.lane.b32.xlu1 %v11008_v17, %s11754_s24 }
0x1292   : > { %11014 = vrot.lane.b32.xlu0 %v11013_v26, %s11754_s24 }
0x1294   : > { %v10667_v40 = vpop.f32.mrb[164].mxu1 }
0x1295   : > { %v7357_v5 = vpop.f32.mrb[165].mxu1 }
0x1296   : > { %v10668_v9 = vpop.f32.mrb[166].mxu1 }
0x1297   : > { %v7360_v20 = vpop.f32.mrb[167].mxu1 }
0x1298   : > { %v11018_v34 = vpack.i.bf16 %v7360_v20, %v7357_v5 }
0x129a   : > { %11019 = vrot.lane.b32.xlu1 %v11018_v34, %s11754_s24 }
0x129b   : > { %v10675_v59 = vpop.f32.mrb[188].mxu0 }
0x129c   : > { %v7419_v25 = vpop.f32.mrb[189].mxu0 }
0x129d   : > { %v11023_v30 = vpack.i.bf16 %v7419_v25, %v10667_v40  ;;  %v10676_v16 = vpop.f32.mrb[190].mxu0 }
0x129e   : > { %v7422_v27 = vpop.f32.mrb[191].mxu0 }
0x129f   : > { %v11028_v41 = vpack.i.bf16 %v10675_v59, %v7422_v27  ;;  %11024 = vrot.lane.b32.xlu0 %v11023_v30, %s11754_s24 }
0x12a1   : > { %11029 = vrot.lane.b32.xlu1 %v11028_v41, %s11754_s24 }
0x12a7   : > { %v10683_v60 = vpop.f32.mrb[168].mxu1 }
0x12a8   : > { %v7481_v56 = vpop.f32.mrb[169].mxu1 }
0x12a9   : > { %v10684_v37 = vpop.f32.mrb[170].mxu1 }
0x12aa   : > { %v7484_v28 = vpop.f32.mrb[171].mxu1 }
0x12ab   : > { %v11033_v19 = vpack.i.bf16 %v7484_v28, %v7481_v56 }
0x12ac   : > { %v10691_v12 = vpop.f32.mrb[192].mxu0 }
0x12ad   : > { %v7543_v39 = vpop.f32.mrb[193].mxu0  ;;  %11034 = vrot.lane.b32.xlu0 %v11033_v19, %s11754_s24 }
0x12ae   : > { %v11038_v48 = vpack.i.bf16 %v7543_v39, %v10683_v60  ;;  %v10692_v58 = vpop.f32.mrb[194].mxu0 }
0x12af   : > { %v7546_v32 = vpop.f32.mrb[195].mxu0 }
0x12b0   : > { %v11043_v63 = vpack.i.bf16 %v10691_v12, %v7546_v32  ;;  %11039 = vrot.lane.b32.xlu1 %v11038_v48, %s11754_s24 }
0x12b2   : > { %11044 = vrot.lane.b32.xlu0 %v11043_v63, %s11754_s24 }
0x12b3   : > { %v10699_v46 = vpop.f32.mrb[172].mxu1 }
0x12b4   : > { %v7605_v15 = vpop.f32.mrb[173].mxu1 }
0x12b5   : > { %v10700_v42 = vpop.f32.mrb[174].mxu1 }
0x12b6   : > { %v7608_v45 = vpop.f32.mrb[175].mxu1 }
0x12b7   : > { %v11048_v14 = vpack.i.bf16 %v7608_v45, %v7605_v15 }
0x12b9   : > { %11049 = vrot.lane.b32.xlu1 %v11048_v14, %s11754_s24 }
0x12bc   : > { %v10707_v53 = vpop.f32.mrb[196].mxu0 }
0x12bd   : > { %v7667_v44 = vpop.f32.mrb[197].mxu0 }
0x12be   : > { %v11053_v33 = vpack.i.bf16 %v7667_v44, %v10699_v46  ;;  %v10708_v49 = vpop.f32.mrb[198].mxu0 }
0x12bf   : > { %v7670_v62 = vpop.f32.mrb[199].mxu0  ;;  %v16186_v49 = vld [vmem:[#allocation33_spill] sm:$0xff] }
0x12c0   : > { %v11058_v23 = vpack.i.bf16 %v10707_v53, %v7670_v62  ;;  %11054 = vrot.lane.b32.xlu0 %v11053_v33, %s11754_s24 }
0x12c2   : > { %11059 = vrot.lane.b32.xlu1 %v11058_v23, %s11754_s24  ;;  %s11755_s24 = smov [#allocation2]  }
0x12c3   : > { %s11689_s21 = sshll.u32 %s11755_s24, 4  ;;  %s11690_s21 = int_to_ptr.vmem [resolvable:$false] %s11689_s21 }
0x12c4   : > { %s11691_s22 = scalar_lea.vmem %s11690_s21, 6144  ;;  %p11692_p0 = scmp.lt.s32.totalorder %s16027_s12, %s11690_s21 }
0x12c5   : > { %p11693_p1 = scmp.lt.s32.totalorder %s11691_s22, %s11685_s19 }
0x12c7   : > { %p11694_p2 = por %p11693_p1, %p11692_p0 }
0x12c9   : > { %p11695_p3 = pnand %p11694_p2, %p11688_p13 }
0x12e8   : > { %v11005_v54 = vpop.permute.xlu0 %11004 }
0x12e9   : > { %v11007_v52 = vunpack.i.h.bf16 %v11005_v54  ;;  %v11006_v55 = vunpack.i.l.bf16 %v11005_v54 }
0x12eb   : > { %v7778_v6 = vsel %vm576_vm1, %v14595_v11, %v11007_v52  ;;  %v7777_v47 = vsel %vm576_vm1, %v14590_v3, %v11006_v55 }
0x12ec   : > { %v7801_v43 = vpack.c.bf16 %v7778_v6, %v7777_v47  ;;  %v16187_v47 = vld [vmem:[#allocation36_spill] sm:$0xff] }
0x12ee   : > { %10713 = vmatprep.mubr.msk.bf16.mxu1 %vm388_vm0, %v7801_v43 }
0x1302   : > { %v11010_v50 = vpop.permute.xlu1 %11009 }
0x1303   : > { %v11012_v13 = vunpack.i.h.bf16 %v11010_v50  ;;  %v11011_v36 = vunpack.i.l.bf16 %v11010_v50  ;;  %v16188_v50 = vld [vmem:[#allocation32_spill] sm:$0xff] }
0x1304   : > { %v11015_v1 = vpop.permute.xlu0 %11014 }
0x1305   : > { %v7780_v10 = vsel %vm576_vm1, %v14600_v38, %v11012_v13  ;;  %v7779_v17 = vsel %vm576_vm1, %v14588_v24, %v11011_v36  ;;  %v11017_v21 = vunpack.i.h.bf16 %v11015_v1  ;;  %v11016_v0 = vunpack.i.l.bf16 %v11015_v1 }
0x1306   : > { %v7802_v26 = vpack.c.bf16 %v7780_v10, %v7779_v17  ;;  %v16189_v17 = vld [vmem:[#allocation35_spill] sm:$0xff] }
0x1307   : > { %v7782_v11 = vsel %vm576_vm1, %v14598_v57, %v11017_v21  ;;  %v7781_v3 = vsel %vm576_vm1, %v14602_v61, %v11016_v0  ;;  %v16190_v0 = vld [vmem:[#allocation37_spill] sm:$0xff] }
0x1308   : > { %10714 = vmatmul.mubr.msk.bf16.vlgmr.msra.gmra.mrb[176].mxu1 %vm388_vm0, %v7802_v26  ;;  %v7803_v40 = vpack.c.bf16 %v7782_v11, %v7781_v3  ;;  %v15031_v3 = vld [vmem:[%s16089_s7 + $0x8] sm:$0x3f] }
0x130a   : > { %10717 = vmatprep.mubr.msk.bf16.mxu1 %vm388_vm0, %v7803_v40  ;;  %v16191_v40 = vld [vmem:[#allocation5_spill] sm:$0xff] }
0x130c   : > { %v11020_v5 = vpop.permute.xlu1 %11019 }
0x130d   : > { %v11022_v9 = vunpack.i.h.bf16 %v11020_v5  ;;  %v11021_v38 = vunpack.i.l.bf16 %v11020_v5  ;;  %v16192_v5 = vsub.s32 0, %v16191_v40 }
0x130f   : > { %v7784_v24 = vsel %vm576_vm1, %v14608_v8, %v11022_v9  ;;  %v7783_v20 = vsel %vm576_vm1, %v14606_v31, %v11021_v38  ;;  %v15036_v9 = vrot.slane %v15031_v3, %v16192_v5 }
0x1310   : > { %v7804_v34 = vpack.c.bf16 %v7784_v24, %v7783_v20 }
0x1311   : > { %v11025_v59 = vpop.permute.xlu0 %11024 }
0x1312   : > { %v11027_v57 = vunpack.i.h.bf16 %v11025_v59  ;;  %v11026_v25 = vunpack.i.l.bf16 %v11025_v59  ;;  %10718 = vmatmul.mubr.msk.bf16.gmra.mrb[180].mxu1 %vm388_vm0, %v7804_v34 }
0x1313   : > { %v11030_v61 = vpop.permute.xlu1 %11029 }
0x1314   : > { %v7786_v30 = vsel %vm576_vm1, %v14612_v7, %v11027_v57  ;;  %v7785_v16 = vsel %vm576_vm1, %v14604_v22, %v11026_v25  ;;  %v11032_v27 = vunpack.i.h.bf16 %v11030_v61  ;;  %v11031_v41 = vunpack.i.l.bf16 %v11030_v61  ;;  %v16193_v57 = vld [vmem:[#allocation10_spill] sm:$0xff] }
0x1315   : > { %v7805_v60 = vpack.c.bf16 %v7786_v30, %v7785_v16 }
0x1316   : > { %v7788_v8 = vsel %vm576_vm1, %v14610_v51, %v11032_v27  ;;  %v7787_v31 = vsel %vm576_vm1, %v14614_v18, %v11031_v41  ;;  %v16194_v27 = vld [vmem:[#allocation9_spill] sm:$0xff] }
0x1317   : > { %10721 = vmatprep.mubr.msk.bf16.mxu1 %vm388_vm0, %v7805_v60  ;;  %v7806_v56 = vpack.c.bf16 %v7788_v8, %v7787_v31  ;;  %v16195_v60 = vld [vmem:[#allocation7_spill] sm:$0xff] }
0x131a   : > { %10722 = vmatmul.mubr.msk.bf16.gmra.mrb[184].mxu1 %vm388_vm0, %v7806_v56  ;;  %v16196_v56 = vld [vmem:[#allocation11_spill] sm:$0xff] }
0x131f   : > { %v11035_v37 = vpop.permute.xlu0 %11034 }
0x1320   : > { %v11037_v28 = vunpack.i.h.bf16 %v11035_v37  ;;  %v11036_v7 = vunpack.i.l.bf16 %v11035_v37 }
0x1322   : > { %v7790_v22 = vsel %vm576_vm1, %v14620_v4, %v11037_v28  ;;  %v7789_v19 = vsel %vm576_vm1, %v14618_v2, %v11036_v7  ;;  %v11040_v12 = vpop.permute.xlu1 %11039  ;;  %v16183_v4 = vld [vmem:[#allocation30_spill] sm:$0xff]  ;;  %v16184_v2 = vld [vmem:[#allocation31_spill] sm:$0xff] }
0x1323   : > { %v11042_v39 = vunpack.i.h.bf16 %v11040_v12  ;;  %v11041_v51 = vunpack.i.l.bf16 %v11040_v12  ;;  %v7807_v48 = vpack.c.bf16 %v7790_v22, %v7789_v19 }
0x1324   : > { %v11045_v58 = vpop.permute.xlu0 %11044 }
0x1325   : > { %v7792_v18 = vsel %vm576_vm1, %v14624_v29, %v11042_v39  ;;  %v7791_v32 = vsel %vm576_vm1, %v14616_v35, %v11041_v51  ;;  %v11047_v63 = vunpack.i.h.bf16 %v11045_v58  ;;  %v11046_v46 = vunpack.i.l.bf16 %v11045_v58  ;;  %10725 = vmatprep.mubr.msk.bf16.mxu1 %vm388_vm0, %v7807_v48  ;;  %v16185_v35 = vld [vmem:[#allocation34_spill] sm:$0xff] }
0x1326   : > { %v7808_v15 = vpack.c.bf16 %v7792_v18, %v7791_v32 }
0x1327   : > { %v7794_v42 = vsel %vm576_vm1, %v16183_v4, %v11047_v63  ;;  %v7793_v45 = vsel %vm576_vm1, %v16184_v2, %v11046_v46  ;;  %v16197_v46 = vld [vmem:[#allocation6_spill] sm:$0xff] }
0x1328   : > { %10726 = vmatmul.mubr.msk.bf16.gmra.mrb[188].mxu1 %vm388_vm0, %v7808_v15  ;;  %v7809_v14 = vpack.c.bf16 %v7794_v42, %v7793_v45 }
0x132a   : > { %10729 = vmatprep.mubr.msk.bf16.mxu1 %vm388_vm0, %v7809_v14 }
0x132b   : > { %v11050_v29 = vpop.permute.xlu1 %11049 }
0x132c   : > { %v11052_v53 = vunpack.i.h.bf16 %v11050_v29  ;;  %v11051_v44 = vunpack.i.l.bf16 %v11050_v29 }
0x132e   : > { %v7796_v33 = vsel %vm576_vm1, %v16185_v35, %v11052_v53  ;;  %v7795_v62 = vsel %vm576_vm1, %v16186_v49, %v11051_v44  ;;  %v16198_v44 = vld [vmem:[#allocation12_spill] sm:$0xff] }
0x132f   : > { %v7810_v23 = vpack.c.bf16 %v7796_v33, %v7795_v62  ;;  %v16199_v62 = vld [vmem:[#allocation13_spill] sm:$0xff] }
0x1331   : > { %10730 = vmatmul.mubr.msk.bf16.gmra.mrb[192].mxu1 %vm388_vm0, %v7810_v23 }
0x1332   : > { %v11055_v54 = vpop.permute.xlu0 %11054 }
0x1333   : > { %v11057_v52 = vunpack.i.h.bf16 %v11055_v54  ;;  %v11056_v55 = vunpack.i.l.bf16 %v11055_v54 }
0x1334   : > { %v11060_v6 = vpop.permute.xlu1 %11059 }
0x1335   : > { %v7798_v43 = vsel %vm576_vm1, %v16187_v47, %v11057_v52  ;;  %v7797_v13 = vsel %vm576_vm1, %v16188_v50, %v11056_v55  ;;  %v11062_v36 = vunpack.i.h.bf16 %v11060_v6  ;;  %v11061_v1 = vunpack.i.l.bf16 %v11060_v6 }
0x1336   : > { %v7811_v10 = vpack.c.bf16 %v7798_v43, %v7797_v13  ;;  %v16200_v43 = vld [vmem:[#allocation8_spill] sm:$0xff] }
0x1337   : > { %v7800_v21 = vsel %vm576_vm1, %v16189_v17, %v11062_v36  ;;  %v7799_v26 = vsel %vm576_vm1, %v16190_v0, %v11061_v1  ;;  %v16201_v0 = vld [vmem:[#allocation14_spill] sm:$0xff] }
0x1338   : > { %v7812_v11 = vpack.c.bf16 %v7800_v21, %v7799_v26  ;;  %10733 = vmatprep.mubr.msk.bf16.mxu1 %vm388_vm0, %v7811_v10 }
0x133a   : > { %10734 = vmatmul.mubr.msk.bf16.gmra.mrb[196].mxu1 %vm388_vm0, %v7812_v11 }
0x13db   : > { %v10715_v38 = vpop.f32.mrb[176].mxu1 }
0x13dc   : > { %v7908_v24 = vadd.f32 %v10715_v38, %v15036_v9  ;;  %v7899_v20 = vpop.f32.mrb[177].mxu1 }
0x13dd   : > { %v7900_v34 = vadd.f32 %v7899_v20, %v15036_v9  ;;  %v10716_v59 = vpop.f32.mrb[178].mxu1 }
0x13de   : > { %v15041_v25 = vadd.f32 %v7908_v24, %v16193_v57  ;;  %v7911_v61 = vadd.f32 %v10716_v59, %v15036_v9  ;;  %v7902_v30 = vpop.f32.mrb[179].mxu1 }
0x13df   : > { %v7903_v16 = vadd.f32 %v7902_v30, %v15036_v9  ;;  %v15046_v41 = vadd.f32 %v7900_v34, %v16194_v27  ;;  %v16202_v30 = vld [vmem:[#allocation16_spill] sm:$0xff] }
0x13e0   : > { %v15049_v8 = vadd.f32 %v7911_v61, %v16195_v60  ;;  %v8024_v31 = vsel %vm388_vm0, %v15041_v25, 0.0  ;;  %v8116_v63 = vmul.f32 %v15041_v25, %v15041_v25  ;;  %v16203_v60 = vld [vmem:[#allocation17_spill] sm:$0xff] }
0x13e1   : > { %v15054_v37 = vadd.f32 %v7903_v16, %v16196_v56  ;;  %8025 = vadd.xlane.f32.xlu0 %v8024_v31  ;;  %v8018_v22 = vsel %vm388_vm0, %v15046_v41, 0.0  ;;  %v8114_v14 = vmul.f32 %v15046_v41, %v15046_v41 }
0x13e2   : > { %v8117_v7 = vmul.f32 %v15049_v8, %v15049_v8  ;;  %v8027_v32 = vsel %vm388_vm0, %v15049_v8, 0.0  ;;  %v8144_v45 = vsel %vm388_vm0, %v8116_v63, 0.0 }
0x13e3   : > { %v8021_v28 = vsel %vm388_vm0, %v15054_v37, 0.0  ;;  %v8115_v48 = vmul.f32 %v15054_v37, %v15054_v37  ;;  %v8138_v55 = vsel %vm388_vm0, %v8114_v14, 0.0 }
0x13e4   : > { %8022 = vadd.xlane.f32.xlu1 %v8021_v28  ;;  %v8147_v51 = vsel %vm388_vm0, %v8117_v7, 0.0 }
0x13e5   : > { %v10719_v19 = vpop.f32.mrb[180].mxu1  ;;  %8019 = vadd.xlane.f32.xlu0 %v8018_v22  ;;  %v8141_v42 = vsel %vm388_vm0, %v8115_v48, 0.0 }
0x13e6   : > { %v7915_v12 = vpop.f32.mrb[181].mxu1  ;;  %v7924_v2 = vadd.f32 %v10719_v19, %v15036_v9  ;;  %v16204_v19 = vld [vmem:[#allocation15_spill] sm:$0xff] }
0x13e7   : > { %v10720_v39 = vpop.f32.mrb[182].mxu1  ;;  %v7916_v54 = vadd.f32 %v7915_v12, %v15036_v9 }
0x13e8   : > { %v7927_v58 = vadd.f32 %v10720_v39, %v15036_v9  ;;  %v7918_v18 = vpop.f32.mrb[183].mxu1  ;;  %8148 = vadd.xlane.f32.xlu1 %v8147_v51  ;;  %v15085_v23 = vadd.f32 %v7924_v2, %v16199_v62 }
0x13e9   : > { %8028 = vadd.xlane.f32.xlu0 %v8027_v32  ;;  %v7919_v4 = vadd.f32 %v7918_v18, %v15036_v9  ;;  %v15094_v50 = vadd.f32 %v7916_v54, %v16200_v43  ;;  %v16206_v43 = vld [vmem:[#allocation20_spill] sm:$0xff] }
0x13ea   : > { %v15071_v15 = vadd.f32 %v7927_v58, %v16197_v46  ;;  %v8036_v13 = vsel %vm388_vm0, %v15085_v23, 0.0  ;;  %v8120_v21 = vmul.f32 %v15085_v23, %v15085_v23 }
0x13eb   : > { %v15080_v35 = vadd.f32 %v7919_v4, %v16198_v44  ;;  %v8030_v17 = vsel %vm388_vm0, %v15094_v50, 0.0  ;;  %v8118_v59 = vmul.f32 %v15094_v50, %v15094_v50 }
0x13ec   : > { %8142 = vadd.xlane.f32.xlu1 %v8141_v42  ;;  %v8039_v49 = vsel %vm388_vm0, %v15071_v15, 0.0  ;;  %v8121_v47 = vmul.f32 %v15071_v15, %v15071_v15  ;;  %v8156_v34 = vsel %vm388_vm0, %v8120_v21, 0.0 }
0x13ed   : > { %v10723_v29 = vpop.f32.mrb[184].mxu1  ;;  %8145 = vadd.xlane.f32.xlu0 %v8144_v45  ;;  %v8033_v6 = vsel %vm388_vm0, %v15080_v35, 0.0  ;;  %v8119_v10 = vmul.f32 %v15080_v35, %v15080_v35  ;;  %v8150_v28 = vsel %vm388_vm0, %v8118_v59, 0.0 }
0x13ee   : > { %v7931_v53 = vpop.f32.mrb[185].mxu1  ;;  %v8159_v1 = vsel %vm388_vm0, %v8121_v47, 0.0  ;;  %v7940_v24 = vadd.f32 %v10723_v29, %v15036_v9 }
0x13ef   : > { %v10724_v33 = vpop.f32.mrb[186].mxu1  ;;  %v8153_v38 = vsel %vm388_vm0, %v8119_v10, 0.0  ;;  %v7932_v56 = vadd.f32 %v7931_v53, %v15036_v9  ;;  %v16205_v53 = vld [vmem:[#allocation18_spill] sm:$0xff] }
0x13f0   : > { %v7934_v52 = vpop.f32.mrb[187].mxu1  ;;  %8040 = vadd.xlane.f32.xlu1 %v8039_v49  ;;  %v7943_v36 = vadd.f32 %v10724_v33, %v15036_v9  ;;  %v15121_v31 = vadd.f32 %v7940_v24, %v16203_v60 }
0x13f1   : > { %8139 = vadd.xlane.f32.xlu0 %v8138_v55  ;;  %v7935_v11 = vadd.f32 %v7934_v52, %v15036_v9  ;;  %v15130_v12 = vadd.f32 %v7932_v56, %v16204_v19 }
0x13f2   : > { %v15107_v26 = vadd.f32 %v7943_v36, %v16201_v0  ;;  %v8048_v51 = vsel %vm388_vm0, %v15121_v31, 0.0  ;;  %v8124_v29 = vmul.f32 %v15121_v31, %v15121_v31 }
0x13f3   : > { %v15116_v16 = vadd.f32 %v7935_v11, %v16202_v30  ;;  %v8042_v14 = vsel %vm388_vm0, %v15130_v12, 0.0  ;;  %v8122_v52 = vmul.f32 %v15130_v12, %v15130_v12 }
0x13f4   : > { %8034 = vadd.xlane.f32.xlu1 %v8033_v6  ;;  %v8051_v27 = vsel %vm388_vm0, %v15107_v26, 0.0  ;;  %v8125_v22 = vmul.f32 %v15107_v26, %v15107_v26  ;;  %v8168_v54 = vsel %vm388_vm0, %v8124_v29, 0.0  ;;  %v16212_v29 = vld [vmem:[#allocation23_spill] sm:$0xff] }
0x13f5   : > { %8037 = vadd.xlane.f32.xlu0 %v8036_v13  ;;  %v8045_v7 = vsel %vm388_vm0, %v15116_v16, 0.0  ;;  %v8123_v2 = vmul.f32 %v15116_v16, %v15116_v16 }
0x13f6   : > { %v8171_v42 = vsel %vm388_vm0, %v8125_v22, 0.0 }
0x13f7   : > { %v8165_v49 = vsel %vm388_vm0, %v8123_v2, 0.0 }
0x13f8   : > { %8160 = vadd.xlane.f32.xlu1 %v8159_v1 }
0x13f9   : > { %8031 = vadd.xlane.f32.xlu0 %v8030_v17  ;;  %v16207_v17 = vld [vmem:[#allocation21_spill] sm:$0xff] }
0x13fb   : > { %v10727_v5 = vpop.f32.mrb[188].mxu1 }
0x13fc   : > { %v7947_v20 = vpop.f32.mrb[189].mxu1  ;;  %8154 = vadd.xlane.f32.xlu1 %v8153_v38  ;;  %v7956_v62 = vadd.f32 %v10727_v5, %v15036_v9  ;;  %v8162_v38 = vsel %vm388_vm0, %v8122_v52, 0.0 }
0x13fd   : > { %v10728_v57 = vpop.f32.mrb[190].mxu1  ;;  %8157 = vadd.xlane.f32.xlu0 %v8156_v34  ;;  %v7948_v0 = vadd.f32 %v7947_v20, %v15036_v9  ;;  %v11077_v34 = vld [vmem:[%s16086_s4 + $0x10] sm:$0xff]  }
0x13fe   : > { %v7950_v61 = vpop.f32.mrb[191].mxu1  ;;  %v7959_v63 = vadd.f32 %v10728_v57, %v15036_v9  ;;  %v15171_v21 = vadd.f32 %v7956_v62, %v16207_v17  ;;  %10737 = vmatprep.subr.bf16.mxu0 %v11077_v34  ;;  %v16208_v20 = vld [vmem:[#allocation19_spill] sm:$0xff]  ;;  %v16215_v17 = vld [vmem:[#allocation28_spill] sm:$0xff] }
0x13ff   : > { %v7951_v33 = vadd.f32 %v7950_v61, %v15036_v9  ;;  %v15185_v61 = vadd.f32 %v7948_v0, %v16208_v20  ;;  %10738 = vmatpush3.bf16.msra.mxu0 %v11077_v34  ;;  %v16216_v34 = vld [vmem:[#allocation26_spill] sm:$0xff] }
0x1400   : > { %8052 = vadd.xlane.f32.xlu1 %v8051_v27  ;;  %v15151_v44 = vadd.f32 %v7959_v63, %v16205_v53  ;;  %v8060_v30 = vsel %vm388_vm0, %v15171_v21, 0.0 }
0x1401   : > { %8151 = vadd.xlane.f32.xlu0 %v8150_v28  ;;  %v15163_v13 = vadd.f32 %v7951_v33, %v16206_v43  ;;  %v8054_v56 = vsel %vm388_vm0, %v15185_v61, 0.0  ;;  %v8128_v28 = vmul.f32 %v15171_v21, %v15171_v21  ;;  %v16214_v43 = vld [vmem:[#allocation27_spill] sm:$0xff] }
0x1402   : > { %v8063_v10 = vsel %vm388_vm0, %v15151_v44, 0.0  ;;  %v8129_v57 = vmul.f32 %v15151_v44, %v15151_v44 }
0x1403   : > { %v8057_v59 = vsel %vm388_vm0, %v15163_v13, 0.0  ;;  %v8127_v60 = vmul.f32 %v15163_v13, %v15163_v13 }
0x1404   : > { %v10731_v39 = vpop.f32.mrb[192].mxu1  ;;  %8046 = vadd.xlane.f32.xlu1 %v8045_v7  ;;  %v8183_v27 = vsel %vm388_vm0, %v8129_v57, 0.0  ;;  %v16209_v7 = vld [vmem:[#allocation22_spill] sm:$0xff] }
0x1405   : > { %v15135_v48 = vadd.f32 %v10731_v39, %v15036_v9  ;;  %v7963_v58 = vpop.f32.mrb[193].mxu1  ;;  %8049 = vadd.xlane.f32.xlu0 %v8048_v51  ;;  %v8177_v19 = vsel %vm388_vm0, %v8127_v60, 0.0  ;;  %v8180_v39 = vsel %vm388_vm0, %v8128_v28, 0.0  ;;  %v8126_v51 = vmul.f32 %v15185_v61, %v15185_v61  ;;  %v11080_v28 = vld [vmem:[%s16088_s6 + $0x28] sm:$0xff]  }
0x1406   : > { %v15138_v18 = vadd.f32 %v7963_v58, %v15036_v9  ;;  %v10732_v32 = vpop.f32.mrb[194].mxu1  ;;  %v16210_v58 = vld [vmem:[#allocation24_spill] sm:$0xff] }
0x1407   : > { %v7975_v46 = vadd.f32 %v10732_v32, %v15036_v9  ;;  %v7966_v4 = vpop.f32.mrb[195].mxu1 }
0x1408   : > { %v7967_v45 = vadd.f32 %v7966_v4, %v15036_v9  ;;  %8172 = vadd.xlane.f32.xlu1 %v8171_v42  ;;  %v16211_v4 = vld [vmem:[#allocation25_spill] sm:$0xff] }
0x1409   : > { %8043 = vadd.xlane.f32.xlu0 %v8042_v14  ;;  %v15200_v22 = vadd.f32 %v7975_v46, %v16209_v7  ;;  %v15213_v42 = vadd.f32 %v15135_v48, %v16211_v4  ;;  %v8174_v46 = vsel %vm388_vm0, %v8126_v51, 0.0 }
0x140a   : > { %v15207_v32 = vadd.f32 %v7967_v45, %v16210_v58  ;;  %v15222_v45 = vadd.f32 %v15138_v18, %v16212_v29  ;;  %v16213_v18 = vld [vmem:[#allocation29_spill] sm:$0xff] }
0x140b   : > { %v8075_v63 = vsel %vm388_vm0, %v15200_v22, 0.0  ;;  %v8133_v14 = vmul.f32 %v15200_v22, %v15200_v22  ;;  %v8072_v53 = vsel %vm388_vm0, %v15213_v42, 0.0  ;;  %v8132_v62 = vmul.f32 %v15213_v42, %v15213_v42 }
0x140c   : > { %8166 = vadd.xlane.f32.xlu1 %v8165_v49  ;;  %v8069_v2 = vsel %vm388_vm0, %v15207_v32, 0.0  ;;  %v8131_v33 = vmul.f32 %v15207_v32, %v15207_v32  ;;  %v8066_v49 = vsel %vm388_vm0, %v15222_v45, 0.0 }
0x140d   : > { %v10735_v55 = vpop.f32.mrb[196].mxu1  ;;  %8169 = vadd.xlane.f32.xlu0 %v8168_v54  ;;  %v8195_v48 = vsel %vm388_vm0, %v8133_v14, 0.0 }
0x140e   : > { %v15160_v6 = vadd.f32 %v10735_v55, %v15036_v9  ;;  %v7979_v47 = vpop.f32.mrb[197].mxu1  ;;  %v8189_v52 = vsel %vm388_vm0, %v8131_v33, 0.0  ;;  %v8192_v55 = vsel %vm388_vm0, %v8132_v62, 0.0 }
0x140f   : > { %v15166_v36 = vadd.f32 %v7979_v47, %v15036_v9  ;;  %v10736_v1 = vpop.f32.mrb[198].mxu1  ;;  %v8130_v47 = vmul.f32 %v15222_v45, %v15222_v45 }
0x1410   : > { %v7991_v11 = vadd.f32 %v10736_v1, %v15036_v9  ;;  %v7982_v5 = vpop.f32.mrb[199].mxu1  ;;  %8064 = vadd.xlane.f32.xlu1 %v8063_v10  ;;  %v15247_v0 = vadd.f32 %v15160_v6, %v16215_v17 }
0x1411   : > { %v7983_v24 = vadd.f32 %v7982_v5, %v15036_v9  ;;  %8163 = vadd.xlane.f32.xlu0 %v8162_v38  ;;  %v11078_v9 = vld [vmem:[%s16086_s4 + $0x18] sm:$0xff]  }
0x1412   : > { %10739 = vmatprep.subr.bf16.mxu0 %v11078_v9  ;;  %v15234_v54 = vadd.f32 %v7991_v11, %v16213_v18  ;;  %v8186_v11 = vsel %vm388_vm0, %v8130_v47, 0.0 }
0x1413   : > { %10740 = vmatpush3.bf16.msra.mxu0 %v11078_v9  ;;  %v15241_v1 = vadd.f32 %v7983_v24, %v16214_v43  ;;  %v15256_v24 = vadd.f32 %v15166_v36, %v16216_v34 }
0x1414   : > { %8058 = vadd.xlane.f32.xlu1 %v8057_v59  ;;  %v8087_v10 = vsel %vm388_vm0, %v15234_v54, 0.0  ;;  %v8084_v59 = vsel %vm388_vm0, %v15247_v0, 0.0  ;;  %v8137_v57 = vmul.f32 %v15234_v54, %v15234_v54 }
0x1415   : > { %8061 = vadd.xlane.f32.xlu0 %v8060_v30  ;;  %v8081_v5 = vsel %vm388_vm0, %v15241_v1, 0.0  ;;  %v8135_v38 = vmul.f32 %v15241_v1, %v15241_v1  ;;  %v8078_v20 = vsel %vm388_vm0, %v15256_v24, 0.0  ;;  %v8134_v30 = vmul.f32 %v15256_v24, %v15256_v24 }
0x1416   : > { %v8207_v36 = vsel %vm388_vm0, %v8137_v57, 0.0 }
0x1417   : > { %v8201_v6 = vsel %vm388_vm0, %v8135_v38, 0.0  ;;  %v8198_v9 = vsel %vm388_vm0, %v8134_v30, 0.0 }
0x1418   : > { %8184 = vadd.xlane.f32.xlu1 %v8183_v27  ;;  %v8136_v27 = vmul.f32 %v15247_v0, %v15247_v0 }
0x1419   : > { %8055 = vadd.xlane.f32.xlu0 %v8054_v56  ;;  %v11079_v56 = vld [vmem:[%s16088_s6 + $0x20] sm:$0xff]  }
0x141a   : > { %v8204_v60 = vsel %vm388_vm0, %v8136_v27, 0.0  ;;  %10765 = vmatprep.subr.bf16.mxu1 %v11079_v56 }
0x141b   : > { %10766 = vmatpush3.bf16.msra.mxu1 %v11079_v56 }
0x141c   : > { %8178 = vadd.xlane.f32.xlu1 %v8177_v19  ;;  %10767 = vmatprep.subr.bf16.mxu1 %v11080_v28 }
0x141d   : > { %8181 = vadd.xlane.f32.xlu0 %v8180_v39 }
0x141f   : > { %10768 = vmatpush3.bf16.msra.mxu1 %v11080_v28 }
0x1420   : > { %8076 = vadd.xlane.f32.xlu1 %v8075_v63 }
0x1421   : > { %8175 = vadd.xlane.f32.xlu0 %v8174_v46 }
0x1424   : > { %8070 = vadd.xlane.f32.xlu1 %v8069_v2 }
0x1425   : > { %8073 = vadd.xlane.f32.xlu0 %v8072_v53 }
0x1428   : > { %8196 = vadd.xlane.f32.xlu1 %v8195_v48 }
0x1429   : > { %8067 = vadd.xlane.f32.xlu0 %v8066_v49 }
0x142c   : > { %8190 = vadd.xlane.f32.xlu1 %v8189_v52 }
0x142d   : > { %8193 = vadd.xlane.f32.xlu0 %v8192_v55 }
0x1430   : > { %8088 = vadd.xlane.f32.xlu1 %v8087_v10 }
0x1431   : > { %8187 = vadd.xlane.f32.xlu0 %v8186_v11 }
0x1434   : > { %8082 = vadd.xlane.f32.xlu1 %v8081_v5 }
0x1435   : > { %8085 = vadd.xlane.f32.xlu0 %v8084_v59 }
0x1438   : > { %8202 = vadd.xlane.f32.xlu1 %v8201_v6 }
0x1439   : > { %8079 = vadd.xlane.f32.xlu0 %v8078_v20 }
0x143c   : > { %8208 = vadd.xlane.f32.xlu1 %v8207_v36 }
0x143d   : > { %8199 = vadd.xlane.f32.xlu0 %v8198_v9 }
0x1441   : > { %8205 = vadd.xlane.f32.xlu0 %v8204_v60 }
0x146e   : > { %v8026_v7 = vpop.xlane.xlu0 %8025 }
0x146f   : > { %v8092_v4 = vmul.f32 0.03125, %v8026_v7 }
0x1471   : > { %v8023_v19 = vpop.xlane.xlu1 %8022  ;;  %v8236_v49 = vmul.f32 %v8092_v4, %v8092_v4 }
0x1472   : > { %v8020_v39 = vpop.xlane.xlu0 %8019  ;;  %v8091_v58 = vmul.f32 0.03125, %v8023_v19 }
0x1473   : > { %v8090_v62 = vmul.f32 0.03125, %v8020_v39  ;;  %v8284_v39 = vsub.f32 %v15041_v25, %v8092_v4  ;;  %v16217_v25 = vsub.s32 1, %v16191_v40 }
0x1474   : > { %v8235_v53 = vmul.f32 %v8091_v58, %v8091_v58 }
0x1475   : > { %v8149_v51 = vpop.xlane.xlu1 %8148  ;;  %v8234_v5 = vmul.f32 %v8090_v62, %v8090_v62  ;;  %v15298_v4 = vrot.slane %v15031_v3, %v16217_v25 }
0x1476   : > { %v8029_v63 = vpop.xlane.xlu0 %8028  ;;  %v8213_v2 = vmul.f32 0.03125, %v8149_v51 }
0x1477   : > { %v8093_v46 = vmul.f32 0.03125, %v8029_v63 }
0x1479   : > { %v8237_v14 = vmul.f32 %v8093_v46, %v8093_v46  ;;  %v8143_v29 = vpop.xlane.xlu1 %8142 }
0x147a   : > { %v8211_v48 = vmul.f32 0.03125, %v8143_v29  ;;  %v8146_v33 = vpop.xlane.xlu0 %8145 }
0x147b   : > { %v8261_v18 = vsub.f32 %v8213_v2, %v8237_v14  ;;  %v8212_v52 = vmul.f32 0.03125, %v8146_v33  ;;  %v8283_v2 = vsub.f32 %v15054_v37, %v8091_v58 }
0x147c   : > { %v8259_v55 = vsub.f32 %v8211_v48, %v8235_v53 }
0x147d   : > { %v8309_v47 = vadd.f32 1e-05, %v8261_v18  ;;  %v8260_v43 = vsub.f32 %v8212_v52, %v8236_v49  ;;  %v8041_v10 = vpop.xlane.xlu1 %8040  ;;  %v8285_v49 = vsub.f32 %v15049_v8, %v8093_v46 }
0x147e   : > { %v8307_v17 = vadd.f32 1e-05, %v8259_v55  ;;  %v8140_v11 = vpop.xlane.xlu0 %8139  ;;  %v15278_v57 = vmul.f32 0.03125, %v8041_v10 }
0x147f   : > { %11563 = vrsqrt.f32 %v8309_v47  ;;  %v8308_v38 = vadd.f32 1e-05, %v8260_v43  ;;  %v8210_v34 = vmul.f32 0.03125, %v8140_v11  ;;  %v8282_v11 = vsub.f32 %v15046_v41, %v8090_v62 }
0x1480   : > { %11565 = vrsqrt.f32 %v8307_v17  ;;  %v8241_v9 = vmul.f32 %v15278_v57, %v15278_v57 }
0x1481   : > { %11567 = vrsqrt.f32 %v8308_v38  ;;  %v8258_v59 = vsub.f32 %v8210_v34, %v8234_v5  ;;  %v8035_v6 = vpop.xlane.xlu1 %8034 }
0x1482   : > { %v8038_v20 = vpop.xlane.xlu0 %8037  ;;  %v15282_v27 = vmul.f32 0.03125, %v8035_v6 }
0x1483   : > { %v8306_v30 = vadd.f32 1e-05, %v8258_v59  ;;  %v15284_v28 = vmul.f32 0.03125, %v8038_v20  ;;  %v16218_v20 = vsub.s32 2, %v16191_v40 }
0x1484   : > { %v8239_v14 = vmul.f32 %v15282_v27, %v15282_v27 }
0x1485   : > { %11569 = vrsqrt.f32 %v8306_v30  ;;  %v8161_v36 = vpop.xlane.xlu1 %8160  ;;  %v8240_v18 = vmul.f32 %v15284_v28, %v15284_v28  ;;  %v15307_v30 = vrot.slane %v15031_v3, %v16218_v20 }
0x1486   : > { %v8217_v60 = vmul.f32 0.03125, %v8161_v36  ;;  %v8032_v56 = vpop.xlane.xlu0 %8031 }
0x1487   : > { %v15290_v29 = vmul.f32 0.03125, %v8032_v56 }
0x1488   : > { %v8265_v7 = vsub.f32 %v8217_v60, %v8241_v9 }
0x1489   : > { %v11564_v19 = vpop.eup %11563  ;;  %v8155_v51 = vpop.xlane.xlu1 %8154  ;;  %v8238_v8 = vmul.f32 %v15290_v29, %v15290_v29 }
0x148a   : > { %v11566_v63 = vpop.eup %11565  ;;  %v8215_v53 = vmul.f32 0.03125, %v8155_v51  ;;  %v8158_v48 = vpop.xlane.xlu0 %8157  ;;  %v8313_v52 = vadd.f32 1e-05, %v8265_v7  ;;  %v8357_v43 = vmul.f32 %v11564_v19, %v8285_v49 }
0x148b   : > { %v11568_v33 = vpop.eup %11567  ;;  %v8216_v55 = vmul.f32 0.03125, %v8158_v48  ;;  %v8355_v47 = vmul.f32 %v11566_v63, %v8283_v2 }
0x148c   : > { %v8356_v37 = vmul.f32 %v11568_v33, %v8284_v39  ;;  %v8263_v58 = vsub.f32 %v8215_v53, %v8239_v14  ;;  %11571 = vrsqrt.f32 %v8313_v52  ;;  %v8385_v62 = vmul.f32 %v15298_v4, %v8357_v43 }
0x148d   : > { %v8264_v10 = vsub.f32 %v8216_v55, %v8240_v18  ;;  %v8053_v17 = vpop.xlane.xlu1 %8052  ;;  %v8383_v41 = vmul.f32 %v15298_v4, %v8355_v47 }
0x148e   : > { %v8311_v46 = vadd.f32 1e-05, %v8263_v58  ;;  %v8152_v5 = vpop.xlane.xlu0 %8151  ;;  %v8384_v6 = vmul.f32 %v15298_v4, %v8356_v37  ;;  %v15311_v56 = vmul.f32 0.03125, %v8053_v17  ;;  %v15324_v2 = vadd.f32 %v15307_v30, %v8385_v62 }
0x148f   : > { %v11570_v38 = vpop.eup %11569  ;;  %v8312_v34 = vadd.f32 1e-05, %v8264_v10  ;;  %v8214_v59 = vmul.f32 0.03125, %v8152_v5  ;;  %v15321_v63 = vadd.f32 %v15307_v30, %v8383_v41  ;;  %v8287_v58 = vsub.f32 %v15080_v35, %v15282_v27 }
0x1490   : > { %11573 = vrsqrt.f32 %v8311_v46  ;;  %v8354_v36 = vmul.f32 %v11570_v38, %v8282_v11  ;;  %v15315_v51 = vadd.f32 %v15307_v30, %v8384_v6  ;;  %v8245_v53 = vmul.f32 %v15311_v56, %v15311_v56 }
0x1491   : > { %11575 = vrsqrt.f32 %v8312_v34  ;;  %v8262_v9 = vsub.f32 %v8214_v59, %v8238_v8  ;;  %v8047_v60 = vpop.xlane.xlu1 %8046  ;;  %v8288_v10 = vsub.f32 %v15085_v23, %v15284_v28  ;;  %v8289_v38 = vsub.f32 %v15071_v15, %v15278_v57 }
0x1492   : > { %v8050_v7 = vpop.xlane.xlu0 %8049  ;;  %v8382_v19 = vmul.f32 %v15298_v4, %v8354_v36  ;;  %v15328_v48 = vmul.f32 0.03125, %v8047_v60  ;;  %v8435_v55 = vpack.c.bf16 %v15324_v2, %v15315_v51  ;;  %v8286_v41 = vsub.f32 %v15094_v50, %v15290_v29 }
0x1493   : > { %v8310_v39 = vadd.f32 1e-05, %v8262_v9  ;;  %v15332_v52 = vmul.f32 0.03125, %v8050_v7 }
0x1494   : > { %v15318_v3 = vadd.f32 %v15307_v30, %v8382_v19  ;;  %v8243_v17 = vmul.f32 %v15328_v48, %v15328_v48 }
0x1495   : > { %11577 = vrsqrt.f32 %v8310_v39  ;;  %v8173_v14 = vpop.xlane.xlu1 %8172  ;;  %v8244_v35 = vmul.f32 %v15332_v52, %v15332_v52 }
0x1496   : > { %v8221_v33 = vmul.f32 0.03125, %v8173_v14  ;;  %v8044_v49 = vpop.xlane.xlu0 %8043  ;;  %v8434_v18 = vpack.c.bf16 %v15321_v63, %v15318_v3  ;;  %v11572_v37 = vpop.eup %11571 }
0x1497   : > { %v15344_v11 = vmul.f32 0.03125, %v8044_v49  ;;  %v8361_v36 = vmul.f32 %v11572_v37, %v8289_v38 }
0x1498   : > { %v8269_v25 = vsub.f32 %v8221_v33, %v8245_v53  ;;  %10741 = vmatprep.mubr.msk.bf16.mxu0 %vm388_vm0, %v8434_v18 }
0x1499   : > { %v8167_v47 = vpop.xlane.xlu1 %8166  ;;  %10742 = vmatmul.mubr.msk.bf16.vlgmr.msra.gmra.mrb[200].mxu0 %vm388_vm0, %v8435_v55  ;;  %v8242_v62 = vmul.f32 %v15344_v11, %v15344_v11  ;;  %v8389_v50 = vmul.f32 %v15298_v4, %v8361_v36 }
0x149a   : > { %v11574_v43 = vpop.eup %11573  ;;  %v8219_v8 = vmul.f32 0.03125, %v8167_v47  ;;  %v8170_v46 = vpop.xlane.xlu0 %8169  ;;  %v8317_v27 = vadd.f32 1e-05, %v8269_v25 }
0x149b   : > { %v11576_v5 = vpop.eup %11575  ;;  %v8220_v34 = vmul.f32 0.03125, %v8170_v46  ;;  %v8359_v6 = vmul.f32 %v11574_v43, %v8287_v58  ;;  %v15370_v43 = vadd.f32 %v15307_v30, %v8389_v50 }
0x149c   : > { %v8267_v59 = vsub.f32 %v8219_v8, %v8243_v17  ;;  %v8360_v20 = vmul.f32 %v11576_v5, %v8288_v10  ;;  %11579 = vrsqrt.f32 %v8317_v27 }
0x149d   : > { %v8268_v23 = vsub.f32 %v8220_v34, %v8244_v35  ;;  %v8065_v28 = vpop.xlane.xlu1 %8064  ;;  %v8387_v14 = vmul.f32 %v15298_v4, %v8359_v6 }
0x149e   : > { %v8315_v9 = vadd.f32 1e-05, %v8267_v59  ;;  %v8164_v60 = vpop.xlane.xlu0 %8163  ;;  %v8388_v19 = vmul.f32 %v15298_v4, %v8360_v20  ;;  %v15357_v29 = vmul.f32 0.03125, %v8065_v28  ;;  %v8291_v59 = vsub.f32 %v15116_v16, %v15328_v48 }
0x149f   : > { %v11578_v15 = vpop.eup %11577  ;;  %v8316_v57 = vadd.f32 1e-05, %v8268_v23  ;;  %v8218_v7 = vmul.f32 0.03125, %v8164_v60  ;;  %v15367_v58 = vadd.f32 %v15307_v30, %v8387_v14  ;;  %v8292_v23 = vsub.f32 %v15121_v31, %v15332_v52 }
0x14a0   : > { %11581 = vrsqrt.f32 %v8315_v9  ;;  %v8358_v39 = vmul.f32 %v11578_v15, %v8286_v41  ;;  %v15361_v25 = vadd.f32 %v15307_v30, %v8388_v19  ;;  %v8249_v10 = vmul.f32 %v15357_v29, %v15357_v29 }
0x14a1   : > { %11583 = vrsqrt.f32 %v8316_v57  ;;  %v8266_v53 = vsub.f32 %v8218_v7, %v8242_v62  ;;  %v8059_v33 = vpop.xlane.xlu1 %8058  ;;  %v8293_v60 = vsub.f32 %v15107_v26, %v15311_v56  ;;  %v8290_v14 = vsub.f32 %v15130_v12, %v15344_v11 }
0x14a2   : > { %v8062_v49 = vpop.xlane.xlu0 %8061  ;;  %v8386_v18 = vmul.f32 %v15298_v4, %v8358_v39  ;;  %v15374_v17 = vmul.f32 0.03125, %v8059_v33  ;;  %v8437_v35 = vpack.c.bf16 %v15370_v43, %v15361_v25 }
0x14a3   : > { %v8314_v55 = vadd.f32 1e-05, %v8266_v53  ;;  %v15378_v38 = vmul.f32 0.03125, %v8062_v49 }
0x14a4   : > { %v15364_v37 = vadd.f32 %v15307_v30, %v8386_v18  ;;  %v8247_v28 = vmul.f32 %v15374_v17, %v15374_v17 }
0x14a5   : > { %11585 = vrsqrt.f32 %v8314_v55  ;;  %v8185_v47 = vpop.xlane.xlu1 %8184  ;;  %v8248_v16 = vmul.f32 %v15378_v38, %v15378_v38 }
0x14a6   : > { %v8225_v8 = vmul.f32 0.03125, %v8185_v47  ;;  %v8056_v46 = vpop.xlane.xlu0 %8055  ;;  %v8436_v5 = vpack.c.bf16 %v15367_v58, %v15364_v37  ;;  %v11580_v34 = vpop.eup %11579 }
0x14a7   : > { %v15390_v36 = vmul.f32 0.03125, %v8056_v46  ;;  %v8365_v39 = vmul.f32 %v11580_v34, %v8293_v60 }
0x14a8   : > { %v8273_v27 = vsub.f32 %v8225_v8, %v8249_v10  ;;  %10745 = vmatprep.mubr.msk.bf16.mxu0 %vm388_vm0, %v8436_v5 }
0x14a9   : > { %v8179_v6 = vpop.xlane.xlu1 %8178  ;;  %10746 = vmatmul.mubr.msk.bf16.gmra.mrb[204].mxu0 %vm388_vm0, %v8437_v35  ;;  %v8246_v53 = vmul.f32 %v15390_v36, %v15390_v36  ;;  %v8393_v12 = vmul.f32 %v15298_v4, %v8365_v39 }
0x14aa   : > { %v11582_v20 = vpop.eup %11581  ;;  %v8223_v41 = vmul.f32 0.03125, %v8179_v6  ;;  %v8182_v62 = vpop.xlane.xlu0 %8181  ;;  %v8321_v48 = vadd.f32 1e-05, %v8273_v27 }
0x14ab   : > { %v11584_v9 = vpop.eup %11583  ;;  %v8224_v15 = vmul.f32 0.03125, %v8182_v62  ;;  %v8363_v7 = vmul.f32 %v11582_v20, %v8291_v59  ;;  %v15416_v20 = vadd.f32 %v15307_v30, %v8393_v12 }
0x14ac   : > { %v8271_v57 = vsub.f32 %v8223_v41, %v8247_v28  ;;  %v8364_v19 = vmul.f32 %v11584_v9, %v8292_v23  ;;  %11587 = vrsqrt.f32 %v8321_v48 }
0x14ad   : > { %v8272_v31 = vsub.f32 %v8224_v15, %v8248_v16  ;;  %v8077_v52 = vpop.xlane.xlu1 %8076  ;;  %v8391_v47 = vmul.f32 %v15298_v4, %v8363_v7 }
0x14ae   : > { %v8319_v33 = vadd.f32 1e-05, %v8271_v57  ;;  %v8176_v50 = vpop.xlane.xlu0 %8175  ;;  %v8392_v18 = vmul.f32 %v15298_v4, %v8364_v19  ;;  %v15403_v11 = vmul.f32 0.03125, %v8077_v52  ;;  %v8295_v57 = vsub.f32 %v15163_v13, %v15374_v17 }
0x14af   : > { %v11586_v26 = vpop.eup %11585  ;;  %v8320_v56 = vadd.f32 1e-05, %v8272_v31  ;;  %v8222_v49 = vmul.f32 0.03125, %v8176_v50  ;;  %v15413_v59 = vadd.f32 %v15307_v30, %v8391_v47  ;;  %v8296_v31 = vsub.f32 %v15171_v21, %v15378_v38 }
0x14b0   : > { %11589 = vrsqrt.f32 %v8319_v33  ;;  %v8362_v55 = vmul.f32 %v11586_v26, %v8290_v14  ;;  %v15407_v27 = vadd.f32 %v15307_v30, %v8392_v18  ;;  %v8253_v23 = vmul.f32 %v15403_v11, %v15403_v11 }
0x14b1   : > { %11591 = vrsqrt.f32 %v8320_v56  ;;  %v8270_v10 = vsub.f32 %v8222_v49, %v8246_v53  ;;  %v8071_v8 = vpop.xlane.xlu1 %8070  ;;  %v8297_v50 = vsub.f32 %v15151_v44, %v15357_v29  ;;  %v8294_v47 = vsub.f32 %v15185_v61, %v15390_v36 }
0x14b2   : > { %v8074_v46 = vpop.xlane.xlu0 %8073  ;;  %v8390_v5 = vmul.f32 %v15298_v4, %v8362_v55  ;;  %v15420_v28 = vmul.f32 0.03125, %v8071_v8  ;;  %v8439_v16 = vpack.c.bf16 %v15416_v20, %v15407_v27 }
0x14b3   : > { %v8318_v35 = vadd.f32 1e-05, %v8270_v10  ;;  %v15424_v60 = vmul.f32 0.03125, %v8074_v46 }
0x14b4   : > { %v15410_v34 = vadd.f32 %v15307_v30, %v8390_v5  ;;  %v8251_v52 = vmul.f32 %v15420_v28, %v15420_v28 }
0x14b5   : > { %11593 = vrsqrt.f32 %v8318_v35  ;;  %v8197_v6 = vpop.xlane.xlu1 %8196  ;;  %v8252_v13 = vmul.f32 %v15424_v60, %v15424_v60 }
0x14b6   : > { %v8229_v41 = vmul.f32 0.03125, %v8197_v6  ;;  %v8068_v62 = vpop.xlane.xlu0 %8067  ;;  %v8438_v9 = vpack.c.bf16 %v15413_v59, %v15410_v34  ;;  %v11588_v15 = vpop.eup %11587 }
0x14b7   : > { %v15436_v39 = vmul.f32 0.03125, %v8068_v62  ;;  %v8369_v55 = vmul.f32 %v11588_v15, %v8297_v50 }
0x14b8   : > { %v8277_v48 = vsub.f32 %v8229_v41, %v8253_v23  ;;  %10749 = vmatprep.mubr.msk.bf16.mxu0 %vm388_vm0, %v8438_v9 }
0x14b9   : > { %v8191_v7 = vpop.xlane.xlu1 %8190  ;;  %10750 = vmatmul.mubr.msk.bf16.gmra.mrb[208].mxu0 %vm388_vm0, %v8439_v16  ;;  %v8250_v10 = vmul.f32 %v15436_v39, %v15436_v39  ;;  %v8397_v61 = vmul.f32 %v15298_v4, %v8369_v55 }
0x14ba   : > { %v11590_v19 = vpop.eup %11589  ;;  %v8227_v14 = vmul.f32 0.03125, %v8191_v7  ;;  %v8194_v53 = vpop.xlane.xlu0 %8193  ;;  %v8325_v17 = vadd.f32 1e-05, %v8277_v48 }
0x14bb   : > { %v11592_v33 = vpop.eup %11591  ;;  %v8228_v26 = vmul.f32 0.03125, %v8194_v53  ;;  %v8367_v49 = vmul.f32 %v11590_v19, %v8295_v57  ;;  %v15462_v19 = vadd.f32 %v15307_v30, %v8397_v61 }
0x14bc   : > { %v8275_v56 = vsub.f32 %v8227_v14, %v8251_v52  ;;  %v8368_v18 = vmul.f32 %v11592_v33, %v8296_v31  ;;  %11595 = vrsqrt.f32 %v8325_v17 }
0x14bd   : > { %v8276_v21 = vsub.f32 %v8228_v26, %v8252_v13  ;;  %v8089_v38 = vpop.xlane.xlu1 %8088  ;;  %v8395_v6 = vmul.f32 %v15298_v4, %v8367_v49 }
0x14be   : > { %v8323_v8 = vadd.f32 1e-05, %v8275_v56  ;;  %v8188_v12 = vpop.xlane.xlu0 %8187  ;;  %v8396_v5 = vmul.f32 %v15298_v4, %v8368_v18  ;;  %v15464_v31 = vmul.f32 0.03125, %v8089_v38  ;;  %v8299_v56 = vsub.f32 %v15207_v32, %v15420_v28 }
0x14bf   : > { %v11594_v44 = vpop.eup %11593  ;;  %v8324_v29 = vadd.f32 1e-05, %v8276_v21  ;;  %v8226_v46 = vmul.f32 0.03125, %v8188_v12  ;;  %v15459_v57 = vadd.f32 %v15307_v30, %v8395_v6  ;;  %v8300_v21 = vsub.f32 %v15213_v42, %v15424_v60 }
0x14c0   : > { %11597 = vrsqrt.f32 %v8323_v8  ;;  %v8366_v35 = vmul.f32 %v11594_v44, %v8294_v47  ;;  %v15453_v48 = vadd.f32 %v15307_v30, %v8396_v5  ;;  %v8257_v38 = vmul.f32 %v15464_v31, %v15464_v31 }
0x14c1   : > { %11599 = vrsqrt.f32 %v8324_v29  ;;  %v8274_v23 = vsub.f32 %v8226_v46, %v8250_v10  ;;  %v8083_v41 = vpop.xlane.xlu1 %8082  ;;  %v8301_v12 = vsub.f32 %v15200_v22, %v15403_v11  ;;  %v8298_v42 = vsub.f32 %v15222_v45, %v15436_v39 }
0x14c2   : > { %v15449_v36 = vmul.f32 0.03125, %v8083_v41  ;;  %v8086_v62 = vpop.xlane.xlu0 %8085  ;;  %v8394_v9 = vmul.f32 %v15298_v4, %v8366_v35  ;;  %v8441_v13 = vpack.c.bf16 %v15462_v19, %v15453_v48 }
0x14c3   : > { %v8322_v16 = vadd.f32 1e-05, %v8274_v23  ;;  %v8112_v44 = vmul.f32 0.03125, %v8086_v62 }
0x14c4   : > { %v15456_v15 = vadd.f32 %v15307_v30, %v8394_v9  ;;  %v8255_v52 = vmul.f32 %v15449_v36, %v15449_v36 }
0x14c5   : > { %11601 = vrsqrt.f32 %v8322_v16  ;;  %v8203_v7 = vpop.xlane.xlu1 %8202  ;;  %v8256_v61 = vmul.f32 %v8112_v44, %v8112_v44 }
0x14c6   : > { %v8231_v14 = vmul.f32 0.03125, %v8203_v7  ;;  %v8080_v53 = vpop.xlane.xlu0 %8079  ;;  %v8440_v33 = vpack.c.bf16 %v15459_v57, %v15456_v15  ;;  %v11596_v26 = vpop.eup %11595 }
0x14c7   : > { %v8110_v50 = vmul.f32 0.03125, %v8080_v53  ;;  %v8373_v6 = vmul.f32 %v11596_v26, %v8301_v12  ;;  %v8303_v26 = vsub.f32 %v15241_v1, %v15449_v36 }
0x14c8   : > { %v8279_v17 = vsub.f32 %v8231_v14, %v8255_v52  ;;  %10753 = vmatprep.mubr.msk.bf16.mxu0 %vm388_vm0, %v8440_v33 }
0x14c9   : > { %v8209_v49 = vpop.xlane.xlu1 %8208  ;;  %10754 = vmatmul.mubr.msk.bf16.gmra.mrb[212].mxu0 %vm388_vm0, %v8441_v13  ;;  %v8254_v29 = vmul.f32 %v8110_v50, %v8110_v50  ;;  %v8401_v52 = vmul.f32 %v15298_v4, %v8373_v6 }
0x14ca   : > { %v11598_v18 = vpop.eup %11597  ;;  %v8327_v55 = vadd.f32 1e-05, %v8279_v17  ;;  %v8233_v47 = vmul.f32 0.03125, %v8209_v49  ;;  %v8200_v10 = vpop.xlane.xlu0 %8199 }
0x14cb   : > { %v11600_v8 = vpop.eup %11599  ;;  %v8230_v32 = vmul.f32 0.03125, %v8200_v10  ;;  %v8371_v46 = vmul.f32 %v11598_v18, %v8299_v56  ;;  %v15498_v13 = vadd.f32 %v15307_v30, %v8401_v52 }
0x14cc   : > { %11603 = vrsqrt.f32 %v8327_v55  ;;  %v8281_v28 = vsub.f32 %v8233_v47, %v8257_v38  ;;  %v8372_v5 = vmul.f32 %v11600_v8, %v8300_v21  ;;  %v8305_v38 = vsub.f32 %v15234_v54, %v15464_v31 }
0x14cd   : > { %v8278_v35 = vsub.f32 %v8230_v32, %v8254_v29  ;;  %v8399_v62 = vmul.f32 %v15298_v4, %v8371_v46  ;;  %v8302_v55 = vsub.f32 %v15256_v24, %v8110_v50  ;;  %v8304_v8 = vsub.f32 %v15247_v0, %v8112_v44 }
0x14ce   : > { %v8329_v60 = vadd.f32 1e-05, %v8281_v28  ;;  %v8206_v23 = vpop.xlane.xlu0 %8205  ;;  %v8400_v22 = vmul.f32 %v15298_v4, %v8372_v5  ;;  %v11081_v5 = vld [vmem:[%s16088_s6 + $0x30] sm:$0xff]  }
0x14cf   : > { %v11602_v41 = vpop.eup %11601  ;;  %v8326_v9 = vadd.f32 1e-05, %v8278_v35  ;;  %v8232_v16 = vmul.f32 0.03125, %v8206_v23  ;;  %v15495_v33 = vadd.f32 %v15307_v30, %v8399_v62  ;;  %10769 = vmatprep.subr.bf16.mxu1 %v11081_v5 }
0x14d0   : > { %11605 = vrsqrt.f32 %v8329_v60  ;;  %v8370_v11 = vmul.f32 %v11602_v41, %v8298_v42  ;;  %v15489_v45 = vadd.f32 %v15307_v30, %v8400_v22  ;;  %10770 = vmatpush3.bf16.msra.mxu1 %v11081_v5 }
0x14d1   : > { %11607 = vrsqrt.f32 %v8326_v9  ;;  %v8280_v7 = vsub.f32 %v8232_v16, %v8256_v61 }
0x14d2   : > { %v8398_v14 = vmul.f32 %v15298_v4, %v8370_v11  ;;  %v8443_v49 = vpack.c.bf16 %v15498_v13, %v15489_v45 }
0x14d3   : > { %v8328_v53 = vadd.f32 1e-05, %v8280_v7 }
0x14d4   : > { %v15492_v39 = vadd.f32 %v15307_v30, %v8398_v14 }
0x14d5   : > { %11609 = vrsqrt.f32 %v8328_v53 }
0x14d6   : > { %v11604_v17 = vpop.eup %11603  ;;  %v8442_v56 = vpack.c.bf16 %v15495_v33, %v15492_v39 }
0x14d7   : > { %v8375_v18 = vmul.f32 %v11604_v17, %v8303_v26 }
0x14d8   : > { %10757 = vmatprep.mubr.msk.bf16.mxu0 %vm388_vm0, %v8442_v56 }
0x14d9   : > { %10758 = vmatmul.mubr.msk.bf16.gmra.mrb[216].mxu0 %vm388_vm0, %v8443_v49  ;;  %v8403_v1 = vmul.f32 %v15298_v4, %v8375_v18 }
0x14da   : > { %v11606_v21 = vpop.eup %11605 }
0x14db   : > { %v11608_v47 = vpop.eup %11607  ;;  %v8377_v36 = vmul.f32 %v11606_v21, %v8305_v38  ;;  %v15518_v28 = vadd.f32 %v15307_v30, %v8403_v1 }
0x14dc   : > { %v8374_v10 = vmul.f32 %v11608_v47, %v8302_v55 }
0x14dd   : > { %v8405_v54 = vmul.f32 %v15298_v4, %v8377_v36 }
0x14de   : > { %v8402_v12 = vmul.f32 %v15298_v4, %v8374_v10 }
0x14df   : > { %v11610_v29 = vpop.eup %11609  ;;  %v15529_v50 = vadd.f32 %v15307_v30, %v8405_v54 }
0x14e0   : > { %v15515_v32 = vadd.f32 %v15307_v30, %v8402_v12  ;;  %v8376_v46 = vmul.f32 %v11610_v29, %v8304_v8 }
0x14e2   : > { %v8444_v24 = vpack.c.bf16 %v15518_v28, %v15515_v32  ;;  %v8404_v31 = vmul.f32 %v15298_v4, %v8376_v46  ;;  %v11082_v4 = vld [vmem:[%s16088_s6 + $0x38] sm:$0xff]  }
0x14e3   : > { %10771 = vmatprep.subr.bf16.mxu1 %v11082_v4 }
0x14e4   : > { %10761 = vmatprep.mubr.msk.bf16.mxu0 %vm388_vm0, %v8444_v24  ;;  %v15526_v0 = vadd.f32 %v15307_v30, %v8404_v31  ;;  %10772 = vmatpush3.bf16.msra.mxu1 %v11082_v4  ;;  %v15543_v30 = vld [vmem:[%s16087_s5 + $0x1] ss:$0 sm:$0xff] }
0x14e6   : > { %v8445_v44 = vpack.c.bf16 %v15529_v50, %v15526_v0 }
0x14e8   : > { %10762 = vmatmul.mubr.msk.bf16.gmra.mrb[220].mxu0 %vm388_vm0, %v8445_v44 }
0x156c   : > { %v10743_v35 = vpop.f32.mrb[200].mxu0 }
0x156d   : > { %v8543_v6 = vadd.f32 %v10743_v35, %v15543_v30  ;;  %v8534_v42 = vpop.f32.mrb[201].mxu0 }
0x156e   : > { %v8535_v60 = vadd.f32 %v15543_v30, %v8534_v42  ;;  %v10744_v23 = vpop.f32.mrb[202].mxu0 }
0x156f   : > { %v8546_v41 = vadd.f32 %v10744_v23, %v15543_v30  ;;  %v8537_v61 = vpop.f32.mrb[203].mxu0  ;;  %v8631_v16 = vmax.f32 %v8543_v6, 0.0 }
0x1570   : > { %v8538_v9 = vadd.f32 %v15543_v30, %v8537_v61  ;;  %v8629_v11 = vmax.f32 %v8535_v60, 0.0 }
0x1571   : > { %v8632_v22 = vmax.f32 %v8546_v41, 0.0 }
0x1572   : > { %v8630_v62 = vmax.f32 %v8538_v9, 0.0 }
0x1573   : > { %v8654_v7 = vpack.c.bf16 %v8632_v22, %v8631_v16 }
0x1574   : > { %v8653_v52 = vpack.c.bf16 %v8630_v62, %v8629_v11 }
0x1576   : > { %10773 = vmatprep.mubr.msk.bf16.mxu1 %vm4210_vm4, %v8653_v52 }
0x1577   : > { %10774 = vmatmul.mubr.msk.bf16.vlgmr.msra.gmra.mrb[200].mxu1 %vm4210_vm4, %v8654_v7 }
0x157c   : > { %v10747_v14 = vpop.f32.mrb[204].mxu0 }
0x157d   : > { %v8559_v53 = vadd.f32 %v10747_v14, %v15543_v30  ;;  %v8550_v17 = vpop.f32.mrb[205].mxu0 }
0x157e   : > { %v8551_v26 = vadd.f32 %v15543_v30, %v8550_v17  ;;  %v10748_v56 = vpop.f32.mrb[206].mxu0 }
0x157f   : > { %v8562_v49 = vadd.f32 %v10748_v56, %v15543_v30  ;;  %v8553_v18 = vpop.f32.mrb[207].mxu0  ;;  %v8635_v38 = vmax.f32 %v8559_v53, 0.0 }
0x1580   : > { %v8554_v21 = vadd.f32 %v15543_v30, %v8553_v18  ;;  %v8633_v47 = vmax.f32 %v8551_v26, 0.0 }
0x1581   : > { %v8636_v55 = vmax.f32 %v8562_v49, 0.0 }
0x1582   : > { %v8634_v10 = vmax.f32 %v8554_v21, 0.0 }
0x1583   : > { %v8656_v1 = vpack.c.bf16 %v8636_v55, %v8635_v38 }
0x1584   : > { %v8655_v36 = vpack.c.bf16 %v8634_v10, %v8633_v47 }
0x1586   : > { %10777 = vmatprep.mubr.msk.bf16.mxu1 %vm4210_vm4, %v8655_v36 }
0x1587   : > { %10778 = vmatmul.mubr.msk.bf16.gmra.mrb[204].mxu1 %vm4210_vm4, %v8656_v1 }
0x158c   : > { %v10751_v8 = vpop.f32.mrb[208].mxu0 }
0x158d   : > { %v8575_v12 = vadd.f32 %v10751_v8, %v15543_v30  ;;  %v8566_v29 = vpop.f32.mrb[209].mxu0 }
0x158e   : > { %v8567_v46 = vadd.f32 %v15543_v30, %v8566_v29  ;;  %v10752_v54 = vpop.f32.mrb[210].mxu0 }
0x158f   : > { %v8578_v24 = vadd.f32 %v10752_v54, %v15543_v30  ;;  %v8569_v31 = vpop.f32.mrb[211].mxu0  ;;  %v8639_v5 = vmax.f32 %v8575_v12, 0.0 }
0x1590   : > { %v8570_v44 = vadd.f32 %v15543_v30, %v8569_v31  ;;  %v8637_v35 = vmax.f32 %v8567_v46, 0.0 }
0x1591   : > { %v8640_v4 = vmax.f32 %v8578_v24, 0.0 }
0x1592   : > { %v8638_v6 = vmax.f32 %v8570_v44, 0.0 }
0x1593   : > { %v8658_v42 = vpack.c.bf16 %v8640_v4, %v8639_v5 }
0x1594   : > { %v8657_v60 = vpack.c.bf16 %v8638_v6, %v8637_v35 }
0x1596   : > { %10781 = vmatprep.mubr.msk.bf16.mxu1 %vm4210_vm4, %v8657_v60 }
0x1597   : > { %10782 = vmatmul.mubr.msk.bf16.gmra.mrb[208].mxu1 %vm4210_vm4, %v8658_v42 }
0x159c   : > { %v10755_v23 = vpop.f32.mrb[212].mxu0 }
0x159d   : > { %v8591_v41 = vadd.f32 %v10755_v23, %v15543_v30  ;;  %v8582_v61 = vpop.f32.mrb[213].mxu0 }
0x159e   : > { %v8583_v9 = vadd.f32 %v15543_v30, %v8582_v61  ;;  %v10756_v16 = vpop.f32.mrb[214].mxu0 }
0x159f   : > { %v8594_v22 = vadd.f32 %v10756_v16, %v15543_v30  ;;  %v8585_v11 = vpop.f32.mrb[215].mxu0  ;;  %v8643_v7 = vmax.f32 %v8591_v41, 0.0  ;;  %v15584_v16 = vld [vmem:[%s16089_s7 + $0x8] sm:$0x3f] }
0x15a0   : > { %v8586_v62 = vadd.f32 %v15543_v30, %v8585_v11  ;;  %v8641_v14 = vmax.f32 %v8583_v9, 0.0 }
0x15a1   : > { %v8644_v52 = vmax.f32 %v8594_v22, 0.0  ;;  %v16219_v22 = vsub.s32 3, %v16191_v40 }
0x15a2   : > { %v8642_v53 = vmax.f32 %v8586_v62, 0.0 }
0x15a3   : > { %v8660_v17 = vpack.c.bf16 %v8644_v52, %v8643_v7  ;;  %v15589_v11 = vrot.slane %v15584_v16, %v16219_v22 }
0x15a4   : > { %v8659_v26 = vpack.c.bf16 %v8642_v53, %v8641_v14 }
0x15a6   : > { %10785 = vmatprep.mubr.msk.bf16.mxu1 %vm4210_vm4, %v8659_v26 }
0x15a7   : > { %10786 = vmatmul.mubr.msk.bf16.gmra.mrb[212].mxu1 %vm4210_vm4, %v8660_v17 }
0x15ac   : > { %v10759_v56 = vpop.f32.mrb[216].mxu0 }
0x15ad   : > { %v8607_v49 = vadd.f32 %v10759_v56, %v15543_v30  ;;  %v8598_v18 = vpop.f32.mrb[217].mxu0 }
0x15ae   : > { %v8599_v21 = vadd.f32 %v15543_v30, %v8598_v18  ;;  %v10760_v38 = vpop.f32.mrb[218].mxu0 }
0x15af   : > { %v8610_v55 = vadd.f32 %v10760_v38, %v15543_v30  ;;  %v8601_v47 = vpop.f32.mrb[219].mxu0  ;;  %v8647_v1 = vmax.f32 %v8607_v49, 0.0 }
0x15b0   : > { %v8602_v10 = vadd.f32 %v15543_v30, %v8601_v47  ;;  %v8645_v8 = vmax.f32 %v8599_v21, 0.0 }
0x15b1   : > { %v8648_v36 = vmax.f32 %v8610_v55, 0.0 }
0x15b2   : > { %v8646_v12 = vmax.f32 %v8602_v10, 0.0 }
0x15b3   : > { %v8662_v29 = vpack.c.bf16 %v8648_v36, %v8647_v1 }
0x15b4   : > { %v8661_v46 = vpack.c.bf16 %v8646_v12, %v8645_v8 }
0x15b6   : > { %10789 = vmatprep.mubr.msk.bf16.mxu1 %vm4210_vm4, %v8661_v46 }
0x15b7   : > { %10790 = vmatmul.mubr.msk.bf16.gmra.mrb[216].mxu1 %vm4210_vm4, %v8662_v29 }
0x15bb   : > { %v10763_v54 = vpop.f32.mrb[220].mxu0 }
0x15bc   : > { %v8623_v24 = vadd.f32 %v10763_v54, %v15543_v30  ;;  %v8614_v31 = vpop.f32.mrb[221].mxu0 }
0x15bd   : > { %v8615_v44 = vadd.f32 %v15543_v30, %v8614_v31  ;;  %v10764_v5 = vpop.f32.mrb[222].mxu0 }
0x15be   : > { %v8626_v4 = vadd.f32 %v10764_v5, %v15543_v30  ;;  %v8617_v35 = vpop.f32.mrb[223].mxu0  ;;  %v8651_v42 = vmax.f32 %v8623_v24, 0.0 }
0x15bf   : > { %v8618_v6 = vadd.f32 %v15543_v30, %v8617_v35  ;;  %v8649_v23 = vmax.f32 %v8615_v44, 0.0 }
0x15c0   : > { %v8652_v60 = vmax.f32 %v8626_v4, 0.0 }
0x15c1   : > { %v8650_v41 = vmax.f32 %v8618_v6, 0.0 }
0x15c2   : > { %v8664_v61 = vpack.c.bf16 %v8652_v60, %v8651_v42 }
0x15c3   : > { %v8663_v9 = vpack.c.bf16 %v8650_v41, %v8649_v23 }
0x15c5   : > { %10793 = vmatprep.mubr.msk.bf16.mxu1 %vm4210_vm4, %v8663_v9 }
0x15c6   : > { %10794 = vmatmul.mubr.msk.bf16.gmra.mrb[220].mxu1 %vm4210_vm4, %v8664_v61 }
0x164a   : > { %v10775_v30 = vpop.f32.mrb[200].mxu1 }
0x164b   : > { %v8772_v62 = vadd.f32 %v10775_v30, %v15589_v11  ;;  %v8763_v7 = vpop.f32.mrb[201].mxu1 }
0x164c   : > { %v8764_v52 = vadd.f32 %v8763_v7, %v15589_v11  ;;  %v10776_v14 = vpop.f32.mrb[202].mxu1 }
0x164d   : > { %v15594_v53 = vadd.f32 %v8772_v62, %v15315_v51  ;;  %v8775_v17 = vadd.f32 %v10776_v14, %v15589_v11  ;;  %v8766_v26 = vpop.f32.mrb[203].mxu1 }
0x164e   : > { %v8767_v56 = vadd.f32 %v8766_v26, %v15589_v11  ;;  %v15599_v49 = vadd.f32 %v8764_v52, %v15318_v3 }
0x164f   : > { %v15602_v18 = vadd.f32 %v8775_v17, %v15324_v2  ;;  %v8888_v21 = vsel %vm388_vm0, %v15594_v53, 0.0  ;;  %v8980_v3 = vmul.f32 %v15594_v53, %v15594_v53 }
0x1650   : > { %8889 = vadd.xlane.f32.xlu0 %v8888_v21  ;;  %v15607_v38 = vadd.f32 %v8767_v56, %v15321_v63  ;;  %v8882_v55 = vsel %vm388_vm0, %v15599_v49, 0.0  ;;  %v8978_v10 = vmul.f32 %v15599_v49, %v15599_v49 }
0x1651   : > { %v8891_v51 = vsel %vm388_vm0, %v15602_v18, 0.0  ;;  %v8981_v47 = vmul.f32 %v15602_v18, %v15602_v18  ;;  %v9008_v63 = vsel %vm388_vm0, %v8980_v3, 0.0 }
0x1652   : > { %8892 = vadd.xlane.f32.xlu1 %v8891_v51  ;;  %v8885_v2 = vsel %vm388_vm0, %v15607_v38, 0.0  ;;  %v8979_v36 = vmul.f32 %v15607_v38, %v15607_v38  ;;  %v9002_v46 = vsel %vm388_vm0, %v8978_v10, 0.0 }
0x1653   : > { %v9011_v1 = vsel %vm388_vm0, %v8981_v47, 0.0 }
0x1654   : > { %8883 = vadd.xlane.f32.xlu0 %v8882_v55  ;;  %v9005_v4 = vsel %vm388_vm0, %v8979_v36, 0.0 }
0x1656   : > { %8886 = vadd.xlane.f32.xlu1 %v8885_v2 }
0x1658   : > { %9009 = vadd.xlane.f32.xlu0 %v9008_v63 }
0x165a   : > { %9012 = vadd.xlane.f32.xlu1 %v9011_v1  ;;  %v10779_v8 = vpop.f32.mrb[204].mxu1 }
0x165b   : > { %v8788_v12 = vadd.f32 %v10779_v8, %v15589_v11  ;;  %v8779_v29 = vpop.f32.mrb[205].mxu1 }
0x165c   : > { %v8780_v54 = vadd.f32 %v8779_v29, %v15589_v11  ;;  %9003 = vadd.xlane.f32.xlu0 %v9002_v46  ;;  %v10780_v24 = vpop.f32.mrb[206].mxu1 }
0x165d   : > { %v15629_v31 = vadd.f32 %v8788_v12, %v15361_v25  ;;  %v8791_v44 = vadd.f32 %v10780_v24, %v15589_v11  ;;  %v8782_v5 = vpop.f32.mrb[207].mxu1 }
0x165e   : > { %v8783_v35 = vadd.f32 %v8782_v5, %v15589_v11  ;;  %9006 = vadd.xlane.f32.xlu1 %v9005_v4  ;;  %v15635_v6 = vadd.f32 %v8780_v54, %v15364_v37 }
0x165f   : > { %v15638_v42 = vadd.f32 %v8791_v44, %v15370_v43  ;;  %v8900_v60 = vsel %vm388_vm0, %v15629_v31, 0.0  ;;  %v8984_v37 = vmul.f32 %v15629_v31, %v15629_v31 }
0x1660   : > { %8901 = vadd.xlane.f32.xlu0 %v8900_v60  ;;  %v15643_v25 = vadd.f32 %v8783_v35, %v15367_v58  ;;  %v8894_v41 = vsel %vm388_vm0, %v15635_v6, 0.0  ;;  %v8982_v9 = vmul.f32 %v15635_v6, %v15635_v6 }
0x1661   : > { %v8903_v23 = vsel %vm388_vm0, %v15638_v42, 0.0  ;;  %v8985_v61 = vmul.f32 %v15638_v42, %v15638_v42  ;;  %v9020_v58 = vsel %vm388_vm0, %v8984_v37, 0.0 }
0x1662   : > { %8904 = vadd.xlane.f32.xlu1 %v8903_v23  ;;  %v8897_v43 = vsel %vm388_vm0, %v15643_v25, 0.0  ;;  %v8983_v30 = vmul.f32 %v15643_v25, %v15643_v25  ;;  %v9014_v14 = vsel %vm388_vm0, %v8982_v9, 0.0 }
0x1663   : > { %v9023_v22 = vsel %vm388_vm0, %v8985_v61, 0.0 }
0x1664   : > { %8895 = vadd.xlane.f32.xlu0 %v8894_v41  ;;  %v9017_v55 = vsel %vm388_vm0, %v8983_v30, 0.0 }
0x1666   : > { %8898 = vadd.xlane.f32.xlu1 %v8897_v43 }
0x1668   : > { %9021 = vadd.xlane.f32.xlu0 %v9020_v58 }
0x166a   : > { %9024 = vadd.xlane.f32.xlu1 %v9023_v22  ;;  %v10783_v62 = vpop.f32.mrb[208].mxu1 }
0x166b   : > { %v8804_v7 = vadd.f32 %v10783_v62, %v15589_v11  ;;  %v8795_v52 = vpop.f32.mrb[209].mxu1 }
0x166c   : > { %v8796_v17 = vadd.f32 %v8795_v52, %v15589_v11  ;;  %9015 = vadd.xlane.f32.xlu0 %v9014_v14  ;;  %v10784_v26 = vpop.f32.mrb[210].mxu1 }
0x166d   : > { %v15665_v56 = vadd.f32 %v8804_v7, %v15407_v27  ;;  %v8807_v21 = vadd.f32 %v10784_v26, %v15589_v11  ;;  %v8798_v51 = vpop.f32.mrb[211].mxu1 }
0x166e   : > { %v8799_v3 = vadd.f32 %v8798_v51, %v15589_v11  ;;  %9018 = vadd.xlane.f32.xlu1 %v9017_v55  ;;  %v15671_v2 = vadd.f32 %v8796_v17, %v15410_v34 }
0x166f   : > { %v15674_v47 = vadd.f32 %v8807_v21, %v15416_v20  ;;  %v8912_v63 = vsel %vm388_vm0, %v15665_v56, 0.0  ;;  %v8988_v34 = vmul.f32 %v15665_v56, %v15665_v56 }
0x1670   : > { %8913 = vadd.xlane.f32.xlu0 %v8912_v63  ;;  %v15679_v27 = vadd.f32 %v8799_v3, %v15413_v59  ;;  %v8906_v1 = vsel %vm388_vm0, %v15671_v2, 0.0  ;;  %v8986_v8 = vmul.f32 %v15671_v2, %v15671_v2 }
0x1671   : > { %v8915_v10 = vsel %vm388_vm0, %v15674_v47, 0.0  ;;  %v8989_v36 = vmul.f32 %v15674_v47, %v15674_v47  ;;  %v9032_v59 = vsel %vm388_vm0, %v8988_v34, 0.0 }
0x1672   : > { %8916 = vadd.xlane.f32.xlu1 %v8915_v10  ;;  %v8909_v20 = vsel %vm388_vm0, %v15679_v27, 0.0  ;;  %v8987_v29 = vmul.f32 %v15679_v27, %v15679_v27  ;;  %v9026_v44 = vsel %vm388_vm0, %v8986_v8, 0.0 }
0x1673   : > { %v9035_v12 = vsel %vm388_vm0, %v8989_v36, 0.0 }
0x1674   : > { %8907 = vadd.xlane.f32.xlu0 %v8906_v1  ;;  %v9029_v41 = vsel %vm388_vm0, %v8987_v29, 0.0 }
0x1676   : > { %8910 = vadd.xlane.f32.xlu1 %v8909_v20 }
0x1678   : > { %9033 = vadd.xlane.f32.xlu0 %v9032_v59 }
0x167a   : > { %9036 = vadd.xlane.f32.xlu1 %v9035_v12  ;;  %v10787_v46 = vpop.f32.mrb[212].mxu1 }
0x167b   : > { %v8820_v54 = vadd.f32 %v10787_v46, %v15589_v11  ;;  %v8811_v24 = vpop.f32.mrb[213].mxu1 }
0x167c   : > { %v8812_v5 = vadd.f32 %v8811_v24, %v15589_v11  ;;  %9027 = vadd.xlane.f32.xlu0 %v9026_v44  ;;  %v10788_v4 = vpop.f32.mrb[214].mxu1 }
0x167d   : > { %v15701_v35 = vadd.f32 %v8820_v54, %v15453_v48  ;;  %v8823_v60 = vadd.f32 %v10788_v4, %v15589_v11  ;;  %v8814_v23 = vpop.f32.mrb[215].mxu1 }
0x167e   : > { %v8815_v37 = vadd.f32 %v8814_v23, %v15589_v11  ;;  %9030 = vadd.xlane.f32.xlu1 %v9029_v41  ;;  %v15707_v43 = vadd.f32 %v8812_v5, %v15456_v15 }
0x167f   : > { %v15710_v61 = vadd.f32 %v8823_v60, %v15462_v19  ;;  %v8924_v58 = vsel %vm388_vm0, %v15701_v35, 0.0  ;;  %v8992_v15 = vmul.f32 %v15701_v35, %v15701_v35 }
0x1680   : > { %8925 = vadd.xlane.f32.xlu0 %v8924_v58  ;;  %v15715_v48 = vadd.f32 %v8815_v37, %v15459_v57  ;;  %v8918_v22 = vsel %vm388_vm0, %v15707_v43, 0.0  ;;  %v8990_v62 = vmul.f32 %v15707_v43, %v15707_v43 }
0x1681   : > { %v8927_v9 = vsel %vm388_vm0, %v15710_v61, 0.0  ;;  %v8993_v30 = vmul.f32 %v15710_v61, %v15710_v61  ;;  %v9044_v57 = vsel %vm388_vm0, %v8992_v15, 0.0 }
0x1682   : > { %8928 = vadd.xlane.f32.xlu1 %v8927_v9  ;;  %v8921_v19 = vsel %vm388_vm0, %v15715_v48, 0.0  ;;  %v8991_v52 = vmul.f32 %v15715_v48, %v15715_v48  ;;  %v9038_v21 = vsel %vm388_vm0, %v8990_v62, 0.0 }
0x1683   : > { %v9047_v7 = vsel %vm388_vm0, %v8993_v30, 0.0 }
0x1684   : > { %8919 = vadd.xlane.f32.xlu0 %v8918_v22  ;;  %v9041_v1 = vsel %vm388_vm0, %v8991_v52, 0.0 }
0x1686   : > { %8922 = vadd.xlane.f32.xlu1 %v8921_v19 }
0x1688   : > { %9045 = vadd.xlane.f32.xlu0 %v9044_v57 }
0x168a   : > { %9048 = vadd.xlane.f32.xlu1 %v9047_v7  ;;  %v10791_v14 = vpop.f32.mrb[216].mxu1 }
0x168b   : > { %v8836_v17 = vadd.f32 %v10791_v14, %v15589_v11  ;;  %v8827_v26 = vpop.f32.mrb[217].mxu1 }
0x168c   : > { %v8828_v51 = vadd.f32 %v8827_v26, %v15589_v11  ;;  %9039 = vadd.xlane.f32.xlu0 %v9038_v21  ;;  %v10792_v55 = vpop.f32.mrb[218].mxu1 }
0x168d   : > { %v15737_v3 = vadd.f32 %v8836_v17, %v15489_v45  ;;  %v8839_v63 = vadd.f32 %v10792_v55, %v15589_v11  ;;  %v8830_v10 = vpop.f32.mrb[219].mxu1 }
0x168e   : > { %v8831_v34 = vadd.f32 %v8830_v10, %v15589_v11  ;;  %9042 = vadd.xlane.f32.xlu1 %v9041_v1  ;;  %v15743_v20 = vadd.f32 %v8828_v51, %v15492_v39 }
0x168f   : > { %v15746_v36 = vadd.f32 %v8839_v63, %v15498_v13  ;;  %v8936_v59 = vsel %vm388_vm0, %v15737_v3, 0.0  ;;  %v8996_v39 = vmul.f32 %v15737_v3, %v15737_v3 }
0x1690   : > { %8937 = vadd.xlane.f32.xlu0 %v8936_v59  ;;  %v15751_v45 = vadd.f32 %v8831_v34, %v15495_v33  ;;  %v8930_v12 = vsel %vm388_vm0, %v15743_v20, 0.0  ;;  %v8994_v46 = vmul.f32 %v15743_v20, %v15743_v20 }
0x1691   : > { %v8939_v8 = vsel %vm388_vm0, %v15746_v36, 0.0  ;;  %v8997_v29 = vmul.f32 %v15746_v36, %v15746_v36  ;;  %v9056_v33 = vsel %vm388_vm0, %v8996_v39, 0.0 }
0x1692   : > { %8940 = vadd.xlane.f32.xlu1 %v8939_v8  ;;  %v8933_v13 = vsel %vm388_vm0, %v15751_v45, 0.0  ;;  %v8995_v44 = vmul.f32 %v15751_v45, %v15751_v45  ;;  %v9050_v41 = vsel %vm388_vm0, %v8994_v46, 0.0 }
0x1693   : > { %v9059_v24 = vsel %vm388_vm0, %v8997_v29, 0.0 }
0x1694   : > { %8931 = vadd.xlane.f32.xlu0 %v8930_v12  ;;  %v9053_v15 = vsel %vm388_vm0, %v8995_v44, 0.0 }
0x1696   : > { %8934 = vadd.xlane.f32.xlu1 %v8933_v13 }
0x1698   : > { %9057 = vadd.xlane.f32.xlu0 %v9056_v33 }
0x1699   : > { %v10795_v54 = vpop.f32.mrb[220].mxu1 }
0x169a   : > { %v8852_v5 = vadd.f32 %v10795_v54, %v15589_v11  ;;  %9060 = vadd.xlane.f32.xlu1 %v9059_v24  ;;  %v8843_v4 = vpop.f32.mrb[221].mxu1 }
0x169b   : > { %v8844_v60 = vadd.f32 %v8843_v4, %v15589_v11  ;;  %v10796_v23 = vpop.f32.mrb[222].mxu1 }
0x169c   : > { %v15773_v37 = vadd.f32 %v8852_v5, %v15526_v0  ;;  %v8855_v58 = vadd.f32 %v10796_v23, %v15589_v11  ;;  %9051 = vadd.xlane.f32.xlu0 %v9050_v41  ;;  %v8846_v9 = vpop.f32.mrb[223].mxu1 }
0x169d   : > { %v8847_v22 = vadd.f32 %v8846_v9, %v15589_v11  ;;  %v15784_v57 = vadd.f32 %v8844_v60, %v15515_v32 }
0x169e   : > { %v15779_v19 = vadd.f32 %v8855_v58, %v15529_v50  ;;  %9054 = vadd.xlane.f32.xlu1 %v9053_v15  ;;  %v8948_v30 = vsel %vm388_vm0, %v15773_v37, 0.0 }
0x169f   : > { %v15789_v62 = vadd.f32 %v8847_v22, %v15518_v28  ;;  %v8942_v11 = vsel %vm388_vm0, %v15784_v57, 0.0  ;;  %v8998_v50 = vmul.f32 %v15784_v57, %v15784_v57  ;;  %v9000_v28 = vmul.f32 %v15773_v37, %v15773_v37 }
0x16a0   : > { %8949 = vadd.xlane.f32.xlu0 %v8948_v30  ;;  %v8951_v0 = vsel %vm388_vm0, %v15779_v19, 0.0  ;;  %v9001_v17 = vmul.f32 %v15779_v19, %v15779_v19 }
0x16a1   : > { %v8945_v7 = vsel %vm388_vm0, %v15789_v62, 0.0  ;;  %v8999_v32 = vmul.f32 %v15789_v62, %v15789_v62  ;;  %v9062_v52 = vsel %vm388_vm0, %v8998_v50, 0.0  ;;  %v9068_v26 = vsel %vm388_vm0, %v9000_v28, 0.0 }
0x16a2   : > { %8952 = vadd.xlane.f32.xlu1 %v8951_v0  ;;  %v9071_v21 = vsel %vm388_vm0, %v9001_v17, 0.0  ;;  %v16220_v17 = vsub.s32 4, %v16191_v40 }
0x16a3   : > { %v9065_v14 = vsel %vm388_vm0, %v8999_v32, 0.0 }
0x16a4   : > { %8943 = vadd.xlane.f32.xlu0 %v8942_v11 }
0x16a6   : > { %8946 = vadd.xlane.f32.xlu1 %v8945_v7 }
0x16a8   : > { %9063 = vadd.xlane.f32.xlu0 %v9062_v52 }
0x16aa   : > { %9066 = vadd.xlane.f32.xlu1 %v9065_v14 }
0x16ac   : > { %9069 = vadd.xlane.f32.xlu0 %v9068_v26  ;;  %v15820_v26 = vrot.slane %v15584_v16, %v16220_v17 }
0x16ae   : > { %9072 = vadd.xlane.f32.xlu1 %v9071_v21 }
0x16dd   : > { %v8890_v51 = vpop.xlane.xlu0 %8889 }
0x16de   : > { %v8956_v10 = vmul.f32 0.03125, %v8890_v51 }
0x16df   : > { %v8893_v55 = vpop.xlane.xlu1 %8892 }
0x16e0   : > { %v8957_v34 = vmul.f32 0.03125, %v8893_v55  ;;  %v9100_v8 = vmul.f32 %v8956_v10, %v8956_v10  ;;  %v9148_v14 = vsub.f32 %v15594_v53, %v8956_v10 }
0x16e1   : > { %v8884_v63 = vpop.xlane.xlu0 %8883 }
0x16e2   : > { %v8954_v12 = vmul.f32 0.03125, %v8884_v63  ;;  %v9101_v33 = vmul.f32 %v8957_v34, %v8957_v34  ;;  %v9149_v10 = vsub.f32 %v15602_v18, %v8957_v34 }
0x16e3   : > { %v8887_v1 = vpop.xlane.xlu1 %8886 }
0x16e4   : > { %v15807_v13 = vmul.f32 0.03125, %v8887_v1  ;;  %v9098_v44 = vmul.f32 %v8954_v12, %v8954_v12 }
0x16e5   : > { %v9010_v59 = vpop.xlane.xlu0 %9009 }
0x16e6   : > { %v9076_v39 = vmul.f32 0.03125, %v9010_v59  ;;  %v9099_v23 = vmul.f32 %v15807_v13, %v15807_v13  ;;  %v16221_v59 = vsub.s32 5, %v16191_v40  ;;  %v9147_v40 = vsub.f32 %v15607_v38, %v15807_v13 }
0x16e7   : > { %v9013_v29 = vpop.xlane.xlu1 %9012 }
0x16e8   : > { %v9124_v46 = vsub.f32 %v9076_v39, %v9100_v8  ;;  %v9077_v54 = vmul.f32 0.03125, %v9013_v29  ;;  %v15833_v53 = vrot.slane %v15584_v16, %v16221_v59 }
0x16e9   : > { %v9004_v24 = vpop.xlane.xlu0 %9003 }
0x16ea   : > { %v9172_v5 = vadd.f32 1e-05, %v9124_v46  ;;  %v9125_v4 = vsub.f32 %v9077_v54, %v9101_v33  ;;  %v9074_v60 = vmul.f32 0.03125, %v9004_v24 }
0x16eb   : > { %v9007_v41 = vpop.xlane.xlu1 %9006 }
0x16ec   : > { %11611 = vrsqrt.f32 %v9172_v5  ;;  %v9173_v58 = vadd.f32 1e-05, %v9125_v4  ;;  %v9122_v9 = vsub.f32 %v9074_v60, %v9098_v44  ;;  %v9075_v22 = vmul.f32 0.03125, %v9007_v41 }
0x16ed   : > { %v8902_v15 = vpop.xlane.xlu0 %8901  ;;  %v9146_v44 = vsub.f32 %v15599_v49, %v8954_v12 }
0x16ee   : > { %11613 = vrsqrt.f32 %v9173_v58  ;;  %v9170_v30 = vadd.f32 1e-05, %v9122_v9  ;;  %v9123_v0 = vsub.f32 %v9075_v22, %v9099_v23  ;;  %v15811_v32 = vmul.f32 0.03125, %v8902_v15 }
0x16ef   : > { %v8905_v11 = vpop.xlane.xlu1 %8904 }
0x16f0   : > { %11615 = vrsqrt.f32 %v9170_v30  ;;  %v9171_v50 = vadd.f32 1e-05, %v9123_v0  ;;  %v15814_v28 = vmul.f32 0.03125, %v8905_v11  ;;  %v9104_v55 = vmul.f32 %v15811_v32, %v15811_v32 }
0x16f1   : > { %v8896_v7 = vpop.xlane.xlu0 %8895 }
0x16f2   : > { %11617 = vrsqrt.f32 %v9171_v50  ;;  %v15828_v63 = vmul.f32 0.03125, %v8896_v7  ;;  %v9105_v46 = vmul.f32 %v15814_v28, %v15814_v28 }
0x16f3   : > { %v8899_v52 = vpop.xlane.xlu1 %8898 }
0x16f4   : > { %v15836_v39 = vmul.f32 0.03125, %v8899_v52  ;;  %v9102_v34 = vmul.f32 %v15828_v63, %v15828_v63 }
0x16f5   : > { %v9022_v21 = vpop.xlane.xlu0 %9021 }
0x16f6   : > { %v11612_v51 = vpop.eup %11611  ;;  %v9080_v1 = vmul.f32 0.03125, %v9022_v21  ;;  %v9103_v38 = vmul.f32 %v15836_v39, %v15836_v39 }
0x16f7   : > { %v9220_v8 = vmul.f32 %v11612_v51, %v9148_v14  ;;  %v9025_v29 = vpop.xlane.xlu1 %9024 }
0x16f8   : > { %v11614_v33 = vpop.eup %11613  ;;  %v9128_v54 = vsub.f32 %v9080_v1, %v9104_v55  ;;  %v9081_v24 = vmul.f32 0.03125, %v9025_v29 }
0x16f9   : > { %v9248_v16 = vmul.f32 %v15820_v26, %v9220_v8  ;;  %v9221_v5 = vmul.f32 %v11614_v33, %v9149_v10  ;;  %v9016_v4 = vpop.xlane.xlu0 %9015  ;;  %v9152_v33 = vsub.f32 %v15629_v31, %v15811_v32 }
0x16fa   : > { %v11616_v18 = vpop.eup %11615  ;;  %v9176_v60 = vadd.f32 1e-05, %v9128_v54  ;;  %v9129_v23 = vsub.f32 %v9081_v24, %v9105_v46  ;;  %v9078_v41 = vmul.f32 0.03125, %v9016_v4 }
0x16fb   : > { %v9276_v58 = vadd.f32 %v15833_v53, %v9248_v16  ;;  %v9249_v9 = vmul.f32 %v15820_v26, %v9221_v5  ;;  %v9218_v49 = vmul.f32 %v11616_v18, %v9146_v44  ;;  %v9019_v12 = vpop.xlane.xlu1 %9018  ;;  %v9153_v16 = vsub.f32 %v15638_v42, %v15814_v28 }
0x16fc   : > { %v11618_v13 = vpop.eup %11617  ;;  %11619 = vrsqrt.f32 %v9176_v60  ;;  %v9177_v22 = vadd.f32 1e-05, %v9129_v23  ;;  %v9126_v15 = vsub.f32 %v9078_v41, %v9102_v34  ;;  %v9079_v30 = vmul.f32 0.03125, %v9019_v12 }
0x16fd   : > { %9300 = vst.msk [vmem:[%s15851_s10 + $0x10] sm:$0xff] %vm388_vm0, %v9276_v58  ;;  %v9277_v0 = vadd.f32 %v15833_v53, %v9249_v9  ;;  %v9246_v11 = vmul.f32 %v15820_v26, %v9218_v49  ;;  %v9219_v50 = vmul.f32 %v11618_v13, %v9147_v40  ;;  %v8914_v7 = vpop.xlane.xlu0 %8913  ;;  %v9150_v23 = vsub.f32 %v15635_v6, %v15828_v63 }
0x16fe   : > { %11621 = vrsqrt.f32 %v9177_v22  ;;  %v9174_v52 = vadd.f32 1e-05, %v9126_v15  ;;  %v9127_v14 = vsub.f32 %v9079_v30, %v9103_v38  ;;  %v15864_v10 = vmul.f32 0.03125, %v8914_v7 }
0x16ff   : > { %9301 = vst.msk [vmem:[%s15851_s10 + $0x18] sm:$0xff] %vm388_vm0, %v9277_v0  ;;  %v9274_v17 = vadd.f32 %v15833_v53, %v9246_v11  ;;  %v9247_v21 = vmul.f32 %v15820_v26, %v9219_v50  ;;  %v8917_v51 = vpop.xlane.xlu1 %8916  ;;  %v9151_v41 = vsub.f32 %v15643_v25, %v15836_v39 }
0x1700   : > { %11623 = vrsqrt.f32 %v9174_v52  ;;  %v9175_v55 = vadd.f32 1e-05, %v9127_v14  ;;  %v15868_v29 = vmul.f32 0.03125, %v8917_v51  ;;  %v9108_v24 = vmul.f32 %v15864_v10, %v15864_v10 }
0x1701   : > { %9298 = vst.msk [vmem:[%s15851_s10] sm:$0xff] %vm388_vm0, %v9274_v17  ;;  %v9275_v1 = vadd.f32 %v15833_v53, %v9247_v21  ;;  %v8908_v59 = vpop.xlane.xlu0 %8907 }
0x1702   : > { %11625 = vrsqrt.f32 %v9175_v55  ;;  %v15874_v44 = vmul.f32 0.03125, %v8908_v59  ;;  %v9109_v60 = vmul.f32 %v15868_v29, %v15868_v29 }
0x1703   : > { %9299 = vst.msk [vmem:[%s15851_s10 + $0x8] sm:$0xff] %vm388_vm0, %v9275_v1  ;;  %v8911_v8 = vpop.xlane.xlu1 %8910 }
0x1704   : > { %v15878_v4 = vmul.f32 0.03125, %v8911_v8  ;;  %v9106_v49 = vmul.f32 %v15874_v44, %v15874_v44 }
0x1705   : > { %v9034_v46 = vpop.xlane.xlu0 %9033 }
0x1706   : > { %v11620_v54 = vpop.eup %11619  ;;  %v9084_v40 = vmul.f32 0.03125, %v9034_v46  ;;  %v9107_v25 = vmul.f32 %v15878_v4, %v15878_v4 }
0x1707   : > { %v9224_v5 = vmul.f32 %v11620_v54, %v9152_v33  ;;  %v9037_v18 = vpop.xlane.xlu1 %9036 }
0x1708   : > { %v11622_v34 = vpop.eup %11621  ;;  %v9132_v31 = vsub.f32 %v9084_v40, %v9108_v24  ;;  %v9085_v32 = vmul.f32 0.03125, %v9037_v18  ;;  %v9156_v40 = vsub.f32 %v15665_v56, %v15864_v10 }
0x1709   : > { %v9252_v58 = vmul.f32 %v15820_v26, %v9224_v5  ;;  %v9225_v9 = vmul.f32 %v11622_v34, %v9153_v16  ;;  %v9028_v42 = vpop.xlane.xlu0 %9027 }
0x170a   : > { %v11624_v28 = vpop.eup %11623  ;;  %v9180_v38 = vadd.f32 1e-05, %v9132_v31  ;;  %v9133_v12 = vsub.f32 %v9085_v32, %v9109_v60  ;;  %v9082_v13 = vmul.f32 0.03125, %v9028_v42  ;;  %v9157_v31 = vsub.f32 %v15674_v47, %v15868_v29 }
0x170b   : > { %v9280_v22 = vadd.f32 %v15833_v53, %v9252_v58  ;;  %v9253_v15 = vmul.f32 %v15820_v26, %v9225_v9  ;;  %v9222_v6 = vmul.f32 %v11624_v28, %v9150_v23  ;;  %v9031_v63 = vpop.xlane.xlu1 %9030  ;;  %v9154_v42 = vsub.f32 %v15671_v2, %v15874_v44 }
0x170c   : > { %v11626_v39 = vpop.eup %11625  ;;  %11627 = vrsqrt.f32 %v9180_v38  ;;  %v9181_v30 = vadd.f32 1e-05, %v9133_v12  ;;  %v9130_v0 = vsub.f32 %v9082_v13, %v9106_v49  ;;  %v9083_v11 = vmul.f32 0.03125, %v9031_v63 }
0x170d   : > { %9304 = vst.msk [vmem:[%s15851_s10 + $0x30] sm:$0xff] %vm388_vm0, %v9280_v22  ;;  %v9281_v50 = vadd.f32 %v15833_v53, %v9253_v15  ;;  %v9250_v7 = vmul.f32 %v15820_v26, %v9222_v6  ;;  %v9223_v52 = vmul.f32 %v11626_v39, %v9151_v41  ;;  %v8926_v14 = vpop.xlane.xlu0 %8925  ;;  %v9155_v28 = vsub.f32 %v15679_v27, %v15878_v4 }
0x170e   : > { %11629 = vrsqrt.f32 %v9181_v30  ;;  %v9178_v17 = vadd.f32 1e-05, %v9130_v0  ;;  %v9131_v21 = vsub.f32 %v9083_v11, %v9107_v25  ;;  %v15904_v46 = vmul.f32 0.03125, %v8926_v14 }
0x170f   : > { %9305 = vst.msk [vmem:[%s15851_s10 + $0x38] sm:$0xff] %vm388_vm0, %v9281_v50  ;;  %v9278_v51 = vadd.f32 %v15833_v53, %v9250_v7  ;;  %v9251_v55 = vmul.f32 %v15820_v26, %v9223_v52  ;;  %v8929_v1 = vpop.xlane.xlu1 %8928 }
0x1710   : > { %11631 = vrsqrt.f32 %v9178_v17  ;;  %v9179_v59 = vadd.f32 1e-05, %v9131_v21  ;;  %v15908_v24 = vmul.f32 0.03125, %v8929_v1  ;;  %v9112_v18 = vmul.f32 %v15904_v46, %v15904_v46 }
0x1711   : > { %9302 = vst.msk [vmem:[%s15851_s10 + $0x20] sm:$0xff] %vm388_vm0, %v9278_v51  ;;  %v9279_v8 = vadd.f32 %v15833_v53, %v9251_v55  ;;  %v8920_v33 = vpop.xlane.xlu0 %8919 }
0x1712   : > { %11633 = vrsqrt.f32 %v9179_v59  ;;  %v15914_v34 = vmul.f32 0.03125, %v8920_v33  ;;  %v9113_v9 = vmul.f32 %v15908_v24, %v15908_v24 }
0x1713   : > { %9303 = vst.msk [vmem:[%s15851_s10 + $0x28] sm:$0xff] %vm388_vm0, %v9279_v8  ;;  %v8923_v54 = vpop.xlane.xlu1 %8922 }
0x1714   : > { %v15918_v23 = vmul.f32 0.03125, %v8923_v54  ;;  %v9110_v12 = vmul.f32 %v15914_v34, %v15914_v34 }
0x1715   : > { %v9046_v16 = vpop.xlane.xlu0 %9045 }
0x1716   : > { %v11628_v5 = vpop.eup %11627  ;;  %v9088_v60 = vmul.f32 0.03125, %v9046_v16  ;;  %v9111_v27 = vmul.f32 %v15918_v23, %v15918_v23 }
0x1717   : > { %v9228_v32 = vmul.f32 %v11628_v5, %v9156_v40  ;;  %v9049_v41 = vpop.xlane.xlu1 %9048  ;;  %v9160_v40 = vsub.f32 %v15701_v35, %v15904_v46 }
0x1718   : > { %v11630_v58 = vpop.eup %11629  ;;  %v9136_v56 = vsub.f32 %v9088_v60, %v9112_v18  ;;  %v9089_v10 = vmul.f32 0.03125, %v9049_v41 }
0x1719   : > { %v9256_v49 = vmul.f32 %v15820_v26, %v9228_v32  ;;  %v9229_v38 = vmul.f32 %v11630_v58, %v9157_v31  ;;  %v9040_v47 = vpop.xlane.xlu0 %9039  ;;  %v9161_v32 = vsub.f32 %v15710_v61, %v15908_v24 }
0x171a   : > { %v11632_v29 = vpop.eup %11631  ;;  %v9184_v13 = vadd.f32 1e-05, %v9136_v56  ;;  %v9137_v22 = vsub.f32 %v9089_v10, %v9113_v9  ;;  %v9086_v15 = vmul.f32 0.03125, %v9040_v47 }
0x171b   : > { %v9284_v6 = vadd.f32 %v15833_v53, %v9256_v49  ;;  %v9257_v25 = vmul.f32 %v15820_v26, %v9229_v38  ;;  %v9226_v2 = vmul.f32 %v11632_v29, %v9154_v42  ;;  %v9043_v44 = vpop.xlane.xlu1 %9042  ;;  %v9158_v42 = vsub.f32 %v15707_v43, %v15914_v34 }
0x171c   : > { %v11634_v4 = vpop.eup %11633  ;;  %11635 = vrsqrt.f32 %v9184_v13  ;;  %v9185_v63 = vadd.f32 1e-05, %v9137_v22  ;;  %v9134_v39 = vsub.f32 %v9086_v15, %v9110_v12  ;;  %v9087_v30 = vmul.f32 0.03125, %v9043_v44 }
0x171d   : > { %9308 = vst.msk [vmem:[%s15851_s10 + $0x50] sm:$0xff] %vm388_vm0, %v9284_v6  ;;  %v9285_v0 = vadd.f32 %v15833_v53, %v9257_v25  ;;  %v9254_v11 = vmul.f32 %v15820_v26, %v9226_v2  ;;  %v9227_v50 = vmul.f32 %v11634_v4, %v9155_v28  ;;  %v8938_v7 = vpop.xlane.xlu0 %8937  ;;  %v9159_v28 = vsub.f32 %v15715_v48, %v15918_v23 }
0x171e   : > { %11637 = vrsqrt.f32 %v9185_v63  ;;  %v9182_v52 = vadd.f32 1e-05, %v9134_v39  ;;  %v9135_v14 = vsub.f32 %v9087_v30, %v9111_v27  ;;  %v15944_v8 = vmul.f32 0.03125, %v8938_v7 }
0x171f   : > { %9309 = vst.msk [vmem:[%s15851_s10 + $0x58] sm:$0xff] %vm388_vm0, %v9285_v0  ;;  %v9282_v17 = vadd.f32 %v15833_v53, %v9254_v11  ;;  %v9255_v21 = vmul.f32 %v15820_v26, %v9227_v50  ;;  %v8941_v51 = vpop.xlane.xlu1 %8940 }
0x1720   : > { %11639 = vrsqrt.f32 %v9182_v52  ;;  %v9183_v55 = vadd.f32 1e-05, %v9135_v14  ;;  %v15948_v54 = vmul.f32 0.03125, %v8941_v51  ;;  %v9116_v18 = vmul.f32 %v15944_v8, %v15944_v8 }
0x1721   : > { %9306 = vst.msk [vmem:[%s15851_s10 + $0x40] sm:$0xff] %vm388_vm0, %v9282_v17  ;;  %v9283_v1 = vadd.f32 %v15833_v53, %v9255_v21  ;;  %v8932_v59 = vpop.xlane.xlu0 %8931 }
0x1722   : > { %11641 = vrsqrt.f32 %v9183_v55  ;;  %v15954_v60 = vmul.f32 0.03125, %v8932_v59  ;;  %v9117_v10 = vmul.f32 %v15948_v54, %v15948_v54  ;;  %v9164_v55 = vsub.f32 %v15737_v3, %v15944_v8 }
0x1723   : > { %9307 = vst.msk [vmem:[%s15851_s10 + $0x48] sm:$0xff] %vm388_vm0, %v9283_v1  ;;  %v8935_v33 = vpop.xlane.xlu1 %8934 }
0x1724   : > { %v15958_v58 = vmul.f32 0.03125, %v8935_v33  ;;  %v9114_v47 = vmul.f32 %v15954_v60, %v15954_v60 }
0x1725   : > { %v9058_v16 = vpop.xlane.xlu0 %9057 }
0x1726   : > { %v11636_v5 = vpop.eup %11635  ;;  %v9092_v31 = vmul.f32 0.03125, %v9058_v16  ;;  %v9115_v48 = vmul.f32 %v15958_v58, %v15958_v58  ;;  %v9163_v3 = vsub.f32 %v15751_v45, %v15958_v58 }
0x1727   : > { %v9232_v41 = vmul.f32 %v11636_v5, %v9160_v40  ;;  %v9061_v9 = vpop.xlane.xlu1 %9060  ;;  %v9165_v5 = vsub.f32 %v15746_v36, %v15948_v54 }
0x1728   : > { %v11638_v56 = vpop.eup %11637  ;;  %v9140_v35 = vsub.f32 %v9092_v31, %v9116_v18  ;;  %v9093_v46 = vmul.f32 0.03125, %v9061_v9 }
0x1729   : > { %v9260_v49 = vmul.f32 %v15820_v26, %v9232_v41  ;;  %v9233_v38 = vmul.f32 %v11638_v56, %v9161_v32  ;;  %v9052_v61 = vpop.xlane.xlu0 %9051 }
0x172a   : > { %v11640_v24 = vpop.eup %11639  ;;  %v9188_v29 = vadd.f32 1e-05, %v9140_v35  ;;  %v9141_v12 = vsub.f32 %v9093_v46, %v9117_v10  ;;  %v9090_v13 = vmul.f32 0.03125, %v9052_v61  ;;  %v9162_v35 = vsub.f32 %v15743_v20, %v15954_v60 }
0x172b   : > { %v9288_v22 = vadd.f32 %v15833_v53, %v9260_v49  ;;  %v9261_v15 = vmul.f32 %v15820_v26, %v9233_v38  ;;  %v9230_v43 = vmul.f32 %v11640_v24, %v9158_v42  ;;  %v9055_v34 = vpop.xlane.xlu1 %9054 }
0x172c   : > { %v11642_v23 = vpop.eup %11641  ;;  %11643 = vrsqrt.f32 %v9188_v29  ;;  %v9189_v6 = vadd.f32 1e-05, %v9141_v12  ;;  %v9138_v25 = vsub.f32 %v9090_v13, %v9114_v47  ;;  %v9091_v2 = vmul.f32 0.03125, %v9055_v34 }
0x172d   : > { %9312 = vst.msk [vmem:[%s15851_s10 + $0x70] sm:$0xff] %vm388_vm0, %v9288_v22  ;;  %v9289_v27 = vadd.f32 %v15833_v53, %v9261_v15  ;;  %v9258_v44 = vmul.f32 %v15820_v26, %v9230_v43  ;;  %v9231_v4 = vmul.f32 %v11642_v23, %v9159_v28  ;;  %v8950_v63 = vpop.xlane.xlu0 %8949 }
0x172e   : > { %11645 = vrsqrt.f32 %v9189_v6  ;;  %v9186_v39 = vadd.f32 1e-05, %v9138_v25  ;;  %v9139_v30 = vsub.f32 %v9091_v2, %v9115_v48  ;;  %v8976_v33 = vmul.f32 0.03125, %v8950_v63 }
0x172f   : > { %9313 = vst.msk [vmem:[%s15851_s10 + $0x78] sm:$0xff] %vm388_vm0, %v9289_v27  ;;  %v9286_v0 = vadd.f32 %v15833_v53, %v9258_v44  ;;  %v9259_v11 = vmul.f32 %v15820_v26, %v9231_v4  ;;  %v8953_v50 = vpop.xlane.xlu1 %8952 }
0x1730   : > { %11647 = vrsqrt.f32 %v9186_v39  ;;  %v9187_v7 = vadd.f32 1e-05, %v9139_v30  ;;  %v8977_v31 = vmul.f32 0.03125, %v8953_v50  ;;  %v9120_v36 = vmul.f32 %v8976_v33, %v8976_v33 }
0x1731   : > { %9310 = vst.msk [vmem:[%s15851_s10 + $0x60] sm:$0xff] %vm388_vm0, %v9286_v0  ;;  %v9287_v52 = vadd.f32 %v15833_v53, %v9259_v11  ;;  %v8944_v14 = vpop.xlane.xlu0 %8943  ;;  %v9168_v39 = vsub.f32 %v15773_v37, %v8976_v33 }
0x1732   : > { %11649 = vrsqrt.f32 %v9187_v7  ;;  %v8974_v17 = vmul.f32 0.03125, %v8944_v14  ;;  %v9121_v20 = vmul.f32 %v8977_v31, %v8977_v31  ;;  %v9169_v50 = vsub.f32 %v15779_v19, %v8977_v31 }
0x1733   : > { %9311 = vst.msk [vmem:[%s15851_s10 + $0x68] sm:$0xff] %vm388_vm0, %v9287_v52  ;;  %v8947_v21 = vpop.xlane.xlu1 %8946 }
0x1734   : > { %v8975_v51 = vmul.f32 0.03125, %v8947_v21  ;;  %v9118_v40 = vmul.f32 %v8974_v17, %v8974_v17  ;;  %v9166_v2 = vsub.f32 %v15784_v57, %v8974_v17 }
0x1735   : > { %v9064_v1 = vpop.xlane.xlu0 %9063 }
0x1736   : > { %v11644_v59 = vpop.eup %11643  ;;  %v9094_v16 = vmul.f32 0.03125, %v9064_v1  ;;  %v9119_v9 = vmul.f32 %v8975_v51, %v8975_v51  ;;  %v9167_v44 = vsub.f32 %v15789_v62, %v8975_v51 }
0x1737   : > { %v9236_v18 = vmul.f32 %v11644_v59, %v9164_v55  ;;  %v9067_v32 = vpop.xlane.xlu1 %9066 }
0x1738   : > { %v11646_v41 = vpop.eup %11645  ;;  %v9142_v56 = vsub.f32 %v9094_v16, %v9118_v40  ;;  %v9095_v10 = vmul.f32 0.03125, %v9067_v32 }
0x1739   : > { %v9264_v8 = vmul.f32 %v15820_v26, %v9236_v18  ;;  %v9237_v46 = vmul.f32 %v11646_v41, %v9165_v5  ;;  %v9070_v42 = vpop.xlane.xlu0 %9069 }
0x173a   : > { %v11648_v28 = vpop.eup %11647  ;;  %v9190_v54 = vadd.f32 1e-05, %v9142_v56  ;;  %v9143_v49 = vsub.f32 %v9095_v10, %v9119_v9  ;;  %v9096_v38 = vmul.f32 0.03125, %v9070_v42 }
0x173b   : > { %v9292_v61 = vadd.f32 %v15833_v53, %v9264_v8  ;;  %v9265_v24 = vmul.f32 %v15820_v26, %v9237_v46  ;;  %v9234_v47 = vmul.f32 %v11648_v28, %v9162_v35  ;;  %v9073_v60 = vpop.xlane.xlu1 %9072 }
0x173c   : > { %v11650_v29 = vpop.eup %11649  ;;  %11651 = vrsqrt.f32 %v9190_v54  ;;  %v9191_v45 = vadd.f32 1e-05, %v9143_v49  ;;  %v9144_v58 = vsub.f32 %v9096_v38, %v9120_v36  ;;  %v9097_v12 = vmul.f32 0.03125, %v9073_v60 }
0x173d   : > { %9316 = vst.msk [vmem:[%s15851_s10 + $0x90] sm:$0xff] %vm388_vm0, %v9292_v61  ;;  %v9293_v13 = vadd.f32 %v15833_v53, %v9265_v24  ;;  %v9262_v22 = vmul.f32 %v15820_v26, %v9234_v47  ;;  %v9235_v15 = vmul.f32 %v11650_v29, %v9163_v3 }
0x173e   : > { %11653 = vrsqrt.f32 %v9191_v45  ;;  %v9192_v43 = vadd.f32 1e-05, %v9144_v58  ;;  %v9145_v48 = vsub.f32 %v9097_v12, %v9121_v20 }
0x173f   : > { %9317 = vst.msk [vmem:[%s15851_s10 + $0x98] sm:$0xff] %vm388_vm0, %v9293_v13  ;;  %v9290_v34 = vadd.f32 %v15833_v53, %v9262_v22  ;;  %v9263_v23 = vmul.f32 %v15820_v26, %v9235_v15 }
0x1740   : > { %11655 = vrsqrt.f32 %v9192_v43  ;;  %v9193_v6 = vadd.f32 1e-05, %v9145_v48 }
0x1741   : > { %9314 = vst.msk [vmem:[%s15851_s10 + $0x80] sm:$0xff] %vm388_vm0, %v9290_v34  ;;  %v9291_v25 = vadd.f32 %v15833_v53, %v9263_v23 }
0x1742   : > { %11657 = vrsqrt.f32 %v9193_v6 }
0x1743   : > { %9315 = vst.msk [vmem:[%s15851_s10 + $0x88] sm:$0xff] %vm388_vm0, %v9291_v25 }
0x1746   : > { %v11652_v27 = vpop.eup %11651 }
0x1747   : > { %v9238_v4 = vmul.f32 %v11652_v27, %v9166_v2 }
0x1748   : > { %v11654_v63 = vpop.eup %11653 }
0x1749   : > { %v9266_v30 = vmul.f32 %v15820_v26, %v9238_v4  ;;  %v9239_v0 = vmul.f32 %v11654_v63, %v9167_v44 }
0x174a   : > { %v11656_v11 = vpop.eup %11655 }
0x174b   : > { %v9294_v7 = vadd.f32 %v15833_v53, %v9266_v30  ;;  %v9267_v57 = vmul.f32 %v15820_v26, %v9239_v0  ;;  %v9240_v62 = vmul.f32 %v11656_v11, %v9168_v39 }
0x174c   : > { %v11658_v52 = vpop.eup %11657 }
0x174d   : > { %9318 = vst.msk [vmem:[%s15851_s10 + $0xa0] sm:$0xff] %vm388_vm0, %v9294_v7  ;;  %v9295_v14 = vadd.f32 %v15833_v53, %v9267_v57  ;;  %v9268_v37 = vmul.f32 %v15820_v26, %v9240_v62  ;;  %v9241_v17 = vmul.f32 %v11658_v52, %v9169_v50 }
0x174f   : > { %9319 = vst.msk [vmem:[%s15851_s10 + $0xa8] sm:$0xff] %vm388_vm0, %v9295_v14  ;;  %v9296_v19 = vadd.f32 %v15833_v53, %v9268_v37  ;;  %v9269_v21 = vmul.f32 %v15820_v26, %v9241_v17 }
0x1751   : > { %9320 = vst.msk [vmem:[%s15851_s10 + $0xb0] sm:$0xff] %vm388_vm0, %v9296_v19  ;;  %v9297_v51 = vadd.f32 %v15833_v53, %v9269_v21 }
0x1753   : > { %9321 = vst.msk [vmem:[%s15851_s10 + $0xb8] sm:$0xff] %vm388_vm0, %v9297_v51 }
0x1754   : > { %11698 = shalt.err (!%p11695_p3)
}
0x1755   : > { %s11699_s23 = scalar_lea.hbm %s16035_s9, 3072  ;;  %s11703_s10 = scalar_lea.hbm %s16090_s8, 6144 }
0x1756   : > { %p11700_p4 = scmp.ne.s32.totalorder %s16035_s9, %s11699_s23  ;;  %p11704_p9 = scmp.lt.u32.totalorder %s16035_s9, %s16090_s8 }
0x1757   : > { %p11705_p10 = scmp.lt.u32.totalorder %s11703_s10, %s11699_s23  ;;  %p11707_p12 = scmp.lt.u32.totalorder %s11699_s23, %s16035_s9 }
0x1758   : > { %p11701_p7 = pnand %p11700_p4, %p11841_p5 }
0x1759   : > { %p11706_p11 = por %p11705_p10, %p11704_p9 }
0x175a   : > { %p11702_p8 = pneg %p11701_p7 }
0x175b   : > { %p11708_p13 = por %p11707_p12, %p11706_p11 }
0x175d   : > { %p11709_p0 = pnand %p11708_p13, %p11702_p8 }
0x175f   : > { %11712 = shalt.err (!%p11709_p0)
}
0x1760   : > { %s11756_s17 = smov 128   ;;  %s11757_s19 = smov 8  }
0x1761   : > { %10896 = dma.vmem_to_hbm [thread:$0]  (%p11841_p5), %s16027_s12, 3072, %s16035_s9, %s16041_s18, %s11756_s17, %s11756_s17, %s11757_s19  }
0x1762 PF: > { %p10902_p1 = scmp.ge.s32.totalorder %s11747_s30, 2  ;;  %s9352_s24 = sand.u32 1, %s11735_s27  }
0x1763   : > { %s9353_s21 = scalar_lea.sflag [#allocation3], %s9352_s24 }
0x1764   : > { %p10899_p2 = pnand %p10902_p1, %p11845_p6 }
0x1766   : > { %11730 = dma.done.wait (!%p10899_p2), %s9353_s21, 3072  }
0x1767   : > { %11732 = vsyncadd (!%p10899_p2), %s9353_s21, 4294964224  ;;  %p18_p3 = scmp.ge.s32.totalorder %s11828_s11, 4   ;;  %s16222_s27 = smov %s11739_s28 }
0x1768   : > { %s16223_s28 = smov %s11743_s29  ;;  %s16224_s29 = smov %s11839_s14 }
0x1769   : > { %s16225_s30 = smov %s11828_s11  ;;  %20 = sbr.rel (!%p18_p3) target bundleno = 3 (0x3), region = 94 }
0x1770   :  { %9358 = vsyncpa [#allocation3], 1 }
0x1771   :  { %9360 = vsyncpa [#allocation3 + $0x1], 1 }

</bundles_post_ra>
